<compile_context>
chip_gen: v5e
topology: v5e:2x2
jax: 0.10.0
libtpu: 0.0.40
codegen_flags: <defaults>
</compile_context>

<pallas_src>
import functools
import math

import jax
import jax.numpy as jnp
import numpy as np
from jax.experimental import pallas as pl
from jax.experimental.pallas import tpu as pltpu


def _round_up(x, m):
    return ((x + m - 1) // m) * m


def _tpu_vmem_capacity_bytes():
    try:
        return int(pltpu.get_tpu_info().vmem_capacity_bytes)
    except Exception:
        return 64 * 1024 * 1024  # conservative (v7x-sized) fallback


# ----------------------------- Pallas kernel ------------------------------ #
def _lstm_layer_kernel(x_ref, wx_ref, wh_ref, b_ref,
                       out_ref, hn_ref, cn_ref,
                       gx_scr, h_scr, c_scr,
                       *, seq_len, mask_tail, unroll):
    """One LSTM layer. Grid: (batch_tiles [parallel], time_chunks [sequential]).

    x_ref  : (Tc, Bt, D)         input chunk (compute dtype, un-padded last dim)
    wx_ref : (D, 4*Hp)           W_ih^T, gate-padded (compute dtype)
    wh_ref : (Hp, 4*Hp)          W_hh^T, gate-padded (compute dtype)
    b_ref  : (1, 4*Hp)   f32     b_ih + b_hh, gate-padded
    out_ref: (Tc, Bt, Hp)        per-step hidden outputs for this chunk
    hn_ref : (1, Bt, Hp) f32     final hidden (resident block, written once)
    cn_ref : (1, Bt, Hp) f32     final cell   (resident block, written once)
    gx_scr : (Tc*Bt, 4*Hp) f32   hoisted input-projection gates (+ bias)
    h_scr  : (Bt, Hp)            recurrent hidden state (compute dtype)
    c_scr  : (Bt, Hp)    f32     recurrent cell state
    """
    t_blk = pl.program_id(1)
    n_t = pl.num_programs(1)
    Tc, Bt, D = x_ref.shape
    Hp = c_scr.shape[-1]

    @pl.when(t_blk == 0)
    def _init():
        h_scr[...] = jnp.zeros_like(h_scr)
        c_scr[...] = jnp.zeros_like(c_scr)

    # Hoisted, non-recurrent input projection for the whole time chunk:
    # one big well-shaped MXU matmul; bias folded in once per chunk (not per
    # timestep), so the unrolled loop carries no redundant broadcasts/adds.
    x_chunk = x_ref[...].reshape(Tc * Bt, D)
    gx_scr[...] = jnp.dot(x_chunk, wx_ref[...],
                          preferred_element_type=jnp.float32) + b_ref[...]

    def step(t, carry):
        row = pl.multiple_of(t * Bt, 8)
        gates = gx_scr[pl.ds(row, Bt), :] + jnp.dot(
            h_scr[...], wh_ref[...], preferred_element_type=jnp.float32)

        # PyTorch gate order i, f, g, o; each slice is 128-lane aligned (Hp%128==0).
        i = jax.nn.sigmoid(gates[:, 0 * Hp:1 * Hp])
        f = jax.nn.sigmoid(gates[:, 1 * Hp:2 * Hp])
        g = jnp.tanh(gates[:, 2 * Hp:3 * Hp])
        o = jax.nn.sigmoid(gates[:, 3 * Hp:4 * Hp])
        # TODO(synk): on v6e/v7x the gate elementwise math could run in bf16
        # (bf16 VPU/EUP) keeping only c_scr in f32; kept f32 here for v5e parity.

        c_new = f * c_scr[...] + i * g
        h_new = o * jnp.tanh(c_new)

        def commit():
            c_scr[...] = c_new
            h_scr[...] = h_new.astype(h_scr.dtype)
            out_ref[t] = h_new.astype(out_ref.dtype)

        if mask_tail:
            # Zero-padded tail timesteps must not advance the recurrent state.
            # Their out_ref rows are left unwritten (stale VMEM); the wrapper
            # strips them with outputs[:T] before returning.
            pl.when(t_blk * Tc + t < seq_len)(commit)
        else:
            commit()
        return carry

    jax.lax.fori_loop(0, Tc, step, 0, unroll=unroll)

    # Only write the resident final-state blocks once, on the last time chunk.
    @pl.when(t_blk == n_t - 1)
    def _final():
        hn_ref[0] = h_scr[...].astype(hn_ref.dtype)
        cn_ref[0] = c_scr[...].astype(cn_ref.dtype)


# ------------------------------ layer wrapper ------------------------------ #
def lstm_layer_pallas(x_tbd, w_ih, w_hh, b_ih, b_hh, *,
                      time_chunk=None, batch_tile=None,
                      compute_dtype=jnp.bfloat16, out_dtype=jnp.float32):
    """Run one LSTM layer over a time-major sequence x_tbd: (T, B, D).

    compute_dtype controls the MXU operand dtype (x, recurrent h, weights).
    Gate math, bias, and the cell state always stay float32.
    """
    T, B, D = x_tbd.shape
    H = w_hh.shape[1]
    assert w_ih.shape[0] == 4 * H

    cap = _tpu_vmem_capacity_bytes()
    big_vmem = cap >= 100 * 1024 * 1024            # 128 MiB parts vs v7x 64 MiB

    # ---- padded / tiled geometry ----
    Hp = _round_up(H, 128)                         # lane-aligned gate blocks
    if batch_tile is None:
        # v6e/v7x MXUs are 2x256x256: Bt=256 doubles utilisation of the
        # latency-critical recurrent dot when the batch is large enough.
        batch_tile = 256 if B >= 256 else 128
    Bt = min(_round_up(B, 8), batch_tile)          # sublane-aligned batch tile
    Bp = _round_up(B, Bt)
    n_b = Bp // Bt

    if time_chunk is None:
        time_chunk = 32 if big_vmem else 16        # amortise ~0.35us/grid-step
    # keep the hoisted-gates scratch (Tc*Bt, 4Hp) f32 within a VMEM budget
    gates_budget = (16 if big_vmem else 8) * 1024 * 1024
    max_tc = max(1, gates_budget // (Bt * 4 * Hp * 4))
    Tc = max(1, min(time_chunk, T, max_tc))
    n_t = pl.cdiv(T, Tc)
    T_pad = n_t * Tc
    mask_tail = (T_pad != T)

    # big Hp -> full unroll mostly adds vreg/spill pressure; partial unroll
    unroll = True if Hp <= 512 else min(Tc, 4)

    # ---- gate-padded weights: W_ih^T (D,4Hp), W_hh^T (Hp,4Hp), fused bias ----
    wx = jnp.zeros((D, 4 * Hp), jnp.float32)
    wh = jnp.zeros((Hp, 4 * Hp), jnp.float32)
    b_fused = jnp.zeros((1, 4 * Hp), jnp.float32)
    for g in range(4):
        wx = wx.at[:, g * Hp:g * Hp + H].set(
            w_ih[g * H:(g + 1) * H, :].T.astype(jnp.float32))
        wh = wh.at[:H, g * Hp:g * Hp + H].set(
            w_hh[g * H:(g + 1) * H, :].T.astype(jnp.float32))
        b_fused = b_fused.at[0, g * Hp:g * Hp + H].set(
            (b_ih[g * H:(g + 1) * H] + b_hh[g * H:(g + 1) * H]).astype(jnp.float32))
    wx = wx.astype(compute_dtype)
    wh = wh.astype(compute_dtype)
    # TODO(synk): for H >~ 2048 on v7x, additionally tile the 4*Hp gate dim of
    # W_hh^T and accumulate per timestep into a (Bt, 4Hp) gates scratch.

    # ---- padded input (T_pad, Bp, D): NO lane padding of the input dim ----
    xp = jnp.pad(x_tbd.astype(compute_dtype),
                 ((0, T_pad - T), (0, Bp - B), (0, 0)))

    kernel = functools.partial(_lstm_layer_kernel, seq_len=T,
                               mask_tail=mask_tail, unroll=unroll)
    out_shapes = (
        jax.ShapeDtypeStruct((T_pad, Bp, Hp), out_dtype),
        jax.ShapeDtypeStruct((1, Bp, Hp), jnp.float32),
        jax.ShapeDtypeStruct((1, Bp, Hp), jnp.float32),
    )
    vmem_limit = (100 if big_vmem else 48) * 1024 * 1024

    def _run(weight_mode):
        def const_spec(shape):
            if weight_mode is None:
                return pl.BlockSpec(shape, lambda b, t: (0, 0))
            return pl.BlockSpec(shape, lambda b, t: (0, 0),
                                pipeline_mode=weight_mode)

        grid_spec = pltpu.PrefetchScalarGridSpec(
            num_scalar_prefetch=0,
            grid=(n_b, n_t),
            in_specs=[
                pl.BlockSpec((Tc, Bt, D), lambda b, t: (t, b, 0)),   # x chunk
                const_spec((D, 4 * Hp)),                             # W_ih^T
                const_spec((Hp, 4 * Hp)),                            # W_hh^T
                const_spec((1, 4 * Hp)),                             # bias
            ],
            out_specs=[
                pl.BlockSpec((Tc, Bt, Hp), lambda b, t: (t, b, 0)),  # outputs
                pl.BlockSpec((1, Bt, Hp), lambda b, t: (0, b, 0)),   # h_n
                pl.BlockSpec((1, Bt, Hp), lambda b, t: (0, b, 0)),   # c_n
            ],
            scratch_shapes=[
                pltpu.VMEM((Tc * Bt, 4 * Hp), jnp.float32),          # gates_x
                pltpu.VMEM((Bt, Hp), compute_dtype),                 # h state
                pltpu.VMEM((Bt, Hp), jnp.float32),                   # c state
            ],
        )
        return pl.pallas_call(
            kernel,
            out_shape=out_shapes,
            grid_spec=grid_spec,
            compiler_params=pltpu.CompilerParams(
                # batch tiles independent (parallel); time chunks sequential.
                dimension_semantics=("parallel", "arbitrary"),
                vmem_limit_bytes=vmem_limit,
            ),
        )(xp, wx, wh, b_fused)

    try:
        # constant-index weight/bias blocks: single buffer, no wasted 2nd copy
        outputs, h_n, c_n = _run(pl.Buffered(1))
    except Exception:
        # stricter Pallas versions: fall back to default double buffering
        outputs, h_n, c_n = _run(None)

    # strip time/batch/gate padding
    return outputs[:T, :B, :H], h_n[0, :B, :H], c_n[0, :B, :H]


# --------------------------- Module equivalent ----------------------------- #
class StandardLSTMPallas:
    """JAX/Pallas equivalent of the PyTorch `StandardLSTM` module."""

    def __init__(self, input_size, hidden_size, num_layers=1, batch_first=True,
                 key=None, compute_dtype=jnp.bfloat16):
        assert batch_first, "only batch_first=True is implemented (as in the module)"
        self.input_size = input_size
        self.hidden_size = hidden_size
        self.num_layers = num_layers
        self.batch_first = batch_first
        self.compute_dtype = compute_dtype

        if key is None:
            key = jax.random.PRNGKey(0)
        k = 1.0 / math.sqrt(hidden_size)   # PyTorch nn.LSTM default init bound
        self.params = []
        for layer in range(num_layers):
            in_l = input_size if layer == 0 else hidden_size
            key, k1, k2, k3, k4 = jax.random.split(key, 5)
            w_ih = jax.random.uniform(k1, (4 * hidden_size, in_l),
                                      jnp.float32, -k, k)
            w_hh = jax.random.uniform(k2, (4 * hidden_size, hidden_size),
                                      jnp.float32, -k, k)
            b_ih = jax.random.uniform(k3, (4 * hidden_size,), jnp.float32, -k, k)
            b_hh = jax.random.uniform(k4, (4 * hidden_size,), jnp.float32, -k, k)
            self.params.append((w_ih, w_hh, b_ih, b_hh))

    def forward(self, x):
        # x: (B, T, input_size) — batch_first, matching PyTorch
        x_tbd = jnp.transpose(x, (1, 0, 2))                       # (T, B, D)
        h_last, c_last = [], []
        n_layers = len(self.params)
        for li, (w_ih, w_hh, b_ih, b_hh) in enumerate(self.params):
            # keep inter-layer activations in compute dtype (halves the HBM
            # round trip); final layer returns f32 like PyTorch.
            out_dtype = jnp.float32 if li == n_layers - 1 else self.compute_dtype
            x_tbd, h_n, c_n = lstm_layer_pallas(
                x_tbd, w_ih, w_hh, b_ih, b_hh,
                compute_dtype=self.compute_dtype, out_dtype=out_dtype)
            h_last.append(h_n)
            c_last.append(c_n)
        outputs = jnp.transpose(x_tbd, (1, 0, 2)).astype(jnp.float32)  # (B, T, H)
        h_n = jnp.stack(h_last, axis=0)                           # (L, B, H)
        c_n = jnp.stack(c_last, axis=0)                           # (L, B, H)
        return outputs, (h_n, c_n)

    def process_sequence(self, x):
        outputs, _ = self.forward(x)
        return outputs


# ------------------------- Pure-JAX reference ------------------------------ #
def _lstm_reference(x, params, hidden_size):
    """lax.scan reference of a multi-layer PyTorch LSTM (batch_first)."""
    B = x.shape[0]
    x_tbd = jnp.transpose(x, (1, 0, 2)).astype(jnp.float32)
    H = hidden_size
    h_all, c_all = [], []
    for (w_ih, w_hh, b_ih, b_hh) in params:
        def step(carry, x_t):
            h, c = carry
            gates = x_t @ w_ih.T + h @ w_hh.T + b_ih + b_hh
            i = jax.nn.sigmoid(gates[:, 0 * H:1 * H])
            f = jax.nn.sigmoid(gates[:, 1 * H:2 * H])
            g = jnp.tanh(gates[:, 2 * H:3 * H])
            o = jax.nn.sigmoid(gates[:, 3 * H:4 * H])
            c_new = f * c + i * g
            h_new = o * jnp.tanh(c_new)
            return (h_new, c_new), h_new

        init = (jnp.zeros((B, H), jnp.float32), jnp.zeros((B, H), jnp.float32))
        (h_f, c_f), x_tbd = jax.lax.scan(step, init, x_tbd)
        h_all.append(h_f)
        c_all.append(c_f)
    return (jnp.transpose(x_tbd, (1, 0, 2)),
            (jnp.stack(h_all, 0), jnp.stack(c_all, 0)))


# --------------------------------- main ------------------------------------ #
if __name__ == "__main__":
    batch, seq, input_size, hidden_size = 2, 8, 16, 32

    key = jax.random.PRNGKey(0)
    k_x, k_p1, k_p2 = jax.random.split(key, 3)
    x = jax.random.normal(k_x, (batch, seq, input_size), jnp.float32)

    # ---- strict check: f32 MXU path, 2 stacked layers ----
    model_f32 = StandardLSTMPallas(input_size, hidden_size, num_layers=2,
                                   batch_first=True, key=k_p1,
                                   compute_dtype=jnp.float32)
    outputs, (h_n, c_n) = model_f32.forward(x)
    jax.block_until_ready((outputs, h_n, c_n))

    assert outputs.shape == (batch, seq, hidden_size)
    assert h_n.shape == (2, batch, hidden_size)
    assert c_n.shape == (2, batch, hidden_size)

    ref_out, (ref_h, ref_c) = _lstm_reference(x, model_f32.params, hidden_size)
    np.testing.assert_allclose(np.asarray(outputs), np.asarray(ref_out),
                               rtol=1e-4, atol=1e-4)
    np.testing.assert_allclose(np.asarray(h_n), np.asarray(ref_h),
                               rtol=1e-4, atol=1e-4)
    np.testing.assert_allclose(np.asarray(c_n), np.asarray(ref_c),
                               rtol=1e-4, atol=1e-4)

    # ---- default bf16-MXU path (performance config), looser tolerance ----
    model_bf16 = StandardLSTMPallas(input_size, hidden_size, num_layers=1,
                                    batch_first=True, key=k_p2)
    out_bf, (h_bf, c_bf) = model_bf16.forward(x)
    jax.block_until_ready((out_bf, h_bf, c_bf))
    assert out_bf.shape == (batch, seq, hidden_size)

    ref_out_b, (ref_h_b, ref_c_b) = _lstm_reference(x, model_bf16.params,
                                                    hidden_size)
    np.testing.assert_allclose(np.asarray(out_bf), np.asarray(ref_out_b),
                               rtol=5e-2, atol=5e-2)
    np.testing.assert_allclose(np.asarray(h_bf), np.asarray(ref_h_b),
                               rtol=5e-2, atol=5e-2)
    np.testing.assert_allclose(np.asarray(c_bf), np.asarray(ref_c_b),
                               rtol=5e-2, atol=5e-2)

    print("KERNEL_OK")
</pallas_src>

<mosaic_0001>
module attributes {stable_mosaic.version = 11 : i64} {
  func.func @_lstm_layer_kernel(%arg0: i32, %arg1: i32, %arg2: memref<8x8x16xf32, #tpu.memory_space<vmem>>, %arg3: memref<16x512xf32, #tpu.memory_space<vmem>>, %arg4: memref<128x512xf32, #tpu.memory_space<vmem>>, %arg5: memref<1x512xf32, #tpu.memory_space<vmem>>, %arg6: memref<8x8x128xf32, #tpu.memory_space<vmem>>, %arg7: memref<1x8x128xf32, #tpu.memory_space<vmem>>, %arg8: memref<1x8x128xf32, #tpu.memory_space<vmem>>, %arg9: memref<64x512xf32, #tpu.memory_space<vmem>>, %arg10: memref<8x128xf32, #tpu.memory_space<vmem>>, %arg11: memref<8x128xf32, #tpu.memory_space<vmem>>) attributes {dimension_semantics = [#tpu.dimension_semantics<parallel>, #tpu.dimension_semantics<arbitrary>], iteration_bounds = array<i64: 1, 1>, scalar_prefetch = 0 : i64, scratch_operands = 3 : i64, tpu.core_type = #tpu.core_type<tc>, window_params = [{transform_indices = @transform_0, window_bounds = array<i64: 8, 8, 16>}, {pipeline_mode = #tpu.pipeline_mode<synchronous>, transform_indices = @transform_1, window_bounds = array<i64: 16, 512>}, {pipeline_mode = #tpu.pipeline_mode<synchronous>, transform_indices = @transform_2, window_bounds = array<i64: 128, 512>}, {pipeline_mode = #tpu.pipeline_mode<synchronous>, transform_indices = @transform_3, window_bounds = array<i64: 1, 512>}, {transform_indices = @transform_4, window_bounds = array<i64: 8, 8, 128>}, {transform_indices = @transform_5, window_bounds = array<i64: 1, 8, 128>}, {transform_indices = @transform_6, window_bounds = array<i64: 1, 8, 128>}]} {
    %c0_i32 = arith.constant 0 : i32
    %0 = arith.cmpi eq, %arg1, %c0_i32 : i32
    %1 = arith.extui %0 : i1 to i32
    %c0_i32_0 = arith.constant 0 : i32
    %2 = arith.cmpi ne, %1, %c0_i32_0 : i32
    scf.if %2 {
      %cst_156 = arith.constant 0.000000e+00 : f32
      %334 = vector.broadcast %cst_156 : f32 to vector<8x128xf32>
      %c0_157 = arith.constant 0 : index
      %c0_158 = arith.constant 0 : index
      %335 = vector.load %arg10[%c0_157, %c0_158] : memref<8x128xf32, #tpu.memory_space<vmem>>, vector<8x128xf32>
      tpu.vector_store %arg10[%c0_157, %c0_158], %334 {strides = array<i32>} : memref<8x128xf32, #tpu.memory_space<vmem>>, vector<8x128xf32>,
      %cst_159 = arith.constant 0.000000e+00 : f32
      %336 = vector.broadcast %cst_159 : f32 to vector<8x128xf32>
      %c0_160 = arith.constant 0 : index
      %c0_161 = arith.constant 0 : index
      %337 = vector.load %arg11[%c0_160, %c0_161] : memref<8x128xf32, #tpu.memory_space<vmem>>, vector<8x128xf32>
      tpu.vector_store %arg11[%c0_160, %c0_161], %336 {strides = array<i32>} : memref<8x128xf32, #tpu.memory_space<vmem>>, vector<8x128xf32>,
    } else {
    }
    %c0 = arith.constant 0 : index
    %c0_1 = arith.constant 0 : index
    %c0_2 = arith.constant 0 : index
    %3 = vector.load %arg2[%c0, %c0_1, %c0_2] : memref<8x8x16xf32, #tpu.memory_space<vmem>>, vector<8x8x16xf32>
    %4 = vector.shape_cast %3 : vector<8x8x16xf32> to vector<64x16xf32>
    %c0_3 = arith.constant 0 : index
    %c0_4 = arith.constant 0 : index
    %5 = vector.load %arg3[%c0_3, %c0_4] : memref<16x512xf32, #tpu.memory_space<vmem>>, vector<16x512xf32>
    %cst = arith.constant dense<0.000000e+00> : vector<64x512xf32>
    %6 = tpu.matmul %4, %5, %cst {dimension_numbers = #tpu.dot_dimension_numbers<[1], [0], [0], [1], [0, 0, 1, 1], [], []>} : vector<64x16xf32>, vector<16x512xf32>, vector<64x512xf32> -> vector<64x512xf32>
    %c0_5 = arith.constant 0 : index
    %c0_6 = arith.constant 0 : index
    %7 = vector.load %arg5[%c0_5, %c0_6] : memref<1x512xf32, #tpu.memory_space<vmem>>, vector<1x512xf32>
    %8 = vector.broadcast %7 : vector<1x512xf32> to vector<64x512xf32>
    %9 = arith.addf %6, %8 : vector<64x512xf32>
    %c0_7 = arith.constant 0 : index
    %c0_8 = arith.constant 0 : index
    %10 = vector.load %arg9[%c0_7, %c0_8] : memref<64x512xf32, #tpu.memory_space<vmem>>, vector<64x512xf32>
    tpu.vector_store %arg9[%c0_7, %c0_8], %9 {strides = array<i32>} : memref<64x512xf32, #tpu.memory_space<vmem>>, vector<64x512xf32>,
    %c0_i32_9 = arith.constant 0 : i32
    %c8_i32 = arith.constant 8 : i32
    %11 = arith.muli %c0_i32_9, %c8_i32 : i32
    %12 = tpu.assume_multiple %11, 8 : i32
    %13 = arith.index_cast %12 : i32 to index
    %c0_10 = arith.constant 0 : index
    %14 = vector.load %arg9[%13, %c0_10] : memref<64x512xf32, #tpu.memory_space<vmem>>, vector<8x512xf32>
    %c0_11 = arith.constant 0 : index
    %c0_12 = arith.constant 0 : index
    %15 = vector.load %arg10[%c0_11, %c0_12] : memref<8x128xf32, #tpu.memory_space<vmem>>, vector<8x128xf32>
    %c0_13 = arith.constant 0 : index
    %c0_14 = arith.constant 0 : index
    %16 = vector.load %arg4[%c0_13, %c0_14] : memref<128x512xf32, #tpu.memory_space<vmem>>, vector<128x512xf32>
    %cst_15 = arith.constant dense<0.000000e+00> : vector<8x512xf32>
    %17 = tpu.matmul %15, %16, %cst_15 {dimension_numbers = #tpu.dot_dimension_numbers<[1], [0], [0], [1], [0, 0, 1, 1], [], []>} : vector<8x128xf32>, vector<128x512xf32>, vector<8x512xf32> -> vector<8x512xf32>
    %18 = arith.addf %14, %17 : vector<8x512xf32>
    %19 = vector.extract_strided_slice %18 {offsets = [0, 0], sizes = [8, 128], strides = [1, 1]} : vector<8x512xf32> to vector<8x128xf32>
    %20 = arith.negf %19 : vector<8x128xf32>
    %21 = math.exp %20 : vector<8x128xf32>
    %cst_16 = arith.constant 1.000000e+00 : f32
    %22 = vector.broadcast %cst_16 : f32 to vector<8x128xf32>
    %23 = arith.addf %22, %21 : vector<8x128xf32>
    %24 = arith.divf %22, %23 : vector<8x128xf32>
    %25 = vector.extract_strided_slice %18 {offsets = [0, 128], sizes = [8, 128], strides = [1, 1]} : vector<8x512xf32> to vector<8x128xf32>
    %26 = arith.negf %25 : vector<8x128xf32>
    %27 = math.exp %26 : vector<8x128xf32>
    %cst_17 = arith.constant 1.000000e+00 : f32
    %28 = vector.broadcast %cst_17 : f32 to vector<8x128xf32>
    %29 = arith.addf %28, %27 : vector<8x128xf32>
    %30 = arith.divf %28, %29 : vector<8x128xf32>
    %31 = vector.extract_strided_slice %18 {offsets = [0, 256], sizes = [8, 128], strides = [1, 1]} : vector<8x512xf32> to vector<8x128xf32>
    %32 = math.tanh %31 : vector<8x128xf32>
    %33 = vector.extract_strided_slice %18 {offsets = [0, 384], sizes = [8, 128], strides = [1, 1]} : vector<8x512xf32> to vector<8x128xf32>
    %34 = arith.negf %33 : vector<8x128xf32>
    %35 = math.exp %34 : vector<8x128xf32>
    %cst_18 = arith.constant 1.000000e+00 : f32
    %36 = vector.broadcast %cst_18 : f32 to vector<8x128xf32>
    %37 = arith.addf %36, %35 : vector<8x128xf32>
    %38 = arith.divf %36, %37 : vector<8x128xf32>
    %c0_19 = arith.constant 0 : index
    %c0_20 = arith.constant 0 : index
    %39 = vector.load %arg11[%c0_19, %c0_20] : memref<8x128xf32, #tpu.memory_space<vmem>>, vector<8x128xf32>
    %40 = arith.mulf %30, %39 : vector<8x128xf32>
    %41 = arith.mulf %24, %32 : vector<8x128xf32>
    %42 = arith.addf %40, %41 : vector<8x128xf32>
    %43 = math.tanh %42 : vector<8x128xf32>
    %44 = arith.mulf %38, %43 : vector<8x128xf32>
    %c0_21 = arith.constant 0 : index
    %c0_22 = arith.constant 0 : index
    %45 = vector.load %arg11[%c0_21, %c0_22] : memref<8x128xf32, #tpu.memory_space<vmem>>, vector<8x128xf32>
    tpu.vector_store %arg11[%c0_21, %c0_22], %42 {strides = array<i32>} : memref<8x128xf32, #tpu.memory_space<vmem>>, vector<8x128xf32>,
    %c0_23 = arith.constant 0 : index
    %c0_24 = arith.constant 0 : index
    %46 = vector.load %arg10[%c0_23, %c0_24] : memref<8x128xf32, #tpu.memory_space<vmem>>, vector<8x128xf32>
    tpu.vector_store %arg10[%c0_23, %c0_24], %44 {strides = array<i32>} : memref<8x128xf32, #tpu.memory_space<vmem>>, vector<8x128xf32>,
    %47 = arith.index_cast %c0_i32_9 : i32 to index
    %c0_25 = arith.constant 0 : index
    %c0_26 = arith.constant 0 : index
    %48 = vector.load %arg6[%47, %c0_25, %c0_26] : memref<8x8x128xf32, #tpu.memory_space<vmem>>, vector<1x8x128xf32>
    %49 = vector.shape_cast %48 : vector<1x8x128xf32> to vector<8x128xf32>
    %50 = vector.shape_cast %44 : vector<8x128xf32> to vector<1x8x128xf32>
    tpu.vector_store %arg6[%47, %c0_25, %c0_26], %50 {strides = array<i32>} : memref<8x8x128xf32, #tpu.memory_space<vmem>>, vector<1x8x128xf32>,
    %c1_i32 = arith.constant 1 : i32
    %c8_i32_27 = arith.constant 8 : i32
    %51 = arith.muli %c1_i32, %c8_i32_27 : i32
    %52 = tpu.assume_multiple %51, 8 : i32
    %53 = arith.index_cast %52 : i32 to index
    %c0_28 = arith.constant 0 : index
    %54 = vector.load %arg9[%53, %c0_28] : memref<64x512xf32, #tpu.memory_space<vmem>>, vector<8x512xf32>
    %c0_29 = arith.constant 0 : index
    %c0_30 = arith.constant 0 : index
    %55 = vector.load %arg10[%c0_29, %c0_30] : memref<8x128xf32, #tpu.memory_space<vmem>>, vector<8x128xf32>
    %c0_31 = arith.constant 0 : index
    %c0_32 = arith.constant 0 : index
    %56 = vector.load %arg4[%c0_31, %c0_32] : memref<128x512xf32, #tpu.memory_space<vmem>>, vector<128x512xf32>
    %cst_33 = arith.constant dense<0.000000e+00> : vector<8x512xf32>
    %57 = tpu.matmul %55, %56, %cst_33 {dimension_numbers = #tpu.dot_dimension_numbers<[1], [0], [0], [1], [0, 0, 1, 1], [], []>} : vector<8x128xf32>, vector<128x512xf32>, vector<8x512xf32> -> vector<8x512xf32>
    %58 = arith.addf %54, %57 : vector<8x512xf32>
    %59 = vector.extract_strided_slice %58 {offsets = [0, 0], sizes = [8, 128], strides = [1, 1]} : vector<8x512xf32> to vector<8x128xf32>
    %60 = arith.negf %59 : vector<8x128xf32>
    %61 = math.exp %60 : vector<8x128xf32>
    %cst_34 = arith.constant 1.000000e+00 : f32
    %62 = vector.broadcast %cst_34 : f32 to vector<8x128xf32>
    %63 = arith.addf %62, %61 : vector<8x128xf32>
    %64 = arith.divf %62, %63 : vector<8x128xf32>
    %65 = vector.extract_strided_slice %58 {offsets = [0, 128], sizes = [8, 128], strides = [1, 1]} : vector<8x512xf32> to vector<8x128xf32>
    %66 = arith.negf %65 : vector<8x128xf32>
    %67 = math.exp %66 : vector<8x128xf32>
    %cst_35 = arith.constant 1.000000e+00 : f32
    %68 = vector.broadcast %cst_35 : f32 to vector<8x128xf32>
    %69 = arith.addf %68, %67 : vector<8x128xf32>
    %70 = arith.divf %68, %69 : vector<8x128xf32>
    %71 = vector.extract_strided_slice %58 {offsets = [0, 256], sizes = [8, 128], strides = [1, 1]} : vector<8x512xf32> to vector<8x128xf32>
    %72 = math.tanh %71 : vector<8x128xf32>
    %73 = vector.extract_strided_slice %58 {offsets = [0, 384], sizes = [8, 128], strides = [1, 1]} : vector<8x512xf32> to vector<8x128xf32>
    %74 = arith.negf %73 : vector<8x128xf32>
    %75 = math.exp %74 : vector<8x128xf32>
    %cst_36 = arith.constant 1.000000e+00 : f32
    %76 = vector.broadcast %cst_36 : f32 to vector<8x128xf32>
    %77 = arith.addf %76, %75 : vector<8x128xf32>
    %78 = arith.divf %76, %77 : vector<8x128xf32>
    %c0_37 = arith.constant 0 : index
    %c0_38 = arith.constant 0 : index
    %79 = vector.load %arg11[%c0_37, %c0_38] : memref<8x128xf32, #tpu.memory_space<vmem>>, vector<8x128xf32>
    %80 = arith.mulf %70, %79 : vector<8x128xf32>
    %81 = arith.mulf %64, %72 : vector<8x128xf32>
    %82 = arith.addf %80, %81 : vector<8x128xf32>
    %83 = math.tanh %82 : vector<8x128xf32>
    %84 = arith.mulf %78, %83 : vector<8x128xf32>
    %c0_39 = arith.constant 0 : index
    %c0_40 = arith.constant 0 : index
    %85 = vector.load %arg11[%c0_39, %c0_40] : memref<8x128xf32, #tpu.memory_space<vmem>>, vector<8x128xf32>
    tpu.vector_store %arg11[%c0_39, %c0_40], %82 {strides = array<i32>} : memref<8x128xf32, #tpu.memory_space<vmem>>, vector<8x128xf32>,
    %c0_41 = arith.constant 0 : index
    %c0_42 = arith.constant 0 : index
    %86 = vector.load %arg10[%c0_41, %c0_42] : memref<8x128xf32, #tpu.memory_space<vmem>>, vector<8x128xf32>
    tpu.vector_store %arg10[%c0_41, %c0_42], %84 {strides = array<i32>} : memref<8x128xf32, #tpu.memory_space<vmem>>, vector<8x128xf32>,
    %87 = arith.index_cast %c1_i32 : i32 to index
    %c0_43 = arith.constant 0 : index
    %c0_44 = arith.constant 0 : index
    %88 = vector.load %arg6[%87, %c0_43, %c0_44] : memref<8x8x128xf32, #tpu.memory_space<vmem>>, vector<1x8x128xf32>
    %89 = vector.shape_cast %88 : vector<1x8x128xf32> to vector<8x128xf32>
    %90 = vector.shape_cast %84 : vector<8x128xf32> to vector<1x8x128xf32>
    tpu.vector_store %arg6[%87, %c0_43, %c0_44], %90 {strides = array<i32>} : memref<8x8x128xf32, #tpu.memory_space<vmem>>, vector<1x8x128xf32>,
    %c2_i32 = arith.constant 2 : i32
    %c8_i32_45 = arith.constant 8 : i32
    %91 = arith.muli %c2_i32, %c8_i32_45 : i32
    %92 = tpu.assume_multiple %91, 8 : i32
    %93 = arith.index_cast %92 : i32 to index
    %c0_46 = arith.constant 0 : index
    %94 = vector.load %arg9[%93, %c0_46] : memref<64x512xf32, #tpu.memory_space<vmem>>, vector<8x512xf32>
    %c0_47 = arith.constant 0 : index
    %c0_48 = arith.constant 0 : index
    %95 = vector.load %arg10[%c0_47, %c0_48] : memref<8x128xf32, #tpu.memory_space<vmem>>, vector<8x128xf32>
    %c0_49 = arith.constant 0 : index
    %c0_50 = arith.constant 0 : index
    %96 = vector.load %arg4[%c0_49, %c0_50] : memref<128x512xf32, #tpu.memory_space<vmem>>, vector<128x512xf32>
    %cst_51 = arith.constant dense<0.000000e+00> : vector<8x512xf32>
    %97 = tpu.matmul %95, %96, %cst_51 {dimension_numbers = #tpu.dot_dimension_numbers<[1], [0], [0], [1], [0, 0, 1, 1], [], []>} : vector<8x128xf32>, vector<128x512xf32>, vector<8x512xf32> -> vector<8x512xf32>
    %98 = arith.addf %94, %97 : vector<8x512xf32>
    %99 = vector.extract_strided_slice %98 {offsets = [0, 0], sizes = [8, 128], strides = [1, 1]} : vector<8x512xf32> to vector<8x128xf32>
    %100 = arith.negf %99 : vector<8x128xf32>
    %101 = math.exp %100 : vector<8x128xf32>
    %cst_52 = arith.constant 1.000000e+00 : f32
    %102 = vector.broadcast %cst_52 : f32 to vector<8x128xf32>
    %103 = arith.addf %102, %101 : vector<8x128xf32>
    %104 = arith.divf %102, %103 : vector<8x128xf32>
    %105 = vector.extract_strided_slice %98 {offsets = [0, 128], sizes = [8, 128], strides = [1, 1]} : vector<8x512xf32> to vector<8x128xf32>
    %106 = arith.negf %105 : vector<8x128xf32>
    %107 = math.exp %106 : vector<8x128xf32>
    %cst_53 = arith.constant 1.000000e+00 : f32
    %108 = vector.broadcast %cst_53 : f32 to vector<8x128xf32>
    %109 = arith.addf %108, %107 : vector<8x128xf32>
    %110 = arith.divf %108, %109 : vector<8x128xf32>
    %111 = vector.extract_strided_slice %98 {offsets = [0, 256], sizes = [8, 128], strides = [1, 1]} : vector<8x512xf32> to vector<8x128xf32>
    %112 = math.tanh %111 : vector<8x128xf32>
    %113 = vector.extract_strided_slice %98 {offsets = [0, 384], sizes = [8, 128], strides = [1, 1]} : vector<8x512xf32> to vector<8x128xf32>
    %114 = arith.negf %113 : vector<8x128xf32>
    %115 = math.exp %114 : vector<8x128xf32>
    %cst_54 = arith.constant 1.000000e+00 : f32
    %116 = vector.broadcast %cst_54 : f32 to vector<8x128xf32>
    %117 = arith.addf %116, %115 : vector<8x128xf32>
    %118 = arith.divf %116, %117 : vector<8x128xf32>
    %c0_55 = arith.constant 0 : index
    %c0_56 = arith.constant 0 : index
    %119 = vector.load %arg11[%c0_55, %c0_56] : memref<8x128xf32, #tpu.memory_space<vmem>>, vector<8x128xf32>
    %120 = arith.mulf %110, %119 : vector<8x128xf32>
    %121 = arith.mulf %104, %112 : vector<8x128xf32>
    %122 = arith.addf %120, %121 : vector<8x128xf32>
    %123 = math.tanh %122 : vector<8x128xf32>
    %124 = arith.mulf %118, %123 : vector<8x128xf32>
    %c0_57 = arith.constant 0 : index
    %c0_58 = arith.constant 0 : index
    %125 = vector.load %arg11[%c0_57, %c0_58] : memref<8x128xf32, #tpu.memory_space<vmem>>, vector<8x128xf32>
    tpu.vector_store %arg11[%c0_57, %c0_58], %122 {strides = array<i32>} : memref<8x128xf32, #tpu.memory_space<vmem>>, vector<8x128xf32>,
    %c0_59 = arith.constant 0 : index
    %c0_60 = arith.constant 0 : index
    %126 = vector.load %arg10[%c0_59, %c0_60] : memref<8x128xf32, #tpu.memory_space<vmem>>, vector<8x128xf32>
    tpu.vector_store %arg10[%c0_59, %c0_60], %124 {strides = array<i32>} : memref<8x128xf32, #tpu.memory_space<vmem>>, vector<8x128xf32>,
    %127 = arith.index_cast %c2_i32 : i32 to index
    %c0_61 = arith.constant 0 : index
    %c0_62 = arith.constant 0 : index
    %128 = vector.load %arg6[%127, %c0_61, %c0_62] : memref<8x8x128xf32, #tpu.memory_space<vmem>>, vector<1x8x128xf32>
    %129 = vector.shape_cast %128 : vector<1x8x128xf32> to vector<8x128xf32>
    %130 = vector.shape_cast %124 : vector<8x128xf32> to vector<1x8x128xf32>
    tpu.vector_store %arg6[%127, %c0_61, %c0_62], %130 {strides = array<i32>} : memref<8x8x128xf32, #tpu.memory_space<vmem>>, vector<1x8x128xf32>,
    %c3_i32 = arith.constant 3 : i32
    %c8_i32_63 = arith.constant 8 : i32
    %131 = arith.muli %c3_i32, %c8_i32_63 : i32
    %132 = tpu.assume_multiple %131, 8 : i32
    %133 = arith.index_cast %132 : i32 to index
    %c0_64 = arith.constant 0 : index
    %134 = vector.load %arg9[%133, %c0_64] : memref<64x512xf32, #tpu.memory_space<vmem>>, vector<8x512xf32>
    %c0_65 = arith.constant 0 : index
    %c0_66 = arith.constant 0 : index
    %135 = vector.load %arg10[%c0_65, %c0_66] : memref<8x128xf32, #tpu.memory_space<vmem>>, vector<8x128xf32>
    %c0_67 = arith.constant 0 : index
    %c0_68 = arith.constant 0 : index
    %136 = vector.load %arg4[%c0_67, %c0_68] : memref<128x512xf32, #tpu.memory_space<vmem>>, vector<128x512xf32>
    %cst_69 = arith.constant dense<0.000000e+00> : vector<8x512xf32>
    %137 = tpu.matmul %135, %136, %cst_69 {dimension_numbers = #tpu.dot_dimension_numbers<[1], [0], [0], [1], [0, 0, 1, 1], [], []>} : vector<8x128xf32>, vector<128x512xf32>, vector<8x512xf32> -> vector<8x512xf32>
    %138 = arith.addf %134, %137 : vector<8x512xf32>
    %139 = vector.extract_strided_slice %138 {offsets = [0, 0], sizes = [8, 128], strides = [1, 1]} : vector<8x512xf32> to vector<8x128xf32>
    %140 = arith.negf %139 : vector<8x128xf32>
    %141 = math.exp %140 : vector<8x128xf32>
    %cst_70 = arith.constant 1.000000e+00 : f32
    %142 = vector.broadcast %cst_70 : f32 to vector<8x128xf32>
    %143 = arith.addf %142, %141 : vector<8x128xf32>
    %144 = arith.divf %142, %143 : vector<8x128xf32>
    %145 = vector.extract_strided_slice %138 {offsets = [0, 128], sizes = [8, 128], strides = [1, 1]} : vector<8x512xf32> to vector<8x128xf32>
    %146 = arith.negf %145 : vector<8x128xf32>
    %147 = math.exp %146 : vector<8x128xf32>
    %cst_71 = arith.constant 1.000000e+00 : f32
    %148 = vector.broadcast %cst_71 : f32 to vector<8x128xf32>
    %149 = arith.addf %148, %147 : vector<8x128xf32>
    %150 = arith.divf %148, %149 : vector<8x128xf32>
    %151 = vector.extract_strided_slice %138 {offsets = [0, 256], sizes = [8, 128], strides = [1, 1]} : vector<8x512xf32> to vector<8x128xf32>
    %152 = math.tanh %151 : vector<8x128xf32>
    %153 = vector.extract_strided_slice %138 {offsets = [0, 384], sizes = [8, 128], strides = [1, 1]} : vector<8x512xf32> to vector<8x128xf32>
    %154 = arith.negf %153 : vector<8x128xf32>
    %155 = math.exp %154 : vector<8x128xf32>
    %cst_72 = arith.constant 1.000000e+00 : f32
    %156 = vector.broadcast %cst_72 : f32 to vector<8x128xf32>
    %157 = arith.addf %156, %155 : vector<8x128xf32>
    %158 = arith.divf %156, %157 : vector<8x128xf32>
    %c0_73 = arith.constant 0 : index
    %c0_74 = arith.constant 0 : index
    %159 = vector.load %arg11[%c0_73, %c0_74] : memref<8x128xf32, #tpu.memory_space<vmem>>, vector<8x128xf32>
    %160 = arith.mulf %150, %159 : vector<8x128xf32>
    %161 = arith.mulf %144, %152 : vector<8x128xf32>
    %162 = arith.addf %160, %161 : vector<8x128xf32>
    %163 = math.tanh %162 : vector<8x128xf32>
    %164 = arith.mulf %158, %163 : vector<8x128xf32>
    %c0_75 = arith.constant 0 : index
    %c0_76 = arith.constant 0 : index
    %165 = vector.load %arg11[%c0_75, %c0_76] : memref<8x128xf32, #tpu.memory_space<vmem>>, vector<8x128xf32>
    tpu.vector_store %arg11[%c0_75, %c0_76], %162 {strides = array<i32>} : memref<8x128xf32, #tpu.memory_space<vmem>>, vector<8x128xf32>,
    %c0_77 = arith.constant 0 : index
    %c0_78 = arith.constant 0 : index
    %166 = vector.load %arg10[%c0_77, %c0_78] : memref<8x128xf32, #tpu.memory_space<vmem>>, vector<8x128xf32>
    tpu.vector_store %arg10[%c0_77, %c0_78], %164 {strides = array<i32>} : memref<8x128xf32, #tpu.memory_space<vmem>>, vector<8x128xf32>,
    %167 = arith.index_cast %c3_i32 : i32 to index
    %c0_79 = arith.constant 0 : index
    %c0_80 = arith.constant 0 : index
    %168 = vector.load %arg6[%167, %c0_79, %c0_80] : memref<8x8x128xf32, #tpu.memory_space<vmem>>, vector<1x8x128xf32>
    %169 = vector.shape_cast %168 : vector<1x8x128xf32> to vector<8x128xf32>
    %170 = vector.shape_cast %164 : vector<8x128xf32> to vector<1x8x128xf32>
    tpu.vector_store %arg6[%167, %c0_79, %c0_80], %170 {strides = array<i32>} : memref<8x8x128xf32, #tpu.memory_space<vmem>>, vector<1x8x128xf32>,
    %c4_i32 = arith.constant 4 : i32
    %c8_i32_81 = arith.constant 8 : i32
    %171 = arith.muli %c4_i32, %c8_i32_81 : i32
    %172 = tpu.assume_multiple %171, 8 : i32
    %173 = arith.index_cast %172 : i32 to index
    %c0_82 = arith.constant 0 : index
    %174 = vector.load %arg9[%173, %c0_82] : memref<64x512xf32, #tpu.memory_space<vmem>>, vector<8x512xf32>
    %c0_83 = arith.constant 0 : index
    %c0_84 = arith.constant 0 : index
    %175 = vector.load %arg10[%c0_83, %c0_84] : memref<8x128xf32, #tpu.memory_space<vmem>>, vector<8x128xf32>
    %c0_85 = arith.constant 0 : index
    %c0_86 = arith.constant 0 : index
    %176 = vector.load %arg4[%c0_85, %c0_86] : memref<128x512xf32, #tpu.memory_space<vmem>>, vector<128x512xf32>
    %cst_87 = arith.constant dense<0.000000e+00> : vector<8x512xf32>
    %177 = tpu.matmul %175, %176, %cst_87 {dimension_numbers = #tpu.dot_dimension_numbers<[1], [0], [0], [1], [0, 0, 1, 1], [], []>} : vector<8x128xf32>, vector<128x512xf32>, vector<8x512xf32> -> vector<8x512xf32>
    %178 = arith.addf %174, %177 : vector<8x512xf32>
    %179 = vector.extract_strided_slice %178 {offsets = [0, 0], sizes = [8, 128], strides = [1, 1]} : vector<8x512xf32> to vector<8x128xf32>
    %180 = arith.negf %179 : vector<8x128xf32>
    %181 = math.exp %180 : vector<8x128xf32>
    %cst_88 = arith.constant 1.000000e+00 : f32
    %182 = vector.broadcast %cst_88 : f32 to vector<8x128xf32>
    %183 = arith.addf %182, %181 : vector<8x128xf32>
    %184 = arith.divf %182, %183 : vector<8x128xf32>
    %185 = vector.extract_strided_slice %178 {offsets = [0, 128], sizes = [8, 128], strides = [1, 1]} : vector<8x512xf32> to vector<8x128xf32>
    %186 = arith.negf %185 : vector<8x128xf32>
    %187 = math.exp %186 : vector<8x128xf32>
    %cst_89 = arith.constant 1.000000e+00 : f32
    %188 = vector.broadcast %cst_89 : f32 to vector<8x128xf32>
    %189 = arith.addf %188, %187 : vector<8x128xf32>
    %190 = arith.divf %188, %189 : vector<8x128xf32>
    %191 = vector.extract_strided_slice %178 {offsets = [0, 256], sizes = [8, 128], strides = [1, 1]} : vector<8x512xf32> to vector<8x128xf32>
    %192 = math.tanh %191 : vector<8x128xf32>
    %193 = vector.extract_strided_slice %178 {offsets = [0, 384], sizes = [8, 128], strides = [1, 1]} : vector<8x512xf32> to vector<8x128xf32>
    %194 = arith.negf %193 : vector<8x128xf32>
    %195 = math.exp %194 : vector<8x128xf32>
    %cst_90 = arith.constant 1.000000e+00 : f32
    %196 = vector.broadcast %cst_90 : f32 to vector<8x128xf32>
    %197 = arith.addf %196, %195 : vector<8x128xf32>
    %198 = arith.divf %196, %197 : vector<8x128xf32>
    %c0_91 = arith.constant 0 : index
    %c0_92 = arith.constant 0 : index
    %199 = vector.load %arg11[%c0_91, %c0_92] : memref<8x128xf32, #tpu.memory_space<vmem>>, vector<8x128xf32>
    %200 = arith.mulf %190, %199 : vector<8x128xf32>
    %201 = arith.mulf %184, %192 : vector<8x128xf32>
    %202 = arith.addf %200, %201 : vector<8x128xf32>
    %203 = math.tanh %202 : vector<8x128xf32>
    %204 = arith.mulf %198, %203 : vector<8x128xf32>
    %c0_93 = arith.constant 0 : index
    %c0_94 = arith.constant 0 : index
    %205 = vector.load %arg11[%c0_93, %c0_94] : memref<8x128xf32, #tpu.memory_space<vmem>>, vector<8x128xf32>
    tpu.vector_store %arg11[%c0_93, %c0_94], %202 {strides = array<i32>} : memref<8x128xf32, #tpu.memory_space<vmem>>, vector<8x128xf32>,
    %c0_95 = arith.constant 0 : index
    %c0_96 = arith.constant 0 : index
    %206 = vector.load %arg10[%c0_95, %c0_96] : memref<8x128xf32, #tpu.memory_space<vmem>>, vector<8x128xf32>
    tpu.vector_store %arg10[%c0_95, %c0_96], %204 {strides = array<i32>} : memref<8x128xf32, #tpu.memory_space<vmem>>, vector<8x128xf32>,
    %207 = arith.index_cast %c4_i32 : i32 to index
    %c0_97 = arith.constant 0 : index
    %c0_98 = arith.constant 0 : index
    %208 = vector.load %arg6[%207, %c0_97, %c0_98] : memref<8x8x128xf32, #tpu.memory_space<vmem>>, vector<1x8x128xf32>
    %209 = vector.shape_cast %208 : vector<1x8x128xf32> to vector<8x128xf32>
    %210 = vector.shape_cast %204 : vector<8x128xf32> to vector<1x8x128xf32>
    tpu.vector_store %arg6[%207, %c0_97, %c0_98], %210 {strides = array<i32>} : memref<8x8x128xf32, #tpu.memory_space<vmem>>, vector<1x8x128xf32>,
    %c5_i32 = arith.constant 5 : i32
    %c8_i32_99 = arith.constant 8 : i32
    %211 = arith.muli %c5_i32, %c8_i32_99 : i32
    %212 = tpu.assume_multiple %211, 8 : i32
    %213 = arith.index_cast %212 : i32 to index
    %c0_100 = arith.constant 0 : index
    %214 = vector.load %arg9[%213, %c0_100] : memref<64x512xf32, #tpu.memory_space<vmem>>, vector<8x512xf32>
    %c0_101 = arith.constant 0 : index
    %c0_102 = arith.constant 0 : index
    %215 = vector.load %arg10[%c0_101, %c0_102] : memref<8x128xf32, #tpu.memory_space<vmem>>, vector<8x128xf32>
    %c0_103 = arith.constant 0 : index
    %c0_104 = arith.constant 0 : index
    %216 = vector.load %arg4[%c0_103, %c0_104] : memref<128x512xf32, #tpu.memory_space<vmem>>, vector<128x512xf32>
    %cst_105 = arith.constant dense<0.000000e+00> : vector<8x512xf32>
    %217 = tpu.matmul %215, %216, %cst_105 {dimension_numbers = #tpu.dot_dimension_numbers<[1], [0], [0], [1], [0, 0, 1, 1], [], []>} : vector<8x128xf32>, vector<128x512xf32>, vector<8x512xf32> -> vector<8x512xf32>
    %218 = arith.addf %214, %217 : vector<8x512xf32>
    %219 = vector.extract_strided_slice %218 {offsets = [0, 0], sizes = [8, 128], strides = [1, 1]} : vector<8x512xf32> to vector<8x128xf32>
    %220 = arith.negf %219 : vector<8x128xf32>
    %221 = math.exp %220 : vector<8x128xf32>
    %cst_106 = arith.constant 1.000000e+00 : f32
    %222 = vector.broadcast %cst_106 : f32 to vector<8x128xf32>
    %223 = arith.addf %222, %221 : vector<8x128xf32>
    %224 = arith.divf %222, %223 : vector<8x128xf32>
    %225 = vector.extract_strided_slice %218 {offsets = [0, 128], sizes = [8, 128], strides = [1, 1]} : vector<8x512xf32> to vector<8x128xf32>
    %226 = arith.negf %225 : vector<8x128xf32>
    %227 = math.exp %226 : vector<8x128xf32>
    %cst_107 = arith.constant 1.000000e+00 : f32
    %228 = vector.broadcast %cst_107 : f32 to vector<8x128xf32>
    %229 = arith.addf %228, %227 : vector<8x128xf32>
    %230 = arith.divf %228, %229 : vector<8x128xf32>
    %231 = vector.extract_strided_slice %218 {offsets = [0, 256], sizes = [8, 128], strides = [1, 1]} : vector<8x512xf32> to vector<8x128xf32>
    %232 = math.tanh %231 : vector<8x128xf32>
    %233 = vector.extract_strided_slice %218 {offsets = [0, 384], sizes = [8, 128], strides = [1, 1]} : vector<8x512xf32> to vector<8x128xf32>
    %234 = arith.negf %233 : vector<8x128xf32>
    %235 = math.exp %234 : vector<8x128xf32>
    %cst_108 = arith.constant 1.000000e+00 : f32
    %236 = vector.broadcast %cst_108 : f32 to vector<8x128xf32>
    %237 = arith.addf %236, %235 : vector<8x128xf32>
    %238 = arith.divf %236, %237 : vector<8x128xf32>
    %c0_109 = arith.constant 0 : index
    %c0_110 = arith.constant 0 : index
    %239 = vector.load %arg11[%c0_109, %c0_110] : memref<8x128xf32, #tpu.memory_space<vmem>>, vector<8x128xf32>
    %240 = arith.mulf %230, %239 : vector<8x128xf32>
    %241 = arith.mulf %224, %232 : vector<8x128xf32>
    %242 = arith.addf %240, %241 : vector<8x128xf32>
    %243 = math.tanh %242 : vector<8x128xf32>
    %244 = arith.mulf %238, %243 : vector<8x128xf32>
    %c0_111 = arith.constant 0 : index
    %c0_112 = arith.constant 0 : index
    %245 = vector.load %arg11[%c0_111, %c0_112] : memref<8x128xf32, #tpu.memory_space<vmem>>, vector<8x128xf32>
    tpu.vector_store %arg11[%c0_111, %c0_112], %242 {strides = array<i32>} : memref<8x128xf32, #tpu.memory_space<vmem>>, vector<8x128xf32>,
    %c0_113 = arith.constant 0 : index
    %c0_114 = arith.constant 0 : index
    %246 = vector.load %arg10[%c0_113, %c0_114] : memref<8x128xf32, #tpu.memory_space<vmem>>, vector<8x128xf32>
    tpu.vector_store %arg10[%c0_113, %c0_114], %244 {strides = array<i32>} : memref<8x128xf32, #tpu.memory_space<vmem>>, vector<8x128xf32>,
    %247 = arith.index_cast %c5_i32 : i32 to index
    %c0_115 = arith.constant 0 : index
    %c0_116 = arith.constant 0 : index
    %248 = vector.load %arg6[%247, %c0_115, %c0_116] : memref<8x8x128xf32, #tpu.memory_space<vmem>>, vector<1x8x128xf32>
    %249 = vector.shape_cast %248 : vector<1x8x128xf32> to vector<8x128xf32>
    %250 = vector.shape_cast %244 : vector<8x128xf32> to vector<1x8x128xf32>
    tpu.vector_store %arg6[%247, %c0_115, %c0_116], %250 {strides = array<i32>} : memref<8x8x128xf32, #tpu.memory_space<vmem>>, vector<1x8x128xf32>,
    %c6_i32 = arith.constant 6 : i32
    %c8_i32_117 = arith.constant 8 : i32
    %251 = arith.muli %c6_i32, %c8_i32_117 : i32
    %252 = tpu.assume_multiple %251, 8 : i32
    %253 = arith.index_cast %252 : i32 to index
    %c0_118 = arith.constant 0 : index
    %254 = vector.load %arg9[%253, %c0_118] : memref<64x512xf32, #tpu.memory_space<vmem>>, vector<8x512xf32>
    %c0_119 = arith.constant 0 : index
    %c0_120 = arith.constant 0 : index
    %255 = vector.load %arg10[%c0_119, %c0_120] : memref<8x128xf32, #tpu.memory_space<vmem>>, vector<8x128xf32>
    %c0_121 = arith.constant 0 : index
    %c0_122 = arith.constant 0 : index
    %256 = vector.load %arg4[%c0_121, %c0_122] : memref<128x512xf32, #tpu.memory_space<vmem>>, vector<128x512xf32>
    %cst_123 = arith.constant dense<0.000000e+00> : vector<8x512xf32>
    %257 = tpu.matmul %255, %256, %cst_123 {dimension_numbers = #tpu.dot_dimension_numbers<[1], [0], [0], [1], [0, 0, 1, 1], [], []>} : vector<8x128xf32>, vector<128x512xf32>, vector<8x512xf32> -> vector<8x512xf32>
    %258 = arith.addf %254, %257 : vector<8x512xf32>
    %259 = vector.extract_strided_slice %258 {offsets = [0, 0], sizes = [8, 128], strides = [1, 1]} : vector<8x512xf32> to vector<8x128xf32>
    %260 = arith.negf %259 : vector<8x128xf32>
    %261 = math.exp %260 : vector<8x128xf32>
    %cst_124 = arith.constant 1.000000e+00 : f32
    %262 = vector.broadcast %cst_124 : f32 to vector<8x128xf32>
    %263 = arith.addf %262, %261 : vector<8x128xf32>
    %264 = arith.divf %262, %263 : vector<8x128xf32>
    %265 = vector.extract_strided_slice %258 {offsets = [0, 128], sizes = [8, 128], strides = [1, 1]} : vector<8x512xf32> to vector<8x128xf32>
    %266 = arith.negf %265 : vector<8x128xf32>
    %267 = math.exp %266 : vector<8x128xf32>
    %cst_125 = arith.constant 1.000000e+00 : f32
    %268 = vector.broadcast %cst_125 : f32 to vector<8x128xf32>
    %269 = arith.addf %268, %267 : vector<8x128xf32>
    %270 = arith.divf %268, %269 : vector<8x128xf32>
    %271 = vector.extract_strided_slice %258 {offsets = [0, 256], sizes = [8, 128], strides = [1, 1]} : vector<8x512xf32> to vector<8x128xf32>
    %272 = math.tanh %271 : vector<8x128xf32>
    %273 = vector.extract_strided_slice %258 {offsets = [0, 384], sizes = [8, 128], strides = [1, 1]} : vector<8x512xf32> to vector<8x128xf32>
    %274 = arith.negf %273 : vector<8x128xf32>
    %275 = math.exp %274 : vector<8x128xf32>
    %cst_126 = arith.constant 1.000000e+00 : f32
    %276 = vector.broadcast %cst_126 : f32 to vector<8x128xf32>
    %277 = arith.addf %276, %275 : vector<8x128xf32>
    %278 = arith.divf %276, %277 : vector<8x128xf32>
    %c0_127 = arith.constant 0 : index
    %c0_128 = arith.constant 0 : index
    %279 = vector.load %arg11[%c0_127, %c0_128] : memref<8x128xf32, #tpu.memory_space<vmem>>, vector<8x128xf32>
    %280 = arith.mulf %270, %279 : vector<8x128xf32>
    %281 = arith.mulf %264, %272 : vector<8x128xf32>
    %282 = arith.addf %280, %281 : vector<8x128xf32>
    %283 = math.tanh %282 : vector<8x128xf32>
    %284 = arith.mulf %278, %283 : vector<8x128xf32>
    %c0_129 = arith.constant 0 : index
    %c0_130 = arith.constant 0 : index
    %285 = vector.load %arg11[%c0_129, %c0_130] : memref<8x128xf32, #tpu.memory_space<vmem>>, vector<8x128xf32>
    tpu.vector_store %arg11[%c0_129, %c0_130], %282 {strides = array<i32>} : memref<8x128xf32, #tpu.memory_space<vmem>>, vector<8x128xf32>,
    %c0_131 = arith.constant 0 : index
    %c0_132 = arith.constant 0 : index
    %286 = vector.load %arg10[%c0_131, %c0_132] : memref<8x128xf32, #tpu.memory_space<vmem>>, vector<8x128xf32>
    tpu.vector_store %arg10[%c0_131, %c0_132], %284 {strides = array<i32>} : memref<8x128xf32, #tpu.memory_space<vmem>>, vector<8x128xf32>,
    %287 = arith.index_cast %c6_i32 : i32 to index
    %c0_133 = arith.constant 0 : index
    %c0_134 = arith.constant 0 : index
    %288 = vector.load %arg6[%287, %c0_133, %c0_134] : memref<8x8x128xf32, #tpu.memory_space<vmem>>, vector<1x8x128xf32>
    %289 = vector.shape_cast %288 : vector<1x8x128xf32> to vector<8x128xf32>
    %290 = vector.shape_cast %284 : vector<8x128xf32> to vector<1x8x128xf32>
    tpu.vector_store %arg6[%287, %c0_133, %c0_134], %290 {strides = array<i32>} : memref<8x8x128xf32, #tpu.memory_space<vmem>>, vector<1x8x128xf32>,
    %c7_i32 = arith.constant 7 : i32
    %c8_i32_135 = arith.constant 8 : i32
    %291 = arith.muli %c7_i32, %c8_i32_135 : i32
    %292 = tpu.assume_multiple %291, 8 : i32
    %293 = arith.index_cast %292 : i32 to index
    %c0_136 = arith.constant 0 : index
    %294 = vector.load %arg9[%293, %c0_136] : memref<64x512xf32, #tpu.memory_space<vmem>>, vector<8x512xf32>
    %c0_137 = arith.constant 0 : index
    %c0_138 = arith.constant 0 : index
    %295 = vector.load %arg10[%c0_137, %c0_138] : memref<8x128xf32, #tpu.memory_space<vmem>>, vector<8x128xf32>
    %c0_139 = arith.constant 0 : index
    %c0_140 = arith.constant 0 : index
    %296 = vector.load %arg4[%c0_139, %c0_140] : memref<128x512xf32, #tpu.memory_space<vmem>>, vector<128x512xf32>
    %cst_141 = arith.constant dense<0.000000e+00> : vector<8x512xf32>
    %297 = tpu.matmul %295, %296, %cst_141 {dimension_numbers = #tpu.dot_dimension_numbers<[1], [0], [0], [1], [0, 0, 1, 1], [], []>} : vector<8x128xf32>, vector<128x512xf32>, vector<8x512xf32> -> vector<8x512xf32>
    %298 = arith.addf %294, %297 : vector<8x512xf32>
    %299 = vector.extract_strided_slice %298 {offsets = [0, 0], sizes = [8, 128], strides = [1, 1]} : vector<8x512xf32> to vector<8x128xf32>
    %300 = arith.negf %299 : vector<8x128xf32>
    %301 = math.exp %300 : vector<8x128xf32>
    %cst_142 = arith.constant 1.000000e+00 : f32
    %302 = vector.broadcast %cst_142 : f32 to vector<8x128xf32>
    %303 = arith.addf %302, %301 : vector<8x128xf32>
    %304 = arith.divf %302, %303 : vector<8x128xf32>
    %305 = vector.extract_strided_slice %298 {offsets = [0, 128], sizes = [8, 128], strides = [1, 1]} : vector<8x512xf32> to vector<8x128xf32>
    %306 = arith.negf %305 : vector<8x128xf32>
    %307 = math.exp %306 : vector<8x128xf32>
    %cst_143 = arith.constant 1.000000e+00 : f32
    %308 = vector.broadcast %cst_143 : f32 to vector<8x128xf32>
    %309 = arith.addf %308, %307 : vector<8x128xf32>
    %310 = arith.divf %308, %309 : vector<8x128xf32>
    %311 = vector.extract_strided_slice %298 {offsets = [0, 256], sizes = [8, 128], strides = [1, 1]} : vector<8x512xf32> to vector<8x128xf32>
    %312 = math.tanh %311 : vector<8x128xf32>
    %313 = vector.extract_strided_slice %298 {offsets = [0, 384], sizes = [8, 128], strides = [1, 1]} : vector<8x512xf32> to vector<8x128xf32>
    %314 = arith.negf %313 : vector<8x128xf32>
    %315 = math.exp %314 : vector<8x128xf32>
    %cst_144 = arith.constant 1.000000e+00 : f32
    %316 = vector.broadcast %cst_144 : f32 to vector<8x128xf32>
    %317 = arith.addf %316, %315 : vector<8x128xf32>
    %318 = arith.divf %316, %317 : vector<8x128xf32>
    %c0_145 = arith.constant 0 : index
    %c0_146 = arith.constant 0 : index
    %319 = vector.load %arg11[%c0_145, %c0_146] : memref<8x128xf32, #tpu.memory_space<vmem>>, vector<8x128xf32>
    %320 = arith.mulf %310, %319 : vector<8x128xf32>
    %321 = arith.mulf %304, %312 : vector<8x128xf32>
    %322 = arith.addf %320, %321 : vector<8x128xf32>
    %323 = math.tanh %322 : vector<8x128xf32>
    %324 = arith.mulf %318, %323 : vector<8x128xf32>
    %c0_147 = arith.constant 0 : index
    %c0_148 = arith.constant 0 : index
    %325 = vector.load %arg11[%c0_147, %c0_148] : memref<8x128xf32, #tpu.memory_space<vmem>>, vector<8x128xf32>
    tpu.vector_store %arg11[%c0_147, %c0_148], %322 {strides = array<i32>} : memref<8x128xf32, #tpu.memory_space<vmem>>, vector<8x128xf32>,
    %c0_149 = arith.constant 0 : index
    %c0_150 = arith.constant 0 : index
    %326 = vector.load %arg10[%c0_149, %c0_150] : memref<8x128xf32, #tpu.memory_space<vmem>>, vector<8x128xf32>
    tpu.vector_store %arg10[%c0_149, %c0_150], %324 {strides = array<i32>} : memref<8x128xf32, #tpu.memory_space<vmem>>, vector<8x128xf32>,
    %327 = arith.index_cast %c7_i32 : i32 to index
    %c0_151 = arith.constant 0 : index
    %c0_152 = arith.constant 0 : index
    %328 = vector.load %arg6[%327, %c0_151, %c0_152] : memref<8x8x128xf32, #tpu.memory_space<vmem>>, vector<1x8x128xf32>
    %329 = vector.shape_cast %328 : vector<1x8x128xf32> to vector<8x128xf32>
    %330 = vector.shape_cast %324 : vector<8x128xf32> to vector<1x8x128xf32>
    tpu.vector_store %arg6[%327, %c0_151, %c0_152], %330 {strides = array<i32>} : memref<8x8x128xf32, #tpu.memory_space<vmem>>, vector<1x8x128xf32>,
    %c8_i32_153 = arith.constant 8 : i32
    %c0_i32_154 = arith.constant 0 : i32
    %331 = arith.cmpi eq, %arg1, %c0_i32_154 : i32
    %332 = arith.extui %331 : i1 to i32
    %c0_i32_155 = arith.constant 0 : i32
    %333 = arith.cmpi ne, %332, %c0_i32_155 : i32
    scf.if %333 {
      %c0_156 = arith.constant 0 : index
      %c0_157 = arith.constant 0 : index
      %334 = vector.load %arg10[%c0_156, %c0_157] : memref<8x128xf32, #tpu.memory_space<vmem>>, vector<8x128xf32>
      %c0_158 = arith.constant 0 : index
      %c0_159 = arith.constant 0 : index
      %c0_160 = arith.constant 0 : index
      %335 = vector.load %arg7[%c0_158, %c0_159, %c0_160] : memref<1x8x128xf32, #tpu.memory_space<vmem>>, vector<1x8x128xf32>
      %336 = vector.shape_cast %335 : vector<1x8x128xf32> to vector<8x128xf32>
      %337 = vector.shape_cast %334 : vector<8x128xf32> to vector<1x8x128xf32>
      tpu.vector_store %arg7[%c0_158, %c0_159, %c0_160], %337 {strides = array<i32>} : memref<1x8x128xf32, #tpu.memory_space<vmem>>, vector<1x8x128xf32>,
      %c0_161 = arith.constant 0 : index
      %c0_162 = arith.constant 0 : index
      %338 = vector.load %arg11[%c0_161, %c0_162] : memref<8x128xf32, #tpu.memory_space<vmem>>, vector<8x128xf32>
      %c0_163 = arith.constant 0 : index
      %c0_164 = arith.constant 0 : index
      %c0_165 = arith.constant 0 : index
      %339 = vector.load %arg8[%c0_163, %c0_164, %c0_165] : memref<1x8x128xf32, #tpu.memory_space<vmem>>, vector<1x8x128xf32>
      %340 = vector.shape_cast %339 : vector<1x8x128xf32> to vector<8x128xf32>
      %341 = vector.shape_cast %338 : vector<8x128xf32> to vector<1x8x128xf32>
      tpu.vector_store %arg8[%c0_163, %c0_164, %c0_165], %341 {strides = array<i32>} : memref<1x8x128xf32, #tpu.memory_space<vmem>>, vector<1x8x128xf32>,
    } else {
    }
    return
  }
  func.func @transform_0(%arg0: i32, %arg1: i32) -> (i32, i32, i32) {
    %c0_i32 = arith.constant 0 : i32
    %c0_i32_0 = arith.constant 0 : i32
    return %arg1, %arg0, %c0_i32 : i32, i32, i32
  }
  func.func @transform_1(%arg0: i32, %arg1: i32) -> (i32, i32) {
    %c0_i32 = arith.constant 0 : i32
    %c0_i32_0 = arith.constant 0 : i32
    %c0_i32_1 = arith.constant 0 : i32
    return %c0_i32, %c0_i32_0 : i32, i32
  }
  func.func @transform_2(%arg0: i32, %arg1: i32) -> (i32, i32) {
    %c0_i32 = arith.constant 0 : i32
    %c0_i32_0 = arith.constant 0 : i32
    %c0_i32_1 = arith.constant 0 : i32
    return %c0_i32, %c0_i32_0 : i32, i32
  }
  func.func @transform_3(%arg0: i32, %arg1: i32) -> (i32, i32) {
    %c0_i32 = arith.constant 0 : i32
    %c0_i32_0 = arith.constant 0 : i32
    %c0_i32_1 = arith.constant 0 : i32
    return %c0_i32, %c0_i32_0 : i32, i32
  }
  func.func @transform_4(%arg0: i32, %arg1: i32) -> (i32, i32, i32) {
    %c0_i32 = arith.constant 0 : i32
    %c0_i32_0 = arith.constant 0 : i32
    return %arg1, %arg0, %c0_i32 : i32, i32, i32
  }
  func.func @transform_5(%arg0: i32, %arg1: i32) -> (i32, i32, i32) {
    %c0_i32 = arith.constant 0 : i32
    %c0_i32_0 = arith.constant 0 : i32
    %c0_i32_1 = arith.constant 0 : i32
    return %c0_i32, %arg0, %c0_i32_0 : i32, i32, i32
  }
  func.func @transform_6(%arg0: i32, %arg1: i32) -> (i32, i32, i32) {
    %c0_i32 = arith.constant 0 : i32
    %c0_i32_0 = arith.constant 0 : i32
    %c0_i32_1 = arith.constant 0 : i32
    return %c0_i32, %arg0, %c0_i32_0 : i32, i32, i32
  }
}

module attributes {stable_mosaic.version = 11 : i64} {
  func.func @_lstm_layer_kernel(%arg0: i32, %arg1: i32, %arg2: memref<8x8x16xf32, #tpu.memory_space<vmem>>, %arg3: memref<16x512xf32, #tpu.memory_space<vmem>>, %arg4: memref<128x512xf32, #tpu.memory_space<vmem>>, %arg5: memref<1x512xf32, #tpu.memory_space<vmem>>, %arg6: memref<8x8x128xf32, #tpu.memory_space<vmem>>, %arg7: memref<1x8x128xf32, #tpu.memory_space<vmem>>, %arg8: memref<1x8x128xf32, #tpu.memory_space<vmem>>, %arg9: memref<64x512xf32, #tpu.memory_space<vmem>>, %arg10: memref<8x128xf32, #tpu.memory_space<vmem>>, %arg11: memref<8x128xf32, #tpu.memory_space<vmem>>) attributes {dimension_semantics = [#tpu.dimension_semantics<parallel>, #tpu.dimension_semantics<arbitrary>], iteration_bounds = array<i64: 1, 1>, scalar_prefetch = 0 : i64, scratch_operands = 3 : i64, tpu.core_type = #tpu.core_type<tc>, window_params = [{transform_indices = @transform_0, window_bounds = array<i64: 8, 8, 16>}, {pipeline_mode = #tpu.pipeline_mode<synchronous>, transform_indices = @transform_1, window_bounds = array<i64: 16, 512>}, {pipeline_mode = #tpu.pipeline_mode<synchronous>, transform_indices = @transform_2, window_bounds = array<i64: 128, 512>}, {pipeline_mode = #tpu.pipeline_mode<synchronous>, transform_indices = @transform_3, window_bounds = array<i64: 1, 512>}, {transform_indices = @transform_4, window_bounds = array<i64: 8, 8, 128>}, {transform_indices = @transform_5, window_bounds = array<i64: 1, 8, 128>}, {transform_indices = @transform_6, window_bounds = array<i64: 1, 8, 128>}]} {
    %c0_i32 = arith.constant 0 : i32
    %0 = arith.cmpi eq, %arg1, %c0_i32 : i32
    %1 = arith.extui %0 : i1 to i32
    %c0_i32_0 = arith.constant 0 : i32
    %2 = arith.cmpi ne, %1, %c0_i32_0 : i32
    scf.if %2 {
      %cst_156 = arith.constant 0.000000e+00 : f32
      %334 = vector.broadcast %cst_156 : f32 to vector<8x128xf32>
      %c0_157 = arith.constant 0 : index
      %c0_158 = arith.constant 0 : index
      %335 = vector.load %arg10[%c0_157, %c0_158] : memref<8x128xf32, #tpu.memory_space<vmem>>, vector<8x128xf32>
      tpu.vector_store %arg10[%c0_157, %c0_158], %334 {strides = array<i32>} : memref<8x128xf32, #tpu.memory_space<vmem>>, vector<8x128xf32>,
      %cst_159 = arith.constant 0.000000e+00 : f32
      %336 = vector.broadcast %cst_159 : f32 to vector<8x128xf32>
      %c0_160 = arith.constant 0 : index
      %c0_161 = arith.constant 0 : index
      %337 = vector.load %arg11[%c0_160, %c0_161] : memref<8x128xf32, #tpu.memory_space<vmem>>, vector<8x128xf32>
      tpu.vector_store %arg11[%c0_160, %c0_161], %336 {strides = array<i32>} : memref<8x128xf32, #tpu.memory_space<vmem>>, vector<8x128xf32>,
    } else {
    }
    %c0 = arith.constant 0 : index
    %c0_1 = arith.constant 0 : index
    %c0_2 = arith.constant 0 : index
    %3 = vector.load %arg2[%c0, %c0_1, %c0_2] : memref<8x8x16xf32, #tpu.memory_space<vmem>>, vector<8x8x16xf32>
    %4 = vector.shape_cast %3 : vector<8x8x16xf32> to vector<64x16xf32>
    %c0_3 = arith.constant 0 : index
    %c0_4 = arith.constant 0 : index
    %5 = vector.load %arg3[%c0_3, %c0_4] : memref<16x512xf32, #tpu.memory_space<vmem>>, vector<16x512xf32>
    %cst = arith.constant dense<0.000000e+00> : vector<64x512xf32>
    %6 = tpu.matmul %4, %5, %cst {dimension_numbers = #tpu.dot_dimension_numbers<[1], [0], [0], [1], [0, 0, 1, 1], [], []>} : vector<64x16xf32>, vector<16x512xf32>, vector<64x512xf32> -> vector<64x512xf32>
    %c0_5 = arith.constant 0 : index
    %c0_6 = arith.constant 0 : index
    %7 = vector.load %arg5[%c0_5, %c0_6] : memref<1x512xf32, #tpu.memory_space<vmem>>, vector<1x512xf32>
    %8 = vector.broadcast %7 : vector<1x512xf32> to vector<64x512xf32>
    %9 = arith.addf %6, %8 : vector<64x512xf32>
    %c0_7 = arith.constant 0 : index
    %c0_8 = arith.constant 0 : index
    %10 = vector.load %arg9[%c0_7, %c0_8] : memref<64x512xf32, #tpu.memory_space<vmem>>, vector<64x512xf32>
    tpu.vector_store %arg9[%c0_7, %c0_8], %9 {strides = array<i32>} : memref<64x512xf32, #tpu.memory_space<vmem>>, vector<64x512xf32>,
    %c0_i32_9 = arith.constant 0 : i32
    %c8_i32 = arith.constant 8 : i32
    %11 = arith.muli %c0_i32_9, %c8_i32 : i32
    %12 = tpu.assume_multiple %11, 8 : i32
    %13 = arith.index_cast %12 : i32 to index
    %c0_10 = arith.constant 0 : index
    %14 = vector.load %arg9[%13, %c0_10] : memref<64x512xf32, #tpu.memory_space<vmem>>, vector<8x512xf32>
    %c0_11 = arith.constant 0 : index
    %c0_12 = arith.constant 0 : index
    %15 = vector.load %arg10[%c0_11, %c0_12] : memref<8x128xf32, #tpu.memory_space<vmem>>, vector<8x128xf32>
    %c0_13 = arith.constant 0 : index
    %c0_14 = arith.constant 0 : index
    %16 = vector.load %arg4[%c0_13, %c0_14] : memref<128x512xf32, #tpu.memory_space<vmem>>, vector<128x512xf32>
    %cst_15 = arith.constant dense<0.000000e+00> : vector<8x512xf32>
    %17 = tpu.matmul %15, %16, %cst_15 {dimension_numbers = #tpu.dot_dimension_numbers<[1], [0], [0], [1], [0, 0, 1, 1], [], []>} : vector<8x128xf32>, vector<128x512xf32>, vector<8x512xf32> -> vector<8x512xf32>
    %18 = arith.addf %14, %17 : vector<8x512xf32>
    %19 = vector.extract_strided_slice %18 {offsets = [0, 0], sizes = [8, 128], strides = [1, 1]} : vector<8x512xf32> to vector<8x128xf32>
    %20 = arith.negf %19 : vector<8x128xf32>
    %21 = math.exp %20 : vector<8x128xf32>
    %cst_16 = arith.constant 1.000000e+00 : f32
    %22 = vector.broadcast %cst_16 : f32 to vector<8x128xf32>
    %23 = arith.addf %22, %21 : vector<8x128xf32>
    %24 = arith.divf %22, %23 : vector<8x128xf32>
    %25 = vector.extract_strided_slice %18 {offsets = [0, 128], sizes = [8, 128], strides = [1, 1]} : vector<8x512xf32> to vector<8x128xf32>
    %26 = arith.negf %25 : vector<8x128xf32>
    %27 = math.exp %26 : vector<8x128xf32>
    %cst_17 = arith.constant 1.000000e+00 : f32
    %28 = vector.broadcast %cst_17 : f32 to vector<8x128xf32>
    %29 = arith.addf %28, %27 : vector<8x128xf32>
    %30 = arith.divf %28, %29 : vector<8x128xf32>
    %31 = vector.extract_strided_slice %18 {offsets = [0, 256], sizes = [8, 128], strides = [1, 1]} : vector<8x512xf32> to vector<8x128xf32>
    %32 = math.tanh %31 : vector<8x128xf32>
    %33 = vector.extract_strided_slice %18 {offsets = [0, 384], sizes = [8, 128], strides = [1, 1]} : vector<8x512xf32> to vector<8x128xf32>
    %34 = arith.negf %33 : vector<8x128xf32>
    %35 = math.exp %34 : vector<8x128xf32>
    %cst_18 = arith.constant 1.000000e+00 : f32
    %36 = vector.broadcast %cst_18 : f32 to vector<8x128xf32>
    %37 = arith.addf %36, %35 : vector<8x128xf32>
    %38 = arith.divf %36, %37 : vector<8x128xf32>
    %c0_19 = arith.constant 0 : index
    %c0_20 = arith.constant 0 : index
    %39 = vector.load %arg11[%c0_19, %c0_20] : memref<8x128xf32, #tpu.memory_space<vmem>>, vector<8x128xf32>
    %40 = arith.mulf %30, %39 : vector<8x128xf32>
    %41 = arith.mulf %24, %32 : vector<8x128xf32>
    %42 = arith.addf %40, %41 : vector<8x128xf32>
    %43 = math.tanh %42 : vector<8x128xf32>
    %44 = arith.mulf %38, %43 : vector<8x128xf32>
    %c0_21 = arith.constant 0 : index
    %c0_22 = arith.constant 0 : index
    %45 = vector.load %arg11[%c0_21, %c0_22] : memref<8x128xf32, #tpu.memory_space<vmem>>, vector<8x128xf32>
    tpu.vector_store %arg11[%c0_21, %c0_22], %42 {strides = array<i32>} : memref<8x128xf32, #tpu.memory_space<vmem>>, vector<8x128xf32>,
    %c0_23 = arith.constant 0 : index
    %c0_24 = arith.constant 0 : index
    %46 = vector.load %arg10[%c0_23, %c0_24] : memref<8x128xf32, #tpu.memory_space<vmem>>, vector<8x128xf32>
    tpu.vector_store %arg10[%c0_23, %c0_24], %44 {strides = array<i32>} : memref<8x128xf32, #tpu.memory_space<vmem>>, vector<8x128xf32>,
    %47 = arith.index_cast %c0_i32_9 : i32 to index
    %c0_25 = arith.constant 0 : index
    %c0_26 = arith.constant 0 : index
    %48 = vector.load %arg6[%47, %c0_25, %c0_26] : memref<8x8x128xf32, #tpu.memory_space<vmem>>, vector<1x8x128xf32>
    %49 = vector.shape_cast %48 : vector<1x8x128xf32> to vector<8x128xf32>
    %50 = vector.shape_cast %44 : vector<8x128xf32> to vector<1x8x128xf32>
    tpu.vector_store %arg6[%47, %c0_25, %c0_26], %50 {strides = array<i32>} : memref<8x8x128xf32, #tpu.memory_space<vmem>>, vector<1x8x128xf32>,
    %c1_i32 = arith.constant 1 : i32
    %c8_i32_27 = arith.constant 8 : i32
    %51 = arith.muli %c1_i32, %c8_i32_27 : i32
    %52 = tpu.assume_multiple %51, 8 : i32
    %53 = arith.index_cast %52 : i32 to index
    %c0_28 = arith.constant 0 : index
    %54 = vector.load %arg9[%53, %c0_28] : memref<64x512xf32, #tpu.memory_space<vmem>>, vector<8x512xf32>
    %c0_29 = arith.constant 0 : index
    %c0_30 = arith.constant 0 : index
    %55 = vector.load %arg10[%c0_29, %c0_30] : memref<8x128xf32, #tpu.memory_space<vmem>>, vector<8x128xf32>
    %c0_31 = arith.constant 0 : index
    %c0_32 = arith.constant 0 : index
    %56 = vector.load %arg4[%c0_31, %c0_32] : memref<128x512xf32, #tpu.memory_space<vmem>>, vector<128x512xf32>
    %cst_33 = arith.constant dense<0.000000e+00> : vector<8x512xf32>
    %57 = tpu.matmul %55, %56, %cst_33 {dimension_numbers = #tpu.dot_dimension_numbers<[1], [0], [0], [1], [0, 0, 1, 1], [], []>} : vector<8x128xf32>, vector<128x512xf32>, vector<8x512xf32> -> vector<8x512xf32>
    %58 = arith.addf %54, %57 : vector<8x512xf32>
    %59 = vector.extract_strided_slice %58 {offsets = [0, 0], sizes = [8, 128], strides = [1, 1]} : vector<8x512xf32> to vector<8x128xf32>
    %60 = arith.negf %59 : vector<8x128xf32>
    %61 = math.exp %60 : vector<8x128xf32>
    %cst_34 = arith.constant 1.000000e+00 : f32
    %62 = vector.broadcast %cst_34 : f32 to vector<8x128xf32>
    %63 = arith.addf %62, %61 : vector<8x128xf32>
    %64 = arith.divf %62, %63 : vector<8x128xf32>
    %65 = vector.extract_strided_slice %58 {offsets = [0, 128], sizes = [8, 128], strides = [1, 1]} : vector<8x512xf32> to vector<8x128xf32>
    %66 = arith.negf %65 : vector<8x128xf32>
    %67 = math.exp %66 : vector<8x128xf32>
    %cst_35 = arith.constant 1.000000e+00 : f32
    %68 = vector.broadcast %cst_35 : f32 to vector<8x128xf32>
    %69 = arith.addf %68, %67 : vector<8x128xf32>
    %70 = arith.divf %68, %69 : vector<8x128xf32>
    %71 = vector.extract_strided_slice %58 {offsets = [0, 256], sizes = [8, 128], strides = [1, 1]} : vector<8x512xf32> to vector<8x128xf32>
    %72 = math.tanh %71 : vector<8x128xf32>
    %73 = vector.extract_strided_slice %58 {offsets = [0, 384], sizes = [8, 128], strides = [1, 1]} : vector<8x512xf32> to vector<8x128xf32>
    %74 = arith.negf %73 : vector<8x128xf32>
    %75 = math.exp %74 : vector<8x128xf32>
    %cst_36 = arith.constant 1.000000e+00 : f32
    %76 = vector.broadcast %cst_36 : f32 to vector<8x128xf32>
    %77 = arith.addf %76, %75 : vector<8x128xf32>
    %78 = arith.divf %76, %77 : vector<8x128xf32>
    %c0_37 = arith.constant 0 : index
    %c0_38 = arith.constant 0 : index
    %79 = vector.load %arg11[%c0_37, %c0_38] : memref<8x128xf32, #tpu.memory_space<vmem>>, vector<8x128xf32>
    %80 = arith.mulf %70, %79 : vector<8x128xf32>
    %81 = arith.mulf %64, %72 : vector<8x128xf32>
    %82 = arith.addf %80, %81 : vector<8x128xf32>
    %83 = math.tanh %82 : vector<8x128xf32>
    %84 = arith.mulf %78, %83 : vector<8x128xf32>
    %c0_39 = arith.constant 0 : index
    %c0_40 = arith.constant 0 : index
    %85 = vector.load %arg11[%c0_39, %c0_40] : memref<8x128xf32, #tpu.memory_space<vmem>>, vector<8x128xf32>
    tpu.vector_store %arg11[%c0_39, %c0_40], %82 {strides = array<i32>} : memref<8x128xf32, #tpu.memory_space<vmem>>, vector<8x128xf32>,
    %c0_41 = arith.constant 0 : index
    %c0_42 = arith.constant 0 : index
    %86 = vector.load %arg10[%c0_41, %c0_42] : memref<8x128xf32, #tpu.memory_space<vmem>>, vector<8x128xf32>
    tpu.vector_store %arg10[%c0_41, %c0_42], %84 {strides = array<i32>} : memref<8x128xf32, #tpu.memory_space<vmem>>, vector<8x128xf32>,
    %87 = arith.index_cast %c1_i32 : i32 to index
    %c0_43 = arith.constant 0 : index
    %c0_44 = arith.constant 0 : index
    %88 = vector.load %arg6[%87, %c0_43, %c0_44] : memref<8x8x128xf32, #tpu.memory_space<vmem>>, vector<1x8x128xf32>
    %89 = vector.shape_cast %88 : vector<1x8x128xf32> to vector<8x128xf32>
    %90 = vector.shape_cast %84 : vector<8x128xf32> to vector<1x8x128xf32>
    tpu.vector_store %arg6[%87, %c0_43, %c0_44], %90 {strides = array<i32>} : memref<8x8x128xf32, #tpu.memory_space<vmem>>, vector<1x8x128xf32>,
    %c2_i32 = arith.constant 2 : i32
    %c8_i32_45 = arith.constant 8 : i32
    %91 = arith.muli %c2_i32, %c8_i32_45 : i32
    %92 = tpu.assume_multiple %91, 8 : i32
    %93 = arith.index_cast %92 : i32 to index
    %c0_46 = arith.constant 0 : index
    %94 = vector.load %arg9[%93, %c0_46] : memref<64x512xf32, #tpu.memory_space<vmem>>, vector<8x512xf32>
    %c0_47 = arith.constant 0 : index
    %c0_48 = arith.constant 0 : index
    %95 = vector.load %arg10[%c0_47, %c0_48] : memref<8x128xf32, #tpu.memory_space<vmem>>, vector<8x128xf32>
    %c0_49 = arith.constant 0 : index
    %c0_50 = arith.constant 0 : index
    %96 = vector.load %arg4[%c0_49, %c0_50] : memref<128x512xf32, #tpu.memory_space<vmem>>, vector<128x512xf32>
    %cst_51 = arith.constant dense<0.000000e+00> : vector<8x512xf32>
    %97 = tpu.matmul %95, %96, %cst_51 {dimension_numbers = #tpu.dot_dimension_numbers<[1], [0], [0], [1], [0, 0, 1, 1], [], []>} : vector<8x128xf32>, vector<128x512xf32>, vector<8x512xf32> -> vector<8x512xf32>
    %98 = arith.addf %94, %97 : vector<8x512xf32>
    %99 = vector.extract_strided_slice %98 {offsets = [0, 0], sizes = [8, 128], strides = [1, 1]} : vector<8x512xf32> to vector<8x128xf32>
    %100 = arith.negf %99 : vector<8x128xf32>
    %101 = math.exp %100 : vector<8x128xf32>
    %cst_52 = arith.constant 1.000000e+00 : f32
    %102 = vector.broadcast %cst_52 : f32 to vector<8x128xf32>
    %103 = arith.addf %102, %101 : vector<8x128xf32>
    %104 = arith.divf %102, %103 : vector<8x128xf32>
    %105 = vector.extract_strided_slice %98 {offsets = [0, 128], sizes = [8, 128], strides = [1, 1]} : vector<8x512xf32> to vector<8x128xf32>
    %106 = arith.negf %105 : vector<8x128xf32>
    %107 = math.exp %106 : vector<8x128xf32>
    %cst_53 = arith.constant 1.000000e+00 : f32
    %108 = vector.broadcast %cst_53 : f32 to vector<8x128xf32>
    %109 = arith.addf %108, %107 : vector<8x128xf32>
    %110 = arith.divf %108, %109 : vector<8x128xf32>
    %111 = vector.extract_strided_slice %98 {offsets = [0, 256], sizes = [8, 128], strides = [1, 1]} : vector<8x512xf32> to vector<8x128xf32>
    %112 = math.tanh %111 : vector<8x128xf32>
    %113 = vector.extract_strided_slice %98 {offsets = [0, 384], sizes = [8, 128], strides = [1, 1]} : vector<8x512xf32> to vector<8x128xf32>
    %114 = arith.negf %113 : vector<8x128xf32>
    %115 = math.exp %114 : vector<8x128xf32>
    %cst_54 = arith.constant 1.000000e+00 : f32
    %116 = vector.broadcast %cst_54 : f32 to vector<8x128xf32>
    %117 = arith.addf %116, %115 : vector<8x128xf32>
    %118 = arith.divf %116, %117 : vector<8x128xf32>
    %c0_55 = arith.constant 0 : index
    %c0_56 = arith.constant 0 : index
    %119 = vector.load %arg11[%c0_55, %c0_56] : memref<8x128xf32, #tpu.memory_space<vmem>>, vector<8x128xf32>
    %120 = arith.mulf %110, %119 : vector<8x128xf32>
    %121 = arith.mulf %104, %112 : vector<8x128xf32>
    %122 = arith.addf %120, %121 : vector<8x128xf32>
    %123 = math.tanh %122 : vector<8x128xf32>
    %124 = arith.mulf %118, %123 : vector<8x128xf32>
    %c0_57 = arith.constant 0 : index
    %c0_58 = arith.constant 0 : index
    %125 = vector.load %arg11[%c0_57, %c0_58] : memref<8x128xf32, #tpu.memory_space<vmem>>, vector<8x128xf32>
    tpu.vector_store %arg11[%c0_57, %c0_58], %122 {strides = array<i32>} : memref<8x128xf32, #tpu.memory_space<vmem>>, vector<8x128xf32>,
    %c0_59 = arith.constant 0 : index
    %c0_60 = arith.constant 0 : index
    %126 = vector.load %arg10[%c0_59, %c0_60] : memref<8x128xf32, #tpu.memory_space<vmem>>, vector<8x128xf32>
    tpu.vector_store %arg10[%c0_59, %c0_60], %124 {strides = array<i32>} : memref<8x128xf32, #tpu.memory_space<vmem>>, vector<8x128xf32>,
    %127 = arith.index_cast %c2_i32 : i32 to index
    %c0_61 = arith.constant 0 : index
    %c0_62 = arith.constant 0 : index
    %128 = vector.load %arg6[%127, %c0_61, %c0_62] : memref<8x8x128xf32, #tpu.memory_space<vmem>>, vector<1x8x128xf32>
    %129 = vector.shape_cast %128 : vector<1x8x128xf32> to vector<8x128xf32>
    %130 = vector.shape_cast %124 : vector<8x128xf32> to vector<1x8x128xf32>
    tpu.vector_store %arg6[%127, %c0_61, %c0_62], %130 {strides = array<i32>} : memref<8x8x128xf32, #tpu.memory_space<vmem>>, vector<1x8x128xf32>,
    %c3_i32 = arith.constant 3 : i32
    %c8_i32_63 = arith.constant 8 : i32
    %131 = arith.muli %c3_i32, %c8_i32_63 : i32
    %132 = tpu.assume_multiple %131, 8 : i32
    %133 = arith.index_cast %132 : i32 to index
    %c0_64 = arith.constant 0 : index
    %134 = vector.load %arg9[%133, %c0_64] : memref<64x512xf32, #tpu.memory_space<vmem>>, vector<8x512xf32>
    %c0_65 = arith.constant 0 : index
    %c0_66 = arith.constant 0 : index
    %135 = vector.load %arg10[%c0_65, %c0_66] : memref<8x128xf32, #tpu.memory_space<vmem>>, vector<8x128xf32>
    %c0_67 = arith.constant 0 : index
    %c0_68 = arith.constant 0 : index
    %136 = vector.load %arg4[%c0_67, %c0_68] : memref<128x512xf32, #tpu.memory_space<vmem>>, vector<128x512xf32>
    %cst_69 = arith.constant dense<0.000000e+00> : vector<8x512xf32>
    %137 = tpu.matmul %135, %136, %cst_69 {dimension_numbers = #tpu.dot_dimension_numbers<[1], [0], [0], [1], [0, 0, 1, 1], [], []>} : vector<8x128xf32>, vector<128x512xf32>, vector<8x512xf32> -> vector<8x512xf32>
    %138 = arith.addf %134, %137 : vector<8x512xf32>
    %139 = vector.extract_strided_slice %138 {offsets = [0, 0], sizes = [8, 128], strides = [1, 1]} : vector<8x512xf32> to vector<8x128xf32>
    %140 = arith.negf %139 : vector<8x128xf32>
    %141 = math.exp %140 : vector<8x128xf32>
    %cst_70 = arith.constant 1.000000e+00 : f32
    %142 = vector.broadcast %cst_70 : f32 to vector<8x128xf32>
    %143 = arith.addf %142, %141 : vector<8x128xf32>
    %144 = arith.divf %142, %143 : vector<8x128xf32>
    %145 = vector.extract_strided_slice %138 {offsets = [0, 128], sizes = [8, 128], strides = [1, 1]} : vector<8x512xf32> to vector<8x128xf32>
    %146 = arith.negf %145 : vector<8x128xf32>
    %147 = math.exp %146 : vector<8x128xf32>
    %cst_71 = arith.constant 1.000000e+00 : f32
    %148 = vector.broadcast %cst_71 : f32 to vector<8x128xf32>
    %149 = arith.addf %148, %147 : vector<8x128xf32>
    %150 = arith.divf %148, %149 : vector<8x128xf32>
    %151 = vector.extract_strided_slice %138 {offsets = [0, 256], sizes = [8, 128], strides = [1, 1]} : vector<8x512xf32> to vector<8x128xf32>
    %152 = math.tanh %151 : vector<8x128xf32>
    %153 = vector.extract_strided_slice %138 {offsets = [0, 384], sizes = [8, 128], strides = [1, 1]} : vector<8x512xf32> to vector<8x128xf32>
    %154 = arith.negf %153 : vector<8x128xf32>
    %155 = math.exp %154 : vector<8x128xf32>
    %cst_72 = arith.constant 1.000000e+00 : f32
    %156 = vector.broadcast %cst_72 : f32 to vector<8x128xf32>
    %157 = arith.addf %156, %155 : vector<8x128xf32>
    %158 = arith.divf %156, %157 : vector<8x128xf32>
    %c0_73 = arith.constant 0 : index
    %c0_74 = arith.constant 0 : index
    %159 = vector.load %arg11[%c0_73, %c0_74] : memref<8x128xf32, #tpu.memory_space<vmem>>, vector<8x128xf32>
    %160 = arith.mulf %150, %159 : vector<8x128xf32>
    %161 = arith.mulf %144, %152 : vector<8x128xf32>
    %162 = arith.addf %160, %161 : vector<8x128xf32>
    %163 = math.tanh %162 : vector<8x128xf32>
    %164 = arith.mulf %158, %163 : vector<8x128xf32>
    %c0_75 = arith.constant 0 : index
    %c0_76 = arith.constant 0 : index
    %165 = vector.load %arg11[%c0_75, %c0_76] : memref<8x128xf32, #tpu.memory_space<vmem>>, vector<8x128xf32>
    tpu.vector_store %arg11[%c0_75, %c0_76], %162 {strides = array<i32>} : memref<8x128xf32, #tpu.memory_space<vmem>>, vector<8x128xf32>,
    %c0_77 = arith.constant 0 : index
    %c0_78 = arith.constant 0 : index
    %166 = vector.load %arg10[%c0_77, %c0_78] : memref<8x128xf32, #tpu.memory_space<vmem>>, vector<8x128xf32>
    tpu.vector_store %arg10[%c0_77, %c0_78], %164 {strides = array<i32>} : memref<8x128xf32, #tpu.memory_space<vmem>>, vector<8x128xf32>,
    %167 = arith.index_cast %c3_i32 : i32 to index
    %c0_79 = arith.constant 0 : index
    %c0_80 = arith.constant 0 : index
    %168 = vector.load %arg6[%167, %c0_79, %c0_80] : memref<8x8x128xf32, #tpu.memory_space<vmem>>, vector<1x8x128xf32>
    %169 = vector.shape_cast %168 : vector<1x8x128xf32> to vector<8x128xf32>
    %170 = vector.shape_cast %164 : vector<8x128xf32> to vector<1x8x128xf32>
    tpu.vector_store %arg6[%167, %c0_79, %c0_80], %170 {strides = array<i32>} : memref<8x8x128xf32, #tpu.memory_space<vmem>>, vector<1x8x128xf32>,
    %c4_i32 = arith.constant 4 : i32
    %c8_i32_81 = arith.constant 8 : i32
    %171 = arith.muli %c4_i32, %c8_i32_81 : i32
    %172 = tpu.assume_multiple %171, 8 : i32
    %173 = arith.index_cast %172 : i32 to index
    %c0_82 = arith.constant 0 : index
    %174 = vector.load %arg9[%173, %c0_82] : memref<64x512xf32, #tpu.memory_space<vmem>>, vector<8x512xf32>
    %c0_83 = arith.constant 0 : index
    %c0_84 = arith.constant 0 : index
    %175 = vector.load %arg10[%c0_83, %c0_84] : memref<8x128xf32, #tpu.memory_space<vmem>>, vector<8x128xf32>
    %c0_85 = arith.constant 0 : index
    %c0_86 = arith.constant 0 : index
    %176 = vector.load %arg4[%c0_85, %c0_86] : memref<128x512xf32, #tpu.memory_space<vmem>>, vector<128x512xf32>
    %cst_87 = arith.constant dense<0.000000e+00> : vector<8x512xf32>
    %177 = tpu.matmul %175, %176, %cst_87 {dimension_numbers = #tpu.dot_dimension_numbers<[1], [0], [0], [1], [0, 0, 1, 1], [], []>} : vector<8x128xf32>, vector<128x512xf32>, vector<8x512xf32> -> vector<8x512xf32>
    %178 = arith.addf %174, %177 : vector<8x512xf32>
    %179 = vector.extract_strided_slice %178 {offsets = [0, 0], sizes = [8, 128], strides = [1, 1]} : vector<8x512xf32> to vector<8x128xf32>
    %180 = arith.negf %179 : vector<8x128xf32>
    %181 = math.exp %180 : vector<8x128xf32>
    %cst_88 = arith.constant 1.000000e+00 : f32
    %182 = vector.broadcast %cst_88 : f32 to vector<8x128xf32>
    %183 = arith.addf %182, %181 : vector<8x128xf32>
    %184 = arith.divf %182, %183 : vector<8x128xf32>
    %185 = vector.extract_strided_slice %178 {offsets = [0, 128], sizes = [8, 128], strides = [1, 1]} : vector<8x512xf32> to vector<8x128xf32>
    %186 = arith.negf %185 : vector<8x128xf32>
    %187 = math.exp %186 : vector<8x128xf32>
    %cst_89 = arith.constant 1.000000e+00 : f32
    %188 = vector.broadcast %cst_89 : f32 to vector<8x128xf32>
    %189 = arith.addf %188, %187 : vector<8x128xf32>
    %190 = arith.divf %188, %189 : vector<8x128xf32>
    %191 = vector.extract_strided_slice %178 {offsets = [0, 256], sizes = [8, 128], strides = [1, 1]} : vector<8x512xf32> to vector<8x128xf32>
    %192 = math.tanh %191 : vector<8x128xf32>
    %193 = vector.extract_strided_slice %178 {offsets = [0, 384], sizes = [8, 128], strides = [1, 1]} : vector<8x512xf32> to vector<8x128xf32>
    %194 = arith.negf %193 : vector<8x128xf32>
    %195 = math.exp %194 : vector<8x128xf32>
    %cst_90 = arith.constant 1.000000e+00 : f32
    %196 = vector.broadcast %cst_90 : f32 to vector<8x128xf32>
    %197 = arith.addf %196, %195 : vector<8x128xf32>
    %198 = arith.divf %196, %197 : vector<8x128xf32>
    %c0_91 = arith.constant 0 : index
    %c0_92 = arith.constant 0 : index
    %199 = vector.load %arg11[%c0_91, %c0_92] : memref<8x128xf32, #tpu.memory_space<vmem>>, vector<8x128xf32>
    %200 = arith.mulf %190, %199 : vector<8x128xf32>
    %201 = arith.mulf %184, %192 : vector<8x128xf32>
    %202 = arith.addf %200, %201 : vector<8x128xf32>
    %203 = math.tanh %202 : vector<8x128xf32>
    %204 = arith.mulf %198, %203 : vector<8x128xf32>
    %c0_93 = arith.constant 0 : index
    %c0_94 = arith.constant 0 : index
    %205 = vector.load %arg11[%c0_93, %c0_94] : memref<8x128xf32, #tpu.memory_space<vmem>>, vector<8x128xf32>
    tpu.vector_store %arg11[%c0_93, %c0_94], %202 {strides = array<i32>} : memref<8x128xf32, #tpu.memory_space<vmem>>, vector<8x128xf32>,
    %c0_95 = arith.constant 0 : index
    %c0_96 = arith.constant 0 : index
    %206 = vector.load %arg10[%c0_95, %c0_96] : memref<8x128xf32, #tpu.memory_space<vmem>>, vector<8x128xf32>
    tpu.vector_store %arg10[%c0_95, %c0_96], %204 {strides = array<i32>} : memref<8x128xf32, #tpu.memory_space<vmem>>, vector<8x128xf32>,
    %207 = arith.index_cast %c4_i32 : i32 to index
    %c0_97 = arith.constant 0 : index
    %c0_98 = arith.constant 0 : index
    %208 = vector.load %arg6[%207, %c0_97, %c0_98] : memref<8x8x128xf32, #tpu.memory_space<vmem>>, vector<1x8x128xf32>
    %209 = vector.shape_cast %208 : vector<1x8x128xf32> to vector<8x128xf32>
    %210 = vector.shape_cast %204 : vector<8x128xf32> to vector<1x8x128xf32>
    tpu.vector_store %arg6[%207, %c0_97, %c0_98], %210 {strides = array<i32>} : memref<8x8x128xf32, #tpu.memory_space<vmem>>, vector<1x8x128xf32>,
    %c5_i32 = arith.constant 5 : i32
    %c8_i32_99 = arith.constant 8 : i32
    %211 = arith.muli %c5_i32, %c8_i32_99 : i32
    %212 = tpu.assume_multiple %211, 8 : i32
    %213 = arith.index_cast %212 : i32 to index
    %c0_100 = arith.constant 0 : index
    %214 = vector.load %arg9[%213, %c0_100] : memref<64x512xf32, #tpu.memory_space<vmem>>, vector<8x512xf32>
    %c0_101 = arith.constant 0 : index
    %c0_102 = arith.constant 0 : index
    %215 = vector.load %arg10[%c0_101, %c0_102] : memref<8x128xf32, #tpu.memory_space<vmem>>, vector<8x128xf32>
    %c0_103 = arith.constant 0 : index
    %c0_104 = arith.constant 0 : index
    %216 = vector.load %arg4[%c0_103, %c0_104] : memref<128x512xf32, #tpu.memory_space<vmem>>, vector<128x512xf32>
    %cst_105 = arith.constant dense<0.000000e+00> : vector<8x512xf32>
    %217 = tpu.matmul %215, %216, %cst_105 {dimension_numbers = #tpu.dot_dimension_numbers<[1], [0], [0], [1], [0, 0, 1, 1], [], []>} : vector<8x128xf32>, vector<128x512xf32>, vector<8x512xf32> -> vector<8x512xf32>
    %218 = arith.addf %214, %217 : vector<8x512xf32>
    %219 = vector.extract_strided_slice %218 {offsets = [0, 0], sizes = [8, 128], strides = [1, 1]} : vector<8x512xf32> to vector<8x128xf32>
    %220 = arith.negf %219 : vector<8x128xf32>
    %221 = math.exp %220 : vector<8x128xf32>
    %cst_106 = arith.constant 1.000000e+00 : f32
    %222 = vector.broadcast %cst_106 : f32 to vector<8x128xf32>
    %223 = arith.addf %222, %221 : vector<8x128xf32>
    %224 = arith.divf %222, %223 : vector<8x128xf32>
    %225 = vector.extract_strided_slice %218 {offsets = [0, 128], sizes = [8, 128], strides = [1, 1]} : vector<8x512xf32> to vector<8x128xf32>
    %226 = arith.negf %225 : vector<8x128xf32>
    %227 = math.exp %226 : vector<8x128xf32>
    %cst_107 = arith.constant 1.000000e+00 : f32
    %228 = vector.broadcast %cst_107 : f32 to vector<8x128xf32>
    %229 = arith.addf %228, %227 : vector<8x128xf32>
    %230 = arith.divf %228, %229 : vector<8x128xf32>
    %231 = vector.extract_strided_slice %218 {offsets = [0, 256], sizes = [8, 128], strides = [1, 1]} : vector<8x512xf32> to vector<8x128xf32>
    %232 = math.tanh %231 : vector<8x128xf32>
    %233 = vector.extract_strided_slice %218 {offsets = [0, 384], sizes = [8, 128], strides = [1, 1]} : vector<8x512xf32> to vector<8x128xf32>
    %234 = arith.negf %233 : vector<8x128xf32>
    %235 = math.exp %234 : vector<8x128xf32>
    %cst_108 = arith.constant 1.000000e+00 : f32
    %236 = vector.broadcast %cst_108 : f32 to vector<8x128xf32>
    %237 = arith.addf %236, %235 : vector<8x128xf32>
    %238 = arith.divf %236, %237 : vector<8x128xf32>
    %c0_109 = arith.constant 0 : index
    %c0_110 = arith.constant 0 : index
    %239 = vector.load %arg11[%c0_109, %c0_110] : memref<8x128xf32, #tpu.memory_space<vmem>>, vector<8x128xf32>
    %240 = arith.mulf %230, %239 : vector<8x128xf32>
    %241 = arith.mulf %224, %232 : vector<8x128xf32>
    %242 = arith.addf %240, %241 : vector<8x128xf32>
    %243 = math.tanh %242 : vector<8x128xf32>
    %244 = arith.mulf %238, %243 : vector<8x128xf32>
    %c0_111 = arith.constant 0 : index
    %c0_112 = arith.constant 0 : index
    %245 = vector.load %arg11[%c0_111, %c0_112] : memref<8x128xf32, #tpu.memory_space<vmem>>, vector<8x128xf32>
    tpu.vector_store %arg11[%c0_111, %c0_112], %242 {strides = array<i32>} : memref<8x128xf32, #tpu.memory_space<vmem>>, vector<8x128xf32>,
    %c0_113 = arith.constant 0 : index
    %c0_114 = arith.constant 0 : index
    %246 = vector.load %arg10[%c0_113, %c0_114] : memref<8x128xf32, #tpu.memory_space<vmem>>, vector<8x128xf32>
    tpu.vector_store %arg10[%c0_113, %c0_114], %244 {strides = array<i32>} : memref<8x128xf32, #tpu.memory_space<vmem>>, vector<8x128xf32>,
    %247 = arith.index_cast %c5_i32 : i32 to index
    %c0_115 = arith.constant 0 : index
    %c0_116 = arith.constant 0 : index
    %248 = vector.load %arg6[%247, %c0_115, %c0_116] : memref<8x8x128xf32, #tpu.memory_space<vmem>>, vector<1x8x128xf32>
    %249 = vector.shape_cast %248 : vector<1x8x128xf32> to vector<8x128xf32>
    %250 = vector.shape_cast %244 : vector<8x128xf32> to vector<1x8x128xf32>
    tpu.vector_store %arg6[%247, %c0_115, %c0_116], %250 {strides = array<i32>} : memref<8x8x128xf32, #tpu.memory_space<vmem>>, vector<1x8x128xf32>,
    %c6_i32 = arith.constant 6 : i32
    %c8_i32_117 = arith.constant 8 : i32
    %251 = arith.muli %c6_i32, %c8_i32_117 : i32
    %252 = tpu.assume_multiple %251, 8 : i32
    %253 = arith.index_cast %252 : i32 to index
    %c0_118 = arith.constant 0 : index
    %254 = vector.load %arg9[%253, %c0_118] : memref<64x512xf32, #tpu.memory_space<vmem>>, vector<8x512xf32>
    %c0_119 = arith.constant 0 : index
    %c0_120 = arith.constant 0 : index
    %255 = vector.load %arg10[%c0_119, %c0_120] : memref<8x128xf32, #tpu.memory_space<vmem>>, vector<8x128xf32>
    %c0_121 = arith.constant 0 : index
    %c0_122 = arith.constant 0 : index
    %256 = vector.load %arg4[%c0_121, %c0_122] : memref<128x512xf32, #tpu.memory_space<vmem>>, vector<128x512xf32>
    %cst_123 = arith.constant dense<0.000000e+00> : vector<8x512xf32>
    %257 = tpu.matmul %255, %256, %cst_123 {dimension_numbers = #tpu.dot_dimension_numbers<[1], [0], [0], [1], [0, 0, 1, 1], [], []>} : vector<8x128xf32>, vector<128x512xf32>, vector<8x512xf32> -> vector<8x512xf32>
    %258 = arith.addf %254, %257 : vector<8x512xf32>
    %259 = vector.extract_strided_slice %258 {offsets = [0, 0], sizes = [8, 128], strides = [1, 1]} : vector<8x512xf32> to vector<8x128xf32>
    %260 = arith.negf %259 : vector<8x128xf32>
    %261 = math.exp %260 : vector<8x128xf32>
    %cst_124 = arith.constant 1.000000e+00 : f32
    %262 = vector.broadcast %cst_124 : f32 to vector<8x128xf32>
    %263 = arith.addf %262, %261 : vector<8x128xf32>
    %264 = arith.divf %262, %263 : vector<8x128xf32>
    %265 = vector.extract_strided_slice %258 {offsets = [0, 128], sizes = [8, 128], strides = [1, 1]} : vector<8x512xf32> to vector<8x128xf32>
    %266 = arith.negf %265 : vector<8x128xf32>
    %267 = math.exp %266 : vector<8x128xf32>
    %cst_125 = arith.constant 1.000000e+00 : f32
    %268 = vector.broadcast %cst_125 : f32 to vector<8x128xf32>
    %269 = arith.addf %268, %267 : vector<8x128xf32>
    %270 = arith.divf %268, %269 : vector<8x128xf32>
    %271 = vector.extract_strided_slice %258 {offsets = [0, 256], sizes = [8, 128], strides = [1, 1]} : vector<8x512xf32> to vector<8x128xf32>
    %272 = math.tanh %271 : vector<8x128xf32>
    %273 = vector.extract_strided_slice %258 {offsets = [0, 384], sizes = [8, 128], strides = [1, 1]} : vector<8x512xf32> to vector<8x128xf32>
    %274 = arith.negf %273 : vector<8x128xf32>
    %275 = math.exp %274 : vector<8x128xf32>
    %cst_126 = arith.constant 1.000000e+00 : f32
    %276 = vector.broadcast %cst_126 : f32 to vector<8x128xf32>
    %277 = arith.addf %276, %275 : vector<8x128xf32>
    %278 = arith.divf %276, %277 : vector<8x128xf32>
    %c0_127 = arith.constant 0 : index
    %c0_128 = arith.constant 0 : index
    %279 = vector.load %arg11[%c0_127, %c0_128] : memref<8x128xf32, #tpu.memory_space<vmem>>, vector<8x128xf32>
    %280 = arith.mulf %270, %279 : vector<8x128xf32>
    %281 = arith.mulf %264, %272 : vector<8x128xf32>
    %282 = arith.addf %280, %281 : vector<8x128xf32>
    %283 = math.tanh %282 : vector<8x128xf32>
    %284 = arith.mulf %278, %283 : vector<8x128xf32>
    %c0_129 = arith.constant 0 : index
    %c0_130 = arith.constant 0 : index
    %285 = vector.load %arg11[%c0_129, %c0_130] : memref<8x128xf32, #tpu.memory_space<vmem>>, vector<8x128xf32>
    tpu.vector_store %arg11[%c0_129, %c0_130], %282 {strides = array<i32>} : memref<8x128xf32, #tpu.memory_space<vmem>>, vector<8x128xf32>,
    %c0_131 = arith.constant 0 : index
    %c0_132 = arith.constant 0 : index
    %286 = vector.load %arg10[%c0_131, %c0_132] : memref<8x128xf32, #tpu.memory_space<vmem>>, vector<8x128xf32>
    tpu.vector_store %arg10[%c0_131, %c0_132], %284 {strides = array<i32>} : memref<8x128xf32, #tpu.memory_space<vmem>>, vector<8x128xf32>,
    %287 = arith.index_cast %c6_i32 : i32 to index
    %c0_133 = arith.constant 0 : index
    %c0_134 = arith.constant 0 : index
    %288 = vector.load %arg6[%287, %c0_133, %c0_134] : memref<8x8x128xf32, #tpu.memory_space<vmem>>, vector<1x8x128xf32>
    %289 = vector.shape_cast %288 : vector<1x8x128xf32> to vector<8x128xf32>
    %290 = vector.shape_cast %284 : vector<8x128xf32> to vector<1x8x128xf32>
    tpu.vector_store %arg6[%287, %c0_133, %c0_134], %290 {strides = array<i32>} : memref<8x8x128xf32, #tpu.memory_space<vmem>>, vector<1x8x128xf32>,
    %c7_i32 = arith.constant 7 : i32
    %c8_i32_135 = arith.constant 8 : i32
    %291 = arith.muli %c7_i32, %c8_i32_135 : i32
    %292 = tpu.assume_multiple %291, 8 : i32
    %293 = arith.index_cast %292 : i32 to index
    %c0_136 = arith.constant 0 : index
    %294 = vector.load %arg9[%293, %c0_136] : memref<64x512xf32, #tpu.memory_space<vmem>>, vector<8x512xf32>
    %c0_137 = arith.constant 0 : index
    %c0_138 = arith.constant 0 : index
    %295 = vector.load %arg10[%c0_137, %c0_138] : memref<8x128xf32, #tpu.memory_space<vmem>>, vector<8x128xf32>
    %c0_139 = arith.constant 0 : index
    %c0_140 = arith.constant 0 : index
    %296 = vector.load %arg4[%c0_139, %c0_140] : memref<128x512xf32, #tpu.memory_space<vmem>>, vector<128x512xf32>
    %cst_141 = arith.constant dense<0.000000e+00> : vector<8x512xf32>
    %297 = tpu.matmul %295, %296, %cst_141 {dimension_numbers = #tpu.dot_dimension_numbers<[1], [0], [0], [1], [0, 0, 1, 1], [], []>} : vector<8x128xf32>, vector<128x512xf32>, vector<8x512xf32> -> vector<8x512xf32>
    %298 = arith.addf %294, %297 : vector<8x512xf32>
    %299 = vector.extract_strided_slice %298 {offsets = [0, 0], sizes = [8, 128], strides = [1, 1]} : vector<8x512xf32> to vector<8x128xf32>
    %300 = arith.negf %299 : vector<8x128xf32>
    %301 = math.exp %300 : vector<8x128xf32>
    %cst_142 = arith.constant 1.000000e+00 : f32
    %302 = vector.broadcast %cst_142 : f32 to vector<8x128xf32>
    %303 = arith.addf %302, %301 : vector<8x128xf32>
    %304 = arith.divf %302, %303 : vector<8x128xf32>
    %305 = vector.extract_strided_slice %298 {offsets = [0, 128], sizes = [8, 128], strides = [1, 1]} : vector<8x512xf32> to vector<8x128xf32>
    %306 = arith.negf %305 : vector<8x128xf32>
    %307 = math.exp %306 : vector<8x128xf32>
    %cst_143 = arith.constant 1.000000e+00 : f32
    %308 = vector.broadcast %cst_143 : f32 to vector<8x128xf32>
    %309 = arith.addf %308, %307 : vector<8x128xf32>
    %310 = arith.divf %308, %309 : vector<8x128xf32>
    %311 = vector.extract_strided_slice %298 {offsets = [0, 256], sizes = [8, 128], strides = [1, 1]} : vector<8x512xf32> to vector<8x128xf32>
    %312 = math.tanh %311 : vector<8x128xf32>
    %313 = vector.extract_strided_slice %298 {offsets = [0, 384], sizes = [8, 128], strides = [1, 1]} : vector<8x512xf32> to vector<8x128xf32>
    %314 = arith.negf %313 : vector<8x128xf32>
    %315 = math.exp %314 : vector<8x128xf32>
    %cst_144 = arith.constant 1.000000e+00 : f32
    %316 = vector.broadcast %cst_144 : f32 to vector<8x128xf32>
    %317 = arith.addf %316, %315 : vector<8x128xf32>
    %318 = arith.divf %316, %317 : vector<8x128xf32>
    %c0_145 = arith.constant 0 : index
    %c0_146 = arith.constant 0 : index
    %319 = vector.load %arg11[%c0_145, %c0_146] : memref<8x128xf32, #tpu.memory_space<vmem>>, vector<8x128xf32>
    %320 = arith.mulf %310, %319 : vector<8x128xf32>
    %321 = arith.mulf %304, %312 : vector<8x128xf32>
    %322 = arith.addf %320, %321 : vector<8x128xf32>
    %323 = math.tanh %322 : vector<8x128xf32>
    %324 = arith.mulf %318, %323 : vector<8x128xf32>
    %c0_147 = arith.constant 0 : index
    %c0_148 = arith.constant 0 : index
    %325 = vector.load %arg11[%c0_147, %c0_148] : memref<8x128xf32, #tpu.memory_space<vmem>>, vector<8x128xf32>
    tpu.vector_store %arg11[%c0_147, %c0_148], %322 {strides = array<i32>} : memref<8x128xf32, #tpu.memory_space<vmem>>, vector<8x128xf32>,
    %c0_149 = arith.constant 0 : index
    %c0_150 = arith.constant 0 : index
    %326 = vector.load %arg10[%c0_149, %c0_150] : memref<8x128xf32, #tpu.memory_space<vmem>>, vector<8x128xf32>
    tpu.vector_store %arg10[%c0_149, %c0_150], %324 {strides = array<i32>} : memref<8x128xf32, #tpu.memory_space<vmem>>, vector<8x128xf32>,
    %327 = arith.index_cast %c7_i32 : i32 to index
    %c0_151 = arith.constant 0 : index
    %c0_152 = arith.constant 0 : index
    %328 = vector.load %arg6[%327, %c0_151, %c0_152] : memref<8x8x128xf32, #tpu.memory_space<vmem>>, vector<1x8x128xf32>
    %329 = vector.shape_cast %328 : vector<1x8x128xf32> to vector<8x128xf32>
    %330 = vector.shape_cast %324 : vector<8x128xf32> to vector<1x8x128xf32>
    tpu.vector_store %arg6[%327, %c0_151, %c0_152], %330 {strides = array<i32>} : memref<8x8x128xf32, #tpu.memory_space<vmem>>, vector<1x8x128xf32>,
    %c8_i32_153 = arith.constant 8 : i32
    %c0_i32_154 = arith.constant 0 : i32
    %331 = arith.cmpi eq, %arg1, %c0_i32_154 : i32
    %332 = arith.extui %331 : i1 to i32
    %c0_i32_155 = arith.constant 0 : i32
    %333 = arith.cmpi ne, %332, %c0_i32_155 : i32
    scf.if %333 {
      %c0_156 = arith.constant 0 : index
      %c0_157 = arith.constant 0 : index
      %334 = vector.load %arg10[%c0_156, %c0_157] : memref<8x128xf32, #tpu.memory_space<vmem>>, vector<8x128xf32>
      %c0_158 = arith.constant 0 : index
      %c0_159 = arith.constant 0 : index
      %c0_160 = arith.constant 0 : index
      %335 = vector.load %arg7[%c0_158, %c0_159, %c0_160] : memref<1x8x128xf32, #tpu.memory_space<vmem>>, vector<1x8x128xf32>
      %336 = vector.shape_cast %335 : vector<1x8x128xf32> to vector<8x128xf32>
      %337 = vector.shape_cast %334 : vector<8x128xf32> to vector<1x8x128xf32>
      tpu.vector_store %arg7[%c0_158, %c0_159, %c0_160], %337 {strides = array<i32>} : memref<1x8x128xf32, #tpu.memory_space<vmem>>, vector<1x8x128xf32>,
      %c0_161 = arith.constant 0 : index
      %c0_162 = arith.constant 0 : index
      %338 = vector.load %arg11[%c0_161, %c0_162] : memref<8x128xf32, #tpu.memory_space<vmem>>, vector<8x128xf32>
      %c0_163 = arith.constant 0 : index
      %c0_164 = arith.constant 0 : index
      %c0_165 = arith.constant 0 : index
      %339 = vector.load %arg8[%c0_163, %c0_164, %c0_165] : memref<1x8x128xf32, #tpu.memory_space<vmem>>, vector<1x8x128xf32>
      %340 = vector.shape_cast %339 : vector<1x8x128xf32> to vector<8x128xf32>
      %341 = vector.shape_cast %338 : vector<8x128xf32> to vector<1x8x128xf32>
      tpu.vector_store %arg8[%c0_163, %c0_164, %c0_165], %341 {strides = array<i32>} : memref<1x8x128xf32, #tpu.memory_space<vmem>>, vector<1x8x128xf32>,
    } else {
    }
    return
  }
  func.func @transform_0(%arg0: i32, %arg1: i32) -> (i32, i32, i32) {
    %c0_i32 = arith.constant 0 : i32
    %c0_i32_0 = arith.constant 0 : i32
    return %arg1, %arg0, %c0_i32 : i32, i32, i32
  }
  func.func @transform_1(%arg0: i32, %arg1: i32) -> (i32, i32) {
    %c0_i32 = arith.constant 0 : i32
    %c0_i32_0 = arith.constant 0 : i32
    %c0_i32_1 = arith.constant 0 : i32
    return %c0_i32, %c0_i32_0 : i32, i32
  }
  func.func @transform_2(%arg0: i32, %arg1: i32) -> (i32, i32) {
    %c0_i32 = arith.constant 0 : i32
    %c0_i32_0 = arith.constant 0 : i32
    %c0_i32_1 = arith.constant 0 : i32
    return %c0_i32, %c0_i32_0 : i32, i32
  }
  func.func @transform_3(%arg0: i32, %arg1: i32) -> (i32, i32) {
    %c0_i32 = arith.constant 0 : i32
    %c0_i32_0 = arith.constant 0 : i32
    %c0_i32_1 = arith.constant 0 : i32
    return %c0_i32, %c0_i32_0 : i32, i32
  }
  func.func @transform_4(%arg0: i32, %arg1: i32) -> (i32, i32, i32) {
    %c0_i32 = arith.constant 0 : i32
    %c0_i32_0 = arith.constant 0 : i32
    return %arg1, %arg0, %c0_i32 : i32, i32, i32
  }
  func.func @transform_5(%arg0: i32, %arg1: i32) -> (i32, i32, i32) {
    %c0_i32 = arith.constant 0 : i32
    %c0_i32_0 = arith.constant 0 : i32
    %c0_i32_1 = arith.constant 0 : i32
    return %c0_i32, %arg0, %c0_i32_0 : i32, i32, i32
  }
  func.func @transform_6(%arg0: i32, %arg1: i32) -> (i32, i32, i32) {
    %c0_i32 = arith.constant 0 : i32
    %c0_i32_0 = arith.constant 0 : i32
    %c0_i32_1 = arith.constant 0 : i32
    return %c0_i32, %arg0, %c0_i32_0 : i32, i32, i32
  }
}

</mosaic_0001>

<bundles_post_ra>
// kernel: tpu_custom_call.1
= control target key start
LH: loop header
LB: loop body
LE: loop exit
PB: predicated region body
PF: predicated region fallthrough
CT: control target
= control target key end

     0   :  { %12 = vsyncpa [#allocation6], 0  ;;  %s3757_s0 = inlined_call_operand.hbm [shape: f32[8,8,16], index: 0, kind: input, shape index: {}]   ;;  %s3758_s1 = inlined_call_operand.hbm [shape: f32[16,512], index: 1, kind: input, shape index: {}]   ;;  %s3759_s2 = inlined_call_operand.hbm [shape: f32[128,512], index: 2, kind: input, shape index: {}]   ;;  %s3760_s3 = inlined_call_operand.hbm [shape: f32[1,512], index: 3, kind: input, shape index: {}]   ;;  %s3761_s4 = inlined_call_operand.hbm [shape: f32[8,8,128], index: 4, kind: output, shape index: {0}]   ;;  %s3762_s5 = inlined_call_operand.hbm [shape: f32[1,8,128], index: 5, kind: output, shape index: {1}]   ;;  %s3763_s6 = inlined_call_operand.hbm [shape: f32[1,8,128], index: 6, kind: output, shape index: {2}]  }
   0x1   :  { %13 = vsyncpa [#allocation9], 0 }
   0x2   :  { %14 = vsyncpa [#allocation12], 0 }
   0x3   :  { %15 = vsyncpa [#allocation7], 0  ;;  %s34_s23 = sshll.u32 %s3758_s1, 4  ;;  %s35_s23 = int_to_ptr.hbm [resolvable:$true] %s34_s23 }
   0x4   :  { %16 = vsyncpa [#allocation15], 0  ;;  %s2567_s24 = smov [#allocation8]   ;;  %s21_s28 = sshll.u32 %s3757_s0, 4  ;;  %s22_s28 = int_to_ptr.hbm [resolvable:$true] %s21_s28 }
   0x5   :  { %s36_s25 = sshll.u32 %s2567_s24, 4  ;;  %s2568_s29 = smov 512   ;;  %s37_s25 = int_to_ptr.vmem [resolvable:$true] %s36_s25 }
   0x6   :  { %s2569_s30 = smov 32   ;;  %s2570_s7 = smov [#allocation5]  }
   0x7   :  { %42 = dma.hbm_to_vmem [thread:$0]  %s35_s23, 1024, %s37_s25, [#allocation9], %s2568_s29, %s2568_s29, %s2569_s30  }
   0x8   :  { %s23_s8 = sshll.u32 %s2570_s7, 4  ;;  %s2571_s9 = smov 128   ;;  %s24_s8 = int_to_ptr.vmem [resolvable:$true] %s23_s8 }
   0x9   :  { %s2572_s10 = smov 8   ;;  %s47_s12 = sshll.u32 %s3759_s2, 4  ;;  %s48_s12 = int_to_ptr.hbm [resolvable:$true] %s47_s12 }
   0xa   :  { %29 = dma.hbm_to_vmem [thread:$0]  %s22_s28, 1024, %s24_s8, [#allocation6], %s2571_s9, %s2571_s9, %s2572_s10  }
   0xb   :  { %s2573_s13 = smov [#allocation10]   ;;  %s61_s16 = sshll.u32 %s3760_s3, 4  ;;  %s62_s16 = int_to_ptr.hbm [resolvable:$true] %s61_s16 }
   0xc   :  { %s49_s0 = sshll.u32 %s2573_s13, 4  ;;  %s2574_s17 = smov [#allocation11]   ;;  %s50_s0 = int_to_ptr.vmem [resolvable:$true] %s49_s0 }
   0xd   :  { %55 = dma.hbm_to_vmem [thread:$0]  %s48_s12, 8192, %s50_s0, [#allocation9], %s2568_s29, %s2568_s29, %s2569_s30  }
   0xe   :  { %s63_s18 = sshll.u32 %s2574_s17, 4  ;;  %s64_s18 = int_to_ptr.vmem [resolvable:$true] %s63_s18 }
   0xf   :  { %66 = dma.hbm_to_vmem [thread:$0]  %s62_s16, 64, %s64_s18, [#allocation12]  }
  0x10   :  { %2557 = dma.done.wait [#allocation6], 1024  }
  0x11   :  { %2558 = vsyncadd [#allocation6], 4294966272 }
  0x12   :  { %2559 = dma.done.wait [#allocation9], 9216  }
  0x13   :  { %2560 = vsyncadd [#allocation9], 4294958080 }
  0x14   :  { %2561 = dma.done.wait [#allocation12], 64  }
  0x15   :  { %2562 = vsyncadd [#allocation12], 4294967232  ;;  %v101_v0 = vld [vmem:[#allocation8 + $0x20] sm:$0xff]  ;;  %v102_v1 = vld [vmem:[#allocation8 + $0x28] sm:$0xff]  ;;  %vm115_vm0 = vcmask 130048   ;;  %s2576_s2 = smov [#allocation13]  }
  0x16   :  { %v103_v2 = vld [vmem:[#allocation8 + $0x30] sm:$0xff]  ;;  %154 = vmatpush.msra.mxu0 %v101_v0  ;;  %195 = vmatpush.msra.mxu1 %v102_v1  ;;  %v104_v3 = vld [vmem:[#allocation8 + $0x38] sm:$0xff]  ;;  %v97_v4 = vld [vmem:[#allocation8] sm:$0xff]  ;;  %s2138_s3 = sshll.u32 %s2576_s2, 4  ;;  %s2140_s21 = sshll.u32 %s3761_s4, 4  ;;  %s2139_s3 = int_to_ptr.vmem [resolvable:$true] %s2138_s3  ;;  %s2141_s21 = int_to_ptr.hbm [resolvable:$true] %s2140_s21 }
  0x17   :  { %v98_v5 = vld [vmem:[#allocation8 + $0x8] sm:$0xff]  ;;  %236 = vmatpush.msra.mxu2 %v103_v2  ;;  %277 = vmatpush.msra.mxu3 %v104_v3  ;;  %v99_v6 = vld [vmem:[#allocation8 + $0x10] sm:$0xff]  ;;  %v100_v7 = vld [vmem:[#allocation8 + $0x18] sm:$0xff]  ;;  %s2577_s22 = smov [#allocation14]   ;;  %s2154_s26 = sshll.u32 %s3762_s5, 4  ;;  %s2155_s26 = int_to_ptr.hbm [resolvable:$true] %s2154_s26 }
  0x18   :  { %v89_v8 = vld [vmem:[#allocation5] sm:$0xff]  ;;  %155 = vmatpush.msra.mxu0 %v97_v4  ;;  %196 = vmatpush.msra.mxu1 %v98_v5  ;;  %v2631_v10 = vld [vmem:[#allocation10 + $0x1e8] sm:$0xff]  ;;  %v2635_v11 = vld [vmem:[#allocation10 + $0x1f8] sm:$0xff]  ;;  %s2152_s23 = sshll.u32 %s2577_s22, 4  ;;  %s2578_s27 = smov [#allocation16]   ;;  %s2153_s23 = int_to_ptr.vmem [resolvable:$true] %s2152_s23 }
  0x19   :  { %237 = vmatpush.msra.mxu2 %v99_v6  ;;  %278 = vmatpush.msra.mxu3 %v100_v7  ;;  %v2629_v9 = vld [vmem:[#allocation10 + $0x1e0] sm:$0xff]  ;;  %v2641_v13 = vld [vmem:[#allocation10 + $0x1c8] sm:$0xff]  ;;  %v2645_v14 = vld [vmem:[#allocation10 + $0x1d8] sm:$0xff]  ;;  %s2163_s28 = sshll.u32 %s2578_s27, 4  ;;  %s2165_s7 = sshll.u32 %s3763_s6, 4  ;;  %s2164_s28 = int_to_ptr.vmem [resolvable:$true] %s2163_s28  ;;  %s2166_s7 = int_to_ptr.hbm [resolvable:$true] %s2165_s7 }
  0x1a   :  { %2193 = vmatmul.msk.f32.vlgmr.msra.gmra.mxu0 %vm115_vm0, %v89_v8  ;;  %2201 = vmatmul.msk.f32.vlgmr.msra.gmra.mxu1 %vm115_vm0, %v89_v8  ;;  %v2639_v12 = vld [vmem:[#allocation10 + $0x1c0] sm:$0xff]  ;;  %v2647_v15 = vld [vmem:[#allocation10 + $0x1f0] sm:$0xff]  ;;  %v2652_v17 = vld [vmem:[#allocation10 + $0x1a8] sm:$0xff] }
  0x1b   :  { %2209 = vmatmul.msk.f32.vlgmr.msra.gmra.mxu2 %vm115_vm0, %v89_v8  ;;  %2217 = vmatmul.msk.f32.vlgmr.msra.gmra.mxu3 %vm115_vm0, %v89_v8  ;;  %v2650_v16 = vld [vmem:[#allocation10 + $0x1a0] sm:$0xff]  ;;  %v2655_v18 = vld [vmem:[#allocation10 + $0x1d0] sm:$0xff]  ;;  %v2659_v19 = vld [vmem:[#allocation10 + $0x1b8] sm:$0xff] }
  0x1c   :  { %408 = vmatpush.msrb.mxu0 %v2629_v9  ;;  %428 = vmatpush.msrb.mxu1 %v2631_v10  ;;  %v90_v20 = vld [vmem:[#allocation5 + $0x8] sm:$0xff]  ;;  %v2663_v21 = vld [vmem:[#allocation10 + $0x1b0] sm:$0xff]  ;;  %v2667_v22 = vld [vmem:[#allocation10 + $0x180] sm:$0xff] }
  0x1d   :  { %468 = vmatpush.msrb.mxu3 %v2635_v11  ;;  %448 = vmatpush.msrb.mxu2 %v2647_v15  ;;  %v2669_v23 = vld [vmem:[#allocation10 + $0x188] sm:$0xff]  ;;  %v2675_v24 = vld [vmem:[#allocation10 + $0x198] sm:$0xff]  ;;  %v2677_v25 = vld [vmem:[#allocation10 + $0x190] sm:$0xff] }
  0x1e   :  { %409 = vmatpush.msrb.mxu0 %v2639_v12  ;;  %429 = vmatpush.msrb.mxu1 %v2641_v13  ;;  %v2681_v26 = vld [vmem:[#allocation10 + $0x160] sm:$0xff]  ;;  %v2683_v27 = vld [vmem:[#allocation10 + $0x168] sm:$0xff]  ;;  %v2687_v28 = vld [vmem:[#allocation10 + $0x178] sm:$0xff] }
  0x1f   :  { %469 = vmatpush.msrb.mxu3 %v2645_v14  ;;  %449 = vmatpush.msrb.mxu2 %v2655_v18  ;;  %v2689_v29 = vld [vmem:[#allocation10 + $0x170] sm:$0xff]  ;;  %v2692_v30 = vld [vmem:[#allocation10 + $0x140] sm:$0xff]  ;;  %v2694_v31 = vld [vmem:[#allocation10 + $0x148] sm:$0xff] }
  0x20   :  { %410 = vmatpush.msrb.mxu0 %v2650_v16  ;;  %430 = vmatpush.msrb.mxu1 %v2652_v17  ;;  %v2699_v32 = vld [vmem:[#allocation10 + $0x158] sm:$0xff]  ;;  %v2701_v33 = vld [vmem:[#allocation10 + $0x150] sm:$0xff]  ;;  %v2707_v35 = vld [vmem:[#allocation10 + $0x120] sm:$0xff] }
  0x21   :  { %470 = vmatpush.msrb.mxu3 %v2659_v19  ;;  %450 = vmatpush.msrb.mxu2 %v2663_v21  ;;  %v91_v34 = vld [vmem:[#allocation5 + $0x10] sm:$0xff]  ;;  %v2709_v36 = vld [vmem:[#allocation10 + $0x128] sm:$0xff]  ;;  %v2715_v37 = vld [vmem:[#allocation10 + $0x138] sm:$0xff] }
  0x22   :  { %2194 = vmatmul.msk.f32.gmra.mxu0 %vm115_vm0, %v90_v20  ;;  %2202 = vmatmul.msk.f32.gmra.mxu1 %vm115_vm0, %v90_v20  ;;  %v2717_v38 = vld [vmem:[#allocation10 + $0x130] sm:$0xff]  ;;  %v2721_v39 = vld [vmem:[#allocation10 + $0x100] sm:$0xff]  ;;  %v2723_v40 = vld [vmem:[#allocation10 + $0x108] sm:$0xff] }
  0x23   :  { %2210 = vmatmul.msk.f32.gmra.mxu2 %vm115_vm0, %v90_v20  ;;  %2218 = vmatmul.msk.f32.gmra.mxu3 %vm115_vm0, %v90_v20  ;;  %v2727_v41 = vld [vmem:[#allocation10 + $0x118] sm:$0xff]  ;;  %v2729_v42 = vld [vmem:[#allocation10 + $0x110] sm:$0xff]  ;;  %v2732_v43 = vld [vmem:[#allocation10 + $0xe0] sm:$0xff] }
  0x24   :  { %411 = vmatpush.msrb.mxu0 %v2667_v22  ;;  %431 = vmatpush.msrb.mxu1 %v2669_v23  ;;  %v2734_v44 = vld [vmem:[#allocation10 + $0xe8] sm:$0xff]  ;;  %v2739_v45 = vld [vmem:[#allocation10 + $0xf8] sm:$0xff]  ;;  %v2741_v46 = vld [vmem:[#allocation10 + $0xf0] sm:$0xff] }
  0x25   :  { %471 = vmatpush.msrb.mxu3 %v2675_v24  ;;  %451 = vmatpush.msrb.mxu2 %v2677_v25  ;;  %v92_v47 = vld [vmem:[#allocation5 + $0x18] sm:$0xff]  ;;  %v2747_v48 = vld [vmem:[#allocation10 + $0xc0] sm:$0xff]  ;;  %v2749_v49 = vld [vmem:[#allocation10 + $0xc8] sm:$0xff] }
  0x26   :  { %412 = vmatpush.msrb.mxu0 %v2681_v26  ;;  %432 = vmatpush.msrb.mxu1 %v2683_v27  ;;  %v2755_v50 = vld [vmem:[#allocation10 + $0xd8] sm:$0xff]  ;;  %v2757_v51 = vld [vmem:[#allocation10 + $0xd0] sm:$0xff]  ;;  %v2761_v52 = vld [vmem:[#allocation10 + $0xa0] sm:$0xff] }
  0x27   :  { %472 = vmatpush.msrb.mxu3 %v2687_v28  ;;  %452 = vmatpush.msrb.mxu2 %v2689_v29  ;;  %v2763_v53 = vld [vmem:[#allocation10 + $0xa8] sm:$0xff]  ;;  %v2767_v54 = vld [vmem:[#allocation10 + $0xb8] sm:$0xff]  ;;  %v2769_v55 = vld [vmem:[#allocation10 + $0xb0] sm:$0xff] }
  0x28   :  { %413 = vmatpush.msrb.mxu0 %v2692_v30  ;;  %433 = vmatpush.msrb.mxu1 %v2694_v31  ;;  %v2772_v56 = vld [vmem:[#allocation10 + $0x80] sm:$0xff]  ;;  %v2774_v57 = vld [vmem:[#allocation10 + $0x88] sm:$0xff]  ;;  %v2779_v58 = vld [vmem:[#allocation10 + $0x98] sm:$0xff] }
  0x29   :  { %473 = vmatpush.msrb.mxu3 %v2699_v32  ;;  %453 = vmatpush.msrb.mxu2 %v2701_v33  ;;  %v2781_v59 = vld [vmem:[#allocation10 + $0x90] sm:$0xff]  ;;  %v93_v60 = vld [vmem:[#allocation5 + $0x20] sm:$0xff]  ;;  %v2789_v62 = vld [vmem:[#allocation10 + $0x68] sm:$0xff] }
  0x2a   :  { %2195 = vmatmul.msk.f32.gmra.mxu0 %vm115_vm0, %v91_v34  ;;  %2203 = vmatmul.msk.f32.gmra.mxu1 %vm115_vm0, %v91_v34  ;;  %v2787_v61 = vld [vmem:[#allocation10 + $0x60] sm:$0xff]  ;;  %v2795_v63 = vld [vmem:[#allocation10 + $0x78] sm:$0xff]  ;;  %v2797_v0 = vld [vmem:[#allocation10 + $0x70] sm:$0xff] }
  0x2b   :  { %2211 = vmatmul.msk.f32.gmra.mxu2 %vm115_vm0, %v91_v34  ;;  %2219 = vmatmul.msk.f32.gmra.mxu3 %vm115_vm0, %v91_v34  ;;  %v2801_v1 = vld [vmem:[#allocation10 + $0x40] sm:$0xff]  ;;  %v2803_v2 = vld [vmem:[#allocation10 + $0x48] sm:$0xff]  ;;  %v2807_v3 = vld [vmem:[#allocation10 + $0x58] sm:$0xff] }
  0x2c   :  { %414 = vmatpush.msrb.mxu0 %v2707_v35  ;;  %434 = vmatpush.msrb.mxu1 %v2709_v36  ;;  %3801 = vst [vmem:[#allocation22_spill] sm:$0xff] %v2807_v3  ;;  %v2809_v4 = vld [vmem:[#allocation10 + $0x50] sm:$0xff]  ;;  %v2812_v5 = vld [vmem:[#allocation10 + $0x20] sm:$0xff]  ;;  %v2814_v6 = vld [vmem:[#allocation10 + $0x28] sm:$0xff] }
  0x2d   :  { %474 = vmatpush.msrb.mxu3 %v2715_v37  ;;  %454 = vmatpush.msrb.mxu2 %v2717_v38  ;;  %v2819_v7 = vld [vmem:[#allocation10 + $0x30] sm:$0xff]  ;;  %v2821_v8 = vld [vmem:[#allocation10 + $0x38] sm:$0xff]  ;;  %v94_v20 = vld [vmem:[#allocation5 + $0x28] sm:$0xff] }
  0x2e   :  { %415 = vmatpush.msrb.mxu0 %v2721_v39  ;;  %435 = vmatpush.msrb.mxu1 %v2723_v40  ;;  %3802 = vst [vmem:[#allocation23_spill] sm:$0xff] %v2821_v8  ;;  %v2827_v34 = vld [vmem:[#allocation10] sm:$0xff] }
  0x2f   :  { %475 = vmatpush.msrb.mxu3 %v2727_v41  ;;  %455 = vmatpush.msrb.mxu2 %v2729_v42 }
  0x30   :  { %416 = vmatpush.msrb.mxu0 %v2732_v43  ;;  %436 = vmatpush.msrb.mxu1 %v2734_v44 }
  0x31   :  { %476 = vmatpush.msrb.mxu3 %v2739_v45  ;;  %456 = vmatpush.msrb.mxu2 %v2741_v46 }
  0x32   :  { %2196 = vmatmul.msk.f32.gmra.mxu0 %vm115_vm0, %v92_v47  ;;  %2204 = vmatmul.msk.f32.gmra.mxu1 %vm115_vm0, %v92_v47 }
  0x33   :  { %2212 = vmatmul.msk.f32.gmra.mxu2 %vm115_vm0, %v92_v47  ;;  %2220 = vmatmul.msk.f32.gmra.mxu3 %vm115_vm0, %v92_v47  ;;  %v2829_v47 = vld [vmem:[#allocation10 + $0x8] sm:$0xff] }
  0x34   :  { %417 = vmatpush.msrb.mxu0 %v2747_v48  ;;  %437 = vmatpush.msrb.mxu1 %v2749_v49 }
  0x35   :  { %477 = vmatpush.msrb.mxu3 %v2755_v50  ;;  %457 = vmatpush.msrb.mxu2 %v2757_v51 }
  0x36   :  { %418 = vmatpush.msrb.mxu0 %v2761_v52  ;;  %438 = vmatpush.msrb.mxu1 %v2763_v53 }
  0x37   :  { %478 = vmatpush.msrb.mxu3 %v2767_v54  ;;  %458 = vmatpush.msrb.mxu2 %v2769_v55 }
  0x38   :  { %419 = vmatpush.msrb.mxu0 %v2772_v56  ;;  %439 = vmatpush.msrb.mxu1 %v2774_v57 }
  0x39   :  { %479 = vmatpush.msrb.mxu3 %v2779_v58  ;;  %459 = vmatpush.msrb.mxu2 %v2781_v59 }
  0x3a   :  { %2197 = vmatmul.msk.f32.gmra.mxu0 %vm115_vm0, %v93_v60  ;;  %2205 = vmatmul.msk.f32.gmra.mxu1 %vm115_vm0, %v93_v60 }
  0x3b   :  { %2213 = vmatmul.msk.f32.gmra.mxu2 %vm115_vm0, %v93_v60  ;;  %2221 = vmatmul.msk.f32.gmra.mxu3 %vm115_vm0, %v93_v60  ;;  %v2835_v60 = vld [vmem:[#allocation10 + $0x10] sm:$0xff] }
  0x3c   :  { %420 = vmatpush.msrb.mxu0 %v2787_v61  ;;  %440 = vmatpush.msrb.mxu1 %v2789_v62 }
  0x3d   :  { %480 = vmatpush.msrb.mxu3 %v2795_v63  ;;  %460 = vmatpush.msrb.mxu2 %v2797_v0 }
  0x3e   :  { %421 = vmatpush.msrb.mxu0 %v2801_v1  ;;  %441 = vmatpush.msrb.mxu1 %v2803_v2 }
  0x3f   :  { %481 = vmatpush.msrb.mxu3 %v2807_v3  ;;  %461 = vmatpush.msrb.mxu2 %v2809_v4  ;;  %v2837_v3 = vld [vmem:[#allocation10 + $0x18] sm:$0xff] }
  0x40   :  { %422 = vmatpush.msrb.mxu0 %v2812_v5  ;;  %442 = vmatpush.msrb.mxu1 %v2814_v6 }
  0x41   :  { %462 = vmatpush.msrb.mxu2 %v2819_v7  ;;  %482 = vmatpush.msrb.mxu3 %v2821_v8  ;;  %v95_v8 = vld [vmem:[#allocation5 + $0x30] sm:$0xff] }
  0x42   :  { %2198 = vmatmul.msk.f32.gmra.mxu0 %vm115_vm0, %v94_v20  ;;  %2206 = vmatmul.msk.f32.gmra.mxu1 %vm115_vm0, %v94_v20 }
  0x43   :  { %2214 = vmatmul.msk.f32.gmra.mxu2 %vm115_vm0, %v94_v20  ;;  %2222 = vmatmul.msk.f32.gmra.mxu3 %vm115_vm0, %v94_v20  ;;  %v96_v20 = vld [vmem:[#allocation5 + $0x38] sm:$0xff] }
  0x44   :  { %423 = vmatpush.msrb.mxu0 %v2827_v34  ;;  %443 = vmatpush.msrb.mxu1 %v2829_v47 }
  0x45   :  { %463 = vmatpush.msrb.mxu2 %v2835_v60  ;;  %483 = vmatpush.msrb.mxu3 %v2837_v3 }
  0x46   :  { %631 = vmatpush.msra.mxu0 %v2629_v9  ;;  %651 = vmatpush.msra.mxu1 %v2631_v10 }
  0x47   :  { %671 = vmatpush.msra.mxu2 %v2647_v15  ;;  %691 = vmatpush.msra.mxu3 %v2635_v11 }
  0x48   :  { %632 = vmatpush.msra.mxu0 %v2639_v12  ;;  %652 = vmatpush.msra.mxu1 %v2641_v13 }
  0x49   :  { %672 = vmatpush.msra.mxu2 %v2655_v18  ;;  %692 = vmatpush.msra.mxu3 %v2645_v14 }
  0x4a   :  { %2199 = vmatmul.msk.f32.gmra.mxu0 %vm115_vm0, %v95_v8  ;;  %2207 = vmatmul.msk.f32.gmra.mxu1 %vm115_vm0, %v95_v8 }
  0x4b   :  { %2215 = vmatmul.msk.f32.gmra.mxu2 %vm115_vm0, %v95_v8  ;;  %2223 = vmatmul.msk.f32.gmra.mxu3 %vm115_vm0, %v95_v8  ;;  %v2575_v8 = vmov 0.0  }
  0x4c   :  { %633 = vmatpush.msra.mxu0 %v2650_v16  ;;  %653 = vmatpush.msra.mxu1 %v2652_v17 }
  0x4d   :  { %673 = vmatpush.msra.mxu2 %v2663_v21  ;;  %693 = vmatpush.msra.mxu3 %v2659_v19 }
  0x4e   :  { %634 = vmatpush.msra.mxu0 %v2667_v22  ;;  %654 = vmatpush.msra.mxu1 %v2669_v23 }
  0x4f   :  { %674 = vmatpush.msra.mxu2 %v2677_v25  ;;  %694 = vmatpush.msra.mxu3 %v2675_v24 }
  0x50   :  { %635 = vmatpush.msra.mxu0 %v2681_v26  ;;  %655 = vmatpush.msra.mxu1 %v2683_v27 }
  0x51   :  { %675 = vmatpush.msra.mxu2 %v2689_v29  ;;  %695 = vmatpush.msra.mxu3 %v2687_v28 }
  0x52   :  { %2200 = vmatmul.msk.f32.gmra.mxu0 %vm115_vm0, %v96_v20  ;;  %2208 = vmatmul.msk.f32.gmra.mxu1 %vm115_vm0, %v96_v20 }
  0x53   :  { %2216 = vmatmul.msk.f32.gmra.mxu2 %vm115_vm0, %v96_v20  ;;  %2224 = vmatmul.msk.f32.gmra.mxu3 %vm115_vm0, %v96_v20  ;;  %v3803_v20 = vld [vmem:[#allocation22_spill] sm:$0xff] }
  0x54   :  { %636 = vmatpush.msra.mxu0 %v2692_v30  ;;  %656 = vmatpush.msra.mxu1 %v2694_v31 }
  0x55   :  { %676 = vmatpush.msra.mxu2 %v2701_v33  ;;  %696 = vmatpush.msra.mxu3 %v2699_v32 }
  0x56   :  { %637 = vmatpush.msra.mxu0 %v2707_v35  ;;  %657 = vmatpush.msra.mxu1 %v2709_v36 }
  0x57   :  { %677 = vmatpush.msra.mxu2 %v2717_v38  ;;  %697 = vmatpush.msra.mxu3 %v2715_v37 }
  0x58   :  { %638 = vmatpush.msra.mxu0 %v2721_v39  ;;  %658 = vmatpush.msra.mxu1 %v2723_v40 }
  0x59   :  { %678 = vmatpush.msra.mxu2 %v2729_v42  ;;  %698 = vmatpush.msra.mxu3 %v2727_v41 }
  0x5a   :  { %424 = vmatmul.f32.vlgmr.msrb.gmra.mxu0 %v2575_v8  ;;  %444 = vmatmul.f32.vlgmr.msrb.gmra.mxu1 %v2575_v8 }
  0x5b   :  { %464 = vmatmul.f32.vlgmr.msrb.gmra.mxu2 %v2575_v8  ;;  %484 = vmatmul.f32.vlgmr.msrb.gmra.mxu3 %v2575_v8  ;;  %v3804_v8 = vld [vmem:[#allocation23_spill] sm:$0xff] }
  0x5c   :  { %639 = vmatpush.msra.mxu0 %v2732_v43  ;;  %659 = vmatpush.msra.mxu1 %v2734_v44 }
  0x5d   :  { %679 = vmatpush.msra.mxu2 %v2741_v46  ;;  %699 = vmatpush.msra.mxu3 %v2739_v45 }
  0x5e   :  { %640 = vmatpush.msra.mxu0 %v2747_v48  ;;  %660 = vmatpush.msra.mxu1 %v2749_v49 }
  0x5f   :  { %680 = vmatpush.msra.mxu2 %v2757_v51  ;;  %700 = vmatpush.msra.mxu3 %v2755_v50 }
  0x60   :  { %641 = vmatpush.msra.mxu0 %v2761_v52  ;;  %661 = vmatpush.msra.mxu1 %v2763_v53 }
  0x61   :  { %681 = vmatpush.msra.mxu2 %v2769_v55  ;;  %701 = vmatpush.msra.mxu3 %v2767_v54 }
  0x62   :  { %642 = vmatpush.msra.mxu0 %v2772_v56  ;;  %662 = vmatpush.msra.mxu1 %v2774_v57 }
  0x63   :  { %682 = vmatpush.msra.mxu2 %v2781_v59  ;;  %702 = vmatpush.msra.mxu3 %v2779_v58 }
  0x64   :  { %643 = vmatpush.msra.mxu0 %v2787_v61  ;;  %663 = vmatpush.msra.mxu1 %v2789_v62 }
  0x65   :  { %683 = vmatpush.msra.mxu2 %v2797_v0  ;;  %703 = vmatpush.msra.mxu3 %v2795_v63 }
  0x66   :  { %644 = vmatpush.msra.mxu0 %v2801_v1  ;;  %664 = vmatpush.msra.mxu1 %v2803_v2 }
  0x67   :  { %684 = vmatpush.msra.mxu2 %v2809_v4  ;;  %704 = vmatpush.msra.mxu3 %v3803_v20 }
  0x68   :  { %645 = vmatpush.msra.mxu0 %v2812_v5  ;;  %665 = vmatpush.msra.mxu1 %v2814_v6 }
  0x69   :  { %685 = vmatpush.msra.mxu2 %v2819_v7  ;;  %705 = vmatpush.msra.mxu3 %v3804_v8 }
  0x6a   :  { %646 = vmatpush.msra.mxu0 %v2827_v34  ;;  %666 = vmatpush.msra.mxu1 %v2829_v47 }
  0x6b   :  { %686 = vmatpush.msra.mxu2 %v2835_v60  ;;  %706 = vmatpush.msra.mxu3 %v2837_v3 }
  0x6c   :  { %855 = vmatpush.msrb.mxu0 %v2629_v9  ;;  %875 = vmatpush.msrb.mxu1 %v2631_v10 }
  0x6d   :  { %895 = vmatpush.msrb.mxu2 %v2647_v15  ;;  %915 = vmatpush.msrb.mxu3 %v2635_v11  ;;  %v105_v11 = vld [vmem:[#allocation11] sm:$0xf] }
  0x6e   :  { %856 = vmatpush.msrb.mxu0 %v2639_v12  ;;  %876 = vmatpush.msrb.mxu1 %v2641_v13  ;;  %v107_v12 = vperm.slane %v105_v11, 0  ;;  %v108_v13 = vperm.slane %v105_v11, 1 }
  0x6f   :  { %896 = vmatpush.msrb.mxu2 %v2655_v18  ;;  %916 = vmatpush.msrb.mxu3 %v2645_v14 }
  0x70   :  { %857 = vmatpush.msrb.mxu0 %v2650_v16  ;;  %877 = vmatpush.msrb.mxu1 %v2652_v17 }
  0x71   :  { %897 = vmatpush.msrb.mxu2 %v2663_v21  ;;  %917 = vmatpush.msrb.mxu3 %v2659_v19  ;;  %v2989_v21 = vperm.slane %v105_v11, 2 }
  0x72   :  { %858 = vmatpush.msrb.mxu0 %v2667_v22  ;;  %878 = vmatpush.msrb.mxu1 %v2669_v23  ;;  %v110_v22 = vperm.slane %v105_v11, 3 }
  0x73   :  { %898 = vmatpush.msrb.mxu2 %v2677_v25  ;;  %918 = vmatpush.msrb.mxu3 %v2675_v24 }
  0x74   :  { %859 = vmatpush.msrb.mxu0 %v2681_v26  ;;  %879 = vmatpush.msrb.mxu1 %v2683_v27 }
  0x75   :  { %899 = vmatpush.msrb.mxu2 %v2689_v29  ;;  %919 = vmatpush.msrb.mxu3 %v2687_v28 }
  0x76   :  { %860 = vmatpush.msrb.mxu0 %v2692_v30  ;;  %880 = vmatpush.msrb.mxu1 %v2694_v31 }
  0x77   :  { %900 = vmatpush.msrb.mxu2 %v2701_v33  ;;  %920 = vmatpush.msrb.mxu3 %v2699_v32 }
  0x78   :  { %861 = vmatpush.msrb.mxu0 %v2707_v35  ;;  %881 = vmatpush.msrb.mxu1 %v2709_v36 }
  0x79   :  { %901 = vmatpush.msrb.mxu2 %v2717_v38  ;;  %921 = vmatpush.msrb.mxu3 %v2715_v37 }
  0x7a   :  { %862 = vmatpush.msrb.mxu0 %v2721_v39  ;;  %882 = vmatpush.msrb.mxu1 %v2723_v40 }
  0x7b   :  { %902 = vmatpush.msrb.mxu2 %v2729_v42  ;;  %922 = vmatpush.msrb.mxu3 %v2727_v41 }
  0x7c   :  { %863 = vmatpush.msrb.mxu0 %v2732_v43  ;;  %883 = vmatpush.msrb.mxu1 %v2734_v44 }
  0x7d   :  { %903 = vmatpush.msrb.mxu2 %v2741_v46  ;;  %923 = vmatpush.msrb.mxu3 %v2739_v45 }
  0x7e   :  { %864 = vmatpush.msrb.mxu0 %v2747_v48  ;;  %884 = vmatpush.msrb.mxu1 %v2749_v49 }
  0x7f   :  { %904 = vmatpush.msrb.mxu2 %v2757_v51  ;;  %924 = vmatpush.msrb.mxu3 %v2755_v50 }
  0x80   :  { %865 = vmatpush.msrb.mxu0 %v2761_v52  ;;  %885 = vmatpush.msrb.mxu1 %v2763_v53 }
  0x81   :  { %905 = vmatpush.msrb.mxu2 %v2769_v55  ;;  %925 = vmatpush.msrb.mxu3 %v2767_v54 }
  0x82   :  { %866 = vmatpush.msrb.mxu0 %v2772_v56  ;;  %886 = vmatpush.msrb.mxu1 %v2774_v57 }
  0x83   :  { %906 = vmatpush.msrb.mxu2 %v2781_v59  ;;  %926 = vmatpush.msrb.mxu3 %v2779_v58 }
  0x84   :  { %867 = vmatpush.msrb.mxu0 %v2787_v61  ;;  %887 = vmatpush.msrb.mxu1 %v2789_v62 }
  0x85   :  { %907 = vmatpush.msrb.mxu2 %v2797_v0  ;;  %927 = vmatpush.msrb.mxu3 %v2795_v63 }
  0x86   :  { %868 = vmatpush.msrb.mxu0 %v2801_v1  ;;  %888 = vmatpush.msrb.mxu1 %v2803_v2 }
  0x87   :  { %908 = vmatpush.msrb.mxu2 %v2809_v4  ;;  %928 = vmatpush.msrb.mxu3 %v3803_v20 }
  0x88   :  { %869 = vmatpush.msrb.mxu0 %v2812_v5  ;;  %889 = vmatpush.msrb.mxu1 %v2814_v6 }
  0x89   :  { %909 = vmatpush.msrb.mxu2 %v2819_v7  ;;  %929 = vmatpush.msrb.mxu3 %v3804_v8 }
  0x8a   :  { %870 = vmatpush.msrb.mxu0 %v2827_v34  ;;  %890 = vmatpush.msrb.mxu1 %v2829_v47 }
  0x8b   :  { %910 = vmatpush.msrb.mxu2 %v2835_v60  ;;  %930 = vmatpush.msrb.mxu3 %v2837_v3 }
  0x97   :  { %v157_v9 = vpop.f32.mrf.mxu0  ;;  %v198_v10 = vpop.f32.mrf.mxu1 }
  0x98   :  { %v158_v60 = vadd.f32 %v157_v9, %v107_v12  ;;  %v199_v20 = vadd.f32 %v198_v10, %v108_v13 }
  0x9e   :  { %v2981_v14 = vpop.f32.mrf.mxu2  ;;  %v2983_v15 = vpop.f32.mrf.mxu3 }
  0x9f   :  { %v160_v16 = vpop.f32.mrf.mxu0  ;;  %v201_v17 = vpop.f32.mrf.mxu1 }
  0xa0   :  { %v2985_v18 = vadd.f32 %v160_v16, %v107_v12  ;;  %v2987_v19 = vadd.f32 %v201_v17, %v108_v13 }
  0xa6   :  { %v242_v23 = vpop.f32.mrf.mxu2  ;;  %v283_v24 = vpop.f32.mrf.mxu3 }
  0xa7   :  { %v2992_v25 = vadd.f32 %v242_v23, %v2989_v21  ;;  %v2994_v26 = vadd.f32 %v283_v24, %v110_v22  ;;  %v163_v27 = vpop.f32.mrf.mxu0  ;;  %v204_v28 = vpop.f32.mrf.mxu1 }
  0xa8   :  { %v2996_v29 = vadd.f32 %v163_v27, %v107_v12  ;;  %v2998_v30 = vadd.f32 %v204_v28, %v108_v13 }
  0xae   :  { %v245_v31 = vpop.f32.mrf.mxu2  ;;  %v286_v32 = vpop.f32.mrf.mxu3 }
  0xaf   :  { %v3001_v33 = vadd.f32 %v245_v31, %v2989_v21  ;;  %v3003_v35 = vadd.f32 %v286_v32, %v110_v22  ;;  %v166_v36 = vpop.f32.mrf.mxu0  ;;  %v207_v37 = vpop.f32.mrf.mxu1 }
  0xb0   :  { %v3005_v38 = vadd.f32 %v166_v36, %v107_v12  ;;  %v3007_v39 = vadd.f32 %v207_v37, %v108_v13  ;;  %v281_v36 = vadd.f32 %v2983_v15, %v110_v22 }
  0xb2   :  { %3805 = vst [vmem:[#allocation22_spill] sm:$0xff] %v3005_v38  ;;  %v3237_v38 = vld [vmem:[#allocation10 + $0x30] sm:$0xff] }
  0xb3   :  { %3806 = vst [vmem:[#allocation23_spill] sm:$0xff] %v3007_v39  ;;  %v3233_v39 = vld [vmem:[#allocation10 + $0x28] sm:$0xff] }
  0xb6   :  { %v248_v40 = vpop.f32.mrf.mxu2  ;;  %v289_v41 = vpop.f32.mrf.mxu3 }
  0xb7   :  { %v3010_v42 = vadd.f32 %v248_v40, %v2989_v21  ;;  %v3012_v43 = vadd.f32 %v289_v41, %v110_v22  ;;  %v169_v44 = vpop.f32.mrf.mxu0  ;;  %v210_v45 = vpop.f32.mrf.mxu1 }
  0xb8   :  { %v3014_v46 = vadd.f32 %v169_v44, %v107_v12  ;;  %v3016_v48 = vadd.f32 %v210_v45, %v108_v13 }
  0xb9   :  { %3807 = vst [vmem:[#allocation24_spill] sm:$0xff] %v3010_v42 }
  0xba   :  { %3808 = vst [vmem:[#allocation25_spill] sm:$0xff] %v3012_v43  ;;  %v3231_v43 = vld [vmem:[#allocation10 + $0x20] sm:$0xff] }
  0xbb   :  { %3809 = vst [vmem:[#allocation26_spill] sm:$0xff] %v3014_v46  ;;  %v3224_v46 = vld [vmem:[#allocation10 + $0x50] sm:$0xff] }
  0xbc   :  { %3810 = vst [vmem:[#allocation27_spill] sm:$0xff] %v3016_v48  ;;  %v3222_v48 = vld [vmem:[#allocation10 + $0x48] sm:$0xff] }
  0xbd   :  { %3844 = vst [vmem:[#allocation61_spill] sm:$0xff] %v3222_v48 }
  0xbe   :  { %v251_v49 = vpop.f32.mrf.mxu2  ;;  %v292_v50 = vpop.f32.mrf.mxu3 }
  0xbf   :  { %v3019_v51 = vadd.f32 %v251_v49, %v2989_v21  ;;  %v3021_v52 = vadd.f32 %v292_v50, %v110_v22  ;;  %v172_v53 = vpop.f32.mrf.mxu0  ;;  %v213_v54 = vpop.f32.mrf.mxu1  ;;  %v240_v49 = vadd.f32 %v2981_v14, %v2989_v21 }
  0xc0   :  { %v3023_v55 = vadd.f32 %v172_v53, %v107_v12  ;;  %v3025_v56 = vadd.f32 %v213_v54, %v108_v13 }
  0xc1   :  { %3811 = vst [vmem:[#allocation28_spill] sm:$0xff] %v3019_v51  ;;  %v3216_v51 = vld [vmem:[#allocation10 + $0x78] sm:$0xff] }
  0xc2   :  { %3812 = vst [vmem:[#allocation29_spill] sm:$0xff] %v3021_v52 }
  0xc3   :  { %3813 = vst [vmem:[#allocation30_spill] sm:$0xff] %v3023_v55  ;;  %v3214_v55 = vld [vmem:[#allocation10 + $0x70] sm:$0xff] }
  0xc4   :  { %3814 = vst [vmem:[#allocation31_spill] sm:$0xff] %v3025_v56  ;;  %v3210_v56 = vld [vmem:[#allocation10 + $0x68] sm:$0xff] }
  0xc5   :  { %3840 = vst [vmem:[#allocation57_spill] sm:$0xff] %v3210_v56 }
  0xc6   :  { %v254_v57 = vpop.f32.mrf.mxu2  ;;  %v295_v58 = vpop.f32.mrf.mxu3  ;;  %3841 = vst [vmem:[#allocation58_spill] sm:$0xff] %v3214_v55 }
  0xc7   :  { %v3028_v59 = vadd.f32 %v254_v57, %v2989_v21  ;;  %v3030_v61 = vadd.f32 %v295_v58, %v110_v22  ;;  %v175_v62 = vpop.f32.mrf.mxu0  ;;  %v216_v63 = vpop.f32.mrf.mxu1  ;;  %3842 = vst [vmem:[#allocation59_spill] sm:$0xff] %v3216_v51 }
  0xc8   :  { %v3032_v0 = vadd.f32 %v175_v62, %v107_v12  ;;  %v3034_v1 = vadd.f32 %v216_v63, %v108_v13 }
  0xc9   :  { %3815 = vst [vmem:[#allocation32_spill] sm:$0xff] %v3028_v59 }
  0xca   :  { %3816 = vst [vmem:[#allocation33_spill] sm:$0xff] %v3030_v61  ;;  %v3202_v61 = vld [vmem:[#allocation10 + $0x90] sm:$0xff] }
  0xcb   :  { %3817 = vst [vmem:[#allocation34_spill] sm:$0xff] %v3032_v0  ;;  %v3190_v0 = vld [vmem:[#allocation10 + $0xb0] sm:$0xff] }
  0xcc   :  { %3818 = vst [vmem:[#allocation35_spill] sm:$0xff] %v3034_v1  ;;  %v3188_v1 = vld [vmem:[#allocation10 + $0xa8] sm:$0xff] }
  0xce   :  { %v257_v2 = vpop.f32.mrf.mxu2  ;;  %v298_v3 = vpop.f32.mrf.mxu3 }
  0xcf   :  { %v3037_v4 = vadd.f32 %v257_v2, %v2989_v21  ;;  %v3039_v5 = vadd.f32 %v298_v3, %v110_v22  ;;  %v178_v6 = vpop.f32.mrf.mxu0  ;;  %v219_v7 = vpop.f32.mrf.mxu1 }
  0xd0   :  { %v3041_v34 = vadd.f32 %v178_v6, %v107_v12  ;;  %v3043_v47 = vadd.f32 %v219_v7, %v108_v13 }
  0xd1   :  { %3819 = vst [vmem:[#allocation36_spill] sm:$0xff] %v3037_v4  ;;  %v3182_v4 = vld [vmem:[#allocation10 + $0xd8] sm:$0xff] }
  0xd2   :  { %3820 = vst [vmem:[#allocation37_spill] sm:$0xff] %v3039_v5  ;;  %v3186_v5 = vld [vmem:[#allocation10 + $0xa0] sm:$0xff] }
  0xd3   :  { %3821 = vst [vmem:[#allocation38_spill] sm:$0xff] %v3041_v34 }
  0xd4   :  { %3822 = vst [vmem:[#allocation39_spill] sm:$0xff] %v3043_v47 }
  0xd6   :  { %v260_v8 = vpop.f32.mrf.mxu2  ;;  %v301_v11 = vpop.f32.mrf.mxu3 }
  0xd7   :  { %v3046_v16 = vadd.f32 %v260_v8, %v2989_v21  ;;  %v3048_v17 = vadd.f32 %v301_v11, %v110_v22  ;;  %v425_v23 = vpop.f32.mrf.mxu0  ;;  %v445_v24 = vpop.f32.mrf.mxu1 }
  0xd8   :  { %v488_v27 = vadd.f32 %v425_v23, %v158_v60  ;;  %v489_v28 = vadd.f32 %v445_v24, %v199_v20 }
  0xd9   :  { %3823 = vst [vmem:[#allocation40_spill] sm:$0xff] %v3046_v16  ;;  %v3174_v16 = vld [vmem:[#allocation10 + $0xc8] sm:$0xff] }
  0xda   :  { %3824 = vst [vmem:[#allocation41_spill] sm:$0xff] %v3048_v17  ;;  %v2225_v31 = vmul.f32 -1.442695, %v488_v27  ;;  %v2226_v32 = vmul.f32 -1.442695, %v489_v28  ;;  %v3176_v17 = vld [vmem:[#allocation10 + $0xd0] sm:$0xff] }
  0xdc   :  { %2261 = vpow2.f32 %v2225_v31 }
  0xdd   :  { %2263 = vpow2.f32 %v2226_v32 }
  0xde   :  { %v485_v37 = vpop.f32.mrf.mxu3  ;;  %v465_v44 = vpop.f32.mrf.mxu2 }
  0xdf   :  { %v491_v9 = vadd.f32 %v485_v37, %v281_v36  ;;  %v490_v54 = vadd.f32 %v465_v44, %v240_v49 }
  0xe1   :  { %v2227_v10 = vmul.f32 -1.442695, %v491_v9 }
  0xe2   :  { %v2262_v12 = vpop.eup %2261 }
  0xe3   :  { %v2264_v13 = vpop.eup %2263  ;;  %v495_v40 = vadd.f32 1.0, %v2262_v12  ;;  %2265 = vpow2.f32 %v2227_v10 }
  0xe4   :  { %v514_v41 = vadd.f32 1.0, %v2264_v13 }
  0xe5   :  { %2267 = vrcp.f32 %v495_v40  ;;  %v507_v63 = vand.u32 2147483648, %v495_v40  ;;  %v505_v6 = vand.u32 2147483647, %v495_v40  ;;  %vm501_vm3 = vweird.f32 %v495_v40 }
  0xe6   :  { %2269 = vrcp.f32 %v514_v41  ;;  %v526_v2 = vand.u32 2147483648, %v514_v41  ;;  %v524_v60 = vand.u32 2147483647, %v514_v41  ;;  %vm520_vm4 = vweird.f32 %v514_v41 }
  0xe7   :  { %v508_v21 = vor.u32 1.1754944e-38, %v507_v63  ;;  %vm506_vm6 = vcmp.eq.f32.partialorder %v505_v6, 8.507059e+37 }
  0xe8   :  { %v527_v23 = vor.u32 1.1754944e-38, %v526_v2  ;;  %vm525_vm8 = vcmp.eq.f32.partialorder %v524_v60, 8.507059e+37 }
  0xe9   :  { %v2266_v45 = vpop.eup %2265 }
  0xea   :  { %v534_v50 = vadd.f32 1.0, %v2266_v45 }
  0xeb   :  { %v2268_v53 = vpop.eup %2267 }
  0xec   :  { %v2270_v15 = vpop.eup %2269  ;;  %v497_v22 = vmul.f32 %v2268_v53, %v495_v40  ;;  %2271 = vrcp.f32 %v534_v50  ;;  %vm502_vm1 = vweird.f32 %v2268_v53  ;;  %v546_v40 = vand.u32 2147483648, %v534_v50 }
  0xed   :  { %v516_v57 = vmul.f32 %v2270_v15, %v514_v41  ;;  %2273 = vtanh.f32 %v490_v54  ;;  %vm521_vm2 = vweird.f32 %v2270_v15  ;;  %vm503_vm5 = vmor %vm501_vm3, %vm502_vm1  ;;  %vm540_vm10 = vweird.f32 %v534_v50 }
  0xee   :  { %v498_v58 = vsub.f32 1.0, %v497_v22  ;;  %vm522_vm7 = vmor %vm520_vm4, %vm521_vm2  ;;  %v544_v41 = vand.u32 2147483647, %v534_v50  ;;  %v547_v45 = vor.u32 1.1754944e-38, %v546_v40 }
  0xef   :  { %v517_v62 = vsub.f32 1.0, %v516_v57 }
  0xf0   :  { %v499_v3 = vmul.f32 %v2268_v53, %v498_v58  ;;  %vm545_vm12 = vcmp.eq.f32.partialorder %v544_v41, 8.507059e+37 }
  0xf1   :  { %v518_v7 = vmul.f32 %v2270_v15, %v517_v62 }
  0xf2   :  { %v2272_v20 = vpop.eup %2271  ;;  %v500_v14 = vadd.f32 %v2268_v53, %v499_v3 }
  0xf3   :  { %v519_v8 = vadd.f32 %v2270_v15, %v518_v7  ;;  %v536_v11 = vmul.f32 %v2272_v20, %v534_v50  ;;  %v2274_v27 = vpop.eup %2273  ;;  %vm541_vm9 = vweird.f32 %v2272_v20 }
  0xf4   :  { %v504_v24 = vsel %vm503_vm5, %v2268_v53, %v500_v14  ;;  %vm542_vm11 = vmor %vm540_vm10, %vm541_vm9 }
  0xf5   :  { %v509_v28 = vsel %vm506_vm6, %v508_v21, %v504_v24  ;;  %v523_v31 = vsel %vm522_vm7, %v2270_v15, %v519_v8  ;;  %v537_v32 = vsub.f32 1.0, %v536_v11 }
  0xf6   :  { %v528_v36 = vsel %vm525_vm8, %v527_v23, %v523_v31  ;;  %v552_v37 = vmul.f32 %v2274_v27, %v509_v28 }
  0xf7   :  { %v551_v9 = vmul.f32 0.0, %v528_v36  ;;  %v538_v10 = vmul.f32 %v2272_v20, %v537_v32 }
  0xf9   :  { %v3053_v12 = vadd.f32 %v552_v37, %v551_v9  ;;  %v539_v13 = vadd.f32 %v2272_v20, %v538_v10 }
  0xfb   :  { %2275 = vtanh.f32 %v3053_v12  ;;  %v543_v44 = vsel %vm542_vm11, %v2272_v20, %v539_v13 }
  0xfc   :  { %v548_v53 = vsel %vm545_vm12, %v547_v45, %v543_v44 }
 0x101   :  { %v2276_v49 = vpop.eup %2275 }
 0x102   :  { %v555_v54 = vmul.f32 %v2276_v49, %v548_v53 }
 0x104   :  { %558 = vst [vmem:[#allocation13] sm:$0xff] %v555_v54  ;;  %647 = vmatmul.f32.vlgmr.msra.gmra.mxu0 %v555_v54  ;;  %667 = vmatmul.f32.vlgmr.msra.gmra.mxu1 %v555_v54 }
 0x105   :  { %687 = vmatmul.f32.vlgmr.msra.gmra.mxu2 %v555_v54  ;;  %707 = vmatmul.f32.vlgmr.msra.gmra.mxu3 %v555_v54 }
 0x181   :  { %v648_v15 = vpop.f32.mrf.mxu0  ;;  %v668_v22 = vpop.f32.mrf.mxu1 }
 0x182   :  { %v711_v57 = vadd.f32 %v648_v15, %v2985_v18  ;;  %v712_v58 = vadd.f32 %v668_v22, %v2987_v19 }
 0x184   :  { %v2228_v62 = vmul.f32 -1.442695, %v711_v57  ;;  %v2229_v50 = vmul.f32 -1.442695, %v712_v58 }
 0x186   :  { %2277 = vpow2.f32 %v2228_v62 }
 0x187   :  { %2279 = vpow2.f32 %v2229_v50 }
 0x188   :  { %v708_v63 = vpop.f32.mrf.mxu3  ;;  %v688_v14 = vpop.f32.mrf.mxu2 }
 0x189   :  { %v714_v2 = vadd.f32 %v708_v63, %v2994_v26  ;;  %v713_v19 = vadd.f32 %v688_v14, %v2992_v25 }
 0x18b   :  { %v2230_v3 = vmul.f32 -1.442695, %v714_v2 }
 0x18c   :  { %v2278_v6 = vpop.eup %2277 }
 0x18d   :  { %v2280_v7 = vpop.eup %2279  ;;  %v718_v60 = vadd.f32 1.0, %v2278_v6  ;;  %2281 = vpow2.f32 %v2230_v3 }
 0x18e   :  { %v737_v20 = vadd.f32 1.0, %v2280_v7 }
 0x18f   :  { %2283 = vrcp.f32 %v718_v60  ;;  %v730_v28 = vand.u32 2147483648, %v718_v60  ;;  %v728_v36 = vand.u32 2147483647, %v718_v60  ;;  %vm724_vm15 = vweird.f32 %v718_v60 }
 0x190   :  { %2285 = vrcp.f32 %v737_v20  ;;  %v749_v31 = vand.u32 2147483648, %v737_v20  ;;  %v747_v9 = vand.u32 2147483647, %v737_v20  ;;  %vm743_vm0 = vweird.f32 %v737_v20 }
 0x191   :  { %v731_v25 = vor.u32 1.1754944e-38, %v730_v28  ;;  %vm729_vm3 = vcmp.eq.f32.partialorder %v728_v36, 8.507059e+37  ;;  %v3092_v28 = vld [vmem:[#allocation10 + $0x1b0] sm:$0xff]  ;;  %v3102_v36 = vld [vmem:[#allocation10 + $0x188] sm:$0xff] }
 0x192   :  { %v750_v44 = vor.u32 1.1754944e-38, %v749_v31  ;;  %vm748_vm4 = vcmp.eq.f32.partialorder %v747_v9, 8.507059e+37  ;;  %v3096_v31 = vld [vmem:[#allocation10 + $0x1b8] sm:$0xff]  ;;  %3831 = vst [vmem:[#allocation48_spill] sm:$0xff] %v3102_v36 }
 0x193   :  { %v2282_v21 = vpop.eup %2281  ;;  %3829 = vst [vmem:[#allocation46_spill] sm:$0xff] %v3096_v31  ;;  %v3108_v9 = vld [vmem:[#allocation10 + $0x198] sm:$0xff] }
 0x194   :  { %v757_v18 = vadd.f32 1.0, %v2282_v21  ;;  %v3066_v21 = vld [vmem:[#allocation10 + $0x1e8] sm:$0xff] }
 0x195   :  { %v2284_v8 = vpop.eup %2283  ;;  %3825 = vst [vmem:[#allocation42_spill] sm:$0xff] %v3066_v21  ;;  %1099 = vmatpush.msra.mxu1 %v3066_v21 }
 0x196   :  { %v2286_v11 = vpop.eup %2285  ;;  %v720_v23 = vmul.f32 %v2284_v8, %v718_v60  ;;  %2287 = vrcp.f32 %v757_v18  ;;  %vm725_vm13 = vweird.f32 %v2284_v8  ;;  %v769_v2 = vand.u32 2147483648, %v757_v18 }
 0x197   :  { %v739_v24 = vmul.f32 %v2286_v11, %v737_v20  ;;  %2289 = vtanh.f32 %v713_v19  ;;  %vm744_vm14 = vweird.f32 %v2286_v11  ;;  %vm726_vm1 = vmor %vm724_vm15, %vm725_vm13  ;;  %vm763_vm6 = vweird.f32 %v757_v18  ;;  %v3076_v19 = vld [vmem:[#allocation10 + $0x1c0] sm:$0xff] }
 0x198   :  { %v721_v27 = vsub.f32 1.0, %v720_v23  ;;  %vm745_vm2 = vmor %vm743_vm0, %vm744_vm14  ;;  %v767_v3 = vand.u32 2147483647, %v757_v18  ;;  %v770_v7 = vor.u32 1.1754944e-38, %v769_v2  ;;  %3827 = vst [vmem:[#allocation44_spill] sm:$0xff] %v3076_v19  ;;  %v3080_v23 = vld [vmem:[#allocation10 + $0x1d0] sm:$0xff] }
 0x199   :  { %v740_v26 = vsub.f32 1.0, %v739_v24  ;;  %v3084_v24 = vld [vmem:[#allocation10 + $0x1d8] sm:$0xff]  ;;  %v3160_v2 = vld [vmem:[#allocation10 + $0xe0] sm:$0xff] }
 0x19a   :  { %v722_v32 = vmul.f32 %v2284_v8, %v721_v27  ;;  %vm768_vm8 = vcmp.eq.f32.partialorder %v767_v3, 8.507059e+37  ;;  %v3088_v27 = vld [vmem:[#allocation10 + $0x1a0] sm:$0xff]  ;;  %v3162_v3 = vld [vmem:[#allocation10 + $0xe8] sm:$0xff] }
 0x19b   :  { %v741_v37 = vmul.f32 %v2286_v11, %v740_v26  ;;  %v3090_v26 = vld [vmem:[#allocation10 + $0x1a8] sm:$0xff] }
 0x19c   :  { %v2288_v10 = vpop.eup %2287  ;;  %v723_v13 = vadd.f32 %v2284_v8, %v722_v32  ;;  %v3100_v32 = vld [vmem:[#allocation10 + $0x180] sm:$0xff] }
 0x19d   :  { %v742_v40 = vadd.f32 %v2286_v11, %v741_v37  ;;  %v759_v41 = vmul.f32 %v2288_v10, %v757_v18  ;;  %v2290_v49 = vpop.eup %2289  ;;  %vm764_vm5 = vweird.f32 %v2288_v10  ;;  %v3072_v18 = vld [vmem:[#allocation10 + $0x1f8] sm:$0xff]  ;;  %3830 = vst [vmem:[#allocation47_spill] sm:$0xff] %v3100_v32  ;;  %v3104_v37 = vld [vmem:[#allocation10 + $0x190] sm:$0xff] }
 0x19e   :  { %v727_v45 = vsel %vm726_vm1, %v2284_v8, %v723_v13  ;;  %vm765_vm7 = vmor %vm763_vm6, %vm764_vm5  ;;  %v3068_v8 = vld [vmem:[#allocation10 + $0x1f0] sm:$0xff]  ;;  %1139 = vmatpush.msra.mxu3 %v3072_v18  ;;  %3832 = vst [vmem:[#allocation49_spill] sm:$0xff] %v3104_v37  ;;  %v3114_v13 = vld [vmem:[#allocation10 + $0x168] sm:$0xff] }
 0x19f   :  { %v732_v53 = vsel %vm729_vm3, %v731_v25, %v727_v45  ;;  %v746_v54 = vsel %vm745_vm2, %v2286_v11, %v742_v40  ;;  %v760_v15 = vsub.f32 1.0, %v759_v41  ;;  %3826 = vst [vmem:[#allocation43_spill] sm:$0xff] %v3068_v8  ;;  %1119 = vmatpush.msra.mxu2 %v3068_v8  ;;  %v3078_v11 = vld [vmem:[#allocation10 + $0x1c8] sm:$0xff]  ;;  %v3116_v25 = vld [vmem:[#allocation10 + $0x170] sm:$0xff]  ;;  %v3120_v40 = vld [vmem:[#allocation10 + $0x178] sm:$0xff] }
 0x1a0   :  { %v751_v22 = vsel %vm748_vm4, %v750_v44, %v746_v54  ;;  %v775_v57 = vmul.f32 %v2290_v49, %v732_v53  ;;  %3828 = vst [vmem:[#allocation45_spill] sm:$0xff] %v3078_v11  ;;  %1100 = vmatpush.msra.mxu1 %v3078_v11  ;;  %1140 = vmatpush.msra.mxu3 %v3084_v24  ;;  %v3124_v41 = vld [vmem:[#allocation10 + $0x140] sm:$0xff]  ;;  %v3126_v44 = vld [vmem:[#allocation10 + $0x148] sm:$0xff]  ;;  %v3128_v45 = vld [vmem:[#allocation10 + $0x150] sm:$0xff] }
 0x1a1   :  { %v774_v58 = vmul.f32 %v751_v22, %v3053_v12  ;;  %v761_v62 = vmul.f32 %v2288_v10, %v760_v15  ;;  %v3064_v12 = vld [vmem:[#allocation10 + $0x1e0] sm:$0xff]  ;;  %1120 = vmatpush.msra.mxu2 %v3080_v23  ;;  %3833 = vst [vmem:[#allocation50_spill] sm:$0xff] %v3120_v40  ;;  %v3132_v49 = vld [vmem:[#allocation10 + $0x158] sm:$0xff]  ;;  %v3138_v54 = vld [vmem:[#allocation10 + $0x128] sm:$0xff] }
 0x1a2   :  { %1079 = vmatpush.msra.mxu0 %v3064_v12  ;;  %1101 = vmatpush.msra.mxu1 %v3090_v26  ;;  %3834 = vst [vmem:[#allocation51_spill] sm:$0xff] %v3128_v45  ;;  %v3136_v53 = vld [vmem:[#allocation10 + $0x120] sm:$0xff]  ;;  %v3140_v15 = vld [vmem:[#allocation10 + $0x130] sm:$0xff]  ;;  %v3144_v22 = vld [vmem:[#allocation10 + $0x138] sm:$0xff] }
 0x1a3   :  { %v3061_v50 = vadd.f32 %v775_v57, %v774_v58  ;;  %v762_v63 = vadd.f32 %v2288_v10, %v761_v62  ;;  %1121 = vmatpush.msra.mxu2 %v3092_v28  ;;  %1141 = vmatpush.msra.mxu3 %v3096_v31  ;;  %3835 = vst [vmem:[#allocation52_spill] sm:$0xff] %v3138_v54  ;;  %v3148_v57 = vld [vmem:[#allocation10 + $0x100] sm:$0xff]  ;;  %v3150_v58 = vld [vmem:[#allocation10 + $0x108] sm:$0xff]  ;;  %v3152_v62 = vld [vmem:[#allocation10 + $0x110] sm:$0xff] }
 0x1a4   :  { %1080 = vmatpush.msra.mxu0 %v3076_v19  ;;  %1102 = vmatpush.msra.mxu1 %v3102_v36  ;;  %3836 = vst [vmem:[#allocation53_spill] sm:$0xff] %v3140_v15 }
 0x1a5   :  { %2291 = vtanh.f32 %v3061_v50  ;;  %v766_v6 = vsel %vm765_vm7, %v2288_v10, %v762_v63  ;;  %1122 = vmatpush.msra.mxu2 %v3104_v37  ;;  %1142 = vmatpush.msra.mxu3 %v3108_v9  ;;  %v3112_v10 = vld [vmem:[#allocation10 + $0x160] sm:$0xff]  ;;  %3837 = vst [vmem:[#allocation54_spill] sm:$0xff] %v3144_v22  ;;  %v3156_v63 = vld [vmem:[#allocation10 + $0x118] sm:$0xff] }
 0x1a6   :  { %v771_v20 = vsel %vm768_vm8, %v770_v7, %v766_v6  ;;  %1081 = vmatpush.msra.mxu0 %v3088_v27  ;;  %1103 = vmatpush.msra.mxu1 %v3114_v13  ;;  %v3164_v6 = vld [vmem:[#allocation10 + $0xf0] sm:$0xff]  ;;  %v3168_v7 = vld [vmem:[#allocation10 + $0xf8] sm:$0xff] }
 0x1a7   :  { %1123 = vmatpush.msra.mxu2 %v3116_v25  ;;  %1143 = vmatpush.msra.mxu3 %v3120_v40 }
 0x1a8   :  { %1082 = vmatpush.msra.mxu0 %v3100_v32  ;;  %1104 = vmatpush.msra.mxu1 %v3126_v44 }
 0x1a9   :  { %1124 = vmatpush.msra.mxu2 %v3128_v45  ;;  %1144 = vmatpush.msra.mxu3 %v3132_v49 }
 0x1aa   :  { %1083 = vmatpush.msra.mxu0 %v3112_v10  ;;  %1105 = vmatpush.msra.mxu1 %v3138_v54 }
 0x1ab   :  { %v2292_v60 = vpop.eup %2291  ;;  %1125 = vmatpush.msra.mxu2 %v3140_v15  ;;  %1145 = vmatpush.msra.mxu3 %v3144_v22 }
 0x1ac   :  { %v778_v14 = vmul.f32 %v2292_v60, %v771_v20  ;;  %1084 = vmatpush.msra.mxu0 %v3124_v41  ;;  %1106 = vmatpush.msra.mxu1 %v3150_v58 }
 0x1ad   :  { %1126 = vmatpush.msra.mxu2 %v3152_v62  ;;  %1146 = vmatpush.msra.mxu3 %v3156_v63 }
 0x1ae   :  { %782 = vst [vmem:[#allocation13 + $0x8] sm:$0xff] %v778_v14  ;;  %871 = vmatmul.f32.vlgmr.msrb.gmra.mxu0 %v778_v14  ;;  %891 = vmatmul.f32.vlgmr.msrb.gmra.mxu1 %v778_v14 }
 0x1af   :  { %911 = vmatmul.f32.vlgmr.msrb.gmra.mxu2 %v778_v14  ;;  %931 = vmatmul.f32.vlgmr.msrb.gmra.mxu3 %v778_v14  ;;  %v3172_v14 = vld [vmem:[#allocation10 + $0xc0] sm:$0xff] }
 0x1b0   :  { %1085 = vmatpush.msra.mxu0 %v3136_v53  ;;  %1107 = vmatpush.msra.mxu1 %v3162_v3 }
 0x1b1   :  { %1127 = vmatpush.msra.mxu2 %v3164_v6  ;;  %1147 = vmatpush.msra.mxu3 %v3168_v7 }
 0x1b2   :  { %1086 = vmatpush.msra.mxu0 %v3148_v57  ;;  %1108 = vmatpush.msra.mxu1 %v3174_v16 }
 0x1b3   :  { %1128 = vmatpush.msra.mxu2 %v3176_v17  ;;  %1148 = vmatpush.msra.mxu3 %v3182_v4 }
 0x1b4   :  { %1087 = vmatpush.msra.mxu0 %v3160_v2  ;;  %1109 = vmatpush.msra.mxu1 %v3188_v1 }
 0x1b5   :  { %1129 = vmatpush.msra.mxu2 %v3190_v0 }
 0x1b6   :  { %1088 = vmatpush.msra.mxu0 %v3172_v14 }
 0x1b7   :  { %1130 = vmatpush.msra.mxu2 %v3202_v61 }
 0x1b8   :  { %1089 = vmatpush.msra.mxu0 %v3186_v5 }
 0x1b9   :  { %1131 = vmatpush.msra.mxu2 %v3214_v55 }
 0x1bb   :  { %1132 = vmatpush.msra.mxu2 %v3224_v46 }
 0x1bd   :  { %1133 = vmatpush.msra.mxu2 %v3237_v38 }
 0x22b   :  { %v872_v60 = vpop.f32.mrf.mxu0  ;;  %v892_v20 = vpop.f32.mrf.mxu1 }
 0x22c   :  { %v935_v47 = vadd.f32 %v872_v60, %v2996_v29  ;;  %v936_v34 = vadd.f32 %v892_v20, %v2998_v30  ;;  %v3194_v30 = vld [vmem:[#allocation10 + $0xb8] sm:$0xff]  ;;  %v3198_v60 = vld [vmem:[#allocation10 + $0x80] sm:$0xff]  ;;  %v3200_v20 = vld [vmem:[#allocation10 + $0x88] sm:$0xff] }
 0x22d   :  { %1149 = vmatpush.msra.mxu3 %v3194_v30  ;;  %1090 = vmatpush.msra.mxu0 %v3198_v60 }
 0x22e   :  { %v2231_v59 = vmul.f32 -1.442695, %v935_v47  ;;  %v2232_v29 = vmul.f32 -1.442695, %v936_v34  ;;  %1110 = vmatpush.msra.mxu1 %v3200_v20  ;;  %v3206_v34 = vld [vmem:[#allocation10 + $0x98] sm:$0xff]  ;;  %v3208_v47 = vld [vmem:[#allocation10 + $0x60] sm:$0xff] }
 0x22f   :  { %3838 = vst [vmem:[#allocation55_spill] sm:$0xff] %v3206_v34  ;;  %1150 = vmatpush.msra.mxu3 %v3206_v34  ;;  %1091 = vmatpush.msra.mxu0 %v3208_v47 }
 0x230   :  { %2293 = vpow2.f32 %v2231_v59  ;;  %3839 = vst [vmem:[#allocation56_spill] sm:$0xff] %v3208_v47  ;;  %v3218_v59 = vld [vmem:[#allocation10 + $0x40] sm:$0xff]  ;;  %1111 = vmatpush.msra.mxu1 %v3210_v56  ;;  %v3239_v56 = vld [vmem:[#allocation10 + $0x38] sm:$0xff] }
 0x231   :  { %2295 = vpow2.f32 %v2232_v29  ;;  %3843 = vst [vmem:[#allocation60_spill] sm:$0xff] %v3218_v59  ;;  %v3226_v29 = vld [vmem:[#allocation10 + $0x58] sm:$0xff]  ;;  %1151 = vmatpush.msra.mxu3 %v3216_v51  ;;  %1092 = vmatpush.msra.mxu0 %v3218_v59  ;;  %v3249_v59 = vld [vmem:[#allocation10 + $0x10] sm:$0xff] }
 0x232   :  { %v932_v52 = vpop.f32.mrf.mxu3  ;;  %1112 = vmatpush.msra.mxu1 %v3222_v48  ;;  %v3251_v48 = vld [vmem:[#allocation10 + $0x18] sm:$0xff]  ;;  %1134 = vmatpush.msra.mxu2 %v3249_v59 }
 0x233   :  { %v938_v42 = vadd.f32 %v932_v52, %v3003_v35  ;;  %1152 = vmatpush.msra.mxu3 %v3226_v29  ;;  %v3243_v35 = vld [vmem:[#allocation10] sm:$0xff]  ;;  %v3245_v52 = vld [vmem:[#allocation10 + $0x8] sm:$0xff]  ;;  %1093 = vmatpush.msra.mxu0 %v3231_v43 }
 0x234   :  { %1113 = vmatpush.msra.mxu1 %v3233_v39  ;;  %1343 = vmatpush.msrb.mxu2 %v3068_v8 }
 0x235   :  { %v2233_v47 = vmul.f32 -1.442695, %v938_v42  ;;  %1153 = vmatpush.msra.mxu3 %v3239_v56  ;;  %1094 = vmatpush.msra.mxu0 %v3243_v35 }
 0x236   :  { %v2294_v51 = vpop.eup %2293  ;;  %1114 = vmatpush.msra.mxu1 %v3245_v52  ;;  %1344 = vmatpush.msrb.mxu2 %v3080_v23 }
 0x237   :  { %v2296_v55 = vpop.eup %2295  ;;  %v3253_v34 = vadd.f32 1.0, %v2294_v51  ;;  %2297 = vpow2.f32 %v2233_v47  ;;  %1154 = vmatpush.msra.mxu3 %v3251_v48  ;;  %1303 = vmatpush.msrb.mxu0 %v3064_v12  ;;  %v912_v51 = vpop.f32.mrf.mxu2 }
 0x238   :  { %v3257_v42 = vadd.f32 1.0, %v2296_v55  ;;  %1323 = vmatpush.msrb.mxu1 %v3066_v21  ;;  %v937_v8 = vadd.f32 %v912_v51, %v3001_v33  ;;  %1345 = vmatpush.msrb.mxu2 %v3092_v28 }
 0x239   :  { %2299 = vrcp.f32 %v3253_v34  ;;  %1363 = vmatpush.msrb.mxu3 %v3072_v18  ;;  %1304 = vmatpush.msrb.mxu0 %v3076_v19  ;;  %vm948_vm11 = vweird.f32 %v3253_v34 }
 0x23a   :  { %2301 = vrcp.f32 %v3257_v42  ;;  %1324 = vmatpush.msrb.mxu1 %v3078_v11  ;;  %1346 = vmatpush.msrb.mxu2 %v3104_v37  ;;  %v952_v37 = vand.u32 2147483647, %v3253_v34  ;;  %vm967_vm12 = vweird.f32 %v3257_v42 }
 0x23b   :  { %1364 = vmatpush.msrb.mxu3 %v3084_v24  ;;  %1305 = vmatpush.msrb.mxu0 %v3088_v27 }
 0x23c   :  { %1325 = vmatpush.msrb.mxu1 %v3090_v26  ;;  %1347 = vmatpush.msrb.mxu2 %v3116_v25  ;;  %vm953_vm15 = vcmp.eq.f32.partialorder %v952_v37, 8.507059e+37 }
 0x23d   :  { %v2298_v55 = vpop.eup %2297  ;;  %1365 = vmatpush.msrb.mxu3 %v3096_v31  ;;  %1306 = vmatpush.msrb.mxu0 %v3100_v32  ;;  %v954_v31 = vand.u32 2147483648, %v3253_v34 }
 0x23e   :  { %v3273_v47 = vadd.f32 1.0, %v2298_v55  ;;  %1326 = vmatpush.msrb.mxu1 %v3102_v36  ;;  %v973_v36 = vand.u32 2147483648, %v3257_v42  ;;  %1348 = vmatpush.msrb.mxu2 %v3128_v45 }
 0x23f   :  { %v2300_v21 = vpop.eup %2299  ;;  %1366 = vmatpush.msrb.mxu3 %v3108_v9  ;;  %1307 = vmatpush.msrb.mxu0 %v3112_v10 }
 0x240   :  { %v2302_v19 = vpop.eup %2301  ;;  %v944_v11 = vmul.f32 %v2300_v21, %v3253_v34  ;;  %2303 = vrcp.f32 %v3273_v47  ;;  %1327 = vmatpush.msrb.mxu1 %v3114_v13  ;;  %vm949_vm9 = vweird.f32 %v2300_v21  ;;  %1349 = vmatpush.msrb.mxu2 %v3140_v15  ;;  %v993_v37 = vand.u32 2147483648, %v3273_v47 }
 0x241   :  { %v963_v55 = vmul.f32 %v2302_v19, %v3257_v42  ;;  %2305 = vtanh.f32 %v937_v8  ;;  %1367 = vmatpush.msrb.mxu3 %v3120_v40  ;;  %1308 = vmatpush.msrb.mxu0 %v3124_v41  ;;  %vm968_vm10 = vweird.f32 %v2302_v19  ;;  %vm950_vm13 = vmor %vm948_vm11, %vm949_vm9  ;;  %vm987_vm2 = vweird.f32 %v3273_v47 }
 0x242   :  { %v945_v33 = vsub.f32 1.0, %v944_v11  ;;  %1328 = vmatpush.msrb.mxu1 %v3126_v44  ;;  %vm969_vm14 = vmor %vm967_vm12, %vm968_vm10  ;;  %1350 = vmatpush.msrb.mxu2 %v3152_v62 }
 0x243   :  { %v964_v51 = vsub.f32 1.0, %v963_v55  ;;  %v971_v55 = vand.u32 2147483647, %v3257_v42  ;;  %1368 = vmatpush.msrb.mxu3 %v3132_v49  ;;  %1309 = vmatpush.msrb.mxu0 %v3136_v53 }
 0x244   :  { %v946_v32 = vmul.f32 %v2300_v21, %v945_v33  ;;  %1329 = vmatpush.msrb.mxu1 %v3138_v54  ;;  %v955_v33 = vor.u32 1.1754944e-38, %v954_v31  ;;  %1351 = vmatpush.msrb.mxu2 %v3164_v6 }
 0x245   :  { %v965_v11 = vmul.f32 %v2302_v19, %v964_v51  ;;  %1369 = vmatpush.msrb.mxu3 %v3144_v22  ;;  %1310 = vmatpush.msrb.mxu0 %v3148_v57  ;;  %vm972_vm0 = vcmp.eq.f32.partialorder %v971_v55, 8.507059e+37  ;;  %v994_v55 = vor.u32 1.1754944e-38, %v993_v37  ;;  %v3858_v37 = vld [vmem:[#allocation48_spill] sm:$0xff] }
 0x246   :  { %v3299_v8 = vpop.eup %2303  ;;  %v947_v40 = vadd.f32 %v2300_v21, %v946_v32  ;;  %v974_v32 = vor.u32 1.1754944e-38, %v973_v36  ;;  %1330 = vmatpush.msrb.mxu1 %v3150_v58  ;;  %1352 = vmatpush.msrb.mxu2 %v3176_v17 }
 0x247   :  { %v966_v51 = vadd.f32 %v2302_v19, %v965_v11  ;;  %v983_v45 = vmul.f32 %v3299_v8, %v3273_v47  ;;  %v2306_v42 = vpop.eup %2305  ;;  %1370 = vmatpush.msrb.mxu3 %v3156_v63  ;;  %1311 = vmatpush.msrb.mxu0 %v3160_v2  ;;  %vm988_vm1 = vweird.f32 %v3299_v8 }
 0x248   :  { %v951_v34 = vsel %vm950_vm13, %v2300_v21, %v947_v40  ;;  %1331 = vmatpush.msrb.mxu1 %v3162_v3  ;;  %1353 = vmatpush.msrb.mxu2 %v3190_v0  ;;  %v991_v40 = vand.u32 2147483647, %v3273_v47  ;;  %vm989_vm3 = vmor %vm987_vm2, %vm988_vm1  ;;  %v3850_v47 = vld [vmem:[#allocation60_spill] sm:$0xff] }
 0x249   :  { %v956_v54 = vsel %vm953_vm15, %v955_v33, %v951_v34  ;;  %v970_v31 = vsel %vm969_vm14, %v2302_v19, %v966_v51  ;;  %v984_v11 = vsub.f32 1.0, %v983_v45  ;;  %1371 = vmatpush.msrb.mxu3 %v3168_v7  ;;  %1312 = vmatpush.msrb.mxu0 %v3172_v14  ;;  %v3845_v45 = vld [vmem:[#allocation55_spill] sm:$0xff]  ;;  %v3848_v33 = vld [vmem:[#allocation58_spill] sm:$0xff] }
 0x24a   :  { %v975_v15 = vsel %vm972_vm0, %v974_v32, %v970_v31  ;;  %v999_v22 = vmul.f32 %v2306_v42, %v956_v54  ;;  %1332 = vmatpush.msrb.mxu1 %v3174_v16  ;;  %1354 = vmatpush.msrb.mxu2 %v3202_v61  ;;  %v3849_v51 = vld [vmem:[#allocation59_spill] sm:$0xff]  ;;  %vm992_vm4 = vcmp.eq.f32.partialorder %v991_v40, 8.507059e+37  ;;  %v3851_v32 = vld [vmem:[#allocation61_spill] sm:$0xff]  ;;  %v3852_v31 = vld [vmem:[#allocation42_spill] sm:$0xff] }
 0x24b   :  { %v998_v21 = vmul.f32 %v975_v15, %v3061_v50  ;;  %v985_v36 = vmul.f32 %v3299_v8, %v984_v11  ;;  %1372 = vmatpush.msrb.mxu3 %v3182_v4  ;;  %1313 = vmatpush.msrb.mxu0 %v3186_v5  ;;  %v3846_v15 = vld [vmem:[#allocation56_spill] sm:$0xff]  ;;  %v3853_v11 = vld [vmem:[#allocation43_spill] sm:$0xff] }
 0x24c   :  { %1333 = vmatpush.msrb.mxu1 %v3188_v1  ;;  %1355 = vmatpush.msrb.mxu2 %v3848_v33 }
 0x24d   :  { %v3323_v19 = vadd.f32 %v999_v22, %v998_v21  ;;  %v986_v50 = vadd.f32 %v3299_v8, %v985_v36  ;;  %1373 = vmatpush.msrb.mxu3 %v3194_v30  ;;  %1314 = vmatpush.msrb.mxu0 %v3198_v60  ;;  %v3847_v22 = vld [vmem:[#allocation57_spill] sm:$0xff]  ;;  %v3854_v21 = vld [vmem:[#allocation44_spill] sm:$0xff] }
 0x24e   :  { %1334 = vmatpush.msrb.mxu1 %v3200_v20  ;;  %1356 = vmatpush.msrb.mxu2 %v3224_v46  ;;  %v3855_v36 = vld [vmem:[#allocation45_spill] sm:$0xff] }
 0x24f   :  { %2307 = vtanh.f32 %v3323_v19  ;;  %1374 = vmatpush.msrb.mxu3 %v3845_v45  ;;  %v990_v54 = vsel %vm989_vm3, %v3299_v8, %v986_v50  ;;  %1315 = vmatpush.msrb.mxu0 %v3846_v15  ;;  %v3857_v50 = vld [vmem:[#allocation47_spill] sm:$0xff] }
 0x250   :  { %1335 = vmatpush.msrb.mxu1 %v3847_v22  ;;  %v995_v42 = vsel %vm992_vm4, %v994_v55, %v990_v54  ;;  %1357 = vmatpush.msrb.mxu2 %v3237_v38 }
 0x251   :  { %1375 = vmatpush.msrb.mxu3 %v3849_v51  ;;  %1316 = vmatpush.msrb.mxu0 %v3850_v47 }
 0x252   :  { %1336 = vmatpush.msrb.mxu1 %v3851_v32  ;;  %1358 = vmatpush.msrb.mxu2 %v3249_v59 }
 0x253   :  { %1376 = vmatpush.msrb.mxu3 %v3226_v29  ;;  %1317 = vmatpush.msrb.mxu0 %v3231_v43 }
 0x254   :  { %1337 = vmatpush.msrb.mxu1 %v3233_v39 }
 0x255   :  { %v2308_v34 = vpop.eup %2307  ;;  %1377 = vmatpush.msrb.mxu3 %v3239_v56  ;;  %1318 = vmatpush.msrb.mxu0 %v3243_v35 }
 0x256   :  { %v1002_v8 = vmul.f32 %v2308_v34, %v995_v42  ;;  %1338 = vmatpush.msrb.mxu1 %v3245_v52 }
 0x257   :  { %1378 = vmatpush.msrb.mxu3 %v3251_v48 }
 0x258   :  { %1006 = vst [vmem:[#allocation13 + $0x10] sm:$0xff] %v1002_v8  ;;  %1095 = vmatmul.f32.vlgmr.msra.gmra.mxu0 %v1002_v8  ;;  %1115 = vmatmul.f32.vlgmr.msra.gmra.mxu1 %v1002_v8 }
 0x259   :  { %1135 = vmatmul.f32.vlgmr.msra.gmra.mxu2 %v1002_v8  ;;  %1155 = vmatmul.f32.vlgmr.msra.gmra.mxu3 %v1002_v8 }
 0x25a   :  { %1527 = vmatpush.msra.mxu0 %v3064_v12  ;;  %1547 = vmatpush.msra.mxu1 %v3852_v31  ;;  %v3856_v12 = vld [vmem:[#allocation46_spill] sm:$0xff] }
 0x25b   :  { %1567 = vmatpush.msra.mxu2 %v3853_v11  ;;  %1587 = vmatpush.msra.mxu3 %v3072_v18  ;;  %v3859_v18 = vld [vmem:[#allocation49_spill] sm:$0xff] }
 0x25c   :  { %1528 = vmatpush.msra.mxu0 %v3854_v21  ;;  %1548 = vmatpush.msra.mxu1 %v3855_v36 }
 0x25d   :  { %1568 = vmatpush.msra.mxu2 %v3080_v23  ;;  %1588 = vmatpush.msra.mxu3 %v3084_v24  ;;  %v3860_v23 = vld [vmem:[#allocation50_spill] sm:$0xff]  ;;  %v3861_v24 = vld [vmem:[#allocation51_spill] sm:$0xff] }
 0x25e   :  { %1529 = vmatpush.msra.mxu0 %v3088_v27  ;;  %1549 = vmatpush.msra.mxu1 %v3090_v26  ;;  %v3862_v27 = vld [vmem:[#allocation52_spill] sm:$0xff]  ;;  %v3863_v26 = vld [vmem:[#allocation53_spill] sm:$0xff] }
 0x25f   :  { %1569 = vmatpush.msra.mxu2 %v3092_v28  ;;  %1589 = vmatpush.msra.mxu3 %v3856_v12  ;;  %v3864_v28 = vld [vmem:[#allocation54_spill] sm:$0xff] }
 0x260   :  { %1530 = vmatpush.msra.mxu0 %v3857_v50  ;;  %1550 = vmatpush.msra.mxu1 %v3858_v37 }
 0x261   :  { %1570 = vmatpush.msra.mxu2 %v3859_v18  ;;  %1590 = vmatpush.msra.mxu3 %v3108_v9 }
 0x262   :  { %1531 = vmatpush.msra.mxu0 %v3112_v10  ;;  %1551 = vmatpush.msra.mxu1 %v3114_v13 }
 0x263   :  { %1571 = vmatpush.msra.mxu2 %v3116_v25  ;;  %1591 = vmatpush.msra.mxu3 %v3860_v23  ;;  %v3869_v23 = vld [vmem:[#allocation26_spill] sm:$0xff] }
 0x264   :  { %1532 = vmatpush.msra.mxu0 %v3124_v41  ;;  %1552 = vmatpush.msra.mxu1 %v3126_v44 }
 0x265   :  { %1572 = vmatpush.msra.mxu2 %v3861_v24  ;;  %1592 = vmatpush.msra.mxu3 %v3132_v49 }
 0x266   :  { %1533 = vmatpush.msra.mxu0 %v3136_v53  ;;  %1553 = vmatpush.msra.mxu1 %v3862_v27  ;;  %v3868_v53 = vld [vmem:[#allocation24_spill] sm:$0xff]  ;;  %v3870_v27 = vld [vmem:[#allocation27_spill] sm:$0xff] }
 0x267   :  { %1573 = vmatpush.msra.mxu2 %v3863_v26  ;;  %1593 = vmatpush.msra.mxu3 %v3864_v28 }
 0x268   :  { %1534 = vmatpush.msra.mxu0 %v3148_v57  ;;  %1554 = vmatpush.msra.mxu1 %v3150_v58 }
 0x269   :  { %1574 = vmatpush.msra.mxu2 %v3152_v62  ;;  %1594 = vmatpush.msra.mxu3 %v3156_v63 }
 0x26a   :  { %1535 = vmatpush.msra.mxu0 %v3160_v2  ;;  %1555 = vmatpush.msra.mxu1 %v3162_v3 }
 0x26b   :  { %1575 = vmatpush.msra.mxu2 %v3164_v6  ;;  %1595 = vmatpush.msra.mxu3 %v3168_v7 }
 0x26c   :  { %1536 = vmatpush.msra.mxu0 %v3172_v14  ;;  %1556 = vmatpush.msra.mxu1 %v3174_v16 }
 0x26d   :  { %1576 = vmatpush.msra.mxu2 %v3176_v17  ;;  %1596 = vmatpush.msra.mxu3 %v3182_v4  ;;  %v3866_v4 = vld [vmem:[#allocation23_spill] sm:$0xff] }
 0x26e   :  { %1537 = vmatpush.msra.mxu0 %v3186_v5  ;;  %1557 = vmatpush.msra.mxu1 %v3188_v1 }
 0x26f   :  { %1577 = vmatpush.msra.mxu2 %v3190_v0  ;;  %1597 = vmatpush.msra.mxu3 %v3194_v30  ;;  %v3865_v0 = vld [vmem:[#allocation22_spill] sm:$0xff] }
 0x270   :  { %1538 = vmatpush.msra.mxu0 %v3198_v60  ;;  %1558 = vmatpush.msra.mxu1 %v3200_v20 }
 0x271   :  { %1578 = vmatpush.msra.mxu2 %v3202_v61  ;;  %1598 = vmatpush.msra.mxu3 %v3845_v45 }
 0x272   :  { %1539 = vmatpush.msra.mxu0 %v3846_v15  ;;  %1559 = vmatpush.msra.mxu1 %v3847_v22 }
 0x273   :  { %1579 = vmatpush.msra.mxu2 %v3848_v33  ;;  %1599 = vmatpush.msra.mxu3 %v3849_v51 }
 0x274   :  { %1540 = vmatpush.msra.mxu0 %v3850_v47  ;;  %1560 = vmatpush.msra.mxu1 %v3851_v32 }
 0x275   :  { %1580 = vmatpush.msra.mxu2 %v3224_v46  ;;  %1600 = vmatpush.msra.mxu3 %v3226_v29 }
 0x276   :  { %1541 = vmatpush.msra.mxu0 %v3231_v43  ;;  %1561 = vmatpush.msra.mxu1 %v3233_v39 }
 0x277   :  { %1581 = vmatpush.msra.mxu2 %v3237_v38  ;;  %1601 = vmatpush.msra.mxu3 %v3239_v56  ;;  %v3867_v56 = vld [vmem:[#allocation25_spill] sm:$0xff] }
 0x278   :  { %1542 = vmatpush.msra.mxu0 %v3243_v35  ;;  %1562 = vmatpush.msra.mxu1 %v3245_v52 }
 0x279   :  { %1582 = vmatpush.msra.mxu2 %v3249_v59  ;;  %1602 = vmatpush.msra.mxu3 %v3251_v48 }
 0x2d5   :  { %v1096_v61 = vpop.f32.mrf.mxu0  ;;  %v1116_v46 = vpop.f32.mrf.mxu1 }
 0x2d6   :  { %v1159_v1 = vadd.f32 %v1096_v61, %v3865_v0  ;;  %v1160_v43 = vadd.f32 %v1116_v46, %v3866_v4  ;;  %v3871_v0 = vld [vmem:[#allocation29_spill] sm:$0xff] }
 0x2d8   :  { %v2234_v5 = vmul.f32 -1.442695, %v1159_v1  ;;  %v2235_v39 = vmul.f32 -1.442695, %v1160_v43 }
 0x2da   :  { %2309 = vpow2.f32 %v2234_v5 }
 0x2db   :  { %2311 = vpow2.f32 %v2235_v39 }
 0x2dc   :  { %v1156_v38 = vpop.f32.mrf.mxu3  ;;  %v1136_v48 = vpop.f32.mrf.mxu2 }
 0x2dd   :  { %v1162_v16 = vadd.f32 %v1156_v38, %v3867_v56  ;;  %v1161_v57 = vadd.f32 %v1136_v48, %v3868_v53 }
 0x2df   :  { %v2236_v17 = vmul.f32 -1.442695, %v1162_v16 }
 0x2e0   :  { %v2310_v9 = vpop.eup %2309 }
 0x2e1   :  { %v2312_v10 = vpop.eup %2311  ;;  %v1166_v13 = vadd.f32 1.0, %v2310_v9  ;;  %2313 = vpow2.f32 %v2236_v17 }
 0x2e2   :  { %v1185_v25 = vadd.f32 1.0, %v2312_v10  ;;  %v3872_v10 = vld [vmem:[#allocation28_spill] sm:$0xff] }
 0x2e3   :  { %2315 = vrcp.f32 %v1166_v13  ;;  %v1178_v6 = vand.u32 2147483648, %v1166_v13  ;;  %v1176_v30 = vand.u32 2147483647, %v1166_v13  ;;  %vm1172_vm7 = vweird.f32 %v1166_v13 }
 0x2e4   :  { %2317 = vrcp.f32 %v1185_v25  ;;  %v1197_v7 = vand.u32 2147483648, %v1185_v25  ;;  %v1195_v20 = vand.u32 2147483647, %v1185_v25  ;;  %vm1191_vm8 = vweird.f32 %v1185_v25 }
 0x2e5   :  { %v1179_v35 = vor.u32 1.1754944e-38, %v1178_v6  ;;  %vm1177_vm11 = vcmp.eq.f32.partialorder %v1176_v30, 8.507059e+37 }
 0x2e6   :  { %v1198_v45 = vor.u32 1.1754944e-38, %v1197_v7  ;;  %vm1196_vm12 = vcmp.eq.f32.partialorder %v1195_v20, 8.507059e+37 }
 0x2e7   :  { %v2314_v41 = vpop.eup %2313 }
 0x2e8   :  { %v1205_v44 = vadd.f32 1.0, %v2314_v41 }
 0x2e9   :  { %v2316_v49 = vpop.eup %2315 }
 0x2ea   :  { %v2318_v58 = vpop.eup %2317  ;;  %v1168_v62 = vmul.f32 %v2316_v49, %v1166_v13  ;;  %2319 = vrcp.f32 %v1205_v44  ;;  %vm1173_vm5 = vweird.f32 %v2316_v49  ;;  %v1217_v31 = vand.u32 2147483648, %v1205_v44 }
 0x2eb   :  { %v1187_v63 = vmul.f32 %v2318_v58, %v1185_v25  ;;  %2321 = vtanh.f32 %v1161_v57  ;;  %vm1192_vm6 = vweird.f32 %v2318_v58  ;;  %vm1174_vm9 = vmor %vm1172_vm7, %vm1173_vm5  ;;  %vm1211_vm14 = vweird.f32 %v1205_v44 }
 0x2ec   :  { %v1169_v2 = vsub.f32 1.0, %v1168_v62  ;;  %vm1193_vm10 = vmor %vm1191_vm8, %vm1192_vm6  ;;  %v1215_v11 = vand.u32 2147483647, %v1205_v44  ;;  %v1218_v36 = vor.u32 1.1754944e-38, %v1217_v31 }
 0x2ed   :  { %v1188_v3 = vsub.f32 1.0, %v1187_v63 }
 0x2ee   :  { %v1170_v14 = vmul.f32 %v2316_v49, %v1169_v2  ;;  %vm1216_vm0 = vcmp.eq.f32.partialorder %v1215_v11, 8.507059e+37  ;;  %v3440_v11 = vld [vmem:[#allocation10 + $0x1e8] sm:$0xff] }
 0x2ef   :  { %v1189_v60 = vmul.f32 %v2318_v58, %v1188_v3 }
 0x2f0   :  { %v2320_v59 = vpop.eup %2319  ;;  %v1171_v29 = vadd.f32 %v2316_v49, %v1170_v14 }
 0x2f1   :  { %v1190_v52 = vadd.f32 %v2318_v58, %v1189_v60  ;;  %v1207_v40 = vmul.f32 %v2320_v59, %v1205_v44  ;;  %v2322_v15 = vpop.eup %2321  ;;  %vm1212_vm13 = vweird.f32 %v2320_v59 }
 0x2f2   :  { %v1175_v54 = vsel %vm1174_vm9, %v2316_v49, %v1171_v29  ;;  %vm1213_vm15 = vmor %vm1211_vm14, %vm1212_vm13 }
 0x2f3   :  { %v1180_v22 = vsel %vm1177_vm11, %v1179_v35, %v1175_v54  ;;  %v1194_v55 = vsel %vm1193_vm10, %v2318_v58, %v1190_v52  ;;  %v1208_v33 = vsub.f32 1.0, %v1207_v40 }
 0x2f4   :  { %v1199_v51 = vsel %vm1196_vm12, %v1198_v45, %v1194_v55  ;;  %v1223_v47 = vmul.f32 %v2322_v15, %v1180_v22 }
 0x2f5   :  { %v1222_v32 = vmul.f32 %v1199_v51, %v3323_v19  ;;  %v1209_v34 = vmul.f32 %v2320_v59, %v1208_v33 }
 0x2f7   :  { %v3427_v42 = vadd.f32 %v1223_v47, %v1222_v32  ;;  %v1210_v8 = vadd.f32 %v2320_v59, %v1209_v34 }
 0x2f9   :  { %2323 = vtanh.f32 %v3427_v42  ;;  %v1214_v21 = vsel %vm1213_vm15, %v2320_v59, %v1210_v8 }
 0x2fa   :  { %v1219_v50 = vsel %vm1216_vm0, %v1218_v36, %v1214_v21  ;;  %v3442_v21 = vld [vmem:[#allocation10 + $0x1f0] sm:$0xff]  ;;  %v3446_v36 = vld [vmem:[#allocation10 + $0x1f8] sm:$0xff] }
 0x2ff   :  { %v2324_v12 = vpop.eup %2323 }
 0x300   :  { %v1226_v37 = vmul.f32 %v2324_v12, %v1219_v50  ;;  %v3450_v12 = vld [vmem:[#allocation10 + $0x1c0] sm:$0xff]  ;;  %v3452_v50 = vld [vmem:[#allocation10 + $0x1c8] sm:$0xff] }
 0x302   :  { %1230 = vst [vmem:[#allocation13 + $0x18] sm:$0xff] %v1226_v37  ;;  %1319 = vmatmul.f32.vlgmr.msrb.gmra.mxu0 %v1226_v37  ;;  %1339 = vmatmul.f32.vlgmr.msrb.gmra.mxu1 %v1226_v37 }
 0x303   :  { %1359 = vmatmul.f32.vlgmr.msrb.gmra.mxu2 %v1226_v37  ;;  %1379 = vmatmul.f32.vlgmr.msrb.gmra.mxu3 %v1226_v37  ;;  %v3454_v37 = vld [vmem:[#allocation10 + $0x1d0] sm:$0xff] }
 0x304   :  { %1771 = vmatpush.msrb.mxu1 %v3440_v11  ;;  %1791 = vmatpush.msrb.mxu2 %v3442_v21 }
 0x305   :  { %1811 = vmatpush.msrb.mxu3 %v3446_v36 }
 0x306   :  { %1772 = vmatpush.msrb.mxu1 %v3452_v50  ;;  %1792 = vmatpush.msrb.mxu2 %v3454_v37 }
 0x37f   :  { %v1320_v19 = vpop.f32.mrf.mxu0  ;;  %v1340_v18 = vpop.f32.mrf.mxu1 }
 0x380   :  { %v1383_v24 = vadd.f32 %v1320_v19, %v3869_v23  ;;  %v1384_v26 = vadd.f32 %v1340_v18, %v3870_v27  ;;  %v3458_v19 = vld [vmem:[#allocation10 + $0x1d8] sm:$0xff]  ;;  %v3462_v18 = vld [vmem:[#allocation10 + $0x1a0] sm:$0xff]  ;;  %v3464_v23 = vld [vmem:[#allocation10 + $0x1a8] sm:$0xff] }
 0x381   :  { %1812 = vmatpush.msrb.mxu3 %v3458_v19  ;;  %1773 = vmatpush.msrb.mxu1 %v3464_v23  ;;  %v3470_v27 = vld [vmem:[#allocation10 + $0x1b8] sm:$0xff] }
 0x382   :  { %v2237_v28 = vmul.f32 -1.442695, %v1383_v24  ;;  %v2238_v61 = vmul.f32 -1.442695, %v1384_v26  ;;  %v3466_v24 = vld [vmem:[#allocation10 + $0x1b0] sm:$0xff]  ;;  %v3474_v26 = vld [vmem:[#allocation10 + $0x180] sm:$0xff] }
 0x383   :  { %1793 = vmatpush.msrb.mxu2 %v3466_v24  ;;  %1813 = vmatpush.msrb.mxu3 %v3470_v27 }
 0x384   :  { %2325 = vpow2.f32 %v2237_v28  ;;  %v3476_v28 = vld [vmem:[#allocation10 + $0x188] sm:$0xff] }
 0x385   :  { %2327 = vpow2.f32 %v2238_v61  ;;  %v3478_v61 = vld [vmem:[#allocation10 + $0x190] sm:$0xff]  ;;  %1774 = vmatpush.msrb.mxu1 %v3476_v28 }
 0x386   :  { %v1380_v46 = vpop.f32.mrf.mxu3  ;;  %v1360_v56 = vpop.f32.mrf.mxu2  ;;  %1794 = vmatpush.msrb.mxu2 %v3478_v61 }
 0x387   :  { %v1386_v1 = vadd.f32 %v1380_v46, %v3871_v0  ;;  %v1385_v13 = vadd.f32 %v1360_v56, %v3872_v10  ;;  %v3482_v46 = vld [vmem:[#allocation10 + $0x198] sm:$0xff]  ;;  %v3486_v0 = vld [vmem:[#allocation10 + $0x160] sm:$0xff] }
 0x388   :  { %1814 = vmatpush.msrb.mxu3 %v3482_v46  ;;  %v3506_v56 = vld [vmem:[#allocation10 + $0x158] sm:$0xff] }
 0x389   :  { %v2239_v4 = vmul.f32 -1.442695, %v1386_v1  ;;  %v3488_v1 = vld [vmem:[#allocation10 + $0x168] sm:$0xff]  ;;  %v3518_v10 = vld [vmem:[#allocation10 + $0x138] sm:$0xff] }
 0x38a   :  { %v2326_v43 = vpop.eup %2325  ;;  %1775 = vmatpush.msrb.mxu1 %v3488_v1 }
 0x38b   :  { %v2328_v5 = vpop.eup %2327  ;;  %v1390_v39 = vadd.f32 1.0, %v2326_v43  ;;  %2329 = vpow2.f32 %v2239_v4  ;;  %v3490_v4 = vld [vmem:[#allocation10 + $0x170] sm:$0xff]  ;;  %v3494_v43 = vld [vmem:[#allocation10 + $0x178] sm:$0xff] }
 0x38c   :  { %v1409_v38 = vadd.f32 1.0, %v2328_v5  ;;  %1795 = vmatpush.msrb.mxu2 %v3490_v4  ;;  %1815 = vmatpush.msrb.mxu3 %v3494_v43  ;;  %v3498_v5 = vld [vmem:[#allocation10 + $0x140] sm:$0xff] }
 0x38d   :  { %2331 = vrcp.f32 %v1390_v39  ;;  %v1402_v53 = vand.u32 2147483648, %v1390_v39  ;;  %v1400_v62 = vand.u32 2147483647, %v1390_v39  ;;  %vm1396_vm3 = vweird.f32 %v1390_v39 }
 0x38e   :  { %2333 = vrcp.f32 %v1409_v38  ;;  %v1421_v57 = vand.u32 2147483648, %v1409_v38  ;;  %v1419_v2 = vand.u32 2147483647, %v1409_v38  ;;  %vm1415_vm4 = vweird.f32 %v1409_v38  ;;  %1816 = vmatpush.msrb.mxu3 %v3506_v56 }
 0x38f   :  { %v1403_v7 = vor.u32 1.1754944e-38, %v1402_v53  ;;  %vm1401_vm7 = vcmp.eq.f32.partialorder %v1400_v62, 8.507059e+37  ;;  %v3538_v53 = vld [vmem:[#allocation10 + $0xf0] sm:$0xff] }
 0x390   :  { %v1422_v60 = vor.u32 1.1754944e-38, %v1421_v57  ;;  %vm1420_vm8 = vcmp.eq.f32.partialorder %v1419_v2, 8.507059e+37  ;;  %1817 = vmatpush.msrb.mxu3 %v3518_v10  ;;  %v3542_v57 = vld [vmem:[#allocation10 + $0xf8] sm:$0xff]  ;;  %v3548_v2 = vld [vmem:[#allocation10 + $0xc8] sm:$0xff] }
 0x391   :  { %v2330_v16 = vpop.eup %2329 }
 0x392   :  { %v1429_v17 = vadd.f32 1.0, %v2330_v16  ;;  %v3510_v16 = vld [vmem:[#allocation10 + $0x120] sm:$0xff] }
 0x393   :  { %v2332_v9 = vpop.eup %2331 }
 0x394   :  { %v2334_v25 = vpop.eup %2333  ;;  %v1392_v48 = vmul.f32 %v2332_v9, %v1390_v39  ;;  %2335 = vrcp.f32 %v1429_v17  ;;  %vm1397_vm1 = vweird.f32 %v2332_v9  ;;  %v1441_v33 = vand.u32 2147483648, %v1429_v17  ;;  %v3500_v39 = vld [vmem:[#allocation10 + $0x148] sm:$0xff] }
 0x395   :  { %v1411_v41 = vmul.f32 %v2334_v25, %v1409_v38  ;;  %2337 = vtanh.f32 %v1385_v13  ;;  %vm1416_vm2 = vweird.f32 %v2334_v25  ;;  %vm1398_vm5 = vmor %vm1396_vm3, %vm1397_vm1  ;;  %vm1435_vm10 = vweird.f32 %v1429_v17  ;;  %v3502_v38 = vld [vmem:[#allocation10 + $0x150] sm:$0xff]  ;;  %1776 = vmatpush.msrb.mxu1 %v3500_v39  ;;  %v3522_v13 = vld [vmem:[#allocation10 + $0x100] sm:$0xff] }
 0x396   :  { %v1393_v44 = vsub.f32 1.0, %v1392_v48  ;;  %vm1417_vm6 = vmor %vm1415_vm4, %vm1416_vm2  ;;  %v1439_v51 = vand.u32 2147483647, %v1429_v17  ;;  %v1442_v32 = vor.u32 1.1754944e-38, %v1441_v33  ;;  %1796 = vmatpush.msrb.mxu2 %v3502_v38  ;;  %v3526_v48 = vld [vmem:[#allocation10 + $0x110] sm:$0xff]  ;;  %v3582_v33 = vld [vmem:[#allocation10 + $0x60] sm:$0xff] }
 0x397   :  { %v1412_v49 = vsub.f32 1.0, %v1411_v41  ;;  %v3530_v41 = vld [vmem:[#allocation10 + $0x118] sm:$0xff]  ;;  %3875 = vst [vmem:[#allocation55_spill] sm:$0xff] %v3582_v33 }
 0x398   :  { %v1394_v58 = vmul.f32 %v2332_v9, %v1393_v44  ;;  %vm1440_vm12 = vcmp.eq.f32.partialorder %v1439_v51, 8.507059e+37  ;;  %1818 = vmatpush.msrb.mxu3 %v3530_v41  ;;  %v3534_v44 = vld [vmem:[#allocation10 + $0xe0] sm:$0xff]  ;;  %v3584_v51 = vld [vmem:[#allocation10 + $0x68] sm:$0xff] }
 0x399   :  { %v1413_v63 = vmul.f32 %v2334_v25, %v1412_v49  ;;  %v3536_v49 = vld [vmem:[#allocation10 + $0xe8] sm:$0xff]  ;;  %3876 = vst [vmem:[#allocation56_spill] sm:$0xff] %v3584_v51 }
 0x39a   :  { %v2336_v3 = vpop.eup %2335  ;;  %v1395_v6 = vadd.f32 %v2332_v9, %v1394_v58  ;;  %1819 = vmatpush.msrb.mxu3 %v3542_v57 }
 0x39b   :  { %v1414_v14 = vadd.f32 %v2334_v25, %v1413_v63  ;;  %v1431_v30 = vmul.f32 %v2336_v3, %v1429_v17  ;;  %v2338_v59 = vpop.eup %2337  ;;  %vm1436_vm9 = vweird.f32 %v2336_v3  ;;  %v3512_v17 = vld [vmem:[#allocation10 + $0x128] sm:$0xff]  ;;  %v3546_v63 = vld [vmem:[#allocation10 + $0xc0] sm:$0xff] }
 0x39c   :  { %v1399_v20 = vsel %vm1398_vm5, %v2332_v9, %v1395_v6  ;;  %vm1437_vm11 = vmor %vm1435_vm10, %vm1436_vm9  ;;  %v3514_v9 = vld [vmem:[#allocation10 + $0x130] sm:$0xff]  ;;  %1777 = vmatpush.msrb.mxu1 %v3512_v17 }
 0x39d   :  { %v1404_v29 = vsel %vm1401_vm7, %v1403_v7, %v1399_v20  ;;  %v1418_v35 = vsel %vm1417_vm6, %v2334_v25, %v1414_v14  ;;  %v1432_v52 = vsub.f32 1.0, %v1431_v30  ;;  %1797 = vmatpush.msrb.mxu2 %v3514_v9  ;;  %v3524_v25 = vld [vmem:[#allocation10 + $0x108] sm:$0xff]  ;;  %v3873_v6 = vld [vmem:[#allocation30_spill] sm:$0xff]  ;;  %v3874_v14 = vld [vmem:[#allocation31_spill] sm:$0xff] }
 0x39e   :  { %v1423_v40 = vsel %vm1420_vm8, %v1422_v60, %v1418_v35  ;;  %v1447_v45 = vmul.f32 %v2338_v59, %v1404_v29  ;;  %1778 = vmatpush.msrb.mxu1 %v3524_v25  ;;  %v3556_v60 = vld [vmem:[#allocation10 + $0xd8] sm:$0xff]  ;;  %v3560_v20 = vld [vmem:[#allocation10 + $0xa0] sm:$0xff]  ;;  %v3562_v59 = vld [vmem:[#allocation10 + $0xa8] sm:$0xff] }
 0x39f   :  { %v1446_v54 = vmul.f32 %v1423_v40, %v3427_v42  ;;  %v1433_v15 = vmul.f32 %v2336_v3, %v1432_v52  ;;  %v3438_v42 = vld [vmem:[#allocation10 + $0x1e0] sm:$0xff]  ;;  %1798 = vmatpush.msrb.mxu2 %v3526_v48  ;;  %1820 = vmatpush.msrb.mxu3 %v3556_v60  ;;  %v3564_v29 = vld [vmem:[#allocation10 + $0xb0] sm:$0xff]  ;;  %v3568_v40 = vld [vmem:[#allocation10 + $0xb8] sm:$0xff] }
 0x3a0   :  { %1751 = vmatpush.msrb.mxu0 %v3438_v42  ;;  %1779 = vmatpush.msrb.mxu1 %v3536_v49 }
 0x3a1   :  { %v3435_v22 = vadd.f32 %v1447_v45, %v1446_v54  ;;  %v1434_v55 = vadd.f32 %v2336_v3, %v1433_v15  ;;  %1799 = vmatpush.msrb.mxu2 %v3538_v53  ;;  %1821 = vmatpush.msrb.mxu3 %v3568_v40  ;;  %v3572_v45 = vld [vmem:[#allocation10 + $0x80] sm:$0xff]  ;;  %v3574_v54 = vld [vmem:[#allocation10 + $0x88] sm:$0xff]  ;;  %v3576_v15 = vld [vmem:[#allocation10 + $0x90] sm:$0xff] }
 0x3a2   :  { %1752 = vmatpush.msrb.mxu0 %v3450_v12  ;;  %1780 = vmatpush.msrb.mxu1 %v3548_v2 }
 0x3a3   :  { %2339 = vtanh.f32 %v3435_v22  ;;  %v1438_v47 = vsel %vm1437_vm11, %v2336_v3, %v1434_v55  ;;  %v3550_v3 = vld [vmem:[#allocation10 + $0xd0] sm:$0xff]  ;;  %v3580_v55 = vld [vmem:[#allocation10 + $0x98] sm:$0xff] }
 0x3a4   :  { %v1443_v8 = vsel %vm1440_vm12, %v1442_v32, %v1438_v47  ;;  %1753 = vmatpush.msrb.mxu0 %v3462_v18  ;;  %1800 = vmatpush.msrb.mxu2 %v3550_v3  ;;  %v3588_v47 = vld [vmem:[#allocation10 + $0x70] sm:$0xff]  ;;  %v3590_v32 = vld [vmem:[#allocation10 + $0x78] sm:$0xff] }
 0x3a5   :  { %1781 = vmatpush.msrb.mxu1 %v3562_v59  ;;  %1822 = vmatpush.msrb.mxu3 %v3580_v55  ;;  %3877 = vst [vmem:[#allocation57_spill] sm:$0xff] %v3588_v47 }
 0x3a6   :  { %1754 = vmatpush.msrb.mxu0 %v3474_v26  ;;  %1801 = vmatpush.msrb.mxu2 %v3564_v29  ;;  %3878 = vst [vmem:[#allocation58_spill] sm:$0xff] %v3590_v32 }
 0x3a7   :  { %1782 = vmatpush.msrb.mxu1 %v3574_v54  ;;  %1823 = vmatpush.msrb.mxu3 %v3590_v32 }
 0x3a8   :  { %1755 = vmatpush.msrb.mxu0 %v3486_v0  ;;  %1802 = vmatpush.msrb.mxu2 %v3576_v15 }
 0x3a9   :  { %v2340_v34 = vpop.eup %2339  ;;  %1783 = vmatpush.msrb.mxu1 %v3584_v51 }
 0x3aa   :  { %v1450_v31 = vmul.f32 %v2340_v34, %v1443_v8  ;;  %1756 = vmatpush.msrb.mxu0 %v3498_v5  ;;  %v3592_v34 = vld [vmem:[#allocation10 + $0x40] sm:$0xff]  ;;  %1803 = vmatpush.msrb.mxu2 %v3588_v47 }
 0x3ab   :  { %3879 = vst [vmem:[#allocation59_spill] sm:$0xff] %v3592_v34 }
 0x3ac   :  { %1454 = vst [vmem:[#allocation13 + $0x20] sm:$0xff] %v1450_v31  ;;  %1543 = vmatmul.f32.vlgmr.msra.gmra.mxu0 %v1450_v31  ;;  %1563 = vmatmul.f32.vlgmr.msra.gmra.mxu1 %v1450_v31 }
 0x3ad   :  { %1583 = vmatmul.f32.vlgmr.msra.gmra.mxu2 %v1450_v31  ;;  %1603 = vmatmul.f32.vlgmr.msra.gmra.mxu3 %v1450_v31  ;;  %v3596_v31 = vld [vmem:[#allocation10 + $0x48] sm:$0xff] }
 0x3ae   :  { %1757 = vmatpush.msrb.mxu0 %v3510_v16  ;;  %3880 = vst [vmem:[#allocation60_spill] sm:$0xff] %v3596_v31  ;;  %1784 = vmatpush.msrb.mxu1 %v3596_v31  ;;  %v3625_v31 = vld [vmem:[#allocation10 + $0x18] sm:$0xff] }
 0x3b0   :  { %1758 = vmatpush.msrb.mxu0 %v3522_v13 }
 0x3b2   :  { %1759 = vmatpush.msrb.mxu0 %v3534_v44 }
 0x3b4   :  { %1760 = vmatpush.msrb.mxu0 %v3546_v63 }
 0x3b6   :  { %1761 = vmatpush.msrb.mxu0 %v3560_v20 }
 0x3b8   :  { %1762 = vmatpush.msrb.mxu0 %v3572_v45 }
 0x3ba   :  { %1763 = vmatpush.msrb.mxu0 %v3582_v33 }
 0x3bc   :  { %1764 = vmatpush.msrb.mxu0 %v3592_v34  ;;  %v3623_v34 = vld [vmem:[#allocation10 + $0x10] sm:$0xff] }
 0x429   :  { %v1544_v58 = vpop.f32.mrf.mxu0  ;;  %v1564_v62 = vpop.f32.mrf.mxu1 }
 0x42a   :  { %v1607_v7 = vadd.f32 %v1544_v58, %v3873_v6  ;;  %v1608_v30 = vadd.f32 %v1564_v62, %v3874_v14  ;;  %v3598_v58 = vld [vmem:[#allocation10 + $0x50] sm:$0xff]  ;;  %v3600_v62 = vld [vmem:[#allocation10 + $0x58] sm:$0xff]  ;;  %v3605_v14 = vld [vmem:[#allocation10 + $0x20] sm:$0xff] }
 0x42b   :  { %v3881_v6 = vld [vmem:[#allocation33_spill] sm:$0xff]  ;;  %1804 = vmatpush.msrb.mxu2 %v3598_v58  ;;  %1824 = vmatpush.msrb.mxu3 %v3600_v62 }
 0x42c   :  { %v2240_v35 = vmul.f32 -1.442695, %v1607_v7  ;;  %v2241_v52 = vmul.f32 -1.442695, %v1608_v30  ;;  %v3607_v30 = vld [vmem:[#allocation10 + $0x28] sm:$0xff]  ;;  %1765 = vmatpush.msrb.mxu0 %v3605_v14 }
 0x42d   :  { %1785 = vmatpush.msrb.mxu1 %v3607_v30 }
 0x42e   :  { %2341 = vpow2.f32 %v2240_v35  ;;  %v3611_v35 = vld [vmem:[#allocation10 + $0x30] sm:$0xff] }
 0x42f   :  { %2343 = vpow2.f32 %v2241_v52  ;;  %v3613_v52 = vld [vmem:[#allocation10 + $0x38] sm:$0xff]  ;;  %1805 = vmatpush.msrb.mxu2 %v3611_v35 }
 0x430   :  { %v1604_v8 = vpop.f32.mrf.mxu3  ;;  %1825 = vmatpush.msrb.mxu3 %v3613_v52 }
 0x431   :  { %v1610_v7 = vadd.f32 %v1604_v8, %v3881_v6  ;;  %v3617_v8 = vld [vmem:[#allocation10] sm:$0xff]  ;;  %v3619_v6 = vld [vmem:[#allocation10 + $0x8] sm:$0xff]  ;;  %1806 = vmatpush.msrb.mxu2 %v3623_v34 }
 0x432   :  { %1766 = vmatpush.msrb.mxu0 %v3617_v8  ;;  %1786 = vmatpush.msrb.mxu1 %v3619_v6 }
 0x433   :  { %v2242_v51 = vmul.f32 -1.442695, %v1610_v7  ;;  %1826 = vmatpush.msrb.mxu3 %v3625_v31  ;;  %2015 = vmatpush.msra.mxu2 %v3442_v21 }
 0x434   :  { %v2342_v32 = vpop.eup %2341  ;;  %1975 = vmatpush.msra.mxu0 %v3438_v42  ;;  %1995 = vmatpush.msra.mxu1 %v3440_v11  ;;  %v3882_v11 = vld [vmem:[#allocation32_spill] sm:$0xff] }
 0x435   :  { %v2344_v47 = vpop.eup %2343  ;;  %v3627_v33 = vadd.f32 1.0, %v2342_v32  ;;  %2345 = vpow2.f32 %v2242_v51  ;;  %2035 = vmatpush.msra.mxu3 %v3446_v36  ;;  %v1584_v51 = vpop.f32.mrf.mxu2  ;;  %2016 = vmatpush.msra.mxu2 %v3454_v37 }
 0x436   :  { %v3631_v7 = vadd.f32 1.0, %v2344_v47  ;;  %1976 = vmatpush.msra.mxu0 %v3450_v12  ;;  %1996 = vmatpush.msra.mxu1 %v3452_v50  ;;  %v1609_v21 = vadd.f32 %v1584_v51, %v3882_v11 }
 0x437   :  { %2347 = vrcp.f32 %v3627_v33  ;;  %2036 = vmatpush.msra.mxu3 %v3458_v19  ;;  %2017 = vmatpush.msra.mxu2 %v3466_v24  ;;  %vm1620_vm15 = vweird.f32 %v3627_v33 }
 0x438   :  { %2349 = vrcp.f32 %v3631_v7  ;;  %1977 = vmatpush.msra.mxu0 %v3462_v18  ;;  %1997 = vmatpush.msra.mxu1 %v3464_v23  ;;  %v1626_v18 = vand.u32 2147483648, %v3627_v33  ;;  %v1645_v23 = vand.u32 2147483648, %v3631_v7  ;;  %vm1639_vm0 = vweird.f32 %v3631_v7 }
 0x439   :  { %2037 = vmatpush.msra.mxu3 %v3470_v27  ;;  %2018 = vmatpush.msra.mxu2 %v3478_v61  ;;  %v1624_v27 = vand.u32 2147483647, %v3627_v33 }
 0x43a   :  { %1978 = vmatpush.msra.mxu0 %v3474_v26  ;;  %1998 = vmatpush.msra.mxu1 %v3476_v28  ;;  %v1643_v28 = vand.u32 2147483647, %v3631_v7 }
 0x43b   :  { %v2346_v47 = vpop.eup %2345  ;;  %2038 = vmatpush.msra.mxu3 %v3482_v46  ;;  %2019 = vmatpush.msra.mxu2 %v3490_v4  ;;  %vm1625_vm3 = vcmp.eq.f32.partialorder %v1624_v27, 8.507059e+37 }
 0x43c   :  { %v3647_v32 = vadd.f32 1.0, %v2346_v47  ;;  %1979 = vmatpush.msra.mxu0 %v3486_v0  ;;  %1999 = vmatpush.msra.mxu1 %v3488_v1  ;;  %v1627_v0 = vor.u32 1.1754944e-38, %v1626_v18  ;;  %vm1644_vm4 = vcmp.eq.f32.partialorder %v1643_v28, 8.507059e+37 }
 0x43d   :  { %v2348_v42 = vpop.eup %2347  ;;  %2039 = vmatpush.msra.mxu3 %v3494_v43  ;;  %2020 = vmatpush.msra.mxu2 %v3502_v38  ;;  %v1646_v43 = vor.u32 1.1754944e-38, %v1645_v23 }
 0x43e   :  { %v2350_v36 = vpop.eup %2349  ;;  %v1616_v12 = vmul.f32 %v2348_v42, %v3627_v33  ;;  %2351 = vrcp.f32 %v3647_v32  ;;  %vm1621_vm13 = vweird.f32 %v2348_v42  ;;  %1980 = vmatpush.msra.mxu0 %v3498_v5  ;;  %2000 = vmatpush.msra.mxu1 %v3500_v39  ;;  %vm1659_vm6 = vweird.f32 %v3647_v32 }
 0x43f   :  { %v1635_v50 = vmul.f32 %v2350_v36, %v3631_v7  ;;  %2353 = vtanh.f32 %v1609_v21  ;;  %vm1640_vm14 = vweird.f32 %v2350_v36  ;;  %2040 = vmatpush.msra.mxu3 %v3506_v56  ;;  %vm1622_vm1 = vmor %vm1620_vm15, %vm1621_vm13  ;;  %2021 = vmatpush.msra.mxu2 %v3514_v9 }
 0x440   :  { %v1617_v37 = vsub.f32 1.0, %v1616_v12  ;;  %1981 = vmatpush.msra.mxu0 %v3510_v16  ;;  %2001 = vmatpush.msra.mxu1 %v3512_v17  ;;  %vm1641_vm2 = vmor %vm1639_vm0, %vm1640_vm14 }
 0x441   :  { %v1636_v19 = vsub.f32 1.0, %v1635_v50  ;;  %2041 = vmatpush.msra.mxu3 %v3518_v10  ;;  %2022 = vmatpush.msra.mxu2 %v3526_v48  ;;  %v1665_v48 = vand.u32 2147483648, %v3647_v32 }
 0x442   :  { %v1618_v24 = vmul.f32 %v2348_v42, %v1617_v37  ;;  %1982 = vmatpush.msra.mxu0 %v3522_v13  ;;  %2002 = vmatpush.msra.mxu1 %v3524_v25 }
 0x443   :  { %v1637_v26 = vmul.f32 %v2350_v36, %v1636_v19  ;;  %2042 = vmatpush.msra.mxu3 %v3530_v41  ;;  %2023 = vmatpush.msra.mxu2 %v3538_v53  ;;  %v1663_v41 = vand.u32 2147483647, %v3647_v32  ;;  %v3884_v53 = vld [vmem:[#allocation56_spill] sm:$0xff] }
 0x444   :  { %v3673_v61 = vpop.eup %2351  ;;  %v1619_v46 = vadd.f32 %v2348_v42, %v1618_v24  ;;  %1983 = vmatpush.msra.mxu0 %v3534_v44  ;;  %2003 = vmatpush.msra.mxu1 %v3536_v49  ;;  %v3883_v49 = vld [vmem:[#allocation55_spill] sm:$0xff] }
 0x445   :  { %v1638_v1 = vadd.f32 %v2350_v36, %v1637_v26  ;;  %v1655_v4 = vmul.f32 %v3673_v61, %v3647_v32  ;;  %v2354_v39 = vpop.eup %2353  ;;  %2043 = vmatpush.msra.mxu3 %v3542_v57  ;;  %2024 = vmatpush.msra.mxu2 %v3550_v3  ;;  %vm1660_vm5 = vweird.f32 %v3673_v61  ;;  %v1666_v57 = vor.u32 1.1754944e-38, %v1665_v48  ;;  %v3887_v3 = vld [vmem:[#allocation59_spill] sm:$0xff] }
 0x446   :  { %v1623_v5 = vsel %vm1622_vm1, %v2348_v42, %v1619_v46  ;;  %1984 = vmatpush.msra.mxu0 %v3546_v63  ;;  %2004 = vmatpush.msra.mxu1 %v3548_v2  ;;  %vm1661_vm7 = vmor %vm1659_vm6, %vm1660_vm5  ;;  %v3885_v63 = vld [vmem:[#allocation57_spill] sm:$0xff]  ;;  %v3886_v2 = vld [vmem:[#allocation58_spill] sm:$0xff]  ;;  %vm1664_vm8 = vcmp.eq.f32.partialorder %v1663_v41, 8.507059e+37 }
 0x447   :  { %v1628_v38 = vsel %vm1625_vm3, %v1627_v0, %v1623_v5  ;;  %v1642_v56 = vsel %vm1641_vm2, %v2350_v36, %v1638_v1  ;;  %v1656_v16 = vsub.f32 1.0, %v1655_v4  ;;  %2044 = vmatpush.msra.mxu3 %v3556_v60  ;;  %2025 = vmatpush.msra.mxu2 %v3564_v29  ;;  %v3888_v60 = vld [vmem:[#allocation60_spill] sm:$0xff] }
 0x448   :  { %v1647_v17 = vsel %vm1644_vm4, %v1646_v43, %v1642_v56  ;;  %v1671_v9 = vmul.f32 %v2354_v39, %v1628_v38  ;;  %1985 = vmatpush.msra.mxu0 %v3560_v20  ;;  %2005 = vmatpush.msra.mxu1 %v3562_v59  ;;  %v3892_v42 = vld [vmem:[#allocation36_spill] sm:$0xff] }
 0x449   :  { %v1670_v10 = vmul.f32 %v1647_v17, %v3435_v22  ;;  %v1657_v13 = vmul.f32 %v3673_v61, %v1656_v16  ;;  %2045 = vmatpush.msra.mxu3 %v3568_v40  ;;  %2026 = vmatpush.msra.mxu2 %v3576_v15 }
 0x44a   :  { %1986 = vmatpush.msra.mxu0 %v3572_v45  ;;  %2006 = vmatpush.msra.mxu1 %v3574_v54  ;;  %v3889_v54 = vld [vmem:[#allocation34_spill] sm:$0xff] }
 0x44b   :  { %v3697_v25 = vadd.f32 %v1671_v9, %v1670_v10  ;;  %v1658_v22 = vadd.f32 %v3673_v61, %v1657_v13  ;;  %2046 = vmatpush.msra.mxu3 %v3580_v55  ;;  %2027 = vmatpush.msra.mxu2 %v3885_v63  ;;  %v3890_v55 = vld [vmem:[#allocation35_spill] sm:$0xff] }
 0x44c   :  { %1987 = vmatpush.msra.mxu0 %v3883_v49  ;;  %2007 = vmatpush.msra.mxu1 %v3884_v53 }
 0x44d   :  { %2355 = vtanh.f32 %v3697_v25  ;;  %v1662_v44 = vsel %vm1661_vm7, %v3673_v61, %v1658_v22  ;;  %2047 = vmatpush.msra.mxu3 %v3886_v2  ;;  %2028 = vmatpush.msra.mxu2 %v3598_v58 }
 0x44e   :  { %1988 = vmatpush.msra.mxu0 %v3887_v3  ;;  %2008 = vmatpush.msra.mxu1 %v3888_v60  ;;  %v1667_v59 = vsel %vm1664_vm8, %v1666_v57, %v1662_v44  ;;  %v3893_v3 = vld [vmem:[#allocation38_spill] sm:$0xff] }
 0x44f   :  { %2048 = vmatpush.msra.mxu3 %v3600_v62  ;;  %2029 = vmatpush.msra.mxu2 %v3611_v35 }
 0x450   :  { %1989 = vmatpush.msra.mxu0 %v3605_v14  ;;  %2009 = vmatpush.msra.mxu1 %v3607_v30  ;;  %v3891_v30 = vld [vmem:[#allocation37_spill] sm:$0xff] }
 0x451   :  { %2049 = vmatpush.msra.mxu3 %v3613_v52  ;;  %2030 = vmatpush.msra.mxu2 %v3623_v34 }
 0x452   :  { %1990 = vmatpush.msra.mxu0 %v3617_v8  ;;  %2010 = vmatpush.msra.mxu1 %v3619_v6 }
 0x453   :  { %v2356_v20 = vpop.eup %2355  ;;  %2050 = vmatpush.msra.mxu3 %v3625_v31 }
 0x454   :  { %v1674_v29 = vmul.f32 %v2356_v20, %v1667_v59  ;;  %v3894_v20 = vld [vmem:[#allocation39_spill] sm:$0xff] }
 0x456   :  { %1678 = vst [vmem:[#allocation13 + $0x28] sm:$0xff] %v1674_v29  ;;  %1767 = vmatmul.f32.vlgmr.msrb.gmra.mxu0 %v1674_v29  ;;  %1787 = vmatmul.f32.vlgmr.msrb.gmra.mxu1 %v1674_v29 }
 0x457   :  { %1807 = vmatmul.f32.vlgmr.msrb.gmra.mxu2 %v1674_v29  ;;  %1827 = vmatmul.f32.vlgmr.msrb.gmra.mxu3 %v1674_v29 }
 0x4d3   :  { %v1768_v40 = vpop.f32.mrf.mxu0  ;;  %v1788_v45 = vpop.f32.mrf.mxu1 }
 0x4d4   :  { %v1831_v15 = vadd.f32 %v1768_v40, %v3889_v54  ;;  %v1832_v33 = vadd.f32 %v1788_v45, %v3890_v55  ;;  %v3895_v54 = vld [vmem:[#allocation41_spill] sm:$0xff] }
 0x4d6   :  { %v2243_v58 = vmul.f32 -1.442695, %v1831_v15  ;;  %v2244_v62 = vmul.f32 -1.442695, %v1832_v33 }
 0x4d8   :  { %2357 = vpow2.f32 %v2243_v58 }
 0x4d9   :  { %2359 = vpow2.f32 %v2244_v62 }
 0x4da   :  { %v1828_v14 = vpop.f32.mrf.mxu3  ;;  %v1808_v31 = vpop.f32.mrf.mxu2 }
 0x4db   :  { %v1834_v35 = vadd.f32 %v1828_v14, %v3891_v30  ;;  %v1833_v11 = vadd.f32 %v1808_v31, %v3892_v42 }
 0x4dd   :  { %v2245_v52 = vmul.f32 -1.442695, %v1834_v35 }
 0x4de   :  { %v2358_v8 = vpop.eup %2357 }
 0x4df   :  { %v2360_v6 = vpop.eup %2359  ;;  %v1838_v7 = vadd.f32 1.0, %v2358_v8  ;;  %2361 = vpow2.f32 %v2245_v52 }
 0x4e0   :  { %v1857_v34 = vadd.f32 1.0, %v2360_v6  ;;  %v3896_v6 = vld [vmem:[#allocation40_spill] sm:$0xff] }
 0x4e1   :  { %2363 = vrcp.f32 %v1838_v7  ;;  %v1850_v19 = vand.u32 2147483648, %v1838_v7  ;;  %v1848_v24 = vand.u32 2147483647, %v1838_v7  ;;  %vm1844_vm11 = vweird.f32 %v1838_v7 }
 0x4e2   :  { %2365 = vrcp.f32 %v1857_v34  ;;  %v1869_v18 = vand.u32 2147483648, %v1857_v34  ;;  %v1867_v26 = vand.u32 2147483647, %v1857_v34  ;;  %vm1863_vm12 = vweird.f32 %v1857_v34 }
 0x4e3   :  { %v1851_v46 = vor.u32 1.1754944e-38, %v1850_v19  ;;  %vm1849_vm15 = vcmp.eq.f32.partialorder %v1848_v24, 8.507059e+37 }
 0x4e4   :  { %v1870_v4 = vor.u32 1.1754944e-38, %v1869_v18  ;;  %vm1868_vm0 = vcmp.eq.f32.partialorder %v1867_v26, 8.507059e+37 }
 0x4e5   :  { %v2362_v51 = vpop.eup %2361 }
 0x4e6   :  { %v1877_v47 = vadd.f32 1.0, %v2362_v51 }
 0x4e7   :  { %v2364_v32 = vpop.eup %2363 }
 0x4e8   :  { %v2366_v21 = vpop.eup %2365  ;;  %v1840_v36 = vmul.f32 %v2364_v32, %v1838_v7  ;;  %2367 = vrcp.f32 %v1877_v47  ;;  %vm1845_vm9 = vweird.f32 %v2364_v32  ;;  %v1889_v48 = vand.u32 2147483648, %v1877_v47 }
 0x4e9   :  { %v1859_v12 = vmul.f32 %v2366_v21, %v1857_v34  ;;  %2369 = vtanh.f32 %v1833_v11  ;;  %vm1864_vm10 = vweird.f32 %v2366_v21  ;;  %vm1846_vm13 = vmor %vm1844_vm11, %vm1845_vm9  ;;  %vm1883_vm2 = vweird.f32 %v1877_v47 }
 0x4ea   :  { %v1841_v50 = vsub.f32 1.0, %v1840_v36  ;;  %vm1865_vm14 = vmor %vm1863_vm12, %vm1864_vm10  ;;  %v1887_v41 = vand.u32 2147483647, %v1877_v47  ;;  %v1890_v49 = vor.u32 1.1754944e-38, %v1889_v48 }
 0x4eb   :  { %v1860_v37 = vsub.f32 1.0, %v1859_v12 }
 0x4ec   :  { %v1842_v23 = vmul.f32 %v2364_v32, %v1841_v50  ;;  %vm1888_vm4 = vcmp.eq.f32.partialorder %v1887_v41, 8.507059e+37 }
 0x4ed   :  { %v1861_v27 = vmul.f32 %v2366_v21, %v1860_v37 }
 0x4ee   :  { %v2368_v28 = vpop.eup %2367  ;;  %v1843_v61 = vadd.f32 %v2364_v32, %v1842_v23 }
 0x4ef   :  { %v1862_v0 = vadd.f32 %v2366_v21, %v1861_v27  ;;  %v1879_v1 = vmul.f32 %v2368_v28, %v1877_v47  ;;  %v2370_v5 = vpop.eup %2369  ;;  %vm1884_vm1 = vweird.f32 %v2368_v28 }
 0x4f0   :  { %v1847_v43 = vsel %vm1846_vm13, %v2364_v32, %v1843_v61  ;;  %vm1885_vm3 = vmor %vm1883_vm2, %vm1884_vm1 }
 0x4f1   :  { %v1852_v39 = vsel %vm1849_vm15, %v1851_v46, %v1847_v43  ;;  %v1866_v38 = vsel %vm1865_vm14, %v2366_v21, %v1862_v0  ;;  %v1880_v56 = vsub.f32 1.0, %v1879_v1 }
 0x4f2   :  { %v1871_v16 = vsel %vm1868_vm0, %v1870_v4, %v1866_v38  ;;  %v1895_v17 = vmul.f32 %v2370_v5, %v1852_v39 }
 0x4f3   :  { %v1894_v9 = vmul.f32 %v1871_v16, %v3697_v25  ;;  %v1881_v10 = vmul.f32 %v2368_v28, %v1880_v56 }
 0x4f5   :  { %v3737_v13 = vadd.f32 %v1895_v17, %v1894_v9  ;;  %v1882_v22 = vadd.f32 %v2368_v28, %v1881_v10 }
 0x4f7   :  { %2371 = vtanh.f32 %v3737_v13  ;;  %v1886_v44 = vsel %vm1885_vm3, %v2368_v28, %v1882_v22 }
 0x4f8   :  { %v1891_v57 = vsel %vm1888_vm4, %v1890_v49, %v1886_v44 }
 0x4fd   :  { %v2372_v53 = vpop.eup %2371 }
 0x4fe   :  { %v1898_v63 = vmul.f32 %v2372_v53, %v1891_v57 }
 0x500   :  { %1902 = vst [vmem:[#allocation13 + $0x30] sm:$0xff] %v1898_v63  ;;  %1991 = vmatmul.f32.vlgmr.msra.gmra.mxu0 %v1898_v63  ;;  %2011 = vmatmul.f32.vlgmr.msra.gmra.mxu1 %v1898_v63 }
 0x501   :  { %2031 = vmatmul.f32.vlgmr.msra.gmra.mxu2 %v1898_v63  ;;  %2051 = vmatmul.f32.vlgmr.msra.gmra.mxu3 %v1898_v63 }
 0x57d   :  { %v1992_v25 = vpop.f32.mrf.mxu0  ;;  %v2012_v2 = vpop.f32.mrf.mxu1 }
 0x57e   :  { %v2055_v60 = vadd.f32 %v1992_v25, %v3893_v3  ;;  %v2056_v59 = vadd.f32 %v2012_v2, %v3894_v20 }
 0x580   :  { %v2246_v29 = vmul.f32 -1.442695, %v2055_v60  ;;  %v2247_v40 = vmul.f32 -1.442695, %v2056_v59 }
 0x582   :  { %2373 = vpow2.f32 %v2246_v29 }
 0x583   :  { %2375 = vpow2.f32 %v2247_v40 }
 0x584   :  { %v2052_v45 = vpop.f32.mrf.mxu3  ;;  %v2032_v30 = vpop.f32.mrf.mxu2 }
 0x585   :  { %v2058_v15 = vadd.f32 %v2052_v45, %v3895_v54  ;;  %v2057_v7 = vadd.f32 %v2032_v30, %v3896_v6 }
 0x587   :  { %v2248_v55 = vmul.f32 -1.442695, %v2058_v15 }
 0x588   :  { %v2374_v33 = vpop.eup %2373 }
 0x589   :  { %v2376_v58 = vpop.eup %2375  ;;  %v2062_v62 = vadd.f32 1.0, %v2374_v33  ;;  %2377 = vpow2.f32 %v2248_v55 }
 0x58a   :  { %v2081_v14 = vadd.f32 1.0, %v2376_v58 }
 0x58b   :  { %2379 = vrcp.f32 %v2062_v62  ;;  %v2074_v42 = vand.u32 2147483648, %v2062_v62  ;;  %v2072_v36 = vand.u32 2147483647, %v2062_v62  ;;  %vm2068_vm7 = vweird.f32 %v2062_v62 }
 0x58c   :  { %2381 = vrcp.f32 %v2081_v14  ;;  %v2093_v11 = vand.u32 2147483648, %v2081_v14  ;;  %v2091_v50 = vand.u32 2147483647, %v2081_v14  ;;  %vm2087_vm8 = vweird.f32 %v2081_v14 }
 0x58d   :  { %v2075_v18 = vor.u32 1.1754944e-38, %v2074_v42  ;;  %vm2073_vm11 = vcmp.eq.f32.partialorder %v2072_v36, 8.507059e+37 }
 0x58e   :  { %v2094_v27 = vor.u32 1.1754944e-38, %v2093_v11  ;;  %vm2092_vm12 = vcmp.eq.f32.partialorder %v2091_v50, 8.507059e+37 }
 0x58f   :  { %v2378_v35 = vpop.eup %2377 }
 0x590   :  { %v2101_v52 = vadd.f32 1.0, %v2378_v35 }
 0x591   :  { %v2380_v8 = vpop.eup %2379 }
 0x592   :  { %v2382_v34 = vpop.eup %2381  ;;  %v2064_v31 = vmul.f32 %v2380_v8, %v2062_v62  ;;  %2383 = vrcp.f32 %v2101_v52  ;;  %vm2069_vm5 = vweird.f32 %v2380_v8  ;;  %v2113_v56 = vand.u32 2147483648, %v2101_v52 }
 0x593   :  { %v2083_v51 = vmul.f32 %v2382_v34, %v2081_v14  ;;  %2385 = vtanh.f32 %v2057_v7  ;;  %vm2088_vm6 = vweird.f32 %v2382_v34  ;;  %vm2070_vm9 = vmor %vm2068_vm7, %vm2069_vm5  ;;  %vm2107_vm14 = vweird.f32 %v2101_v52 }
 0x594   :  { %v2065_v47 = vsub.f32 1.0, %v2064_v31  ;;  %vm2089_vm10 = vmor %vm2087_vm8, %vm2088_vm6  ;;  %v2111_v16 = vand.u32 2147483647, %v2101_v52  ;;  %v2114_v9 = vor.u32 1.1754944e-38, %v2113_v56 }
 0x595   :  { %v2084_v32 = vsub.f32 1.0, %v2083_v51 }
 0x596   :  { %v2066_v21 = vmul.f32 %v2380_v8, %v2065_v47  ;;  %vm2112_vm0 = vcmp.eq.f32.partialorder %v2111_v16, 8.507059e+37 }
 0x597   :  { %v2085_v12 = vmul.f32 %v2382_v34, %v2084_v32 }
 0x598   :  { %v2384_v37 = vpop.eup %2383  ;;  %v2067_v19 = vadd.f32 %v2380_v8, %v2066_v21 }
 0x599   :  { %v2086_v23 = vadd.f32 %v2382_v34, %v2085_v12  ;;  %v2103_v24 = vmul.f32 %v2384_v37, %v2101_v52  ;;  %v2386_v28 = vpop.eup %2385  ;;  %vm2108_vm13 = vweird.f32 %v2384_v37 }
 0x59a   :  { %v2071_v26 = vsel %vm2070_vm9, %v2380_v8, %v2067_v19  ;;  %vm2109_vm15 = vmor %vm2107_vm14, %vm2108_vm13 }
 0x59b   :  { %v2076_v61 = vsel %vm2073_vm11, %v2075_v18, %v2071_v26  ;;  %v2090_v46 = vsel %vm2089_vm10, %v2382_v34, %v2086_v23  ;;  %v2104_v0 = vsub.f32 1.0, %v2103_v24 }
 0x59c   :  { %v2095_v1 = vsel %vm2092_vm12, %v2094_v27, %v2090_v46  ;;  %v2119_v4 = vmul.f32 %v2386_v28, %v2076_v61 }
 0x59d   :  { %v2118_v43 = vmul.f32 %v2095_v1, %v3737_v13  ;;  %v2105_v5 = vmul.f32 %v2384_v37, %v2104_v0 }
 0x59f   :  { %v2120_v39 = vadd.f32 %v2119_v4, %v2118_v43  ;;  %v2106_v38 = vadd.f32 %v2384_v37, %v2105_v5 }
 0x5a1   :  { %2387 = vtanh.f32 %v2120_v39  ;;  %2133 = vst [vmem:[#allocation16] sm:$0xff] %v2120_v39  ;;  %v2110_v17 = vsel %vm2109_vm15, %v2384_v37, %v2106_v38 }
 0x5a2   :  { %v2115_v13 = vsel %vm2112_vm0, %v2114_v9, %v2110_v17 }
 0x5a7   :  { %v2388_v10 = vpop.eup %2387 }
 0x5a8   :  { %v2122_v22 = vmul.f32 %v2388_v10, %v2115_v13 }
 0x5aa   :  { %2126 = vst [vmem:[#allocation13 + $0x38] sm:$0xff] %v2122_v22 }
 0x5ab   :  { %2131 = vst [vmem:[#allocation14] sm:$0xff] %v2122_v22  ;;  %2146 = dma.vmem_to_hbm [thread:$0]  %s2139_s3, 1024, %s2141_s21, [#allocation7], %s2571_s9, %s2571_s9, %s2572_s10  }
 0x5ac   :  { %2157 = dma.vmem_to_hbm [thread:$0]  %s2153_s23, 128, %s2155_s26, [#allocation15]  }
 0x5ad   :  { %2168 = dma.vmem_to_hbm [thread:$0]  %s2164_s28, 128, %s2166_s7, [#allocation15]  }
 0x5ae   :  { %2563 = dma.done.wait [#allocation7], 1024  }
 0x5af   :  { %2564 = vsyncadd [#allocation7], 4294966272 }
 0x5b0   :  { %2565 = dma.done.wait [#allocation15], 256  }
 0x5b1   :  { %2566 = vsyncadd [#allocation15], 4294967040 }
 0x5b2   :  { %2181 = vsyncpa [#allocation6], 1 }
 0x5b3   :  { %2182 = vsyncpa [#allocation9], 1 }
 0x5b4   :  { %2183 = vsyncpa [#allocation12], 1 }
 0x5b5   :  { %2184 = vsyncpa [#allocation7], 1 }
 0x5b6   :  { %2185 = vsyncpa [#allocation15], 1 }

// kernel: tpu_custom_call.1
= control target key start
LH: loop header
LB: loop body
LE: loop exit
PB: predicated region body
PF: predicated region fallthrough
CT: control target
= control target key end

     0   :  { %12 = vsyncpa [#allocation6], 0  ;;  %s3757_s0 = inlined_call_operand.hbm [shape: f32[8,8,16], index: 0, kind: input, shape index: {}]   ;;  %s3758_s1 = inlined_call_operand.hbm [shape: f32[16,512], index: 1, kind: input, shape index: {}]   ;;  %s3759_s2 = inlined_call_operand.hbm [shape: f32[128,512], index: 2, kind: input, shape index: {}]   ;;  %s3760_s3 = inlined_call_operand.hbm [shape: f32[1,512], index: 3, kind: input, shape index: {}]   ;;  %s3761_s4 = inlined_call_operand.hbm [shape: f32[8,8,128], index: 4, kind: output, shape index: {0}]   ;;  %s3762_s5 = inlined_call_operand.hbm [shape: f32[1,8,128], index: 5, kind: output, shape index: {1}]   ;;  %s3763_s6 = inlined_call_operand.hbm [shape: f32[1,8,128], index: 6, kind: output, shape index: {2}]  }
   0x1   :  { %13 = vsyncpa [#allocation9], 0 }
   0x2   :  { %14 = vsyncpa [#allocation12], 0 }
   0x3   :  { %15 = vsyncpa [#allocation7], 0  ;;  %s34_s23 = sshll.u32 %s3758_s1, 4  ;;  %s35_s23 = int_to_ptr.hbm [resolvable:$true] %s34_s23 }
   0x4   :  { %16 = vsyncpa [#allocation15], 0  ;;  %s2567_s24 = smov [#allocation8]   ;;  %s21_s28 = sshll.u32 %s3757_s0, 4  ;;  %s22_s28 = int_to_ptr.hbm [resolvable:$true] %s21_s28 }
   0x5   :  { %s36_s25 = sshll.u32 %s2567_s24, 4  ;;  %s2568_s29 = smov 512   ;;  %s37_s25 = int_to_ptr.vmem [resolvable:$true] %s36_s25 }
   0x6   :  { %s2569_s30 = smov 32   ;;  %s2570_s7 = smov [#allocation5]  }
   0x7   :  { %42 = dma.hbm_to_vmem [thread:$0]  %s35_s23, 1024, %s37_s25, [#allocation9], %s2568_s29, %s2568_s29, %s2569_s30  }
   0x8   :  { %s23_s8 = sshll.u32 %s2570_s7, 4  ;;  %s2571_s9 = smov 128   ;;  %s24_s8 = int_to_ptr.vmem [resolvable:$true] %s23_s8 }
   0x9   :  { %s2572_s10 = smov 8   ;;  %s47_s12 = sshll.u32 %s3759_s2, 4  ;;  %s48_s12 = int_to_ptr.hbm [resolvable:$true] %s47_s12 }
   0xa   :  { %29 = dma.hbm_to_vmem [thread:$0]  %s22_s28, 1024, %s24_s8, [#allocation6], %s2571_s9, %s2571_s9, %s2572_s10  }
   0xb   :  { %s2573_s13 = smov [#allocation10]   ;;  %s61_s16 = sshll.u32 %s3760_s3, 4  ;;  %s62_s16 = int_to_ptr.hbm [resolvable:$true] %s61_s16 }
   0xc   :  { %s49_s0 = sshll.u32 %s2573_s13, 4  ;;  %s2574_s17 = smov [#allocation11]   ;;  %s50_s0 = int_to_ptr.vmem [resolvable:$true] %s49_s0 }
   0xd   :  { %55 = dma.hbm_to_vmem [thread:$0]  %s48_s12, 8192, %s50_s0, [#allocation9], %s2568_s29, %s2568_s29, %s2569_s30  }
   0xe   :  { %s63_s18 = sshll.u32 %s2574_s17, 4  ;;  %s64_s18 = int_to_ptr.vmem [resolvable:$true] %s63_s18 }
   0xf   :  { %66 = dma.hbm_to_vmem [thread:$0]  %s62_s16, 64, %s64_s18, [#allocation12]  }
  0x10   :  { %2557 = dma.done.wait [#allocation6], 1024  }
  0x11   :  { %2558 = vsyncadd [#allocation6], 4294966272 }
  0x12   :  { %2559 = dma.done.wait [#allocation9], 9216  }
  0x13   :  { %2560 = vsyncadd [#allocation9], 4294958080 }
  0x14   :  { %2561 = dma.done.wait [#allocation12], 64  }
  0x15   :  { %2562 = vsyncadd [#allocation12], 4294967232  ;;  %v101_v0 = vld [vmem:[#allocation8 + $0x20] sm:$0xff]  ;;  %v102_v1 = vld [vmem:[#allocation8 + $0x28] sm:$0xff]  ;;  %vm115_vm0 = vcmask 130048   ;;  %s2576_s2 = smov [#allocation13]  }
  0x16   :  { %v103_v2 = vld [vmem:[#allocation8 + $0x30] sm:$0xff]  ;;  %154 = vmatpush.msra.mxu0 %v101_v0  ;;  %195 = vmatpush.msra.mxu1 %v102_v1  ;;  %v104_v3 = vld [vmem:[#allocation8 + $0x38] sm:$0xff]  ;;  %v97_v4 = vld [vmem:[#allocation8] sm:$0xff]  ;;  %s2138_s3 = sshll.u32 %s2576_s2, 4  ;;  %s2140_s21 = sshll.u32 %s3761_s4, 4  ;;  %s2139_s3 = int_to_ptr.vmem [resolvable:$true] %s2138_s3  ;;  %s2141_s21 = int_to_ptr.hbm [resolvable:$true] %s2140_s21 }
  0x17   :  { %v98_v5 = vld [vmem:[#allocation8 + $0x8] sm:$0xff]  ;;  %236 = vmatpush.msra.mxu2 %v103_v2  ;;  %277 = vmatpush.msra.mxu3 %v104_v3  ;;  %v99_v6 = vld [vmem:[#allocation8 + $0x10] sm:$0xff]  ;;  %v100_v7 = vld [vmem:[#allocation8 + $0x18] sm:$0xff]  ;;  %s2577_s22 = smov [#allocation14]   ;;  %s2154_s26 = sshll.u32 %s3762_s5, 4  ;;  %s2155_s26 = int_to_ptr.hbm [resolvable:$true] %s2154_s26 }
  0x18   :  { %v89_v8 = vld [vmem:[#allocation5] sm:$0xff]  ;;  %155 = vmatpush.msra.mxu0 %v97_v4  ;;  %196 = vmatpush.msra.mxu1 %v98_v5  ;;  %v2631_v10 = vld [vmem:[#allocation10 + $0x1e8] sm:$0xff]  ;;  %v2635_v11 = vld [vmem:[#allocation10 + $0x1f8] sm:$0xff]  ;;  %s2152_s23 = sshll.u32 %s2577_s22, 4  ;;  %s2578_s27 = smov [#allocation16]   ;;  %s2153_s23 = int_to_ptr.vmem [resolvable:$true] %s2152_s23 }
  0x19   :  { %237 = vmatpush.msra.mxu2 %v99_v6  ;;  %278 = vmatpush.msra.mxu3 %v100_v7  ;;  %v2629_v9 = vld [vmem:[#allocation10 + $0x1e0] sm:$0xff]  ;;  %v2641_v13 = vld [vmem:[#allocation10 + $0x1c8] sm:$0xff]  ;;  %v2645_v14 = vld [vmem:[#allocation10 + $0x1d8] sm:$0xff]  ;;  %s2163_s28 = sshll.u32 %s2578_s27, 4  ;;  %s2165_s7 = sshll.u32 %s3763_s6, 4  ;;  %s2164_s28 = int_to_ptr.vmem [resolvable:$true] %s2163_s28  ;;  %s2166_s7 = int_to_ptr.hbm [resolvable:$true] %s2165_s7 }
  0x1a   :  { %2193 = vmatmul.msk.f32.vlgmr.msra.gmra.mxu0 %vm115_vm0, %v89_v8  ;;  %2201 = vmatmul.msk.f32.vlgmr.msra.gmra.mxu1 %vm115_vm0, %v89_v8  ;;  %v2639_v12 = vld [vmem:[#allocation10 + $0x1c0] sm:$0xff]  ;;  %v2647_v15 = vld [vmem:[#allocation10 + $0x1f0] sm:$0xff]  ;;  %v2652_v17 = vld [vmem:[#allocation10 + $0x1a8] sm:$0xff] }
  0x1b   :  { %2209 = vmatmul.msk.f32.vlgmr.msra.gmra.mxu2 %vm115_vm0, %v89_v8  ;;  %2217 = vmatmul.msk.f32.vlgmr.msra.gmra.mxu3 %vm115_vm0, %v89_v8  ;;  %v2650_v16 = vld [vmem:[#allocation10 + $0x1a0] sm:$0xff]  ;;  %v2655_v18 = vld [vmem:[#allocation10 + $0x1d0] sm:$0xff]  ;;  %v2659_v19 = vld [vmem:[#allocation10 + $0x1b8] sm:$0xff] }
  0x1c   :  { %408 = vmatpush.msrb.mxu0 %v2629_v9  ;;  %428 = vmatpush.msrb.mxu1 %v2631_v10  ;;  %v90_v20 = vld [vmem:[#allocation5 + $0x8] sm:$0xff]  ;;  %v2663_v21 = vld [vmem:[#allocation10 + $0x1b0] sm:$0xff]  ;;  %v2667_v22 = vld [vmem:[#allocation10 + $0x180] sm:$0xff] }
  0x1d   :  { %468 = vmatpush.msrb.mxu3 %v2635_v11  ;;  %448 = vmatpush.msrb.mxu2 %v2647_v15  ;;  %v2669_v23 = vld [vmem:[#allocation10 + $0x188] sm:$0xff]  ;;  %v2675_v24 = vld [vmem:[#allocation10 + $0x198] sm:$0xff]  ;;  %v2677_v25 = vld [vmem:[#allocation10 + $0x190] sm:$0xff] }
  0x1e   :  { %409 = vmatpush.msrb.mxu0 %v2639_v12  ;;  %429 = vmatpush.msrb.mxu1 %v2641_v13  ;;  %v2681_v26 = vld [vmem:[#allocation10 + $0x160] sm:$0xff]  ;;  %v2683_v27 = vld [vmem:[#allocation10 + $0x168] sm:$0xff]  ;;  %v2687_v28 = vld [vmem:[#allocation10 + $0x178] sm:$0xff] }
  0x1f   :  { %469 = vmatpush.msrb.mxu3 %v2645_v14  ;;  %449 = vmatpush.msrb.mxu2 %v2655_v18  ;;  %v2689_v29 = vld [vmem:[#allocation10 + $0x170] sm:$0xff]  ;;  %v2692_v30 = vld [vmem:[#allocation10 + $0x140] sm:$0xff]  ;;  %v2694_v31 = vld [vmem:[#allocation10 + $0x148] sm:$0xff] }
  0x20   :  { %410 = vmatpush.msrb.mxu0 %v2650_v16  ;;  %430 = vmatpush.msrb.mxu1 %v2652_v17  ;;  %v2699_v32 = vld [vmem:[#allocation10 + $0x158] sm:$0xff]  ;;  %v2701_v33 = vld [vmem:[#allocation10 + $0x150] sm:$0xff]  ;;  %v2707_v35 = vld [vmem:[#allocation10 + $0x120] sm:$0xff] }
  0x21   :  { %470 = vmatpush.msrb.mxu3 %v2659_v19  ;;  %450 = vmatpush.msrb.mxu2 %v2663_v21  ;;  %v91_v34 = vld [vmem:[#allocation5 + $0x10] sm:$0xff]  ;;  %v2709_v36 = vld [vmem:[#allocation10 + $0x128] sm:$0xff]  ;;  %v2715_v37 = vld [vmem:[#allocation10 + $0x138] sm:$0xff] }
  0x22   :  { %2194 = vmatmul.msk.f32.gmra.mxu0 %vm115_vm0, %v90_v20  ;;  %2202 = vmatmul.msk.f32.gmra.mxu1 %vm115_vm0, %v90_v20  ;;  %v2717_v38 = vld [vmem:[#allocation10 + $0x130] sm:$0xff]  ;;  %v2721_v39 = vld [vmem:[#allocation10 + $0x100] sm:$0xff]  ;;  %v2723_v40 = vld [vmem:[#allocation10 + $0x108] sm:$0xff] }
  0x23   :  { %2210 = vmatmul.msk.f32.gmra.mxu2 %vm115_vm0, %v90_v20  ;;  %2218 = vmatmul.msk.f32.gmra.mxu3 %vm115_vm0, %v90_v20  ;;  %v2727_v41 = vld [vmem:[#allocation10 + $0x118] sm:$0xff]  ;;  %v2729_v42 = vld [vmem:[#allocation10 + $0x110] sm:$0xff]  ;;  %v2732_v43 = vld [vmem:[#allocation10 + $0xe0] sm:$0xff] }
  0x24   :  { %411 = vmatpush.msrb.mxu0 %v2667_v22  ;;  %431 = vmatpush.msrb.mxu1 %v2669_v23  ;;  %v2734_v44 = vld [vmem:[#allocation10 + $0xe8] sm:$0xff]  ;;  %v2739_v45 = vld [vmem:[#allocation10 + $0xf8] sm:$0xff]  ;;  %v2741_v46 = vld [vmem:[#allocation10 + $0xf0] sm:$0xff] }
  0x25   :  { %471 = vmatpush.msrb.mxu3 %v2675_v24  ;;  %451 = vmatpush.msrb.mxu2 %v2677_v25  ;;  %v92_v47 = vld [vmem:[#allocation5 + $0x18] sm:$0xff]  ;;  %v2747_v48 = vld [vmem:[#allocation10 + $0xc0] sm:$0xff]  ;;  %v2749_v49 = vld [vmem:[#allocation10 + $0xc8] sm:$0xff] }
  0x26   :  { %412 = vmatpush.msrb.mxu0 %v2681_v26  ;;  %432 = vmatpush.msrb.mxu1 %v2683_v27  ;;  %v2755_v50 = vld [vmem:[#allocation10 + $0xd8] sm:$0xff]  ;;  %v2757_v51 = vld [vmem:[#allocation10 + $0xd0] sm:$0xff]  ;;  %v2761_v52 = vld [vmem:[#allocation10 + $0xa0] sm:$0xff] }
  0x27   :  { %472 = vmatpush.msrb.mxu3 %v2687_v28  ;;  %452 = vmatpush.msrb.mxu2 %v2689_v29  ;;  %v2763_v53 = vld [vmem:[#allocation10 + $0xa8] sm:$0xff]  ;;  %v2767_v54 = vld [vmem:[#allocation10 + $0xb8] sm:$0xff]  ;;  %v2769_v55 = vld [vmem:[#allocation10 + $0xb0] sm:$0xff] }
  0x28   :  { %413 = vmatpush.msrb.mxu0 %v2692_v30  ;;  %433 = vmatpush.msrb.mxu1 %v2694_v31  ;;  %v2772_v56 = vld [vmem:[#allocation10 + $0x80] sm:$0xff]  ;;  %v2774_v57 = vld [vmem:[#allocation10 + $0x88] sm:$0xff]  ;;  %v2779_v58 = vld [vmem:[#allocation10 + $0x98] sm:$0xff] }
  0x29   :  { %473 = vmatpush.msrb.mxu3 %v2699_v32  ;;  %453 = vmatpush.msrb.mxu2 %v2701_v33  ;;  %v2781_v59 = vld [vmem:[#allocation10 + $0x90] sm:$0xff]  ;;  %v93_v60 = vld [vmem:[#allocation5 + $0x20] sm:$0xff]  ;;  %v2789_v62 = vld [vmem:[#allocation10 + $0x68] sm:$0xff] }
  0x2a   :  { %2195 = vmatmul.msk.f32.gmra.mxu0 %vm115_vm0, %v91_v34  ;;  %2203 = vmatmul.msk.f32.gmra.mxu1 %vm115_vm0, %v91_v34  ;;  %v2787_v61 = vld [vmem:[#allocation10 + $0x60] sm:$0xff]  ;;  %v2795_v63 = vld [vmem:[#allocation10 + $0x78] sm:$0xff]  ;;  %v2797_v0 = vld [vmem:[#allocation10 + $0x70] sm:$0xff] }
  0x2b   :  { %2211 = vmatmul.msk.f32.gmra.mxu2 %vm115_vm0, %v91_v34  ;;  %2219 = vmatmul.msk.f32.gmra.mxu3 %vm115_vm0, %v91_v34  ;;  %v2801_v1 = vld [vmem:[#allocation10 + $0x40] sm:$0xff]  ;;  %v2803_v2 = vld [vmem:[#allocation10 + $0x48] sm:$0xff]  ;;  %v2807_v3 = vld [vmem:[#allocation10 + $0x58] sm:$0xff] }
  0x2c   :  { %414 = vmatpush.msrb.mxu0 %v2707_v35  ;;  %434 = vmatpush.msrb.mxu1 %v2709_v36  ;;  %3801 = vst [vmem:[#allocation22_spill] sm:$0xff] %v2807_v3  ;;  %v2809_v4 = vld [vmem:[#allocation10 + $0x50] sm:$0xff]  ;;  %v2812_v5 = vld [vmem:[#allocation10 + $0x20] sm:$0xff]  ;;  %v2814_v6 = vld [vmem:[#allocation10 + $0x28] sm:$0xff] }
  0x2d   :  { %474 = vmatpush.msrb.mxu3 %v2715_v37  ;;  %454 = vmatpush.msrb.mxu2 %v2717_v38  ;;  %v2819_v7 = vld [vmem:[#allocation10 + $0x30] sm:$0xff]  ;;  %v2821_v8 = vld [vmem:[#allocation10 + $0x38] sm:$0xff]  ;;  %v94_v20 = vld [vmem:[#allocation5 + $0x28] sm:$0xff] }
  0x2e   :  { %415 = vmatpush.msrb.mxu0 %v2721_v39  ;;  %435 = vmatpush.msrb.mxu1 %v2723_v40  ;;  %3802 = vst [vmem:[#allocation23_spill] sm:$0xff] %v2821_v8  ;;  %v2827_v34 = vld [vmem:[#allocation10] sm:$0xff] }
  0x2f   :  { %475 = vmatpush.msrb.mxu3 %v2727_v41  ;;  %455 = vmatpush.msrb.mxu2 %v2729_v42 }
  0x30   :  { %416 = vmatpush.msrb.mxu0 %v2732_v43  ;;  %436 = vmatpush.msrb.mxu1 %v2734_v44 }
  0x31   :  { %476 = vmatpush.msrb.mxu3 %v2739_v45  ;;  %456 = vmatpush.msrb.mxu2 %v2741_v46 }
  0x32   :  { %2196 = vmatmul.msk.f32.gmra.mxu0 %vm115_vm0, %v92_v47  ;;  %2204 = vmatmul.msk.f32.gmra.mxu1 %vm115_vm0, %v92_v47 }
  0x33   :  { %2212 = vmatmul.msk.f32.gmra.mxu2 %vm115_vm0, %v92_v47  ;;  %2220 = vmatmul.msk.f32.gmra.mxu3 %vm115_vm0, %v92_v47  ;;  %v2829_v47 = vld [vmem:[#allocation10 + $0x8] sm:$0xff] }
  0x34   :  { %417 = vmatpush.msrb.mxu0 %v2747_v48  ;;  %437 = vmatpush.msrb.mxu1 %v2749_v49 }
  0x35   :  { %477 = vmatpush.msrb.mxu3 %v2755_v50  ;;  %457 = vmatpush.msrb.mxu2 %v2757_v51 }
  0x36   :  { %418 = vmatpush.msrb.mxu0 %v2761_v52  ;;  %438 = vmatpush.msrb.mxu1 %v2763_v53 }
  0x37   :  { %478 = vmatpush.msrb.mxu3 %v2767_v54  ;;  %458 = vmatpush.msrb.mxu2 %v2769_v55 }
  0x38   :  { %419 = vmatpush.msrb.mxu0 %v2772_v56  ;;  %439 = vmatpush.msrb.mxu1 %v2774_v57 }
  0x39   :  { %479 = vmatpush.msrb.mxu3 %v2779_v58  ;;  %459 = vmatpush.msrb.mxu2 %v2781_v59 }
  0x3a   :  { %2197 = vmatmul.msk.f32.gmra.mxu0 %vm115_vm0, %v93_v60  ;;  %2205 = vmatmul.msk.f32.gmra.mxu1 %vm115_vm0, %v93_v60 }
  0x3b   :  { %2213 = vmatmul.msk.f32.gmra.mxu2 %vm115_vm0, %v93_v60  ;;  %2221 = vmatmul.msk.f32.gmra.mxu3 %vm115_vm0, %v93_v60  ;;  %v2835_v60 = vld [vmem:[#allocation10 + $0x10] sm:$0xff] }
  0x3c   :  { %420 = vmatpush.msrb.mxu0 %v2787_v61  ;;  %440 = vmatpush.msrb.mxu1 %v2789_v62 }
  0x3d   :  { %480 = vmatpush.msrb.mxu3 %v2795_v63  ;;  %460 = vmatpush.msrb.mxu2 %v2797_v0 }
  0x3e   :  { %421 = vmatpush.msrb.mxu0 %v2801_v1  ;;  %441 = vmatpush.msrb.mxu1 %v2803_v2 }
  0x3f   :  { %481 = vmatpush.msrb.mxu3 %v2807_v3  ;;  %461 = vmatpush.msrb.mxu2 %v2809_v4  ;;  %v2837_v3 = vld [vmem:[#allocation10 + $0x18] sm:$0xff] }
  0x40   :  { %422 = vmatpush.msrb.mxu0 %v2812_v5  ;;  %442 = vmatpush.msrb.mxu1 %v2814_v6 }
  0x41   :  { %462 = vmatpush.msrb.mxu2 %v2819_v7  ;;  %482 = vmatpush.msrb.mxu3 %v2821_v8  ;;  %v95_v8 = vld [vmem:[#allocation5 + $0x30] sm:$0xff] }
  0x42   :  { %2198 = vmatmul.msk.f32.gmra.mxu0 %vm115_vm0, %v94_v20  ;;  %2206 = vmatmul.msk.f32.gmra.mxu1 %vm115_vm0, %v94_v20 }
  0x43   :  { %2214 = vmatmul.msk.f32.gmra.mxu2 %vm115_vm0, %v94_v20  ;;  %2222 = vmatmul.msk.f32.gmra.mxu3 %vm115_vm0, %v94_v20  ;;  %v96_v20 = vld [vmem:[#allocation5 + $0x38] sm:$0xff] }
  0x44   :  { %423 = vmatpush.msrb.mxu0 %v2827_v34  ;;  %443 = vmatpush.msrb.mxu1 %v2829_v47 }
  0x45   :  { %463 = vmatpush.msrb.mxu2 %v2835_v60  ;;  %483 = vmatpush.msrb.mxu3 %v2837_v3 }
  0x46   :  { %631 = vmatpush.msra.mxu0 %v2629_v9  ;;  %651 = vmatpush.msra.mxu1 %v2631_v10 }
  0x47   :  { %671 = vmatpush.msra.mxu2 %v2647_v15  ;;  %691 = vmatpush.msra.mxu3 %v2635_v11 }
  0x48   :  { %632 = vmatpush.msra.mxu0 %v2639_v12  ;;  %652 = vmatpush.msra.mxu1 %v2641_v13 }
  0x49   :  { %672 = vmatpush.msra.mxu2 %v2655_v18  ;;  %692 = vmatpush.msra.mxu3 %v2645_v14 }
  0x4a   :  { %2199 = vmatmul.msk.f32.gmra.mxu0 %vm115_vm0, %v95_v8  ;;  %2207 = vmatmul.msk.f32.gmra.mxu1 %vm115_vm0, %v95_v8 }
  0x4b   :  { %2215 = vmatmul.msk.f32.gmra.mxu2 %vm115_vm0, %v95_v8  ;;  %2223 = vmatmul.msk.f32.gmra.mxu3 %vm115_vm0, %v95_v8  ;;  %v2575_v8 = vmov 0.0  }
  0x4c   :  { %633 = vmatpush.msra.mxu0 %v2650_v16  ;;  %653 = vmatpush.msra.mxu1 %v2652_v17 }
  0x4d   :  { %673 = vmatpush.msra.mxu2 %v2663_v21  ;;  %693 = vmatpush.msra.mxu3 %v2659_v19 }
  0x4e   :  { %634 = vmatpush.msra.mxu0 %v2667_v22  ;;  %654 = vmatpush.msra.mxu1 %v2669_v23 }
  0x4f   :  { %674 = vmatpush.msra.mxu2 %v2677_v25  ;;  %694 = vmatpush.msra.mxu3 %v2675_v24 }
  0x50   :  { %635 = vmatpush.msra.mxu0 %v2681_v26  ;;  %655 = vmatpush.msra.mxu1 %v2683_v27 }
  0x51   :  { %675 = vmatpush.msra.mxu2 %v2689_v29  ;;  %695 = vmatpush.msra.mxu3 %v2687_v28 }
  0x52   :  { %2200 = vmatmul.msk.f32.gmra.mxu0 %vm115_vm0, %v96_v20  ;;  %2208 = vmatmul.msk.f32.gmra.mxu1 %vm115_vm0, %v96_v20 }
  0x53   :  { %2216 = vmatmul.msk.f32.gmra.mxu2 %vm115_vm0, %v96_v20  ;;  %2224 = vmatmul.msk.f32.gmra.mxu3 %vm115_vm0, %v96_v20  ;;  %v3803_v20 = vld [vmem:[#allocation22_spill] sm:$0xff] }
  0x54   :  { %636 = vmatpush.msra.mxu0 %v2692_v30  ;;  %656 = vmatpush.msra.mxu1 %v2694_v31 }
  0x55   :  { %676 = vmatpush.msra.mxu2 %v2701_v33  ;;  %696 = vmatpush.msra.mxu3 %v2699_v32 }
  0x56   :  { %637 = vmatpush.msra.mxu0 %v2707_v35  ;;  %657 = vmatpush.msra.mxu1 %v2709_v36 }
  0x57   :  { %677 = vmatpush.msra.mxu2 %v2717_v38  ;;  %697 = vmatpush.msra.mxu3 %v2715_v37 }
  0x58   :  { %638 = vmatpush.msra.mxu0 %v2721_v39  ;;  %658 = vmatpush.msra.mxu1 %v2723_v40 }
  0x59   :  { %678 = vmatpush.msra.mxu2 %v2729_v42  ;;  %698 = vmatpush.msra.mxu3 %v2727_v41 }
  0x5a   :  { %424 = vmatmul.f32.vlgmr.msrb.gmra.mxu0 %v2575_v8  ;;  %444 = vmatmul.f32.vlgmr.msrb.gmra.mxu1 %v2575_v8 }
  0x5b   :  { %464 = vmatmul.f32.vlgmr.msrb.gmra.mxu2 %v2575_v8  ;;  %484 = vmatmul.f32.vlgmr.msrb.gmra.mxu3 %v2575_v8  ;;  %v3804_v8 = vld [vmem:[#allocation23_spill] sm:$0xff] }
  0x5c   :  { %639 = vmatpush.msra.mxu0 %v2732_v43  ;;  %659 = vmatpush.msra.mxu1 %v2734_v44 }
  0x5d   :  { %679 = vmatpush.msra.mxu2 %v2741_v46  ;;  %699 = vmatpush.msra.mxu3 %v2739_v45 }
  0x5e   :  { %640 = vmatpush.msra.mxu0 %v2747_v48  ;;  %660 = vmatpush.msra.mxu1 %v2749_v49 }
  0x5f   :  { %680 = vmatpush.msra.mxu2 %v2757_v51  ;;  %700 = vmatpush.msra.mxu3 %v2755_v50 }
  0x60   :  { %641 = vmatpush.msra.mxu0 %v2761_v52  ;;  %661 = vmatpush.msra.mxu1 %v2763_v53 }
  0x61   :  { %681 = vmatpush.msra.mxu2 %v2769_v55  ;;  %701 = vmatpush.msra.mxu3 %v2767_v54 }
  0x62   :  { %642 = vmatpush.msra.mxu0 %v2772_v56  ;;  %662 = vmatpush.msra.mxu1 %v2774_v57 }
  0x63   :  { %682 = vmatpush.msra.mxu2 %v2781_v59  ;;  %702 = vmatpush.msra.mxu3 %v2779_v58 }
  0x64   :  { %643 = vmatpush.msra.mxu0 %v2787_v61  ;;  %663 = vmatpush.msra.mxu1 %v2789_v62 }
  0x65   :  { %683 = vmatpush.msra.mxu2 %v2797_v0  ;;  %703 = vmatpush.msra.mxu3 %v2795_v63 }
  0x66   :  { %644 = vmatpush.msra.mxu0 %v2801_v1  ;;  %664 = vmatpush.msra.mxu1 %v2803_v2 }
  0x67   :  { %684 = vmatpush.msra.mxu2 %v2809_v4  ;;  %704 = vmatpush.msra.mxu3 %v3803_v20 }
  0x68   :  { %645 = vmatpush.msra.mxu0 %v2812_v5  ;;  %665 = vmatpush.msra.mxu1 %v2814_v6 }
  0x69   :  { %685 = vmatpush.msra.mxu2 %v2819_v7  ;;  %705 = vmatpush.msra.mxu3 %v3804_v8 }
  0x6a   :  { %646 = vmatpush.msra.mxu0 %v2827_v34  ;;  %666 = vmatpush.msra.mxu1 %v2829_v47 }
  0x6b   :  { %686 = vmatpush.msra.mxu2 %v2835_v60  ;;  %706 = vmatpush.msra.mxu3 %v2837_v3 }
  0x6c   :  { %855 = vmatpush.msrb.mxu0 %v2629_v9  ;;  %875 = vmatpush.msrb.mxu1 %v2631_v10 }
  0x6d   :  { %895 = vmatpush.msrb.mxu2 %v2647_v15  ;;  %915 = vmatpush.msrb.mxu3 %v2635_v11  ;;  %v105_v11 = vld [vmem:[#allocation11] sm:$0xf] }
  0x6e   :  { %856 = vmatpush.msrb.mxu0 %v2639_v12  ;;  %876 = vmatpush.msrb.mxu1 %v2641_v13  ;;  %v107_v12 = vperm.slane %v105_v11, 0  ;;  %v108_v13 = vperm.slane %v105_v11, 1 }
  0x6f   :  { %896 = vmatpush.msrb.mxu2 %v2655_v18  ;;  %916 = vmatpush.msrb.mxu3 %v2645_v14 }
  0x70   :  { %857 = vmatpush.msrb.mxu0 %v2650_v16  ;;  %877 = vmatpush.msrb.mxu1 %v2652_v17 }
  0x71   :  { %897 = vmatpush.msrb.mxu2 %v2663_v21  ;;  %917 = vmatpush.msrb.mxu3 %v2659_v19  ;;  %v2989_v21 = vperm.slane %v105_v11, 2 }
  0x72   :  { %858 = vmatpush.msrb.mxu0 %v2667_v22  ;;  %878 = vmatpush.msrb.mxu1 %v2669_v23  ;;  %v110_v22 = vperm.slane %v105_v11, 3 }
  0x73   :  { %898 = vmatpush.msrb.mxu2 %v2677_v25  ;;  %918 = vmatpush.msrb.mxu3 %v2675_v24 }
  0x74   :  { %859 = vmatpush.msrb.mxu0 %v2681_v26  ;;  %879 = vmatpush.msrb.mxu1 %v2683_v27 }
  0x75   :  { %899 = vmatpush.msrb.mxu2 %v2689_v29  ;;  %919 = vmatpush.msrb.mxu3 %v2687_v28 }
  0x76   :  { %860 = vmatpush.msrb.mxu0 %v2692_v30  ;;  %880 = vmatpush.msrb.mxu1 %v2694_v31 }
  0x77   :  { %900 = vmatpush.msrb.mxu2 %v2701_v33  ;;  %920 = vmatpush.msrb.mxu3 %v2699_v32 }
  0x78   :  { %861 = vmatpush.msrb.mxu0 %v2707_v35  ;;  %881 = vmatpush.msrb.mxu1 %v2709_v36 }
  0x79   :  { %901 = vmatpush.msrb.mxu2 %v2717_v38  ;;  %921 = vmatpush.msrb.mxu3 %v2715_v37 }
  0x7a   :  { %862 = vmatpush.msrb.mxu0 %v2721_v39  ;;  %882 = vmatpush.msrb.mxu1 %v2723_v40 }
  0x7b   :  { %902 = vmatpush.msrb.mxu2 %v2729_v42  ;;  %922 = vmatpush.msrb.mxu3 %v2727_v41 }
  0x7c   :  { %863 = vmatpush.msrb.mxu0 %v2732_v43  ;;  %883 = vmatpush.msrb.mxu1 %v2734_v44 }
  0x7d   :  { %903 = vmatpush.msrb.mxu2 %v2741_v46  ;;  %923 = vmatpush.msrb.mxu3 %v2739_v45 }
  0x7e   :  { %864 = vmatpush.msrb.mxu0 %v2747_v48  ;;  %884 = vmatpush.msrb.mxu1 %v2749_v49 }
  0x7f   :  { %904 = vmatpush.msrb.mxu2 %v2757_v51  ;;  %924 = vmatpush.msrb.mxu3 %v2755_v50 }
  0x80   :  { %865 = vmatpush.msrb.mxu0 %v2761_v52  ;;  %885 = vmatpush.msrb.mxu1 %v2763_v53 }
  0x81   :  { %905 = vmatpush.msrb.mxu2 %v2769_v55  ;;  %925 = vmatpush.msrb.mxu3 %v2767_v54 }
  0x82   :  { %866 = vmatpush.msrb.mxu0 %v2772_v56  ;;  %886 = vmatpush.msrb.mxu1 %v2774_v57 }
  0x83   :  { %906 = vmatpush.msrb.mxu2 %v2781_v59  ;;  %926 = vmatpush.msrb.mxu3 %v2779_v58 }
  0x84   :  { %867 = vmatpush.msrb.mxu0 %v2787_v61  ;;  %887 = vmatpush.msrb.mxu1 %v2789_v62 }
  0x85   :  { %907 = vmatpush.msrb.mxu2 %v2797_v0  ;;  %927 = vmatpush.msrb.mxu3 %v2795_v63 }
  0x86   :  { %868 = vmatpush.msrb.mxu0 %v2801_v1  ;;  %888 = vmatpush.msrb.mxu1 %v2803_v2 }
  0x87   :  { %908 = vmatpush.msrb.mxu2 %v2809_v4  ;;  %928 = vmatpush.msrb.mxu3 %v3803_v20 }
  0x88   :  { %869 = vmatpush.msrb.mxu0 %v2812_v5  ;;  %889 = vmatpush.msrb.mxu1 %v2814_v6 }
  0x89   :  { %909 = vmatpush.msrb.mxu2 %v2819_v7  ;;  %929 = vmatpush.msrb.mxu3 %v3804_v8 }
  0x8a   :  { %870 = vmatpush.msrb.mxu0 %v2827_v34  ;;  %890 = vmatpush.msrb.mxu1 %v2829_v47 }
  0x8b   :  { %910 = vmatpush.msrb.mxu2 %v2835_v60  ;;  %930 = vmatpush.msrb.mxu3 %v2837_v3 }
  0x97   :  { %v157_v9 = vpop.f32.mrf.mxu0  ;;  %v198_v10 = vpop.f32.mrf.mxu1 }
  0x98   :  { %v158_v60 = vadd.f32 %v157_v9, %v107_v12  ;;  %v199_v20 = vadd.f32 %v198_v10, %v108_v13 }
  0x9e   :  { %v2981_v14 = vpop.f32.mrf.mxu2  ;;  %v2983_v15 = vpop.f32.mrf.mxu3 }
  0x9f   :  { %v160_v16 = vpop.f32.mrf.mxu0  ;;  %v201_v17 = vpop.f32.mrf.mxu1 }
  0xa0   :  { %v2985_v18 = vadd.f32 %v160_v16, %v107_v12  ;;  %v2987_v19 = vadd.f32 %v201_v17, %v108_v13 }
  0xa6   :  { %v242_v23 = vpop.f32.mrf.mxu2  ;;  %v283_v24 = vpop.f32.mrf.mxu3 }
  0xa7   :  { %v2992_v25 = vadd.f32 %v242_v23, %v2989_v21  ;;  %v2994_v26 = vadd.f32 %v283_v24, %v110_v22  ;;  %v163_v27 = vpop.f32.mrf.mxu0  ;;  %v204_v28 = vpop.f32.mrf.mxu1 }
  0xa8   :  { %v2996_v29 = vadd.f32 %v163_v27, %v107_v12  ;;  %v2998_v30 = vadd.f32 %v204_v28, %v108_v13 }
  0xae   :  { %v245_v31 = vpop.f32.mrf.mxu2  ;;  %v286_v32 = vpop.f32.mrf.mxu3 }
  0xaf   :  { %v3001_v33 = vadd.f32 %v245_v31, %v2989_v21  ;;  %v3003_v35 = vadd.f32 %v286_v32, %v110_v22  ;;  %v166_v36 = vpop.f32.mrf.mxu0  ;;  %v207_v37 = vpop.f32.mrf.mxu1 }
  0xb0   :  { %v3005_v38 = vadd.f32 %v166_v36, %v107_v12  ;;  %v3007_v39 = vadd.f32 %v207_v37, %v108_v13  ;;  %v281_v36 = vadd.f32 %v2983_v15, %v110_v22 }
  0xb2   :  { %3805 = vst [vmem:[#allocation22_spill] sm:$0xff] %v3005_v38  ;;  %v3237_v38 = vld [vmem:[#allocation10 + $0x30] sm:$0xff] }
  0xb3   :  { %3806 = vst [vmem:[#allocation23_spill] sm:$0xff] %v3007_v39  ;;  %v3233_v39 = vld [vmem:[#allocation10 + $0x28] sm:$0xff] }
  0xb6   :  { %v248_v40 = vpop.f32.mrf.mxu2  ;;  %v289_v41 = vpop.f32.mrf.mxu3 }
  0xb7   :  { %v3010_v42 = vadd.f32 %v248_v40, %v2989_v21  ;;  %v3012_v43 = vadd.f32 %v289_v41, %v110_v22  ;;  %v169_v44 = vpop.f32.mrf.mxu0  ;;  %v210_v45 = vpop.f32.mrf.mxu1 }
  0xb8   :  { %v3014_v46 = vadd.f32 %v169_v44, %v107_v12  ;;  %v3016_v48 = vadd.f32 %v210_v45, %v108_v13 }
  0xb9   :  { %3807 = vst [vmem:[#allocation24_spill] sm:$0xff] %v3010_v42 }
  0xba   :  { %3808 = vst [vmem:[#allocation25_spill] sm:$0xff] %v3012_v43  ;;  %v3231_v43 = vld [vmem:[#allocation10 + $0x20] sm:$0xff] }
  0xbb   :  { %3809 = vst [vmem:[#allocation26_spill] sm:$0xff] %v3014_v46  ;;  %v3224_v46 = vld [vmem:[#allocation10 + $0x50] sm:$0xff] }
  0xbc   :  { %3810 = vst [vmem:[#allocation27_spill] sm:$0xff] %v3016_v48  ;;  %v3222_v48 = vld [vmem:[#allocation10 + $0x48] sm:$0xff] }
  0xbd   :  { %3844 = vst [vmem:[#allocation61_spill] sm:$0xff] %v3222_v48 }
  0xbe   :  { %v251_v49 = vpop.f32.mrf.mxu2  ;;  %v292_v50 = vpop.f32.mrf.mxu3 }
  0xbf   :  { %v3019_v51 = vadd.f32 %v251_v49, %v2989_v21  ;;  %v3021_v52 = vadd.f32 %v292_v50, %v110_v22  ;;  %v172_v53 = vpop.f32.mrf.mxu0  ;;  %v213_v54 = vpop.f32.mrf.mxu1  ;;  %v240_v49 = vadd.f32 %v2981_v14, %v2989_v21 }
  0xc0   :  { %v3023_v55 = vadd.f32 %v172_v53, %v107_v12  ;;  %v3025_v56 = vadd.f32 %v213_v54, %v108_v13 }
  0xc1   :  { %3811 = vst [vmem:[#allocation28_spill] sm:$0xff] %v3019_v51  ;;  %v3216_v51 = vld [vmem:[#allocation10 + $0x78] sm:$0xff] }
  0xc2   :  { %3812 = vst [vmem:[#allocation29_spill] sm:$0xff] %v3021_v52 }
  0xc3   :  { %3813 = vst [vmem:[#allocation30_spill] sm:$0xff] %v3023_v55  ;;  %v3214_v55 = vld [vmem:[#allocation10 + $0x70] sm:$0xff] }
  0xc4   :  { %3814 = vst [vmem:[#allocation31_spill] sm:$0xff] %v3025_v56  ;;  %v3210_v56 = vld [vmem:[#allocation10 + $0x68] sm:$0xff] }
  0xc5   :  { %3840 = vst [vmem:[#allocation57_spill] sm:$0xff] %v3210_v56 }
  0xc6   :  { %v254_v57 = vpop.f32.mrf.mxu2  ;;  %v295_v58 = vpop.f32.mrf.mxu3  ;;  %3841 = vst [vmem:[#allocation58_spill] sm:$0xff] %v3214_v55 }
  0xc7   :  { %v3028_v59 = vadd.f32 %v254_v57, %v2989_v21  ;;  %v3030_v61 = vadd.f32 %v295_v58, %v110_v22  ;;  %v175_v62 = vpop.f32.mrf.mxu0  ;;  %v216_v63 = vpop.f32.mrf.mxu1  ;;  %3842 = vst [vmem:[#allocation59_spill] sm:$0xff] %v3216_v51 }
  0xc8   :  { %v3032_v0 = vadd.f32 %v175_v62, %v107_v12  ;;  %v3034_v1 = vadd.f32 %v216_v63, %v108_v13 }
  0xc9   :  { %3815 = vst [vmem:[#allocation32_spill] sm:$0xff] %v3028_v59 }
  0xca   :  { %3816 = vst [vmem:[#allocation33_spill] sm:$0xff] %v3030_v61  ;;  %v3202_v61 = vld [vmem:[#allocation10 + $0x90] sm:$0xff] }
  0xcb   :  { %3817 = vst [vmem:[#allocation34_spill] sm:$0xff] %v3032_v0  ;;  %v3190_v0 = vld [vmem:[#allocation10 + $0xb0] sm:$0xff] }
  0xcc   :  { %3818 = vst [vmem:[#allocation35_spill] sm:$0xff] %v3034_v1  ;;  %v3188_v1 = vld [vmem:[#allocation10 + $0xa8] sm:$0xff] }
  0xce   :  { %v257_v2 = vpop.f32.mrf.mxu2  ;;  %v298_v3 = vpop.f32.mrf.mxu3 }
  0xcf   :  { %v3037_v4 = vadd.f32 %v257_v2, %v2989_v21  ;;  %v3039_v5 = vadd.f32 %v298_v3, %v110_v22  ;;  %v178_v6 = vpop.f32.mrf.mxu0  ;;  %v219_v7 = vpop.f32.mrf.mxu1 }
  0xd0   :  { %v3041_v34 = vadd.f32 %v178_v6, %v107_v12  ;;  %v3043_v47 = vadd.f32 %v219_v7, %v108_v13 }
  0xd1   :  { %3819 = vst [vmem:[#allocation36_spill] sm:$0xff] %v3037_v4  ;;  %v3182_v4 = vld [vmem:[#allocation10 + $0xd8] sm:$0xff] }
  0xd2   :  { %3820 = vst [vmem:[#allocation37_spill] sm:$0xff] %v3039_v5  ;;  %v3186_v5 = vld [vmem:[#allocation10 + $0xa0] sm:$0xff] }
  0xd3   :  { %3821 = vst [vmem:[#allocation38_spill] sm:$0xff] %v3041_v34 }
  0xd4   :  { %3822 = vst [vmem:[#allocation39_spill] sm:$0xff] %v3043_v47 }
  0xd6   :  { %v260_v8 = vpop.f32.mrf.mxu2  ;;  %v301_v11 = vpop.f32.mrf.mxu3 }
  0xd7   :  { %v3046_v16 = vadd.f32 %v260_v8, %v2989_v21  ;;  %v3048_v17 = vadd.f32 %v301_v11, %v110_v22  ;;  %v425_v23 = vpop.f32.mrf.mxu0  ;;  %v445_v24 = vpop.f32.mrf.mxu1 }
  0xd8   :  { %v488_v27 = vadd.f32 %v425_v23, %v158_v60  ;;  %v489_v28 = vadd.f32 %v445_v24, %v199_v20 }
  0xd9   :  { %3823 = vst [vmem:[#allocation40_spill] sm:$0xff] %v3046_v16  ;;  %v3174_v16 = vld [vmem:[#allocation10 + $0xc8] sm:$0xff] }
  0xda   :  { %3824 = vst [vmem:[#allocation41_spill] sm:$0xff] %v3048_v17  ;;  %v2225_v31 = vmul.f32 -1.442695, %v488_v27  ;;  %v2226_v32 = vmul.f32 -1.442695, %v489_v28  ;;  %v3176_v17 = vld [vmem:[#allocation10 + $0xd0] sm:$0xff] }
  0xdc   :  { %2261 = vpow2.f32 %v2225_v31 }
  0xdd   :  { %2263 = vpow2.f32 %v2226_v32 }
  0xde   :  { %v485_v37 = vpop.f32.mrf.mxu3  ;;  %v465_v44 = vpop.f32.mrf.mxu2 }
  0xdf   :  { %v491_v9 = vadd.f32 %v485_v37, %v281_v36  ;;  %v490_v54 = vadd.f32 %v465_v44, %v240_v49 }
  0xe1   :  { %v2227_v10 = vmul.f32 -1.442695, %v491_v9 }
  0xe2   :  { %v2262_v12 = vpop.eup %2261 }
  0xe3   :  { %v2264_v13 = vpop.eup %2263  ;;  %v495_v40 = vadd.f32 1.0, %v2262_v12  ;;  %2265 = vpow2.f32 %v2227_v10 }
  0xe4   :  { %v514_v41 = vadd.f32 1.0, %v2264_v13 }
  0xe5   :  { %2267 = vrcp.f32 %v495_v40  ;;  %v507_v63 = vand.u32 2147483648, %v495_v40  ;;  %v505_v6 = vand.u32 2147483647, %v495_v40  ;;  %vm501_vm3 = vweird.f32 %v495_v40 }
  0xe6   :  { %2269 = vrcp.f32 %v514_v41  ;;  %v526_v2 = vand.u32 2147483648, %v514_v41  ;;  %v524_v60 = vand.u32 2147483647, %v514_v41  ;;  %vm520_vm4 = vweird.f32 %v514_v41 }
  0xe7   :  { %v508_v21 = vor.u32 1.1754944e-38, %v507_v63  ;;  %vm506_vm6 = vcmp.eq.f32.partialorder %v505_v6, 8.507059e+37 }
  0xe8   :  { %v527_v23 = vor.u32 1.1754944e-38, %v526_v2  ;;  %vm525_vm8 = vcmp.eq.f32.partialorder %v524_v60, 8.507059e+37 }
  0xe9   :  { %v2266_v45 = vpop.eup %2265 }
  0xea   :  { %v534_v50 = vadd.f32 1.0, %v2266_v45 }
  0xeb   :  { %v2268_v53 = vpop.eup %2267 }
  0xec   :  { %v2270_v15 = vpop.eup %2269  ;;  %v497_v22 = vmul.f32 %v2268_v53, %v495_v40  ;;  %2271 = vrcp.f32 %v534_v50  ;;  %vm502_vm1 = vweird.f32 %v2268_v53  ;;  %v546_v40 = vand.u32 2147483648, %v534_v50 }
  0xed   :  { %v516_v57 = vmul.f32 %v2270_v15, %v514_v41  ;;  %2273 = vtanh.f32 %v490_v54  ;;  %vm521_vm2 = vweird.f32 %v2270_v15  ;;  %vm503_vm5 = vmor %vm501_vm3, %vm502_vm1  ;;  %vm540_vm10 = vweird.f32 %v534_v50 }
  0xee   :  { %v498_v58 = vsub.f32 1.0, %v497_v22  ;;  %vm522_vm7 = vmor %vm520_vm4, %vm521_vm2  ;;  %v544_v41 = vand.u32 2147483647, %v534_v50  ;;  %v547_v45 = vor.u32 1.1754944e-38, %v546_v40 }
  0xef   :  { %v517_v62 = vsub.f32 1.0, %v516_v57 }
  0xf0   :  { %v499_v3 = vmul.f32 %v2268_v53, %v498_v58  ;;  %vm545_vm12 = vcmp.eq.f32.partialorder %v544_v41, 8.507059e+37 }
  0xf1   :  { %v518_v7 = vmul.f32 %v2270_v15, %v517_v62 }
  0xf2   :  { %v2272_v20 = vpop.eup %2271  ;;  %v500_v14 = vadd.f32 %v2268_v53, %v499_v3 }
  0xf3   :  { %v519_v8 = vadd.f32 %v2270_v15, %v518_v7  ;;  %v536_v11 = vmul.f32 %v2272_v20, %v534_v50  ;;  %v2274_v27 = vpop.eup %2273  ;;  %vm541_vm9 = vweird.f32 %v2272_v20 }
  0xf4   :  { %v504_v24 = vsel %vm503_vm5, %v2268_v53, %v500_v14  ;;  %vm542_vm11 = vmor %vm540_vm10, %vm541_vm9 }
  0xf5   :  { %v509_v28 = vsel %vm506_vm6, %v508_v21, %v504_v24  ;;  %v523_v31 = vsel %vm522_vm7, %v2270_v15, %v519_v8  ;;  %v537_v32 = vsub.f32 1.0, %v536_v11 }
  0xf6   :  { %v528_v36 = vsel %vm525_vm8, %v527_v23, %v523_v31  ;;  %v552_v37 = vmul.f32 %v2274_v27, %v509_v28 }
  0xf7   :  { %v551_v9 = vmul.f32 0.0, %v528_v36  ;;  %v538_v10 = vmul.f32 %v2272_v20, %v537_v32 }
  0xf9   :  { %v3053_v12 = vadd.f32 %v552_v37, %v551_v9  ;;  %v539_v13 = vadd.f32 %v2272_v20, %v538_v10 }
  0xfb   :  { %2275 = vtanh.f32 %v3053_v12  ;;  %v543_v44 = vsel %vm542_vm11, %v2272_v20, %v539_v13 }
  0xfc   :  { %v548_v53 = vsel %vm545_vm12, %v547_v45, %v543_v44 }
 0x101   :  { %v2276_v49 = vpop.eup %2275 }
 0x102   :  { %v555_v54 = vmul.f32 %v2276_v49, %v548_v53 }
 0x104   :  { %558 = vst [vmem:[#allocation13] sm:$0xff] %v555_v54  ;;  %647 = vmatmul.f32.vlgmr.msra.gmra.mxu0 %v555_v54  ;;  %667 = vmatmul.f32.vlgmr.msra.gmra.mxu1 %v555_v54 }
 0x105   :  { %687 = vmatmul.f32.vlgmr.msra.gmra.mxu2 %v555_v54  ;;  %707 = vmatmul.f32.vlgmr.msra.gmra.mxu3 %v555_v54 }
 0x181   :  { %v648_v15 = vpop.f32.mrf.mxu0  ;;  %v668_v22 = vpop.f32.mrf.mxu1 }
 0x182   :  { %v711_v57 = vadd.f32 %v648_v15, %v2985_v18  ;;  %v712_v58 = vadd.f32 %v668_v22, %v2987_v19 }
 0x184   :  { %v2228_v62 = vmul.f32 -1.442695, %v711_v57  ;;  %v2229_v50 = vmul.f32 -1.442695, %v712_v58 }
 0x186   :  { %2277 = vpow2.f32 %v2228_v62 }
 0x187   :  { %2279 = vpow2.f32 %v2229_v50 }
 0x188   :  { %v708_v63 = vpop.f32.mrf.mxu3  ;;  %v688_v14 = vpop.f32.mrf.mxu2 }
 0x189   :  { %v714_v2 = vadd.f32 %v708_v63, %v2994_v26  ;;  %v713_v19 = vadd.f32 %v688_v14, %v2992_v25 }
 0x18b   :  { %v2230_v3 = vmul.f32 -1.442695, %v714_v2 }
 0x18c   :  { %v2278_v6 = vpop.eup %2277 }
 0x18d   :  { %v2280_v7 = vpop.eup %2279  ;;  %v718_v60 = vadd.f32 1.0, %v2278_v6  ;;  %2281 = vpow2.f32 %v2230_v3 }
 0x18e   :  { %v737_v20 = vadd.f32 1.0, %v2280_v7 }
 0x18f   :  { %2283 = vrcp.f32 %v718_v60  ;;  %v730_v28 = vand.u32 2147483648, %v718_v60  ;;  %v728_v36 = vand.u32 2147483647, %v718_v60  ;;  %vm724_vm15 = vweird.f32 %v718_v60 }
 0x190   :  { %2285 = vrcp.f32 %v737_v20  ;;  %v749_v31 = vand.u32 2147483648, %v737_v20  ;;  %v747_v9 = vand.u32 2147483647, %v737_v20  ;;  %vm743_vm0 = vweird.f32 %v737_v20 }
 0x191   :  { %v731_v25 = vor.u32 1.1754944e-38, %v730_v28  ;;  %vm729_vm3 = vcmp.eq.f32.partialorder %v728_v36, 8.507059e+37  ;;  %v3092_v28 = vld [vmem:[#allocation10 + $0x1b0] sm:$0xff]  ;;  %v3102_v36 = vld [vmem:[#allocation10 + $0x188] sm:$0xff] }
 0x192   :  { %v750_v44 = vor.u32 1.1754944e-38, %v749_v31  ;;  %vm748_vm4 = vcmp.eq.f32.partialorder %v747_v9, 8.507059e+37  ;;  %v3096_v31 = vld [vmem:[#allocation10 + $0x1b8] sm:$0xff]  ;;  %3831 = vst [vmem:[#allocation48_spill] sm:$0xff] %v3102_v36 }
 0x193   :  { %v2282_v21 = vpop.eup %2281  ;;  %3829 = vst [vmem:[#allocation46_spill] sm:$0xff] %v3096_v31  ;;  %v3108_v9 = vld [vmem:[#allocation10 + $0x198] sm:$0xff] }
 0x194   :  { %v757_v18 = vadd.f32 1.0, %v2282_v21  ;;  %v3066_v21 = vld [vmem:[#allocation10 + $0x1e8] sm:$0xff] }
 0x195   :  { %v2284_v8 = vpop.eup %2283  ;;  %3825 = vst [vmem:[#allocation42_spill] sm:$0xff] %v3066_v21  ;;  %1099 = vmatpush.msra.mxu1 %v3066_v21 }
 0x196   :  { %v2286_v11 = vpop.eup %2285  ;;  %v720_v23 = vmul.f32 %v2284_v8, %v718_v60  ;;  %2287 = vrcp.f32 %v757_v18  ;;  %vm725_vm13 = vweird.f32 %v2284_v8  ;;  %v769_v2 = vand.u32 2147483648, %v757_v18 }
 0x197   :  { %v739_v24 = vmul.f32 %v2286_v11, %v737_v20  ;;  %2289 = vtanh.f32 %v713_v19  ;;  %vm744_vm14 = vweird.f32 %v2286_v11  ;;  %vm726_vm1 = vmor %vm724_vm15, %vm725_vm13  ;;  %vm763_vm6 = vweird.f32 %v757_v18  ;;  %v3076_v19 = vld [vmem:[#allocation10 + $0x1c0] sm:$0xff] }
 0x198   :  { %v721_v27 = vsub.f32 1.0, %v720_v23  ;;  %vm745_vm2 = vmor %vm743_vm0, %vm744_vm14  ;;  %v767_v3 = vand.u32 2147483647, %v757_v18  ;;  %v770_v7 = vor.u32 1.1754944e-38, %v769_v2  ;;  %3827 = vst [vmem:[#allocation44_spill] sm:$0xff] %v3076_v19  ;;  %v3080_v23 = vld [vmem:[#allocation10 + $0x1d0] sm:$0xff] }
 0x199   :  { %v740_v26 = vsub.f32 1.0, %v739_v24  ;;  %v3084_v24 = vld [vmem:[#allocation10 + $0x1d8] sm:$0xff]  ;;  %v3160_v2 = vld [vmem:[#allocation10 + $0xe0] sm:$0xff] }
 0x19a   :  { %v722_v32 = vmul.f32 %v2284_v8, %v721_v27  ;;  %vm768_vm8 = vcmp.eq.f32.partialorder %v767_v3, 8.507059e+37  ;;  %v3088_v27 = vld [vmem:[#allocation10 + $0x1a0] sm:$0xff]  ;;  %v3162_v3 = vld [vmem:[#allocation10 + $0xe8] sm:$0xff] }
 0x19b   :  { %v741_v37 = vmul.f32 %v2286_v11, %v740_v26  ;;  %v3090_v26 = vld [vmem:[#allocation10 + $0x1a8] sm:$0xff] }
 0x19c   :  { %v2288_v10 = vpop.eup %2287  ;;  %v723_v13 = vadd.f32 %v2284_v8, %v722_v32  ;;  %v3100_v32 = vld [vmem:[#allocation10 + $0x180] sm:$0xff] }
 0x19d   :  { %v742_v40 = vadd.f32 %v2286_v11, %v741_v37  ;;  %v759_v41 = vmul.f32 %v2288_v10, %v757_v18  ;;  %v2290_v49 = vpop.eup %2289  ;;  %vm764_vm5 = vweird.f32 %v2288_v10  ;;  %v3072_v18 = vld [vmem:[#allocation10 + $0x1f8] sm:$0xff]  ;;  %3830 = vst [vmem:[#allocation47_spill] sm:$0xff] %v3100_v32  ;;  %v3104_v37 = vld [vmem:[#allocation10 + $0x190] sm:$0xff] }
 0x19e   :  { %v727_v45 = vsel %vm726_vm1, %v2284_v8, %v723_v13  ;;  %vm765_vm7 = vmor %vm763_vm6, %vm764_vm5  ;;  %v3068_v8 = vld [vmem:[#allocation10 + $0x1f0] sm:$0xff]  ;;  %1139 = vmatpush.msra.mxu3 %v3072_v18  ;;  %3832 = vst [vmem:[#allocation49_spill] sm:$0xff] %v3104_v37  ;;  %v3114_v13 = vld [vmem:[#allocation10 + $0x168] sm:$0xff] }
 0x19f   :  { %v732_v53 = vsel %vm729_vm3, %v731_v25, %v727_v45  ;;  %v746_v54 = vsel %vm745_vm2, %v2286_v11, %v742_v40  ;;  %v760_v15 = vsub.f32 1.0, %v759_v41  ;;  %3826 = vst [vmem:[#allocation43_spill] sm:$0xff] %v3068_v8  ;;  %1119 = vmatpush.msra.mxu2 %v3068_v8  ;;  %v3078_v11 = vld [vmem:[#allocation10 + $0x1c8] sm:$0xff]  ;;  %v3116_v25 = vld [vmem:[#allocation10 + $0x170] sm:$0xff]  ;;  %v3120_v40 = vld [vmem:[#allocation10 + $0x178] sm:$0xff] }
 0x1a0   :  { %v751_v22 = vsel %vm748_vm4, %v750_v44, %v746_v54  ;;  %v775_v57 = vmul.f32 %v2290_v49, %v732_v53  ;;  %3828 = vst [vmem:[#allocation45_spill] sm:$0xff] %v3078_v11  ;;  %1100 = vmatpush.msra.mxu1 %v3078_v11  ;;  %1140 = vmatpush.msra.mxu3 %v3084_v24  ;;  %v3124_v41 = vld [vmem:[#allocation10 + $0x140] sm:$0xff]  ;;  %v3126_v44 = vld [vmem:[#allocation10 + $0x148] sm:$0xff]  ;;  %v3128_v45 = vld [vmem:[#allocation10 + $0x150] sm:$0xff] }
 0x1a1   :  { %v774_v58 = vmul.f32 %v751_v22, %v3053_v12  ;;  %v761_v62 = vmul.f32 %v2288_v10, %v760_v15  ;;  %v3064_v12 = vld [vmem:[#allocation10 + $0x1e0] sm:$0xff]  ;;  %1120 = vmatpush.msra.mxu2 %v3080_v23  ;;  %3833 = vst [vmem:[#allocation50_spill] sm:$0xff] %v3120_v40  ;;  %v3132_v49 = vld [vmem:[#allocation10 + $0x158] sm:$0xff]  ;;  %v3138_v54 = vld [vmem:[#allocation10 + $0x128] sm:$0xff] }
 0x1a2   :  { %1079 = vmatpush.msra.mxu0 %v3064_v12  ;;  %1101 = vmatpush.msra.mxu1 %v3090_v26  ;;  %3834 = vst [vmem:[#allocation51_spill] sm:$0xff] %v3128_v45  ;;  %v3136_v53 = vld [vmem:[#allocation10 + $0x120] sm:$0xff]  ;;  %v3140_v15 = vld [vmem:[#allocation10 + $0x130] sm:$0xff]  ;;  %v3144_v22 = vld [vmem:[#allocation10 + $0x138] sm:$0xff] }
 0x1a3   :  { %v3061_v50 = vadd.f32 %v775_v57, %v774_v58  ;;  %v762_v63 = vadd.f32 %v2288_v10, %v761_v62  ;;  %1121 = vmatpush.msra.mxu2 %v3092_v28  ;;  %1141 = vmatpush.msra.mxu3 %v3096_v31  ;;  %3835 = vst [vmem:[#allocation52_spill] sm:$0xff] %v3138_v54  ;;  %v3148_v57 = vld [vmem:[#allocation10 + $0x100] sm:$0xff]  ;;  %v3150_v58 = vld [vmem:[#allocation10 + $0x108] sm:$0xff]  ;;  %v3152_v62 = vld [vmem:[#allocation10 + $0x110] sm:$0xff] }
 0x1a4   :  { %1080 = vmatpush.msra.mxu0 %v3076_v19  ;;  %1102 = vmatpush.msra.mxu1 %v3102_v36  ;;  %3836 = vst [vmem:[#allocation53_spill] sm:$0xff] %v3140_v15 }
 0x1a5   :  { %2291 = vtanh.f32 %v3061_v50  ;;  %v766_v6 = vsel %vm765_vm7, %v2288_v10, %v762_v63  ;;  %1122 = vmatpush.msra.mxu2 %v3104_v37  ;;  %1142 = vmatpush.msra.mxu3 %v3108_v9  ;;  %v3112_v10 = vld [vmem:[#allocation10 + $0x160] sm:$0xff]  ;;  %3837 = vst [vmem:[#allocation54_spill] sm:$0xff] %v3144_v22  ;;  %v3156_v63 = vld [vmem:[#allocation10 + $0x118] sm:$0xff] }
 0x1a6   :  { %v771_v20 = vsel %vm768_vm8, %v770_v7, %v766_v6  ;;  %1081 = vmatpush.msra.mxu0 %v3088_v27  ;;  %1103 = vmatpush.msra.mxu1 %v3114_v13  ;;  %v3164_v6 = vld [vmem:[#allocation10 + $0xf0] sm:$0xff]  ;;  %v3168_v7 = vld [vmem:[#allocation10 + $0xf8] sm:$0xff] }
 0x1a7   :  { %1123 = vmatpush.msra.mxu2 %v3116_v25  ;;  %1143 = vmatpush.msra.mxu3 %v3120_v40 }
 0x1a8   :  { %1082 = vmatpush.msra.mxu0 %v3100_v32  ;;  %1104 = vmatpush.msra.mxu1 %v3126_v44 }
 0x1a9   :  { %1124 = vmatpush.msra.mxu2 %v3128_v45  ;;  %1144 = vmatpush.msra.mxu3 %v3132_v49 }
 0x1aa   :  { %1083 = vmatpush.msra.mxu0 %v3112_v10  ;;  %1105 = vmatpush.msra.mxu1 %v3138_v54 }
 0x1ab   :  { %v2292_v60 = vpop.eup %2291  ;;  %1125 = vmatpush.msra.mxu2 %v3140_v15  ;;  %1145 = vmatpush.msra.mxu3 %v3144_v22 }
 0x1ac   :  { %v778_v14 = vmul.f32 %v2292_v60, %v771_v20  ;;  %1084 = vmatpush.msra.mxu0 %v3124_v41  ;;  %1106 = vmatpush.msra.mxu1 %v3150_v58 }
 0x1ad   :  { %1126 = vmatpush.msra.mxu2 %v3152_v62  ;;  %1146 = vmatpush.msra.mxu3 %v3156_v63 }
 0x1ae   :  { %782 = vst [vmem:[#allocation13 + $0x8] sm:$0xff] %v778_v14  ;;  %871 = vmatmul.f32.vlgmr.msrb.gmra.mxu0 %v778_v14  ;;  %891 = vmatmul.f32.vlgmr.msrb.gmra.mxu1 %v778_v14 }
 0x1af   :  { %911 = vmatmul.f32.vlgmr.msrb.gmra.mxu2 %v778_v14  ;;  %931 = vmatmul.f32.vlgmr.msrb.gmra.mxu3 %v778_v14  ;;  %v3172_v14 = vld [vmem:[#allocation10 + $0xc0] sm:$0xff] }
 0x1b0   :  { %1085 = vmatpush.msra.mxu0 %v3136_v53  ;;  %1107 = vmatpush.msra.mxu1 %v3162_v3 }
 0x1b1   :  { %1127 = vmatpush.msra.mxu2 %v3164_v6  ;;  %1147 = vmatpush.msra.mxu3 %v3168_v7 }
 0x1b2   :  { %1086 = vmatpush.msra.mxu0 %v3148_v57  ;;  %1108 = vmatpush.msra.mxu1 %v3174_v16 }
 0x1b3   :  { %1128 = vmatpush.msra.mxu2 %v3176_v17  ;;  %1148 = vmatpush.msra.mxu3 %v3182_v4 }
 0x1b4   :  { %1087 = vmatpush.msra.mxu0 %v3160_v2  ;;  %1109 = vmatpush.msra.mxu1 %v3188_v1 }
 0x1b5   :  { %1129 = vmatpush.msra.mxu2 %v3190_v0 }
 0x1b6   :  { %1088 = vmatpush.msra.mxu0 %v3172_v14 }
 0x1b7   :  { %1130 = vmatpush.msra.mxu2 %v3202_v61 }
 0x1b8   :  { %1089 = vmatpush.msra.mxu0 %v3186_v5 }
 0x1b9   :  { %1131 = vmatpush.msra.mxu2 %v3214_v55 }
 0x1bb   :  { %1132 = vmatpush.msra.mxu2 %v3224_v46 }
 0x1bd   :  { %1133 = vmatpush.msra.mxu2 %v3237_v38 }
 0x22b   :  { %v872_v60 = vpop.f32.mrf.mxu0  ;;  %v892_v20 = vpop.f32.mrf.mxu1 }
 0x22c   :  { %v935_v47 = vadd.f32 %v872_v60, %v2996_v29  ;;  %v936_v34 = vadd.f32 %v892_v20, %v2998_v30  ;;  %v3194_v30 = vld [vmem:[#allocation10 + $0xb8] sm:$0xff]  ;;  %v3198_v60 = vld [vmem:[#allocation10 + $0x80] sm:$0xff]  ;;  %v3200_v20 = vld [vmem:[#allocation10 + $0x88] sm:$0xff] }
 0x22d   :  { %1149 = vmatpush.msra.mxu3 %v3194_v30  ;;  %1090 = vmatpush.msra.mxu0 %v3198_v60 }
 0x22e   :  { %v2231_v59 = vmul.f32 -1.442695, %v935_v47  ;;  %v2232_v29 = vmul.f32 -1.442695, %v936_v34  ;;  %1110 = vmatpush.msra.mxu1 %v3200_v20  ;;  %v3206_v34 = vld [vmem:[#allocation10 + $0x98] sm:$0xff]  ;;  %v3208_v47 = vld [vmem:[#allocation10 + $0x60] sm:$0xff] }
 0x22f   :  { %3838 = vst [vmem:[#allocation55_spill] sm:$0xff] %v3206_v34  ;;  %1150 = vmatpush.msra.mxu3 %v3206_v34  ;;  %1091 = vmatpush.msra.mxu0 %v3208_v47 }
 0x230   :  { %2293 = vpow2.f32 %v2231_v59  ;;  %3839 = vst [vmem:[#allocation56_spill] sm:$0xff] %v3208_v47  ;;  %v3218_v59 = vld [vmem:[#allocation10 + $0x40] sm:$0xff]  ;;  %1111 = vmatpush.msra.mxu1 %v3210_v56  ;;  %v3239_v56 = vld [vmem:[#allocation10 + $0x38] sm:$0xff] }
 0x231   :  { %2295 = vpow2.f32 %v2232_v29  ;;  %3843 = vst [vmem:[#allocation60_spill] sm:$0xff] %v3218_v59  ;;  %v3226_v29 = vld [vmem:[#allocation10 + $0x58] sm:$0xff]  ;;  %1151 = vmatpush.msra.mxu3 %v3216_v51  ;;  %1092 = vmatpush.msra.mxu0 %v3218_v59  ;;  %v3249_v59 = vld [vmem:[#allocation10 + $0x10] sm:$0xff] }
 0x232   :  { %v932_v52 = vpop.f32.mrf.mxu3  ;;  %1112 = vmatpush.msra.mxu1 %v3222_v48  ;;  %v3251_v48 = vld [vmem:[#allocation10 + $0x18] sm:$0xff]  ;;  %1134 = vmatpush.msra.mxu2 %v3249_v59 }
 0x233   :  { %v938_v42 = vadd.f32 %v932_v52, %v3003_v35  ;;  %1152 = vmatpush.msra.mxu3 %v3226_v29  ;;  %v3243_v35 = vld [vmem:[#allocation10] sm:$0xff]  ;;  %v3245_v52 = vld [vmem:[#allocation10 + $0x8] sm:$0xff]  ;;  %1093 = vmatpush.msra.mxu0 %v3231_v43 }
 0x234   :  { %1113 = vmatpush.msra.mxu1 %v3233_v39  ;;  %1343 = vmatpush.msrb.mxu2 %v3068_v8 }
 0x235   :  { %v2233_v47 = vmul.f32 -1.442695, %v938_v42  ;;  %1153 = vmatpush.msra.mxu3 %v3239_v56  ;;  %1094 = vmatpush.msra.mxu0 %v3243_v35 }
 0x236   :  { %v2294_v51 = vpop.eup %2293  ;;  %1114 = vmatpush.msra.mxu1 %v3245_v52  ;;  %1344 = vmatpush.msrb.mxu2 %v3080_v23 }
 0x237   :  { %v2296_v55 = vpop.eup %2295  ;;  %v3253_v34 = vadd.f32 1.0, %v2294_v51  ;;  %2297 = vpow2.f32 %v2233_v47  ;;  %1154 = vmatpush.msra.mxu3 %v3251_v48  ;;  %1303 = vmatpush.msrb.mxu0 %v3064_v12  ;;  %v912_v51 = vpop.f32.mrf.mxu2 }
 0x238   :  { %v3257_v42 = vadd.f32 1.0, %v2296_v55  ;;  %1323 = vmatpush.msrb.mxu1 %v3066_v21  ;;  %v937_v8 = vadd.f32 %v912_v51, %v3001_v33  ;;  %1345 = vmatpush.msrb.mxu2 %v3092_v28 }
 0x239   :  { %2299 = vrcp.f32 %v3253_v34  ;;  %1363 = vmatpush.msrb.mxu3 %v3072_v18  ;;  %1304 = vmatpush.msrb.mxu0 %v3076_v19  ;;  %vm948_vm11 = vweird.f32 %v3253_v34 }
 0x23a   :  { %2301 = vrcp.f32 %v3257_v42  ;;  %1324 = vmatpush.msrb.mxu1 %v3078_v11  ;;  %1346 = vmatpush.msrb.mxu2 %v3104_v37  ;;  %v952_v37 = vand.u32 2147483647, %v3253_v34  ;;  %vm967_vm12 = vweird.f32 %v3257_v42 }
 0x23b   :  { %1364 = vmatpush.msrb.mxu3 %v3084_v24  ;;  %1305 = vmatpush.msrb.mxu0 %v3088_v27 }
 0x23c   :  { %1325 = vmatpush.msrb.mxu1 %v3090_v26  ;;  %1347 = vmatpush.msrb.mxu2 %v3116_v25  ;;  %vm953_vm15 = vcmp.eq.f32.partialorder %v952_v37, 8.507059e+37 }
 0x23d   :  { %v2298_v55 = vpop.eup %2297  ;;  %1365 = vmatpush.msrb.mxu3 %v3096_v31  ;;  %1306 = vmatpush.msrb.mxu0 %v3100_v32  ;;  %v954_v31 = vand.u32 2147483648, %v3253_v34 }
 0x23e   :  { %v3273_v47 = vadd.f32 1.0, %v2298_v55  ;;  %1326 = vmatpush.msrb.mxu1 %v3102_v36  ;;  %v973_v36 = vand.u32 2147483648, %v3257_v42  ;;  %1348 = vmatpush.msrb.mxu2 %v3128_v45 }
 0x23f   :  { %v2300_v21 = vpop.eup %2299  ;;  %1366 = vmatpush.msrb.mxu3 %v3108_v9  ;;  %1307 = vmatpush.msrb.mxu0 %v3112_v10 }
 0x240   :  { %v2302_v19 = vpop.eup %2301  ;;  %v944_v11 = vmul.f32 %v2300_v21, %v3253_v34  ;;  %2303 = vrcp.f32 %v3273_v47  ;;  %1327 = vmatpush.msrb.mxu1 %v3114_v13  ;;  %vm949_vm9 = vweird.f32 %v2300_v21  ;;  %1349 = vmatpush.msrb.mxu2 %v3140_v15  ;;  %v993_v37 = vand.u32 2147483648, %v3273_v47 }
 0x241   :  { %v963_v55 = vmul.f32 %v2302_v19, %v3257_v42  ;;  %2305 = vtanh.f32 %v937_v8  ;;  %1367 = vmatpush.msrb.mxu3 %v3120_v40  ;;  %1308 = vmatpush.msrb.mxu0 %v3124_v41  ;;  %vm968_vm10 = vweird.f32 %v2302_v19  ;;  %vm950_vm13 = vmor %vm948_vm11, %vm949_vm9  ;;  %vm987_vm2 = vweird.f32 %v3273_v47 }
 0x242   :  { %v945_v33 = vsub.f32 1.0, %v944_v11  ;;  %1328 = vmatpush.msrb.mxu1 %v3126_v44  ;;  %vm969_vm14 = vmor %vm967_vm12, %vm968_vm10  ;;  %1350 = vmatpush.msrb.mxu2 %v3152_v62 }
 0x243   :  { %v964_v51 = vsub.f32 1.0, %v963_v55  ;;  %v971_v55 = vand.u32 2147483647, %v3257_v42  ;;  %1368 = vmatpush.msrb.mxu3 %v3132_v49  ;;  %1309 = vmatpush.msrb.mxu0 %v3136_v53 }
 0x244   :  { %v946_v32 = vmul.f32 %v2300_v21, %v945_v33  ;;  %1329 = vmatpush.msrb.mxu1 %v3138_v54  ;;  %v955_v33 = vor.u32 1.1754944e-38, %v954_v31  ;;  %1351 = vmatpush.msrb.mxu2 %v3164_v6 }
 0x245   :  { %v965_v11 = vmul.f32 %v2302_v19, %v964_v51  ;;  %1369 = vmatpush.msrb.mxu3 %v3144_v22  ;;  %1310 = vmatpush.msrb.mxu0 %v3148_v57  ;;  %vm972_vm0 = vcmp.eq.f32.partialorder %v971_v55, 8.507059e+37  ;;  %v994_v55 = vor.u32 1.1754944e-38, %v993_v37  ;;  %v3858_v37 = vld [vmem:[#allocation48_spill] sm:$0xff] }
 0x246   :  { %v3299_v8 = vpop.eup %2303  ;;  %v947_v40 = vadd.f32 %v2300_v21, %v946_v32  ;;  %v974_v32 = vor.u32 1.1754944e-38, %v973_v36  ;;  %1330 = vmatpush.msrb.mxu1 %v3150_v58  ;;  %1352 = vmatpush.msrb.mxu2 %v3176_v17 }
 0x247   :  { %v966_v51 = vadd.f32 %v2302_v19, %v965_v11  ;;  %v983_v45 = vmul.f32 %v3299_v8, %v3273_v47  ;;  %v2306_v42 = vpop.eup %2305  ;;  %1370 = vmatpush.msrb.mxu3 %v3156_v63  ;;  %1311 = vmatpush.msrb.mxu0 %v3160_v2  ;;  %vm988_vm1 = vweird.f32 %v3299_v8 }
 0x248   :  { %v951_v34 = vsel %vm950_vm13, %v2300_v21, %v947_v40  ;;  %1331 = vmatpush.msrb.mxu1 %v3162_v3  ;;  %1353 = vmatpush.msrb.mxu2 %v3190_v0  ;;  %v991_v40 = vand.u32 2147483647, %v3273_v47  ;;  %vm989_vm3 = vmor %vm987_vm2, %vm988_vm1  ;;  %v3850_v47 = vld [vmem:[#allocation60_spill] sm:$0xff] }
 0x249   :  { %v956_v54 = vsel %vm953_vm15, %v955_v33, %v951_v34  ;;  %v970_v31 = vsel %vm969_vm14, %v2302_v19, %v966_v51  ;;  %v984_v11 = vsub.f32 1.0, %v983_v45  ;;  %1371 = vmatpush.msrb.mxu3 %v3168_v7  ;;  %1312 = vmatpush.msrb.mxu0 %v3172_v14  ;;  %v3845_v45 = vld [vmem:[#allocation55_spill] sm:$0xff]  ;;  %v3848_v33 = vld [vmem:[#allocation58_spill] sm:$0xff] }
 0x24a   :  { %v975_v15 = vsel %vm972_vm0, %v974_v32, %v970_v31  ;;  %v999_v22 = vmul.f32 %v2306_v42, %v956_v54  ;;  %1332 = vmatpush.msrb.mxu1 %v3174_v16  ;;  %1354 = vmatpush.msrb.mxu2 %v3202_v61  ;;  %v3849_v51 = vld [vmem:[#allocation59_spill] sm:$0xff]  ;;  %vm992_vm4 = vcmp.eq.f32.partialorder %v991_v40, 8.507059e+37  ;;  %v3851_v32 = vld [vmem:[#allocation61_spill] sm:$0xff]  ;;  %v3852_v31 = vld [vmem:[#allocation42_spill] sm:$0xff] }
 0x24b   :  { %v998_v21 = vmul.f32 %v975_v15, %v3061_v50  ;;  %v985_v36 = vmul.f32 %v3299_v8, %v984_v11  ;;  %1372 = vmatpush.msrb.mxu3 %v3182_v4  ;;  %1313 = vmatpush.msrb.mxu0 %v3186_v5  ;;  %v3846_v15 = vld [vmem:[#allocation56_spill] sm:$0xff]  ;;  %v3853_v11 = vld [vmem:[#allocation43_spill] sm:$0xff] }
 0x24c   :  { %1333 = vmatpush.msrb.mxu1 %v3188_v1  ;;  %1355 = vmatpush.msrb.mxu2 %v3848_v33 }
 0x24d   :  { %v3323_v19 = vadd.f32 %v999_v22, %v998_v21  ;;  %v986_v50 = vadd.f32 %v3299_v8, %v985_v36  ;;  %1373 = vmatpush.msrb.mxu3 %v3194_v30  ;;  %1314 = vmatpush.msrb.mxu0 %v3198_v60  ;;  %v3847_v22 = vld [vmem:[#allocation57_spill] sm:$0xff]  ;;  %v3854_v21 = vld [vmem:[#allocation44_spill] sm:$0xff] }
 0x24e   :  { %1334 = vmatpush.msrb.mxu1 %v3200_v20  ;;  %1356 = vmatpush.msrb.mxu2 %v3224_v46  ;;  %v3855_v36 = vld [vmem:[#allocation45_spill] sm:$0xff] }
 0x24f   :  { %2307 = vtanh.f32 %v3323_v19  ;;  %1374 = vmatpush.msrb.mxu3 %v3845_v45  ;;  %v990_v54 = vsel %vm989_vm3, %v3299_v8, %v986_v50  ;;  %1315 = vmatpush.msrb.mxu0 %v3846_v15  ;;  %v3857_v50 = vld [vmem:[#allocation47_spill] sm:$0xff] }
 0x250   :  { %1335 = vmatpush.msrb.mxu1 %v3847_v22  ;;  %v995_v42 = vsel %vm992_vm4, %v994_v55, %v990_v54  ;;  %1357 = vmatpush.msrb.mxu2 %v3237_v38 }
 0x251   :  { %1375 = vmatpush.msrb.mxu3 %v3849_v51  ;;  %1316 = vmatpush.msrb.mxu0 %v3850_v47 }
 0x252   :  { %1336 = vmatpush.msrb.mxu1 %v3851_v32  ;;  %1358 = vmatpush.msrb.mxu2 %v3249_v59 }
 0x253   :  { %1376 = vmatpush.msrb.mxu3 %v3226_v29  ;;  %1317 = vmatpush.msrb.mxu0 %v3231_v43 }
 0x254   :  { %1337 = vmatpush.msrb.mxu1 %v3233_v39 }
 0x255   :  { %v2308_v34 = vpop.eup %2307  ;;  %1377 = vmatpush.msrb.mxu3 %v3239_v56  ;;  %1318 = vmatpush.msrb.mxu0 %v3243_v35 }
 0x256   :  { %v1002_v8 = vmul.f32 %v2308_v34, %v995_v42  ;;  %1338 = vmatpush.msrb.mxu1 %v3245_v52 }
 0x257   :  { %1378 = vmatpush.msrb.mxu3 %v3251_v48 }
 0x258   :  { %1006 = vst [vmem:[#allocation13 + $0x10] sm:$0xff] %v1002_v8  ;;  %1095 = vmatmul.f32.vlgmr.msra.gmra.mxu0 %v1002_v8  ;;  %1115 = vmatmul.f32.vlgmr.msra.gmra.mxu1 %v1002_v8 }
 0x259   :  { %1135 = vmatmul.f32.vlgmr.msra.gmra.mxu2 %v1002_v8  ;;  %1155 = vmatmul.f32.vlgmr.msra.gmra.mxu3 %v1002_v8 }
 0x25a   :  { %1527 = vmatpush.msra.mxu0 %v3064_v12  ;;  %1547 = vmatpush.msra.mxu1 %v3852_v31  ;;  %v3856_v12 = vld [vmem:[#allocation46_spill] sm:$0xff] }
 0x25b   :  { %1567 = vmatpush.msra.mxu2 %v3853_v11  ;;  %1587 = vmatpush.msra.mxu3 %v3072_v18  ;;  %v3859_v18 = vld [vmem:[#allocation49_spill] sm:$0xff] }
 0x25c   :  { %1528 = vmatpush.msra.mxu0 %v3854_v21  ;;  %1548 = vmatpush.msra.mxu1 %v3855_v36 }
 0x25d   :  { %1568 = vmatpush.msra.mxu2 %v3080_v23  ;;  %1588 = vmatpush.msra.mxu3 %v3084_v24  ;;  %v3860_v23 = vld [vmem:[#allocation50_spill] sm:$0xff]  ;;  %v3861_v24 = vld [vmem:[#allocation51_spill] sm:$0xff] }
 0x25e   :  { %1529 = vmatpush.msra.mxu0 %v3088_v27  ;;  %1549 = vmatpush.msra.mxu1 %v3090_v26  ;;  %v3862_v27 = vld [vmem:[#allocation52_spill] sm:$0xff]  ;;  %v3863_v26 = vld [vmem:[#allocation53_spill] sm:$0xff] }
 0x25f   :  { %1569 = vmatpush.msra.mxu2 %v3092_v28  ;;  %1589 = vmatpush.msra.mxu3 %v3856_v12  ;;  %v3864_v28 = vld [vmem:[#allocation54_spill] sm:$0xff] }
 0x260   :  { %1530 = vmatpush.msra.mxu0 %v3857_v50  ;;  %1550 = vmatpush.msra.mxu1 %v3858_v37 }
 0x261   :  { %1570 = vmatpush.msra.mxu2 %v3859_v18  ;;  %1590 = vmatpush.msra.mxu3 %v3108_v9 }
 0x262   :  { %1531 = vmatpush.msra.mxu0 %v3112_v10  ;;  %1551 = vmatpush.msra.mxu1 %v3114_v13 }
 0x263   :  { %1571 = vmatpush.msra.mxu2 %v3116_v25  ;;  %1591 = vmatpush.msra.mxu3 %v3860_v23  ;;  %v3869_v23 = vld [vmem:[#allocation26_spill] sm:$0xff] }
 0x264   :  { %1532 = vmatpush.msra.mxu0 %v3124_v41  ;;  %1552 = vmatpush.msra.mxu1 %v3126_v44 }
 0x265   :  { %1572 = vmatpush.msra.mxu2 %v3861_v24  ;;  %1592 = vmatpush.msra.mxu3 %v3132_v49 }
 0x266   :  { %1533 = vmatpush.msra.mxu0 %v3136_v53  ;;  %1553 = vmatpush.msra.mxu1 %v3862_v27  ;;  %v3868_v53 = vld [vmem:[#allocation24_spill] sm:$0xff]  ;;  %v3870_v27 = vld [vmem:[#allocation27_spill] sm:$0xff] }
 0x267   :  { %1573 = vmatpush.msra.mxu2 %v3863_v26  ;;  %1593 = vmatpush.msra.mxu3 %v3864_v28 }
 0x268   :  { %1534 = vmatpush.msra.mxu0 %v3148_v57  ;;  %1554 = vmatpush.msra.mxu1 %v3150_v58 }
 0x269   :  { %1574 = vmatpush.msra.mxu2 %v3152_v62  ;;  %1594 = vmatpush.msra.mxu3 %v3156_v63 }
 0x26a   :  { %1535 = vmatpush.msra.mxu0 %v3160_v2  ;;  %1555 = vmatpush.msra.mxu1 %v3162_v3 }
 0x26b   :  { %1575 = vmatpush.msra.mxu2 %v3164_v6  ;;  %1595 = vmatpush.msra.mxu3 %v3168_v7 }
 0x26c   :  { %1536 = vmatpush.msra.mxu0 %v3172_v14  ;;  %1556 = vmatpush.msra.mxu1 %v3174_v16 }
 0x26d   :  { %1576 = vmatpush.msra.mxu2 %v3176_v17  ;;  %1596 = vmatpush.msra.mxu3 %v3182_v4  ;;  %v3866_v4 = vld [vmem:[#allocation23_spill] sm:$0xff] }
 0x26e   :  { %1537 = vmatpush.msra.mxu0 %v3186_v5  ;;  %1557 = vmatpush.msra.mxu1 %v3188_v1 }
 0x26f   :  { %1577 = vmatpush.msra.mxu2 %v3190_v0  ;;  %1597 = vmatpush.msra.mxu3 %v3194_v30  ;;  %v3865_v0 = vld [vmem:[#allocation22_spill] sm:$0xff] }
 0x270   :  { %1538 = vmatpush.msra.mxu0 %v3198_v60  ;;  %1558 = vmatpush.msra.mxu1 %v3200_v20 }
 0x271   :  { %1578 = vmatpush.msra.mxu2 %v3202_v61  ;;  %1598 = vmatpush.msra.mxu3 %v3845_v45 }
 0x272   :  { %1539 = vmatpush.msra.mxu0 %v3846_v15  ;;  %1559 = vmatpush.msra.mxu1 %v3847_v22 }
 0x273   :  { %1579 = vmatpush.msra.mxu2 %v3848_v33  ;;  %1599 = vmatpush.msra.mxu3 %v3849_v51 }
 0x274   :  { %1540 = vmatpush.msra.mxu0 %v3850_v47  ;;  %1560 = vmatpush.msra.mxu1 %v3851_v32 }
 0x275   :  { %1580 = vmatpush.msra.mxu2 %v3224_v46  ;;  %1600 = vmatpush.msra.mxu3 %v3226_v29 }
 0x276   :  { %1541 = vmatpush.msra.mxu0 %v3231_v43  ;;  %1561 = vmatpush.msra.mxu1 %v3233_v39 }
 0x277   :  { %1581 = vmatpush.msra.mxu2 %v3237_v38  ;;  %1601 = vmatpush.msra.mxu3 %v3239_v56  ;;  %v3867_v56 = vld [vmem:[#allocation25_spill] sm:$0xff] }
 0x278   :  { %1542 = vmatpush.msra.mxu0 %v3243_v35  ;;  %1562 = vmatpush.msra.mxu1 %v3245_v52 }
 0x279   :  { %1582 = vmatpush.msra.mxu2 %v3249_v59  ;;  %1602 = vmatpush.msra.mxu3 %v3251_v48 }
 0x2d5   :  { %v1096_v61 = vpop.f32.mrf.mxu0  ;;  %v1116_v46 = vpop.f32.mrf.mxu1 }
 0x2d6   :  { %v1159_v1 = vadd.f32 %v1096_v61, %v3865_v0  ;;  %v1160_v43 = vadd.f32 %v1116_v46, %v3866_v4  ;;  %v3871_v0 = vld [vmem:[#allocation29_spill] sm:$0xff] }
 0x2d8   :  { %v2234_v5 = vmul.f32 -1.442695, %v1159_v1  ;;  %v2235_v39 = vmul.f32 -1.442695, %v1160_v43 }
 0x2da   :  { %2309 = vpow2.f32 %v2234_v5 }
 0x2db   :  { %2311 = vpow2.f32 %v2235_v39 }
 0x2dc   :  { %v1156_v38 = vpop.f32.mrf.mxu3  ;;  %v1136_v48 = vpop.f32.mrf.mxu2 }
 0x2dd   :  { %v1162_v16 = vadd.f32 %v1156_v38, %v3867_v56  ;;  %v1161_v57 = vadd.f32 %v1136_v48, %v3868_v53 }
 0x2df   :  { %v2236_v17 = vmul.f32 -1.442695, %v1162_v16 }
 0x2e0   :  { %v2310_v9 = vpop.eup %2309 }
 0x2e1   :  { %v2312_v10 = vpop.eup %2311  ;;  %v1166_v13 = vadd.f32 1.0, %v2310_v9  ;;  %2313 = vpow2.f32 %v2236_v17 }
 0x2e2   :  { %v1185_v25 = vadd.f32 1.0, %v2312_v10  ;;  %v3872_v10 = vld [vmem:[#allocation28_spill] sm:$0xff] }
 0x2e3   :  { %2315 = vrcp.f32 %v1166_v13  ;;  %v1178_v6 = vand.u32 2147483648, %v1166_v13  ;;  %v1176_v30 = vand.u32 2147483647, %v1166_v13  ;;  %vm1172_vm7 = vweird.f32 %v1166_v13 }
 0x2e4   :  { %2317 = vrcp.f32 %v1185_v25  ;;  %v1197_v7 = vand.u32 2147483648, %v1185_v25  ;;  %v1195_v20 = vand.u32 2147483647, %v1185_v25  ;;  %vm1191_vm8 = vweird.f32 %v1185_v25 }
 0x2e5   :  { %v1179_v35 = vor.u32 1.1754944e-38, %v1178_v6  ;;  %vm1177_vm11 = vcmp.eq.f32.partialorder %v1176_v30, 8.507059e+37 }
 0x2e6   :  { %v1198_v45 = vor.u32 1.1754944e-38, %v1197_v7  ;;  %vm1196_vm12 = vcmp.eq.f32.partialorder %v1195_v20, 8.507059e+37 }
 0x2e7   :  { %v2314_v41 = vpop.eup %2313 }
 0x2e8   :  { %v1205_v44 = vadd.f32 1.0, %v2314_v41 }
 0x2e9   :  { %v2316_v49 = vpop.eup %2315 }
 0x2ea   :  { %v2318_v58 = vpop.eup %2317  ;;  %v1168_v62 = vmul.f32 %v2316_v49, %v1166_v13  ;;  %2319 = vrcp.f32 %v1205_v44  ;;  %vm1173_vm5 = vweird.f32 %v2316_v49  ;;  %v1217_v31 = vand.u32 2147483648, %v1205_v44 }
 0x2eb   :  { %v1187_v63 = vmul.f32 %v2318_v58, %v1185_v25  ;;  %2321 = vtanh.f32 %v1161_v57  ;;  %vm1192_vm6 = vweird.f32 %v2318_v58  ;;  %vm1174_vm9 = vmor %vm1172_vm7, %vm1173_vm5  ;;  %vm1211_vm14 = vweird.f32 %v1205_v44 }
 0x2ec   :  { %v1169_v2 = vsub.f32 1.0, %v1168_v62  ;;  %vm1193_vm10 = vmor %vm1191_vm8, %vm1192_vm6  ;;  %v1215_v11 = vand.u32 2147483647, %v1205_v44  ;;  %v1218_v36 = vor.u32 1.1754944e-38, %v1217_v31 }
 0x2ed   :  { %v1188_v3 = vsub.f32 1.0, %v1187_v63 }
 0x2ee   :  { %v1170_v14 = vmul.f32 %v2316_v49, %v1169_v2  ;;  %vm1216_vm0 = vcmp.eq.f32.partialorder %v1215_v11, 8.507059e+37  ;;  %v3440_v11 = vld [vmem:[#allocation10 + $0x1e8] sm:$0xff] }
 0x2ef   :  { %v1189_v60 = vmul.f32 %v2318_v58, %v1188_v3 }
 0x2f0   :  { %v2320_v59 = vpop.eup %2319  ;;  %v1171_v29 = vadd.f32 %v2316_v49, %v1170_v14 }
 0x2f1   :  { %v1190_v52 = vadd.f32 %v2318_v58, %v1189_v60  ;;  %v1207_v40 = vmul.f32 %v2320_v59, %v1205_v44  ;;  %v2322_v15 = vpop.eup %2321  ;;  %vm1212_vm13 = vweird.f32 %v2320_v59 }
 0x2f2   :  { %v1175_v54 = vsel %vm1174_vm9, %v2316_v49, %v1171_v29  ;;  %vm1213_vm15 = vmor %vm1211_vm14, %vm1212_vm13 }
 0x2f3   :  { %v1180_v22 = vsel %vm1177_vm11, %v1179_v35, %v1175_v54  ;;  %v1194_v55 = vsel %vm1193_vm10, %v2318_v58, %v1190_v52  ;;  %v1208_v33 = vsub.f32 1.0, %v1207_v40 }
 0x2f4   :  { %v1199_v51 = vsel %vm1196_vm12, %v1198_v45, %v1194_v55  ;;  %v1223_v47 = vmul.f32 %v2322_v15, %v1180_v22 }
 0x2f5   :  { %v1222_v32 = vmul.f32 %v1199_v51, %v3323_v19  ;;  %v1209_v34 = vmul.f32 %v2320_v59, %v1208_v33 }
 0x2f7   :  { %v3427_v42 = vadd.f32 %v1223_v47, %v1222_v32  ;;  %v1210_v8 = vadd.f32 %v2320_v59, %v1209_v34 }
 0x2f9   :  { %2323 = vtanh.f32 %v3427_v42  ;;  %v1214_v21 = vsel %vm1213_vm15, %v2320_v59, %v1210_v8 }
 0x2fa   :  { %v1219_v50 = vsel %vm1216_vm0, %v1218_v36, %v1214_v21  ;;  %v3442_v21 = vld [vmem:[#allocation10 + $0x1f0] sm:$0xff]  ;;  %v3446_v36 = vld [vmem:[#allocation10 + $0x1f8] sm:$0xff] }
 0x2ff   :  { %v2324_v12 = vpop.eup %2323 }
 0x300   :  { %v1226_v37 = vmul.f32 %v2324_v12, %v1219_v50  ;;  %v3450_v12 = vld [vmem:[#allocation10 + $0x1c0] sm:$0xff]  ;;  %v3452_v50 = vld [vmem:[#allocation10 + $0x1c8] sm:$0xff] }
 0x302   :  { %1230 = vst [vmem:[#allocation13 + $0x18] sm:$0xff] %v1226_v37  ;;  %1319 = vmatmul.f32.vlgmr.msrb.gmra.mxu0 %v1226_v37  ;;  %1339 = vmatmul.f32.vlgmr.msrb.gmra.mxu1 %v1226_v37 }
 0x303   :  { %1359 = vmatmul.f32.vlgmr.msrb.gmra.mxu2 %v1226_v37  ;;  %1379 = vmatmul.f32.vlgmr.msrb.gmra.mxu3 %v1226_v37  ;;  %v3454_v37 = vld [vmem:[#allocation10 + $0x1d0] sm:$0xff] }
 0x304   :  { %1771 = vmatpush.msrb.mxu1 %v3440_v11  ;;  %1791 = vmatpush.msrb.mxu2 %v3442_v21 }
 0x305   :  { %1811 = vmatpush.msrb.mxu3 %v3446_v36 }
 0x306   :  { %1772 = vmatpush.msrb.mxu1 %v3452_v50  ;;  %1792 = vmatpush.msrb.mxu2 %v3454_v37 }
 0x37f   :  { %v1320_v19 = vpop.f32.mrf.mxu0  ;;  %v1340_v18 = vpop.f32.mrf.mxu1 }
 0x380   :  { %v1383_v24 = vadd.f32 %v1320_v19, %v3869_v23  ;;  %v1384_v26 = vadd.f32 %v1340_v18, %v3870_v27  ;;  %v3458_v19 = vld [vmem:[#allocation10 + $0x1d8] sm:$0xff]  ;;  %v3462_v18 = vld [vmem:[#allocation10 + $0x1a0] sm:$0xff]  ;;  %v3464_v23 = vld [vmem:[#allocation10 + $0x1a8] sm:$0xff] }
 0x381   :  { %1812 = vmatpush.msrb.mxu3 %v3458_v19  ;;  %1773 = vmatpush.msrb.mxu1 %v3464_v23  ;;  %v3470_v27 = vld [vmem:[#allocation10 + $0x1b8] sm:$0xff] }
 0x382   :  { %v2237_v28 = vmul.f32 -1.442695, %v1383_v24  ;;  %v2238_v61 = vmul.f32 -1.442695, %v1384_v26  ;;  %v3466_v24 = vld [vmem:[#allocation10 + $0x1b0] sm:$0xff]  ;;  %v3474_v26 = vld [vmem:[#allocation10 + $0x180] sm:$0xff] }
 0x383   :  { %1793 = vmatpush.msrb.mxu2 %v3466_v24  ;;  %1813 = vmatpush.msrb.mxu3 %v3470_v27 }
 0x384   :  { %2325 = vpow2.f32 %v2237_v28  ;;  %v3476_v28 = vld [vmem:[#allocation10 + $0x188] sm:$0xff] }
 0x385   :  { %2327 = vpow2.f32 %v2238_v61  ;;  %v3478_v61 = vld [vmem:[#allocation10 + $0x190] sm:$0xff]  ;;  %1774 = vmatpush.msrb.mxu1 %v3476_v28 }
 0x386   :  { %v1380_v46 = vpop.f32.mrf.mxu3  ;;  %v1360_v56 = vpop.f32.mrf.mxu2  ;;  %1794 = vmatpush.msrb.mxu2 %v3478_v61 }
 0x387   :  { %v1386_v1 = vadd.f32 %v1380_v46, %v3871_v0  ;;  %v1385_v13 = vadd.f32 %v1360_v56, %v3872_v10  ;;  %v3482_v46 = vld [vmem:[#allocation10 + $0x198] sm:$0xff]  ;;  %v3486_v0 = vld [vmem:[#allocation10 + $0x160] sm:$0xff] }
 0x388   :  { %1814 = vmatpush.msrb.mxu3 %v3482_v46  ;;  %v3506_v56 = vld [vmem:[#allocation10 + $0x158] sm:$0xff] }
 0x389   :  { %v2239_v4 = vmul.f32 -1.442695, %v1386_v1  ;;  %v3488_v1 = vld [vmem:[#allocation10 + $0x168] sm:$0xff]  ;;  %v3518_v10 = vld [vmem:[#allocation10 + $0x138] sm:$0xff] }
 0x38a   :  { %v2326_v43 = vpop.eup %2325  ;;  %1775 = vmatpush.msrb.mxu1 %v3488_v1 }
 0x38b   :  { %v2328_v5 = vpop.eup %2327  ;;  %v1390_v39 = vadd.f32 1.0, %v2326_v43  ;;  %2329 = vpow2.f32 %v2239_v4  ;;  %v3490_v4 = vld [vmem:[#allocation10 + $0x170] sm:$0xff]  ;;  %v3494_v43 = vld [vmem:[#allocation10 + $0x178] sm:$0xff] }
 0x38c   :  { %v1409_v38 = vadd.f32 1.0, %v2328_v5  ;;  %1795 = vmatpush.msrb.mxu2 %v3490_v4  ;;  %1815 = vmatpush.msrb.mxu3 %v3494_v43  ;;  %v3498_v5 = vld [vmem:[#allocation10 + $0x140] sm:$0xff] }
 0x38d   :  { %2331 = vrcp.f32 %v1390_v39  ;;  %v1402_v53 = vand.u32 2147483648, %v1390_v39  ;;  %v1400_v62 = vand.u32 2147483647, %v1390_v39  ;;  %vm1396_vm3 = vweird.f32 %v1390_v39 }
 0x38e   :  { %2333 = vrcp.f32 %v1409_v38  ;;  %v1421_v57 = vand.u32 2147483648, %v1409_v38  ;;  %v1419_v2 = vand.u32 2147483647, %v1409_v38  ;;  %vm1415_vm4 = vweird.f32 %v1409_v38  ;;  %1816 = vmatpush.msrb.mxu3 %v3506_v56 }
 0x38f   :  { %v1403_v7 = vor.u32 1.1754944e-38, %v1402_v53  ;;  %vm1401_vm7 = vcmp.eq.f32.partialorder %v1400_v62, 8.507059e+37  ;;  %v3538_v53 = vld [vmem:[#allocation10 + $0xf0] sm:$0xff] }
 0x390   :  { %v1422_v60 = vor.u32 1.1754944e-38, %v1421_v57  ;;  %vm1420_vm8 = vcmp.eq.f32.partialorder %v1419_v2, 8.507059e+37  ;;  %1817 = vmatpush.msrb.mxu3 %v3518_v10  ;;  %v3542_v57 = vld [vmem:[#allocation10 + $0xf8] sm:$0xff]  ;;  %v3548_v2 = vld [vmem:[#allocation10 + $0xc8] sm:$0xff] }
 0x391   :  { %v2330_v16 = vpop.eup %2329 }
 0x392   :  { %v1429_v17 = vadd.f32 1.0, %v2330_v16  ;;  %v3510_v16 = vld [vmem:[#allocation10 + $0x120] sm:$0xff] }
 0x393   :  { %v2332_v9 = vpop.eup %2331 }
 0x394   :  { %v2334_v25 = vpop.eup %2333  ;;  %v1392_v48 = vmul.f32 %v2332_v9, %v1390_v39  ;;  %2335 = vrcp.f32 %v1429_v17  ;;  %vm1397_vm1 = vweird.f32 %v2332_v9  ;;  %v1441_v33 = vand.u32 2147483648, %v1429_v17  ;;  %v3500_v39 = vld [vmem:[#allocation10 + $0x148] sm:$0xff] }
 0x395   :  { %v1411_v41 = vmul.f32 %v2334_v25, %v1409_v38  ;;  %2337 = vtanh.f32 %v1385_v13  ;;  %vm1416_vm2 = vweird.f32 %v2334_v25  ;;  %vm1398_vm5 = vmor %vm1396_vm3, %vm1397_vm1  ;;  %vm1435_vm10 = vweird.f32 %v1429_v17  ;;  %v3502_v38 = vld [vmem:[#allocation10 + $0x150] sm:$0xff]  ;;  %1776 = vmatpush.msrb.mxu1 %v3500_v39  ;;  %v3522_v13 = vld [vmem:[#allocation10 + $0x100] sm:$0xff] }
 0x396   :  { %v1393_v44 = vsub.f32 1.0, %v1392_v48  ;;  %vm1417_vm6 = vmor %vm1415_vm4, %vm1416_vm2  ;;  %v1439_v51 = vand.u32 2147483647, %v1429_v17  ;;  %v1442_v32 = vor.u32 1.1754944e-38, %v1441_v33  ;;  %1796 = vmatpush.msrb.mxu2 %v3502_v38  ;;  %v3526_v48 = vld [vmem:[#allocation10 + $0x110] sm:$0xff]  ;;  %v3582_v33 = vld [vmem:[#allocation10 + $0x60] sm:$0xff] }
 0x397   :  { %v1412_v49 = vsub.f32 1.0, %v1411_v41  ;;  %v3530_v41 = vld [vmem:[#allocation10 + $0x118] sm:$0xff]  ;;  %3875 = vst [vmem:[#allocation55_spill] sm:$0xff] %v3582_v33 }
 0x398   :  { %v1394_v58 = vmul.f32 %v2332_v9, %v1393_v44  ;;  %vm1440_vm12 = vcmp.eq.f32.partialorder %v1439_v51, 8.507059e+37  ;;  %1818 = vmatpush.msrb.mxu3 %v3530_v41  ;;  %v3534_v44 = vld [vmem:[#allocation10 + $0xe0] sm:$0xff]  ;;  %v3584_v51 = vld [vmem:[#allocation10 + $0x68] sm:$0xff] }
 0x399   :  { %v1413_v63 = vmul.f32 %v2334_v25, %v1412_v49  ;;  %v3536_v49 = vld [vmem:[#allocation10 + $0xe8] sm:$0xff]  ;;  %3876 = vst [vmem:[#allocation56_spill] sm:$0xff] %v3584_v51 }
 0x39a   :  { %v2336_v3 = vpop.eup %2335  ;;  %v1395_v6 = vadd.f32 %v2332_v9, %v1394_v58  ;;  %1819 = vmatpush.msrb.mxu3 %v3542_v57 }
 0x39b   :  { %v1414_v14 = vadd.f32 %v2334_v25, %v1413_v63  ;;  %v1431_v30 = vmul.f32 %v2336_v3, %v1429_v17  ;;  %v2338_v59 = vpop.eup %2337  ;;  %vm1436_vm9 = vweird.f32 %v2336_v3  ;;  %v3512_v17 = vld [vmem:[#allocation10 + $0x128] sm:$0xff]  ;;  %v3546_v63 = vld [vmem:[#allocation10 + $0xc0] sm:$0xff] }
 0x39c   :  { %v1399_v20 = vsel %vm1398_vm5, %v2332_v9, %v1395_v6  ;;  %vm1437_vm11 = vmor %vm1435_vm10, %vm1436_vm9  ;;  %v3514_v9 = vld [vmem:[#allocation10 + $0x130] sm:$0xff]  ;;  %1777 = vmatpush.msrb.mxu1 %v3512_v17 }
 0x39d   :  { %v1404_v29 = vsel %vm1401_vm7, %v1403_v7, %v1399_v20  ;;  %v1418_v35 = vsel %vm1417_vm6, %v2334_v25, %v1414_v14  ;;  %v1432_v52 = vsub.f32 1.0, %v1431_v30  ;;  %1797 = vmatpush.msrb.mxu2 %v3514_v9  ;;  %v3524_v25 = vld [vmem:[#allocation10 + $0x108] sm:$0xff]  ;;  %v3873_v6 = vld [vmem:[#allocation30_spill] sm:$0xff]  ;;  %v3874_v14 = vld [vmem:[#allocation31_spill] sm:$0xff] }
 0x39e   :  { %v1423_v40 = vsel %vm1420_vm8, %v1422_v60, %v1418_v35  ;;  %v1447_v45 = vmul.f32 %v2338_v59, %v1404_v29  ;;  %1778 = vmatpush.msrb.mxu1 %v3524_v25  ;;  %v3556_v60 = vld [vmem:[#allocation10 + $0xd8] sm:$0xff]  ;;  %v3560_v20 = vld [vmem:[#allocation10 + $0xa0] sm:$0xff]  ;;  %v3562_v59 = vld [vmem:[#allocation10 + $0xa8] sm:$0xff] }
 0x39f   :  { %v1446_v54 = vmul.f32 %v1423_v40, %v3427_v42  ;;  %v1433_v15 = vmul.f32 %v2336_v3, %v1432_v52  ;;  %v3438_v42 = vld [vmem:[#allocation10 + $0x1e0] sm:$0xff]  ;;  %1798 = vmatpush.msrb.mxu2 %v3526_v48  ;;  %1820 = vmatpush.msrb.mxu3 %v3556_v60  ;;  %v3564_v29 = vld [vmem:[#allocation10 + $0xb0] sm:$0xff]  ;;  %v3568_v40 = vld [vmem:[#allocation10 + $0xb8] sm:$0xff] }
 0x3a0   :  { %1751 = vmatpush.msrb.mxu0 %v3438_v42  ;;  %1779 = vmatpush.msrb.mxu1 %v3536_v49 }
 0x3a1   :  { %v3435_v22 = vadd.f32 %v1447_v45, %v1446_v54  ;;  %v1434_v55 = vadd.f32 %v2336_v3, %v1433_v15  ;;  %1799 = vmatpush.msrb.mxu2 %v3538_v53  ;;  %1821 = vmatpush.msrb.mxu3 %v3568_v40  ;;  %v3572_v45 = vld [vmem:[#allocation10 + $0x80] sm:$0xff]  ;;  %v3574_v54 = vld [vmem:[#allocation10 + $0x88] sm:$0xff]  ;;  %v3576_v15 = vld [vmem:[#allocation10 + $0x90] sm:$0xff] }
 0x3a2   :  { %1752 = vmatpush.msrb.mxu0 %v3450_v12  ;;  %1780 = vmatpush.msrb.mxu1 %v3548_v2 }
 0x3a3   :  { %2339 = vtanh.f32 %v3435_v22  ;;  %v1438_v47 = vsel %vm1437_vm11, %v2336_v3, %v1434_v55  ;;  %v3550_v3 = vld [vmem:[#allocation10 + $0xd0] sm:$0xff]  ;;  %v3580_v55 = vld [vmem:[#allocation10 + $0x98] sm:$0xff] }
 0x3a4   :  { %v1443_v8 = vsel %vm1440_vm12, %v1442_v32, %v1438_v47  ;;  %1753 = vmatpush.msrb.mxu0 %v3462_v18  ;;  %1800 = vmatpush.msrb.mxu2 %v3550_v3  ;;  %v3588_v47 = vld [vmem:[#allocation10 + $0x70] sm:$0xff]  ;;  %v3590_v32 = vld [vmem:[#allocation10 + $0x78] sm:$0xff] }
 0x3a5   :  { %1781 = vmatpush.msrb.mxu1 %v3562_v59  ;;  %1822 = vmatpush.msrb.mxu3 %v3580_v55  ;;  %3877 = vst [vmem:[#allocation57_spill] sm:$0xff] %v3588_v47 }
 0x3a6   :  { %1754 = vmatpush.msrb.mxu0 %v3474_v26  ;;  %1801 = vmatpush.msrb.mxu2 %v3564_v29  ;;  %3878 = vst [vmem:[#allocation58_spill] sm:$0xff] %v3590_v32 }
 0x3a7   :  { %1782 = vmatpush.msrb.mxu1 %v3574_v54  ;;  %1823 = vmatpush.msrb.mxu3 %v3590_v32 }
 0x3a8   :  { %1755 = vmatpush.msrb.mxu0 %v3486_v0  ;;  %1802 = vmatpush.msrb.mxu2 %v3576_v15 }
 0x3a9   :  { %v2340_v34 = vpop.eup %2339  ;;  %1783 = vmatpush.msrb.mxu1 %v3584_v51 }
 0x3aa   :  { %v1450_v31 = vmul.f32 %v2340_v34, %v1443_v8  ;;  %1756 = vmatpush.msrb.mxu0 %v3498_v5  ;;  %v3592_v34 = vld [vmem:[#allocation10 + $0x40] sm:$0xff]  ;;  %1803 = vmatpush.msrb.mxu2 %v3588_v47 }
 0x3ab   :  { %3879 = vst [vmem:[#allocation59_spill] sm:$0xff] %v3592_v34 }
 0x3ac   :  { %1454 = vst [vmem:[#allocation13 + $0x20] sm:$0xff] %v1450_v31  ;;  %1543 = vmatmul.f32.vlgmr.msra.gmra.mxu0 %v1450_v31  ;;  %1563 = vmatmul.f32.vlgmr.msra.gmra.mxu1 %v1450_v31 }
 0x3ad   :  { %1583 = vmatmul.f32.vlgmr.msra.gmra.mxu2 %v1450_v31  ;;  %1603 = vmatmul.f32.vlgmr.msra.gmra.mxu3 %v1450_v31  ;;  %v3596_v31 = vld [vmem:[#allocation10 + $0x48] sm:$0xff] }
 0x3ae   :  { %1757 = vmatpush.msrb.mxu0 %v3510_v16  ;;  %3880 = vst [vmem:[#allocation60_spill] sm:$0xff] %v3596_v31  ;;  %1784 = vmatpush.msrb.mxu1 %v3596_v31  ;;  %v3625_v31 = vld [vmem:[#allocation10 + $0x18] sm:$0xff] }
 0x3b0   :  { %1758 = vmatpush.msrb.mxu0 %v3522_v13 }
 0x3b2   :  { %1759 = vmatpush.msrb.mxu0 %v3534_v44 }
 0x3b4   :  { %1760 = vmatpush.msrb.mxu0 %v3546_v63 }
 0x3b6   :  { %1761 = vmatpush.msrb.mxu0 %v3560_v20 }
 0x3b8   :  { %1762 = vmatpush.msrb.mxu0 %v3572_v45 }
 0x3ba   :  { %1763 = vmatpush.msrb.mxu0 %v3582_v33 }
 0x3bc   :  { %1764 = vmatpush.msrb.mxu0 %v3592_v34  ;;  %v3623_v34 = vld [vmem:[#allocation10 + $0x10] sm:$0xff] }
 0x429   :  { %v1544_v58 = vpop.f32.mrf.mxu0  ;;  %v1564_v62 = vpop.f32.mrf.mxu1 }
 0x42a   :  { %v1607_v7 = vadd.f32 %v1544_v58, %v3873_v6  ;;  %v1608_v30 = vadd.f32 %v1564_v62, %v3874_v14  ;;  %v3598_v58 = vld [vmem:[#allocation10 + $0x50] sm:$0xff]  ;;  %v3600_v62 = vld [vmem:[#allocation10 + $0x58] sm:$0xff]  ;;  %v3605_v14 = vld [vmem:[#allocation10 + $0x20] sm:$0xff] }
 0x42b   :  { %v3881_v6 = vld [vmem:[#allocation33_spill] sm:$0xff]  ;;  %1804 = vmatpush.msrb.mxu2 %v3598_v58  ;;  %1824 = vmatpush.msrb.mxu3 %v3600_v62 }
 0x42c   :  { %v2240_v35 = vmul.f32 -1.442695, %v1607_v7  ;;  %v2241_v52 = vmul.f32 -1.442695, %v1608_v30  ;;  %v3607_v30 = vld [vmem:[#allocation10 + $0x28] sm:$0xff]  ;;  %1765 = vmatpush.msrb.mxu0 %v3605_v14 }
 0x42d   :  { %1785 = vmatpush.msrb.mxu1 %v3607_v30 }
 0x42e   :  { %2341 = vpow2.f32 %v2240_v35  ;;  %v3611_v35 = vld [vmem:[#allocation10 + $0x30] sm:$0xff] }
 0x42f   :  { %2343 = vpow2.f32 %v2241_v52  ;;  %v3613_v52 = vld [vmem:[#allocation10 + $0x38] sm:$0xff]  ;;  %1805 = vmatpush.msrb.mxu2 %v3611_v35 }
 0x430   :  { %v1604_v8 = vpop.f32.mrf.mxu3  ;;  %1825 = vmatpush.msrb.mxu3 %v3613_v52 }
 0x431   :  { %v1610_v7 = vadd.f32 %v1604_v8, %v3881_v6  ;;  %v3617_v8 = vld [vmem:[#allocation10] sm:$0xff]  ;;  %v3619_v6 = vld [vmem:[#allocation10 + $0x8] sm:$0xff]  ;;  %1806 = vmatpush.msrb.mxu2 %v3623_v34 }
 0x432   :  { %1766 = vmatpush.msrb.mxu0 %v3617_v8  ;;  %1786 = vmatpush.msrb.mxu1 %v3619_v6 }
 0x433   :  { %v2242_v51 = vmul.f32 -1.442695, %v1610_v7  ;;  %1826 = vmatpush.msrb.mxu3 %v3625_v31  ;;  %2015 = vmatpush.msra.mxu2 %v3442_v21 }
 0x434   :  { %v2342_v32 = vpop.eup %2341  ;;  %1975 = vmatpush.msra.mxu0 %v3438_v42  ;;  %1995 = vmatpush.msra.mxu1 %v3440_v11  ;;  %v3882_v11 = vld [vmem:[#allocation32_spill] sm:$0xff] }
 0x435   :  { %v2344_v47 = vpop.eup %2343  ;;  %v3627_v33 = vadd.f32 1.0, %v2342_v32  ;;  %2345 = vpow2.f32 %v2242_v51  ;;  %2035 = vmatpush.msra.mxu3 %v3446_v36  ;;  %v1584_v51 = vpop.f32.mrf.mxu2  ;;  %2016 = vmatpush.msra.mxu2 %v3454_v37 }
 0x436   :  { %v3631_v7 = vadd.f32 1.0, %v2344_v47  ;;  %1976 = vmatpush.msra.mxu0 %v3450_v12  ;;  %1996 = vmatpush.msra.mxu1 %v3452_v50  ;;  %v1609_v21 = vadd.f32 %v1584_v51, %v3882_v11 }
 0x437   :  { %2347 = vrcp.f32 %v3627_v33  ;;  %2036 = vmatpush.msra.mxu3 %v3458_v19  ;;  %2017 = vmatpush.msra.mxu2 %v3466_v24  ;;  %vm1620_vm15 = vweird.f32 %v3627_v33 }
 0x438   :  { %2349 = vrcp.f32 %v3631_v7  ;;  %1977 = vmatpush.msra.mxu0 %v3462_v18  ;;  %1997 = vmatpush.msra.mxu1 %v3464_v23  ;;  %v1626_v18 = vand.u32 2147483648, %v3627_v33  ;;  %v1645_v23 = vand.u32 2147483648, %v3631_v7  ;;  %vm1639_vm0 = vweird.f32 %v3631_v7 }
 0x439   :  { %2037 = vmatpush.msra.mxu3 %v3470_v27  ;;  %2018 = vmatpush.msra.mxu2 %v3478_v61  ;;  %v1624_v27 = vand.u32 2147483647, %v3627_v33 }
 0x43a   :  { %1978 = vmatpush.msra.mxu0 %v3474_v26  ;;  %1998 = vmatpush.msra.mxu1 %v3476_v28  ;;  %v1643_v28 = vand.u32 2147483647, %v3631_v7 }
 0x43b   :  { %v2346_v47 = vpop.eup %2345  ;;  %2038 = vmatpush.msra.mxu3 %v3482_v46  ;;  %2019 = vmatpush.msra.mxu2 %v3490_v4  ;;  %vm1625_vm3 = vcmp.eq.f32.partialorder %v1624_v27, 8.507059e+37 }
 0x43c   :  { %v3647_v32 = vadd.f32 1.0, %v2346_v47  ;;  %1979 = vmatpush.msra.mxu0 %v3486_v0  ;;  %1999 = vmatpush.msra.mxu1 %v3488_v1  ;;  %v1627_v0 = vor.u32 1.1754944e-38, %v1626_v18  ;;  %vm1644_vm4 = vcmp.eq.f32.partialorder %v1643_v28, 8.507059e+37 }
 0x43d   :  { %v2348_v42 = vpop.eup %2347  ;;  %2039 = vmatpush.msra.mxu3 %v3494_v43  ;;  %2020 = vmatpush.msra.mxu2 %v3502_v38  ;;  %v1646_v43 = vor.u32 1.1754944e-38, %v1645_v23 }
 0x43e   :  { %v2350_v36 = vpop.eup %2349  ;;  %v1616_v12 = vmul.f32 %v2348_v42, %v3627_v33  ;;  %2351 = vrcp.f32 %v3647_v32  ;;  %vm1621_vm13 = vweird.f32 %v2348_v42  ;;  %1980 = vmatpush.msra.mxu0 %v3498_v5  ;;  %2000 = vmatpush.msra.mxu1 %v3500_v39  ;;  %vm1659_vm6 = vweird.f32 %v3647_v32 }
 0x43f   :  { %v1635_v50 = vmul.f32 %v2350_v36, %v3631_v7  ;;  %2353 = vtanh.f32 %v1609_v21  ;;  %vm1640_vm14 = vweird.f32 %v2350_v36  ;;  %2040 = vmatpush.msra.mxu3 %v3506_v56  ;;  %vm1622_vm1 = vmor %vm1620_vm15, %vm1621_vm13  ;;  %2021 = vmatpush.msra.mxu2 %v3514_v9 }
 0x440   :  { %v1617_v37 = vsub.f32 1.0, %v1616_v12  ;;  %1981 = vmatpush.msra.mxu0 %v3510_v16  ;;  %2001 = vmatpush.msra.mxu1 %v3512_v17  ;;  %vm1641_vm2 = vmor %vm1639_vm0, %vm1640_vm14 }
 0x441   :  { %v1636_v19 = vsub.f32 1.0, %v1635_v50  ;;  %2041 = vmatpush.msra.mxu3 %v3518_v10  ;;  %2022 = vmatpush.msra.mxu2 %v3526_v48  ;;  %v1665_v48 = vand.u32 2147483648, %v3647_v32 }
 0x442   :  { %v1618_v24 = vmul.f32 %v2348_v42, %v1617_v37  ;;  %1982 = vmatpush.msra.mxu0 %v3522_v13  ;;  %2002 = vmatpush.msra.mxu1 %v3524_v25 }
 0x443   :  { %v1637_v26 = vmul.f32 %v2350_v36, %v1636_v19  ;;  %2042 = vmatpush.msra.mxu3 %v3530_v41  ;;  %2023 = vmatpush.msra.mxu2 %v3538_v53  ;;  %v1663_v41 = vand.u32 2147483647, %v3647_v32  ;;  %v3884_v53 = vld [vmem:[#allocation56_spill] sm:$0xff] }
 0x444   :  { %v3673_v61 = vpop.eup %2351  ;;  %v1619_v46 = vadd.f32 %v2348_v42, %v1618_v24  ;;  %1983 = vmatpush.msra.mxu0 %v3534_v44  ;;  %2003 = vmatpush.msra.mxu1 %v3536_v49  ;;  %v3883_v49 = vld [vmem:[#allocation55_spill] sm:$0xff] }
 0x445   :  { %v1638_v1 = vadd.f32 %v2350_v36, %v1637_v26  ;;  %v1655_v4 = vmul.f32 %v3673_v61, %v3647_v32  ;;  %v2354_v39 = vpop.eup %2353  ;;  %2043 = vmatpush.msra.mxu3 %v3542_v57  ;;  %2024 = vmatpush.msra.mxu2 %v3550_v3  ;;  %vm1660_vm5 = vweird.f32 %v3673_v61  ;;  %v1666_v57 = vor.u32 1.1754944e-38, %v1665_v48  ;;  %v3887_v3 = vld [vmem:[#allocation59_spill] sm:$0xff] }
 0x446   :  { %v1623_v5 = vsel %vm1622_vm1, %v2348_v42, %v1619_v46  ;;  %1984 = vmatpush.msra.mxu0 %v3546_v63  ;;  %2004 = vmatpush.msra.mxu1 %v3548_v2  ;;  %vm1661_vm7 = vmor %vm1659_vm6, %vm1660_vm5  ;;  %v3885_v63 = vld [vmem:[#allocation57_spill] sm:$0xff]  ;;  %v3886_v2 = vld [vmem:[#allocation58_spill] sm:$0xff]  ;;  %vm1664_vm8 = vcmp.eq.f32.partialorder %v1663_v41, 8.507059e+37 }
 0x447   :  { %v1628_v38 = vsel %vm1625_vm3, %v1627_v0, %v1623_v5  ;;  %v1642_v56 = vsel %vm1641_vm2, %v2350_v36, %v1638_v1  ;;  %v1656_v16 = vsub.f32 1.0, %v1655_v4  ;;  %2044 = vmatpush.msra.mxu3 %v3556_v60  ;;  %2025 = vmatpush.msra.mxu2 %v3564_v29  ;;  %v3888_v60 = vld [vmem:[#allocation60_spill] sm:$0xff] }
 0x448   :  { %v1647_v17 = vsel %vm1644_vm4, %v1646_v43, %v1642_v56  ;;  %v1671_v9 = vmul.f32 %v2354_v39, %v1628_v38  ;;  %1985 = vmatpush.msra.mxu0 %v3560_v20  ;;  %2005 = vmatpush.msra.mxu1 %v3562_v59  ;;  %v3892_v42 = vld [vmem:[#allocation36_spill] sm:$0xff] }
 0x449   :  { %v1670_v10 = vmul.f32 %v1647_v17, %v3435_v22  ;;  %v1657_v13 = vmul.f32 %v3673_v61, %v1656_v16  ;;  %2045 = vmatpush.msra.mxu3 %v3568_v40  ;;  %2026 = vmatpush.msra.mxu2 %v3576_v15 }
 0x44a   :  { %1986 = vmatpush.msra.mxu0 %v3572_v45  ;;  %2006 = vmatpush.msra.mxu1 %v3574_v54  ;;  %v3889_v54 = vld [vmem:[#allocation34_spill] sm:$0xff] }
 0x44b   :  { %v3697_v25 = vadd.f32 %v1671_v9, %v1670_v10  ;;  %v1658_v22 = vadd.f32 %v3673_v61, %v1657_v13  ;;  %2046 = vmatpush.msra.mxu3 %v3580_v55  ;;  %2027 = vmatpush.msra.mxu2 %v3885_v63  ;;  %v3890_v55 = vld [vmem:[#allocation35_spill] sm:$0xff] }
 0x44c   :  { %1987 = vmatpush.msra.mxu0 %v3883_v49  ;;  %2007 = vmatpush.msra.mxu1 %v3884_v53 }
 0x44d   :  { %2355 = vtanh.f32 %v3697_v25  ;;  %v1662_v44 = vsel %vm1661_vm7, %v3673_v61, %v1658_v22  ;;  %2047 = vmatpush.msra.mxu3 %v3886_v2  ;;  %2028 = vmatpush.msra.mxu2 %v3598_v58 }
 0x44e   :  { %1988 = vmatpush.msra.mxu0 %v3887_v3  ;;  %2008 = vmatpush.msra.mxu1 %v3888_v60  ;;  %v1667_v59 = vsel %vm1664_vm8, %v1666_v57, %v1662_v44  ;;  %v3893_v3 = vld [vmem:[#allocation38_spill] sm:$0xff] }
 0x44f   :  { %2048 = vmatpush.msra.mxu3 %v3600_v62  ;;  %2029 = vmatpush.msra.mxu2 %v3611_v35 }
 0x450   :  { %1989 = vmatpush.msra.mxu0 %v3605_v14  ;;  %2009 = vmatpush.msra.mxu1 %v3607_v30  ;;  %v3891_v30 = vld [vmem:[#allocation37_spill] sm:$0xff] }
 0x451   :  { %2049 = vmatpush.msra.mxu3 %v3613_v52  ;;  %2030 = vmatpush.msra.mxu2 %v3623_v34 }
 0x452   :  { %1990 = vmatpush.msra.mxu0 %v3617_v8  ;;  %2010 = vmatpush.msra.mxu1 %v3619_v6 }
 0x453   :  { %v2356_v20 = vpop.eup %2355  ;;  %2050 = vmatpush.msra.mxu3 %v3625_v31 }
 0x454   :  { %v1674_v29 = vmul.f32 %v2356_v20, %v1667_v59  ;;  %v3894_v20 = vld [vmem:[#allocation39_spill] sm:$0xff] }
 0x456   :  { %1678 = vst [vmem:[#allocation13 + $0x28] sm:$0xff] %v1674_v29  ;;  %1767 = vmatmul.f32.vlgmr.msrb.gmra.mxu0 %v1674_v29  ;;  %1787 = vmatmul.f32.vlgmr.msrb.gmra.mxu1 %v1674_v29 }
 0x457   :  { %1807 = vmatmul.f32.vlgmr.msrb.gmra.mxu2 %v1674_v29  ;;  %1827 = vmatmul.f32.vlgmr.msrb.gmra.mxu3 %v1674_v29 }
 0x4d3   :  { %v1768_v40 = vpop.f32.mrf.mxu0  ;;  %v1788_v45 = vpop.f32.mrf.mxu1 }
 0x4d4   :  { %v1831_v15 = vadd.f32 %v1768_v40, %v3889_v54  ;;  %v1832_v33 = vadd.f32 %v1788_v45, %v3890_v55  ;;  %v3895_v54 = vld [vmem:[#allocation41_spill] sm:$0xff] }
 0x4d6   :  { %v2243_v58 = vmul.f32 -1.442695, %v1831_v15  ;;  %v2244_v62 = vmul.f32 -1.442695, %v1832_v33 }
 0x4d8   :  { %2357 = vpow2.f32 %v2243_v58 }
 0x4d9   :  { %2359 = vpow2.f32 %v2244_v62 }
 0x4da   :  { %v1828_v14 = vpop.f32.mrf.mxu3  ;;  %v1808_v31 = vpop.f32.mrf.mxu2 }
 0x4db   :  { %v1834_v35 = vadd.f32 %v1828_v14, %v3891_v30  ;;  %v1833_v11 = vadd.f32 %v1808_v31, %v3892_v42 }
 0x4dd   :  { %v2245_v52 = vmul.f32 -1.442695, %v1834_v35 }
 0x4de   :  { %v2358_v8 = vpop.eup %2357 }
 0x4df   :  { %v2360_v6 = vpop.eup %2359  ;;  %v1838_v7 = vadd.f32 1.0, %v2358_v8  ;;  %2361 = vpow2.f32 %v2245_v52 }
 0x4e0   :  { %v1857_v34 = vadd.f32 1.0, %v2360_v6  ;;  %v3896_v6 = vld [vmem:[#allocation40_spill] sm:$0xff] }
 0x4e1   :  { %2363 = vrcp.f32 %v1838_v7  ;;  %v1850_v19 = vand.u32 2147483648, %v1838_v7  ;;  %v1848_v24 = vand.u32 2147483647, %v1838_v7  ;;  %vm1844_vm11 = vweird.f32 %v1838_v7 }
 0x4e2   :  { %2365 = vrcp.f32 %v1857_v34  ;;  %v1869_v18 = vand.u32 2147483648, %v1857_v34  ;;  %v1867_v26 = vand.u32 2147483647, %v1857_v34  ;;  %vm1863_vm12 = vweird.f32 %v1857_v34 }
 0x4e3   :  { %v1851_v46 = vor.u32 1.1754944e-38, %v1850_v19  ;;  %vm1849_vm15 = vcmp.eq.f32.partialorder %v1848_v24, 8.507059e+37 }
 0x4e4   :  { %v1870_v4 = vor.u32 1.1754944e-38, %v1869_v18  ;;  %vm1868_vm0 = vcmp.eq.f32.partialorder %v1867_v26, 8.507059e+37 }
 0x4e5   :  { %v2362_v51 = vpop.eup %2361 }
 0x4e6   :  { %v1877_v47 = vadd.f32 1.0, %v2362_v51 }
 0x4e7   :  { %v2364_v32 = vpop.eup %2363 }
 0x4e8   :  { %v2366_v21 = vpop.eup %2365  ;;  %v1840_v36 = vmul.f32 %v2364_v32, %v1838_v7  ;;  %2367 = vrcp.f32 %v1877_v47  ;;  %vm1845_vm9 = vweird.f32 %v2364_v32  ;;  %v1889_v48 = vand.u32 2147483648, %v1877_v47 }
 0x4e9   :  { %v1859_v12 = vmul.f32 %v2366_v21, %v1857_v34  ;;  %2369 = vtanh.f32 %v1833_v11  ;;  %vm1864_vm10 = vweird.f32 %v2366_v21  ;;  %vm1846_vm13 = vmor %vm1844_vm11, %vm1845_vm9  ;;  %vm1883_vm2 = vweird.f32 %v1877_v47 }
 0x4ea   :  { %v1841_v50 = vsub.f32 1.0, %v1840_v36  ;;  %vm1865_vm14 = vmor %vm1863_vm12, %vm1864_vm10  ;;  %v1887_v41 = vand.u32 2147483647, %v1877_v47  ;;  %v1890_v49 = vor.u32 1.1754944e-38, %v1889_v48 }
 0x4eb   :  { %v1860_v37 = vsub.f32 1.0, %v1859_v12 }
 0x4ec   :  { %v1842_v23 = vmul.f32 %v2364_v32, %v1841_v50  ;;  %vm1888_vm4 = vcmp.eq.f32.partialorder %v1887_v41, 8.507059e+37 }
 0x4ed   :  { %v1861_v27 = vmul.f32 %v2366_v21, %v1860_v37 }
 0x4ee   :  { %v2368_v28 = vpop.eup %2367  ;;  %v1843_v61 = vadd.f32 %v2364_v32, %v1842_v23 }
 0x4ef   :  { %v1862_v0 = vadd.f32 %v2366_v21, %v1861_v27  ;;  %v1879_v1 = vmul.f32 %v2368_v28, %v1877_v47  ;;  %v2370_v5 = vpop.eup %2369  ;;  %vm1884_vm1 = vweird.f32 %v2368_v28 }
 0x4f0   :  { %v1847_v43 = vsel %vm1846_vm13, %v2364_v32, %v1843_v61  ;;  %vm1885_vm3 = vmor %vm1883_vm2, %vm1884_vm1 }
 0x4f1   :  { %v1852_v39 = vsel %vm1849_vm15, %v1851_v46, %v1847_v43  ;;  %v1866_v38 = vsel %vm1865_vm14, %v2366_v21, %v1862_v0  ;;  %v1880_v56 = vsub.f32 1.0, %v1879_v1 }
 0x4f2   :  { %v1871_v16 = vsel %vm1868_vm0, %v1870_v4, %v1866_v38  ;;  %v1895_v17 = vmul.f32 %v2370_v5, %v1852_v39 }
 0x4f3   :  { %v1894_v9 = vmul.f32 %v1871_v16, %v3697_v25  ;;  %v1881_v10 = vmul.f32 %v2368_v28, %v1880_v56 }
 0x4f5   :  { %v3737_v13 = vadd.f32 %v1895_v17, %v1894_v9  ;;  %v1882_v22 = vadd.f32 %v2368_v28, %v1881_v10 }
 0x4f7   :  { %2371 = vtanh.f32 %v3737_v13  ;;  %v1886_v44 = vsel %vm1885_vm3, %v2368_v28, %v1882_v22 }
 0x4f8   :  { %v1891_v57 = vsel %vm1888_vm4, %v1890_v49, %v1886_v44 }
 0x4fd   :  { %v2372_v53 = vpop.eup %2371 }
 0x4fe   :  { %v1898_v63 = vmul.f32 %v2372_v53, %v1891_v57 }
 0x500   :  { %1902 = vst [vmem:[#allocation13 + $0x30] sm:$0xff] %v1898_v63  ;;  %1991 = vmatmul.f32.vlgmr.msra.gmra.mxu0 %v1898_v63  ;;  %2011 = vmatmul.f32.vlgmr.msra.gmra.mxu1 %v1898_v63 }
 0x501   :  { %2031 = vmatmul.f32.vlgmr.msra.gmra.mxu2 %v1898_v63  ;;  %2051 = vmatmul.f32.vlgmr.msra.gmra.mxu3 %v1898_v63 }
 0x57d   :  { %v1992_v25 = vpop.f32.mrf.mxu0  ;;  %v2012_v2 = vpop.f32.mrf.mxu1 }
 0x57e   :  { %v2055_v60 = vadd.f32 %v1992_v25, %v3893_v3  ;;  %v2056_v59 = vadd.f32 %v2012_v2, %v3894_v20 }
 0x580   :  { %v2246_v29 = vmul.f32 -1.442695, %v2055_v60  ;;  %v2247_v40 = vmul.f32 -1.442695, %v2056_v59 }
 0x582   :  { %2373 = vpow2.f32 %v2246_v29 }
 0x583   :  { %2375 = vpow2.f32 %v2247_v40 }
 0x584   :  { %v2052_v45 = vpop.f32.mrf.mxu3  ;;  %v2032_v30 = vpop.f32.mrf.mxu2 }
 0x585   :  { %v2058_v15 = vadd.f32 %v2052_v45, %v3895_v54  ;;  %v2057_v7 = vadd.f32 %v2032_v30, %v3896_v6 }
 0x587   :  { %v2248_v55 = vmul.f32 -1.442695, %v2058_v15 }
 0x588   :  { %v2374_v33 = vpop.eup %2373 }
 0x589   :  { %v2376_v58 = vpop.eup %2375  ;;  %v2062_v62 = vadd.f32 1.0, %v2374_v33  ;;  %2377 = vpow2.f32 %v2248_v55 }
 0x58a   :  { %v2081_v14 = vadd.f32 1.0, %v2376_v58 }
 0x58b   :  { %2379 = vrcp.f32 %v2062_v62  ;;  %v2074_v42 = vand.u32 2147483648, %v2062_v62  ;;  %v2072_v36 = vand.u32 2147483647, %v2062_v62  ;;  %vm2068_vm7 = vweird.f32 %v2062_v62 }
 0x58c   :  { %2381 = vrcp.f32 %v2081_v14  ;;  %v2093_v11 = vand.u32 2147483648, %v2081_v14  ;;  %v2091_v50 = vand.u32 2147483647, %v2081_v14  ;;  %vm2087_vm8 = vweird.f32 %v2081_v14 }
 0x58d   :  { %v2075_v18 = vor.u32 1.1754944e-38, %v2074_v42  ;;  %vm2073_vm11 = vcmp.eq.f32.partialorder %v2072_v36, 8.507059e+37 }
 0x58e   :  { %v2094_v27 = vor.u32 1.1754944e-38, %v2093_v11  ;;  %vm2092_vm12 = vcmp.eq.f32.partialorder %v2091_v50, 8.507059e+37 }
 0x58f   :  { %v2378_v35 = vpop.eup %2377 }
 0x590   :  { %v2101_v52 = vadd.f32 1.0, %v2378_v35 }
 0x591   :  { %v2380_v8 = vpop.eup %2379 }
 0x592   :  { %v2382_v34 = vpop.eup %2381  ;;  %v2064_v31 = vmul.f32 %v2380_v8, %v2062_v62  ;;  %2383 = vrcp.f32 %v2101_v52  ;;  %vm2069_vm5 = vweird.f32 %v2380_v8  ;;  %v2113_v56 = vand.u32 2147483648, %v2101_v52 }
 0x593   :  { %v2083_v51 = vmul.f32 %v2382_v34, %v2081_v14  ;;  %2385 = vtanh.f32 %v2057_v7  ;;  %vm2088_vm6 = vweird.f32 %v2382_v34  ;;  %vm2070_vm9 = vmor %vm2068_vm7, %vm2069_vm5  ;;  %vm2107_vm14 = vweird.f32 %v2101_v52 }
 0x594   :  { %v2065_v47 = vsub.f32 1.0, %v2064_v31  ;;  %vm2089_vm10 = vmor %vm2087_vm8, %vm2088_vm6  ;;  %v2111_v16 = vand.u32 2147483647, %v2101_v52  ;;  %v2114_v9 = vor.u32 1.1754944e-38, %v2113_v56 }
 0x595   :  { %v2084_v32 = vsub.f32 1.0, %v2083_v51 }
 0x596   :  { %v2066_v21 = vmul.f32 %v2380_v8, %v2065_v47  ;;  %vm2112_vm0 = vcmp.eq.f32.partialorder %v2111_v16, 8.507059e+37 }
 0x597   :  { %v2085_v12 = vmul.f32 %v2382_v34, %v2084_v32 }
 0x598   :  { %v2384_v37 = vpop.eup %2383  ;;  %v2067_v19 = vadd.f32 %v2380_v8, %v2066_v21 }
 0x599   :  { %v2086_v23 = vadd.f32 %v2382_v34, %v2085_v12  ;;  %v2103_v24 = vmul.f32 %v2384_v37, %v2101_v52  ;;  %v2386_v28 = vpop.eup %2385  ;;  %vm2108_vm13 = vweird.f32 %v2384_v37 }
 0x59a   :  { %v2071_v26 = vsel %vm2070_vm9, %v2380_v8, %v2067_v19  ;;  %vm2109_vm15 = vmor %vm2107_vm14, %vm2108_vm13 }
 0x59b   :  { %v2076_v61 = vsel %vm2073_vm11, %v2075_v18, %v2071_v26  ;;  %v2090_v46 = vsel %vm2089_vm10, %v2382_v34, %v2086_v23  ;;  %v2104_v0 = vsub.f32 1.0, %v2103_v24 }
 0x59c   :  { %v2095_v1 = vsel %vm2092_vm12, %v2094_v27, %v2090_v46  ;;  %v2119_v4 = vmul.f32 %v2386_v28, %v2076_v61 }
 0x59d   :  { %v2118_v43 = vmul.f32 %v2095_v1, %v3737_v13  ;;  %v2105_v5 = vmul.f32 %v2384_v37, %v2104_v0 }
 0x59f   :  { %v2120_v39 = vadd.f32 %v2119_v4, %v2118_v43  ;;  %v2106_v38 = vadd.f32 %v2384_v37, %v2105_v5 }
 0x5a1   :  { %2387 = vtanh.f32 %v2120_v39  ;;  %2133 = vst [vmem:[#allocation16] sm:$0xff] %v2120_v39  ;;  %v2110_v17 = vsel %vm2109_vm15, %v2384_v37, %v2106_v38 }
 0x5a2   :  { %v2115_v13 = vsel %vm2112_vm0, %v2114_v9, %v2110_v17 }
 0x5a7   :  { %v2388_v10 = vpop.eup %2387 }
 0x5a8   :  { %v2122_v22 = vmul.f32 %v2388_v10, %v2115_v13 }
 0x5aa   :  { %2126 = vst [vmem:[#allocation13 + $0x38] sm:$0xff] %v2122_v22 }
 0x5ab   :  { %2131 = vst [vmem:[#allocation14] sm:$0xff] %v2122_v22  ;;  %2146 = dma.vmem_to_hbm [thread:$0]  %s2139_s3, 1024, %s2141_s21, [#allocation7], %s2571_s9, %s2571_s9, %s2572_s10  }
 0x5ac   :  { %2157 = dma.vmem_to_hbm [thread:$0]  %s2153_s23, 128, %s2155_s26, [#allocation15]  }
 0x5ad   :  { %2168 = dma.vmem_to_hbm [thread:$0]  %s2164_s28, 128, %s2166_s7, [#allocation15]  }
 0x5ae   :  { %2563 = dma.done.wait [#allocation7], 1024  }
 0x5af   :  { %2564 = vsyncadd [#allocation7], 4294966272 }
 0x5b0   :  { %2565 = dma.done.wait [#allocation15], 256  }
 0x5b1   :  { %2566 = vsyncadd [#allocation15], 4294967040 }
 0x5b2   :  { %2181 = vsyncpa [#allocation6], 1 }
 0x5b3   :  { %2182 = vsyncpa [#allocation9], 1 }
 0x5b4   :  { %2183 = vsyncpa [#allocation12], 1 }
 0x5b5   :  { %2184 = vsyncpa [#allocation7], 1 }
 0x5b6   :  { %2185 = vsyncpa [#allocation15], 1 }

</bundles_post_ra>
